<compile_context>
chip_gen: v7x
topology: tpu7x:2x2x1
jax: 0.10.0
libtpu: 0.0.40
codegen_flags: <defaults>
</compile_context>

<pallas_src>
import math
import numpy as np
import jax
import jax.numpy as jnp
from jax.experimental import pallas as pl
from jax.experimental.pallas import tpu as pltpu

# ----------------------------- sizes (small, synthetic) ----------------------
N = 128            # number of points (grid_size)
C = 64             # Sonata embed_channels (enc_channels[-1]) -- small synthetic value
HIDDEN = 64        # config.hidden_size
NUM_HEADS = 8      # fixed by the module
DH = HIDDEN // NUM_HEADS
NUM_BANDS = 10
SAMPLE_RATE = 60
COORD_DIM = 3
ENC_DIM = COORD_DIM * (1 + 2 * NUM_BANDS)   # 63
ENC_PAD = 64                                 # lane-aligned padded encoding width
LN_EPS = 1e-5

# Fourier band frequencies (match torch.linspace(1, sample_rate/2, num_bands) * pi)
_SAMPLES = (np.linspace(1.0, SAMPLE_RATE / 2.0, NUM_BANDS).astype(np.float64) * np.pi)


def _fourier_matrices():
    """Precompute (3, 64) coord->arg matrix and (1, 64) phase vector.

    Encoding lane layout per point (63 lanes + 1 zero pad):
      [coord(3), b0_sin(3), b0_cos(3), b1_sin(3), b1_cos(3), ..., b9_sin(3), b9_cos(3)]
    Identity lanes have fac=1 and are selected with a lane mask inside the
    kernel; cos lanes get phase=pi/2 so only sin() is evaluated.
    """
    m = np.zeros((COORD_DIM, ENC_PAD), np.float32)
    phase = np.zeros((1, ENC_PAD), np.float32)
    for c in range(COORD_DIM):
        m[c, c] = 1.0                                      # identity lanes
    for b in range(NUM_BANDS):
        base = COORD_DIM + 2 * COORD_DIM * b
        for c in range(COORD_DIM):
            m[c, base + c] = _SAMPLES[b]                   # sin lane
            m[c, base + COORD_DIM + c] = _SAMPLES[b]       # cos lane
            phase[0, base + COORD_DIM + c] = np.pi / 2.0   # cos = sin(x + pi/2)
    return m, phase


_M_NP, _PHASE_NP = _fourier_matrices()


# ----------------------------- fused kernel ----------------------------------
def _encoder_kernel(feat_ref, coord_ref, me_ref, m_ref, ph_ref,
                    wf_ref, we_ref, bp_ref,
                    wq_ref, wk_ref, wv_ref, bq_ref, bk_ref, bv_ref,
                    wo_ref, bo_ref, o_ref):
    n = feat_ref.shape[0]

    # ---- fourier encoding (one transcendental per lane) ----
    cs = coord_ref[...] - me_ref[...]                                   # (N, 3)
    arg = jnp.dot(cs, m_ref[...], preferred_element_type=jnp.float32)  # (N, 64)
    lane = jax.lax.broadcasted_iota(jnp.int32, arg.shape, 1)
    enc = jnp.where(lane < COORD_DIM, arg, jnp.sin(arg + ph_ref[...]))  # (N, 64)

    # ---- point_proj: y = feat @ Wf + enc @ We + b ----
    y = (jnp.dot(feat_ref[...], wf_ref[...], preferred_element_type=jnp.float32)
         + jnp.dot(enc, we_ref[...], preferred_element_type=jnp.float32)
         + bp_ref[...])                                                 # (N, H)

    # ---- 8-head self-attention (q-scale already folded into wq/bq) ----
    attn = None
    for h in range(NUM_HEADS):                      # static unroll over heads
        qh = jnp.dot(y, wq_ref[h], preferred_element_type=jnp.float32) + bq_ref[h]  # (N, DH)
        kh = jnp.dot(y, wk_ref[h], preferred_element_type=jnp.float32) + bk_ref[h]
        vh = jnp.dot(y, wv_ref[h], preferred_element_type=jnp.float32) + bv_ref[h]
        s = jax.lax.dot_general(qh, kh, (((1,), (1,)), ((), ())),
                                preferred_element_type=jnp.float32)                 # (N, N)
        mx = jnp.max(s, axis=-1, keepdims=True)
        p = jnp.exp(s - mx)
        p = p * pl.reciprocal(jnp.sum(p, axis=-1, keepdims=True), approx=True)
        ctx = jnp.dot(p, vh, preferred_element_type=jnp.float32)                    # (N, DH)
        part = jnp.dot(ctx, wo_ref[h], preferred_element_type=jnp.float32)          # (N, H)
        attn = part if attn is None else attn + part
    attn = attn + bo_ref[...]

    # ---- residual + fresh LayerNorm (weight=1, bias=0) ----
    z = attn + y
    mu = jnp.mean(z, axis=-1, keepdims=True)
    d = z - mu
    var = jnp.mean(d * d, axis=-1, keepdims=True)
    o_ref[...] = d * jax.lax.rsqrt(var + LN_EPS)


def _full_spec(shape):
    return pl.BlockSpec(shape, lambda i, _n=len(shape): (0,) * _n)


# ----------------------------- parameters ------------------------------------
def init_params(key):
    """Raw params in PyTorch layout (as the original module stores them)."""
    ks = jax.random.split(key, 6)
    fused = C + ENC_DIM
    return dict(
        # nn.Linear(embed_channels + 63, hidden): weight (H, fused), bias (H,)
        w_proj=jax.random.normal(ks[0], (HIDDEN, fused), jnp.float32) / math.sqrt(fused),
        b_proj=jax.random.normal(ks[1], (HIDDEN,), jnp.float32) * 0.01,
        # MultiheadAttention: in_proj (3H, H) + (3H,), out_proj (H, H) + (H,)
        in_proj_w=jax.random.normal(ks[2], (3 * HIDDEN, HIDDEN), jnp.float32) / math.sqrt(HIDDEN),
        in_proj_b=jax.random.normal(ks[3], (3 * HIDDEN,), jnp.float32) * 0.01,
        out_proj_w=jax.random.normal(ks[4], (HIDDEN, HIDDEN), jnp.float32) / math.sqrt(HIDDEN),
        out_proj_b=jax.random.normal(ks[5], (HIDDEN,), jnp.float32) * 0.01,
    )


def prepare_params(params):
    """One-time weight prep: transposes, per-head slicing, scale folding, padding."""
    scale = 1.0 / math.sqrt(DH)

    w_proj = params["w_proj"]                               # (H, C+63)
    w_feat = jnp.transpose(w_proj[:, :C])                   # (C, H)
    w_enc = jnp.zeros((ENC_PAD, HIDDEN), jnp.float32)
    w_enc = w_enc.at[:ENC_DIM, :].set(jnp.transpose(w_proj[:, C:]))   # (64, H), zero pad row
    b_proj = params["b_proj"].reshape(1, HIDDEN)

    in_w, in_b = params["in_proj_w"], params["in_proj_b"]
    wq = jnp.transpose(in_w[:HIDDEN]) * scale               # fold 1/sqrt(DH) into q proj
    wk = jnp.transpose(in_w[HIDDEN:2 * HIDDEN])
    wv = jnp.transpose(in_w[2 * HIDDEN:])
    bq = in_b[:HIDDEN] * scale
    bk = in_b[HIDDEN:2 * HIDDEN]
    bv = in_b[2 * HIDDEN:]

    def per_head_w(w):                                      # (H, H) -> (NUM_HEADS, H, DH)
        return w.reshape(HIDDEN, NUM_HEADS, DH).transpose(1, 0, 2)

    def per_head_b(b):                                      # (H,) -> (NUM_HEADS, 1, DH)
        return b.reshape(NUM_HEADS, 1, DH)

    wo = jnp.transpose(params["out_proj_w"])                # (H, H)
    wo_h = wo.reshape(NUM_HEADS, DH, HIDDEN)                # (NUM_HEADS, DH, H)
    bo = params["out_proj_b"].reshape(1, HIDDEN)

    return dict(
        M=jnp.asarray(_M_NP), phase=jnp.asarray(_PHASE_NP),
        w_feat=w_feat, w_enc=w_enc, b_proj=b_proj,
        wq=per_head_w(wq), wk=per_head_w(wk), wv=per_head_w(wv),
        bq=per_head_b(bq), bk=per_head_b(bk), bv=per_head_b(bv),
        wo=wo_h, bo=bo,
    )


# ----------------------------- forward ----------------------------------------
def pointcloud_encoder_forward(prep, point_feat, coord, min_extent):
    n = point_feat.shape[0]
    me = min_extent.reshape(1, COORD_DIM)
    return pl.pallas_call(
        _encoder_kernel,
        out_shape=jax.ShapeDtypeStruct((n, HIDDEN), jnp.float32),
        grid=(1,),
        in_specs=[
            _full_spec((n, C)),                    # feat
            _full_spec((n, COORD_DIM)),            # coord
            _full_spec((1, COORD_DIM)),            # min_extent
            _full_spec((COORD_DIM, ENC_PAD)),      # fourier matrix M
            _full_spec((1, ENC_PAD)),              # phase
            _full_spec((C, HIDDEN)),               # w_feat
            _full_spec((ENC_PAD, HIDDEN)),         # w_enc (padded)
            _full_spec((1, HIDDEN)),               # b_proj
            _full_spec((NUM_HEADS, HIDDEN, DH)),   # wq
            _full_spec((NUM_HEADS, HIDDEN, DH)),   # wk
            _full_spec((NUM_HEADS, HIDDEN, DH)),   # wv
            _full_spec((NUM_HEADS, 1, DH)),        # bq
            _full_spec((NUM_HEADS, 1, DH)),        # bk
            _full_spec((NUM_HEADS, 1, DH)),        # bv
            _full_spec((NUM_HEADS, DH, HIDDEN)),   # wo
            _full_spec((1, HIDDEN)),               # bo
        ],
        out_specs=_full_spec((n, HIDDEN)),
    )(point_feat, coord, me,
      prep["M"], prep["phase"],
      prep["w_feat"], prep["w_enc"], prep["b_proj"],
      prep["wq"], prep["wk"], prep["wv"], prep["bq"], prep["bk"], prep["bv"],
      prep["wo"], prep["bo"])


# ----------------------------- pure-JAX reference ------------------------------
def reference_forward(params, point_feat, coord, min_extent):
    coord = coord - min_extent[None, :]
    samples = jnp.asarray(_SAMPLES.astype(np.float32))
    args = samples[None, :, None] * coord[:, None, :]                       # (N, 10, 3)
    enc = jnp.stack([jnp.sin(args), jnp.cos(args)], axis=2)                 # (N, 10, 2, 3)
    enc = enc.reshape(coord.shape[0], 2 * NUM_BANDS, COORD_DIM)
    enc = jnp.concatenate([coord[:, None, :], enc], axis=1).reshape(coord.shape[0], ENC_DIM)
    fused = jnp.concatenate([point_feat, enc], axis=-1)
    y = fused @ params["w_proj"].T + params["b_proj"]

    in_w, in_b = params["in_proj_w"], params["in_proj_b"]
    q = y @ in_w[:HIDDEN].T + in_b[:HIDDEN]
    k = y @ in_w[HIDDEN:2 * HIDDEN].T + in_b[HIDDEN:2 * HIDDEN]
    v = y @ in_w[2 * HIDDEN:].T + in_b[2 * HIDDEN:]
    n = y.shape[0]
    qh = q.reshape(n, NUM_HEADS, DH).transpose(1, 0, 2)
    kh = k.reshape(n, NUM_HEADS, DH).transpose(1, 0, 2)
    vh = v.reshape(n, NUM_HEADS, DH).transpose(1, 0, 2)
    s = jnp.einsum("hqd,hkd->hqk", qh, kh) / math.sqrt(DH)
    p = jax.nn.softmax(s, axis=-1)
    ctx = jnp.einsum("hqk,hkd->hqd", p, vh).transpose(1, 0, 2).reshape(n, HIDDEN)
    attn = ctx @ params["out_proj_w"].T + params["out_proj_b"]
    z = attn + y
    mu = z.mean(-1, keepdims=True)
    var = ((z - mu) ** 2).mean(-1, keepdims=True)
    return (z - mu) / jnp.sqrt(var + LN_EPS)


# ----------------------------- main -------------------------------------------
if __name__ == "__main__":
    key = jax.random.PRNGKey(0)
    k_feat, k_coord, k_min, k_param = jax.random.split(key, 4)
    point_feat = jax.random.normal(k_feat, (N, C), jnp.float32)
    coord = jax.random.uniform(k_coord, (N, COORD_DIM), jnp.float32, 0.0, 1.0)
    min_extent = jax.random.uniform(k_min, (COORD_DIM,), jnp.float32, -0.1, 0.0)

    params = init_params(k_param)
    prep = prepare_params(params)        # one-time weight prep (not per call)

    out = jax.block_until_ready(pointcloud_encoder_forward(prep, point_feat, coord, min_extent))
    ref = jax.block_until_ready(reference_forward(params, point_feat, coord, min_extent))

    assert out.shape == (N, HIDDEN)
    np.testing.assert_allclose(np.asarray(out), np.asarray(ref), rtol=5e-3, atol=5e-3)
    print("KERNEL_OK")
</pallas_src>

<mosaic_0001>
module attributes {stable_mosaic.version = 11 : i64} {
  func.func @_encoder_kernel(%arg0: i32, %arg1: memref<128x64xf32, #tpu.memory_space<vmem>>, %arg2: memref<128x3xf32, #tpu.memory_space<vmem>>, %arg3: memref<1x3xf32, #tpu.memory_space<vmem>>, %arg4: memref<3x64xf32, #tpu.memory_space<vmem>>, %arg5: memref<1x64xf32, #tpu.memory_space<vmem>>, %arg6: memref<64x64xf32, #tpu.memory_space<vmem>>, %arg7: memref<64x64xf32, #tpu.memory_space<vmem>>, %arg8: memref<1x64xf32, #tpu.memory_space<vmem>>, %arg9: memref<8x64x8xf32, #tpu.memory_space<vmem>>, %arg10: memref<8x64x8xf32, #tpu.memory_space<vmem>>, %arg11: memref<8x64x8xf32, #tpu.memory_space<vmem>>, %arg12: memref<8x1x8xf32, #tpu.memory_space<vmem>>, %arg13: memref<8x1x8xf32, #tpu.memory_space<vmem>>, %arg14: memref<8x1x8xf32, #tpu.memory_space<vmem>>, %arg15: memref<8x8x64xf32, #tpu.memory_space<vmem>>, %arg16: memref<1x64xf32, #tpu.memory_space<vmem>>, %arg17: memref<128x64xf32, #tpu.memory_space<vmem>>) attributes {dimension_semantics = [#tpu.dimension_semantics<arbitrary>], iteration_bounds = array<i64: 1>, scalar_prefetch = 0 : i64, scratch_operands = 0 : i64, tpu.core_type = #tpu.core_type<tc>, window_params = [{pipeline_mode = #tpu.pipeline_mode<synchronous>, transform_indices = @transform_0, window_bounds = array<i64: 128, 64>}, {pipeline_mode = #tpu.pipeline_mode<synchronous>, transform_indices = @transform_1, window_bounds = array<i64: 128, 3>}, {pipeline_mode = #tpu.pipeline_mode<synchronous>, transform_indices = @transform_2, window_bounds = array<i64: 1, 3>}, {pipeline_mode = #tpu.pipeline_mode<synchronous>, transform_indices = @transform_3, window_bounds = array<i64: 3, 64>}, {pipeline_mode = #tpu.pipeline_mode<synchronous>, transform_indices = @transform_4, window_bounds = array<i64: 1, 64>}, {pipeline_mode = #tpu.pipeline_mode<synchronous>, transform_indices = @transform_5, window_bounds = array<i64: 64, 64>}, {pipeline_mode = #tpu.pipeline_mode<synchronous>, transform_indices = @transform_6, window_bounds = array<i64: 64, 64>}, {pipeline_mode = #tpu.pipeline_mode<synchronous>, transform_indices = @transform_7, window_bounds = array<i64: 1, 64>}, {pipeline_mode = #tpu.pipeline_mode<synchronous>, transform_indices = @transform_8, window_bounds = array<i64: 8, 64, 8>}, {pipeline_mode = #tpu.pipeline_mode<synchronous>, transform_indices = @transform_9, window_bounds = array<i64: 8, 64, 8>}, {pipeline_mode = #tpu.pipeline_mode<synchronous>, transform_indices = @transform_10, window_bounds = array<i64: 8, 64, 8>}, {pipeline_mode = #tpu.pipeline_mode<synchronous>, transform_indices = @transform_11, window_bounds = array<i64: 8, 1, 8>}, {pipeline_mode = #tpu.pipeline_mode<synchronous>, transform_indices = @transform_12, window_bounds = array<i64: 8, 1, 8>}, {pipeline_mode = #tpu.pipeline_mode<synchronous>, transform_indices = @transform_13, window_bounds = array<i64: 8, 1, 8>}, {pipeline_mode = #tpu.pipeline_mode<synchronous>, transform_indices = @transform_14, window_bounds = array<i64: 8, 8, 64>}, {pipeline_mode = #tpu.pipeline_mode<synchronous>, transform_indices = @transform_15, window_bounds = array<i64: 1, 64>}, {pipeline_mode = #tpu.pipeline_mode<synchronous>, transform_indices = @transform_16, window_bounds = array<i64: 128, 64>}]} {
    %c0 = arith.constant 0 : index
    %c0_0 = arith.constant 0 : index
    %0 = vector.load %arg2[%c0, %c0_0] : memref<128x3xf32, #tpu.memory_space<vmem>>, vector<128x3xf32>
    %c0_1 = arith.constant 0 : index
    %c0_2 = arith.constant 0 : index
    %1 = vector.load %arg3[%c0_1, %c0_2] : memref<1x3xf32, #tpu.memory_space<vmem>>, vector<1x3xf32>
    %2 = vector.broadcast %1 : vector<1x3xf32> to vector<128x3xf32>
    %3 = arith.subf %0, %2 : vector<128x3xf32>
    %c0_3 = arith.constant 0 : index
    %c0_4 = arith.constant 0 : index
    %4 = vector.load %arg4[%c0_3, %c0_4] : memref<3x64xf32, #tpu.memory_space<vmem>>, vector<3x64xf32>
    %cst = arith.constant dense<0.000000e+00> : vector<128x64xf32>
    %5 = tpu.matmul %3, %4, %cst {dimension_numbers = #tpu.dot_dimension_numbers<[1], [0], [0], [1], [0, 0, 1, 1], [], []>} : vector<128x3xf32>, vector<3x64xf32>, vector<128x64xf32> -> vector<128x64xf32>
    %6 = tpu.iota {dimensions = array<i32: 1>} : vector<128x64xi32>
    %c3_i32 = arith.constant 3 : i32
    %7 = vector.broadcast %c3_i32 : i32 to vector<128x64xi32>
    %8 = arith.cmpi slt, %6, %7 : vector<128x64xi32>
    %c0_5 = arith.constant 0 : index
    %c0_6 = arith.constant 0 : index
    %9 = vector.load %arg5[%c0_5, %c0_6] : memref<1x64xf32, #tpu.memory_space<vmem>>, vector<1x64xf32>
    %10 = vector.broadcast %9 : vector<1x64xf32> to vector<128x64xf32>
    %11 = arith.addf %5, %10 : vector<128x64xf32>
    %12 = math.sin %11 : vector<128x64xf32>
    %13 = arith.select %8, %5, %12 : vector<128x64xi1>, vector<128x64xf32>
    %c0_7 = arith.constant 0 : index
    %c0_8 = arith.constant 0 : index
    %14 = vector.load %arg1[%c0_7, %c0_8] : memref<128x64xf32, #tpu.memory_space<vmem>>, vector<128x64xf32>
    %c0_9 = arith.constant 0 : index
    %c0_10 = arith.constant 0 : index
    %15 = vector.load %arg6[%c0_9, %c0_10] : memref<64x64xf32, #tpu.memory_space<vmem>>, vector<64x64xf32>
    %cst_11 = arith.constant dense<0.000000e+00> : vector<128x64xf32>
    %16 = tpu.matmul %14, %15, %cst_11 {dimension_numbers = #tpu.dot_dimension_numbers<[1], [0], [0], [1], [0, 0, 1, 1], [], []>} : vector<128x64xf32>, vector<64x64xf32>, vector<128x64xf32> -> vector<128x64xf32>
    %c0_12 = arith.constant 0 : index
    %c0_13 = arith.constant 0 : index
    %17 = vector.load %arg7[%c0_12, %c0_13] : memref<64x64xf32, #tpu.memory_space<vmem>>, vector<64x64xf32>
    %cst_14 = arith.constant dense<0.000000e+00> : vector<128x64xf32>
    %18 = tpu.matmul %13, %17, %cst_14 {dimension_numbers = #tpu.dot_dimension_numbers<[1], [0], [0], [1], [0, 0, 1, 1], [], []>} : vector<128x64xf32>, vector<64x64xf32>, vector<128x64xf32> -> vector<128x64xf32>
    %19 = arith.addf %16, %18 : vector<128x64xf32>
    %c0_15 = arith.constant 0 : index
    %c0_16 = arith.constant 0 : index
    %20 = vector.load %arg8[%c0_15, %c0_16] : memref<1x64xf32, #tpu.memory_space<vmem>>, vector<1x64xf32>
    %21 = vector.broadcast %20 : vector<1x64xf32> to vector<128x64xf32>
    %22 = arith.addf %19, %21 : vector<128x64xf32>
    %c0_17 = arith.constant 0 : index
    %c0_18 = arith.constant 0 : index
    %c0_19 = arith.constant 0 : index
    %23 = vector.load %arg9[%c0_17, %c0_18, %c0_19] : memref<8x64x8xf32, #tpu.memory_space<vmem>>, vector<1x64x8xf32>
    %24 = vector.shape_cast %23 : vector<1x64x8xf32> to vector<64x8xf32>
    %cst_20 = arith.constant dense<0.000000e+00> : vector<128x8xf32>
    %25 = tpu.matmul %22, %24, %cst_20 {dimension_numbers = #tpu.dot_dimension_numbers<[1], [0], [0], [1], [0, 0, 1, 1], [], []>} : vector<128x64xf32>, vector<64x8xf32>, vector<128x8xf32> -> vector<128x8xf32>
    %c0_21 = arith.constant 0 : index
    %c0_22 = arith.constant 0 : index
    %c0_23 = arith.constant 0 : index
    %26 = vector.load %arg12[%c0_21, %c0_22, %c0_23] : memref<8x1x8xf32, #tpu.memory_space<vmem>>, vector<1x1x8xf32>
    %27 = vector.shape_cast %26 : vector<1x1x8xf32> to vector<1x8xf32>
    %28 = vector.broadcast %27 : vector<1x8xf32> to vector<128x8xf32>
    %29 = arith.addf %25, %28 : vector<128x8xf32>
    %c0_24 = arith.constant 0 : index
    %c0_25 = arith.constant 0 : index
    %c0_26 = arith.constant 0 : index
    %30 = vector.load %arg10[%c0_24, %c0_25, %c0_26] : memref<8x64x8xf32, #tpu.memory_space<vmem>>, vector<1x64x8xf32>
    %31 = vector.shape_cast %30 : vector<1x64x8xf32> to vector<64x8xf32>
    %cst_27 = arith.constant dense<0.000000e+00> : vector<128x8xf32>
    %32 = tpu.matmul %22, %31, %cst_27 {dimension_numbers = #tpu.dot_dimension_numbers<[1], [0], [0], [1], [0, 0, 1, 1], [], []>} : vector<128x64xf32>, vector<64x8xf32>, vector<128x8xf32> -> vector<128x8xf32>
    %c0_28 = arith.constant 0 : index
    %c0_29 = arith.constant 0 : index
    %c0_30 = arith.constant 0 : index
    %33 = vector.load %arg13[%c0_28, %c0_29, %c0_30] : memref<8x1x8xf32, #tpu.memory_space<vmem>>, vector<1x1x8xf32>
    %34 = vector.shape_cast %33 : vector<1x1x8xf32> to vector<1x8xf32>
    %35 = vector.broadcast %34 : vector<1x8xf32> to vector<128x8xf32>
    %36 = arith.addf %32, %35 : vector<128x8xf32>
    %c0_31 = arith.constant 0 : index
    %c0_32 = arith.constant 0 : index
    %c0_33 = arith.constant 0 : index
    %37 = vector.load %arg11[%c0_31, %c0_32, %c0_33] : memref<8x64x8xf32, #tpu.memory_space<vmem>>, vector<1x64x8xf32>
    %38 = vector.shape_cast %37 : vector<1x64x8xf32> to vector<64x8xf32>
    %cst_34 = arith.constant dense<0.000000e+00> : vector<128x8xf32>
    %39 = tpu.matmul %22, %38, %cst_34 {dimension_numbers = #tpu.dot_dimension_numbers<[1], [0], [0], [1], [0, 0, 1, 1], [], []>} : vector<128x64xf32>, vector<64x8xf32>, vector<128x8xf32> -> vector<128x8xf32>
    %c0_35 = arith.constant 0 : index
    %c0_36 = arith.constant 0 : index
    %c0_37 = arith.constant 0 : index
    %40 = vector.load %arg14[%c0_35, %c0_36, %c0_37] : memref<8x1x8xf32, #tpu.memory_space<vmem>>, vector<1x1x8xf32>
    %41 = vector.shape_cast %40 : vector<1x1x8xf32> to vector<1x8xf32>
    %42 = vector.broadcast %41 : vector<1x8xf32> to vector<128x8xf32>
    %43 = arith.addf %39, %42 : vector<128x8xf32>
    %cst_38 = arith.constant dense<0.000000e+00> : vector<128x128xf32>
    %44 = tpu.matmul %29, %36, %cst_38 {dimension_numbers = #tpu.dot_dimension_numbers<[1], [1], [0], [0], [0, 0, 1, 0], [], []>} : vector<128x8xf32>, vector<128x8xf32>, vector<128x128xf32> -> vector<128x128xf32>
    %cst_39 = arith.constant dense<0xFF800000> : vector<128xf32>
    %45 = vector.multi_reduction <maximumf>, %44, %cst_39 [1] : vector<128x128xf32> to vector<128xf32>
    %46 = vector.shape_cast %45 : vector<128xf32> to vector<128x1xf32>
    %47 = vector.broadcast %46 : vector<128x1xf32> to vector<128x128xf32>
    %48 = arith.subf %44, %47 : vector<128x128xf32>
    %49 = math.exp %48 : vector<128x128xf32>
    %cst_40 = arith.constant dense<0.000000e+00> : vector<128xf32>
    %50 = vector.multi_reduction <add>, %49, %cst_40 [1] : vector<128x128xf32> to vector<128xf32>
    %51 = vector.shape_cast %50 : vector<128xf32> to vector<128x1xf32>
    %52 = tpu.reciprocal %51 {approx = true} : vector<128x1xf32> -> vector<128x1xf32>
    %53 = vector.broadcast %52 : vector<128x1xf32> to vector<128x128xf32>
    %54 = arith.mulf %49, %53 : vector<128x128xf32>
    %cst_41 = arith.constant dense<0.000000e+00> : vector<128x8xf32>
    %55 = tpu.matmul %54, %43, %cst_41 {dimension_numbers = #tpu.dot_dimension_numbers<[1], [0], [0], [1], [0, 0, 1, 1], [], []>} : vector<128x128xf32>, vector<128x8xf32>, vector<128x8xf32> -> vector<128x8xf32>
    %c0_42 = arith.constant 0 : index
    %c0_43 = arith.constant 0 : index
    %c0_44 = arith.constant 0 : index
    %56 = vector.load %arg15[%c0_42, %c0_43, %c0_44] : memref<8x8x64xf32, #tpu.memory_space<vmem>>, vector<1x8x64xf32>
    %57 = vector.shape_cast %56 : vector<1x8x64xf32> to vector<8x64xf32>
    %cst_45 = arith.constant dense<0.000000e+00> : vector<128x64xf32>
    %58 = tpu.matmul %55, %57, %cst_45 {dimension_numbers = #tpu.dot_dimension_numbers<[1], [0], [0], [1], [0, 0, 1, 1], [], []>} : vector<128x8xf32>, vector<8x64xf32>, vector<128x64xf32> -> vector<128x64xf32>
    %c1 = arith.constant 1 : index
    %c0_46 = arith.constant 0 : index
    %c0_47 = arith.constant 0 : index
    %59 = vector.load %arg9[%c1, %c0_46, %c0_47] : memref<8x64x8xf32, #tpu.memory_space<vmem>>, vector<1x64x8xf32>
    %60 = vector.shape_cast %59 : vector<1x64x8xf32> to vector<64x8xf32>
    %cst_48 = arith.constant dense<0.000000e+00> : vector<128x8xf32>
    %61 = tpu.matmul %22, %60, %cst_48 {dimension_numbers = #tpu.dot_dimension_numbers<[1], [0], [0], [1], [0, 0, 1, 1], [], []>} : vector<128x64xf32>, vector<64x8xf32>, vector<128x8xf32> -> vector<128x8xf32>
    %c1_49 = arith.constant 1 : index
    %c0_50 = arith.constant 0 : index
    %c0_51 = arith.constant 0 : index
    %62 = vector.load %arg12[%c1_49, %c0_50, %c0_51] : memref<8x1x8xf32, #tpu.memory_space<vmem>>, vector<1x1x8xf32>
    %63 = vector.shape_cast %62 : vector<1x1x8xf32> to vector<1x8xf32>
    %64 = vector.broadcast %63 : vector<1x8xf32> to vector<128x8xf32>
    %65 = arith.addf %61, %64 : vector<128x8xf32>
    %c1_52 = arith.constant 1 : index
    %c0_53 = arith.constant 0 : index
    %c0_54 = arith.constant 0 : index
    %66 = vector.load %arg10[%c1_52, %c0_53, %c0_54] : memref<8x64x8xf32, #tpu.memory_space<vmem>>, vector<1x64x8xf32>
    %67 = vector.shape_cast %66 : vector<1x64x8xf32> to vector<64x8xf32>
    %cst_55 = arith.constant dense<0.000000e+00> : vector<128x8xf32>
    %68 = tpu.matmul %22, %67, %cst_55 {dimension_numbers = #tpu.dot_dimension_numbers<[1], [0], [0], [1], [0, 0, 1, 1], [], []>} : vector<128x64xf32>, vector<64x8xf32>, vector<128x8xf32> -> vector<128x8xf32>
    %c1_56 = arith.constant 1 : index
    %c0_57 = arith.constant 0 : index
    %c0_58 = arith.constant 0 : index
    %69 = vector.load %arg13[%c1_56, %c0_57, %c0_58] : memref<8x1x8xf32, #tpu.memory_space<vmem>>, vector<1x1x8xf32>
    %70 = vector.shape_cast %69 : vector<1x1x8xf32> to vector<1x8xf32>
    %71 = vector.broadcast %70 : vector<1x8xf32> to vector<128x8xf32>
    %72 = arith.addf %68, %71 : vector<128x8xf32>
    %c1_59 = arith.constant 1 : index
    %c0_60 = arith.constant 0 : index
    %c0_61 = arith.constant 0 : index
    %73 = vector.load %arg11[%c1_59, %c0_60, %c0_61] : memref<8x64x8xf32, #tpu.memory_space<vmem>>, vector<1x64x8xf32>
    %74 = vector.shape_cast %73 : vector<1x64x8xf32> to vector<64x8xf32>
    %cst_62 = arith.constant dense<0.000000e+00> : vector<128x8xf32>
    %75 = tpu.matmul %22, %74, %cst_62 {dimension_numbers = #tpu.dot_dimension_numbers<[1], [0], [0], [1], [0, 0, 1, 1], [], []>} : vector<128x64xf32>, vector<64x8xf32>, vector<128x8xf32> -> vector<128x8xf32>
    %c1_63 = arith.constant 1 : index
    %c0_64 = arith.constant 0 : index
    %c0_65 = arith.constant 0 : index
    %76 = vector.load %arg14[%c1_63, %c0_64, %c0_65] : memref<8x1x8xf32, #tpu.memory_space<vmem>>, vector<1x1x8xf32>
    %77 = vector.shape_cast %76 : vector<1x1x8xf32> to vector<1x8xf32>
    %78 = vector.broadcast %77 : vector<1x8xf32> to vector<128x8xf32>
    %79 = arith.addf %75, %78 : vector<128x8xf32>
    %cst_66 = arith.constant dense<0.000000e+00> : vector<128x128xf32>
    %80 = tpu.matmul %65, %72, %cst_66 {dimension_numbers = #tpu.dot_dimension_numbers<[1], [1], [0], [0], [0, 0, 1, 0], [], []>} : vector<128x8xf32>, vector<128x8xf32>, vector<128x128xf32> -> vector<128x128xf32>
    %cst_67 = arith.constant dense<0xFF800000> : vector<128xf32>
    %81 = vector.multi_reduction <maximumf>, %80, %cst_67 [1] : vector<128x128xf32> to vector<128xf32>
    %82 = vector.shape_cast %81 : vector<128xf32> to vector<128x1xf32>
    %83 = vector.broadcast %82 : vector<128x1xf32> to vector<128x128xf32>
    %84 = arith.subf %80, %83 : vector<128x128xf32>
    %85 = math.exp %84 : vector<128x128xf32>
    %cst_68 = arith.constant dense<0.000000e+00> : vector<128xf32>
    %86 = vector.multi_reduction <add>, %85, %cst_68 [1] : vector<128x128xf32> to vector<128xf32>
    %87 = vector.shape_cast %86 : vector<128xf32> to vector<128x1xf32>
    %88 = tpu.reciprocal %87 {approx = true} : vector<128x1xf32> -> vector<128x1xf32>
    %89 = vector.broadcast %88 : vector<128x1xf32> to vector<128x128xf32>
    %90 = arith.mulf %85, %89 : vector<128x128xf32>
    %cst_69 = arith.constant dense<0.000000e+00> : vector<128x8xf32>
    %91 = tpu.matmul %90, %79, %cst_69 {dimension_numbers = #tpu.dot_dimension_numbers<[1], [0], [0], [1], [0, 0, 1, 1], [], []>} : vector<128x128xf32>, vector<128x8xf32>, vector<128x8xf32> -> vector<128x8xf32>
    %c1_70 = arith.constant 1 : index
    %c0_71 = arith.constant 0 : index
    %c0_72 = arith.constant 0 : index
    %92 = vector.load %arg15[%c1_70, %c0_71, %c0_72] : memref<8x8x64xf32, #tpu.memory_space<vmem>>, vector<1x8x64xf32>
    %93 = vector.shape_cast %92 : vector<1x8x64xf32> to vector<8x64xf32>
    %cst_73 = arith.constant dense<0.000000e+00> : vector<128x64xf32>
    %94 = tpu.matmul %91, %93, %cst_73 {dimension_numbers = #tpu.dot_dimension_numbers<[1], [0], [0], [1], [0, 0, 1, 1], [], []>} : vector<128x8xf32>, vector<8x64xf32>, vector<128x64xf32> -> vector<128x64xf32>
    %95 = arith.addf %58, %94 : vector<128x64xf32>
    %c2 = arith.constant 2 : index
    %c0_74 = arith.constant 0 : index
    %c0_75 = arith.constant 0 : index
    %96 = vector.load %arg9[%c2, %c0_74, %c0_75] : memref<8x64x8xf32, #tpu.memory_space<vmem>>, vector<1x64x8xf32>
    %97 = vector.shape_cast %96 : vector<1x64x8xf32> to vector<64x8xf32>
    %cst_76 = arith.constant dense<0.000000e+00> : vector<128x8xf32>
    %98 = tpu.matmul %22, %97, %cst_76 {dimension_numbers = #tpu.dot_dimension_numbers<[1], [0], [0], [1], [0, 0, 1, 1], [], []>} : vector<128x64xf32>, vector<64x8xf32>, vector<128x8xf32> -> vector<128x8xf32>
    %c2_77 = arith.constant 2 : index
    %c0_78 = arith.constant 0 : index
    %c0_79 = arith.constant 0 : index
    %99 = vector.load %arg12[%c2_77, %c0_78, %c0_79] : memref<8x1x8xf32, #tpu.memory_space<vmem>>, vector<1x1x8xf32>
    %100 = vector.shape_cast %99 : vector<1x1x8xf32> to vector<1x8xf32>
    %101 = vector.broadcast %100 : vector<1x8xf32> to vector<128x8xf32>
    %102 = arith.addf %98, %101 : vector<128x8xf32>
    %c2_80 = arith.constant 2 : index
    %c0_81 = arith.constant 0 : index
    %c0_82 = arith.constant 0 : index
    %103 = vector.load %arg10[%c2_80, %c0_81, %c0_82] : memref<8x64x8xf32, #tpu.memory_space<vmem>>, vector<1x64x8xf32>
    %104 = vector.shape_cast %103 : vector<1x64x8xf32> to vector<64x8xf32>
    %cst_83 = arith.constant dense<0.000000e+00> : vector<128x8xf32>
    %105 = tpu.matmul %22, %104, %cst_83 {dimension_numbers = #tpu.dot_dimension_numbers<[1], [0], [0], [1], [0, 0, 1, 1], [], []>} : vector<128x64xf32>, vector<64x8xf32>, vector<128x8xf32> -> vector<128x8xf32>
    %c2_84 = arith.constant 2 : index
    %c0_85 = arith.constant 0 : index
    %c0_86 = arith.constant 0 : index
    %106 = vector.load %arg13[%c2_84, %c0_85, %c0_86] : memref<8x1x8xf32, #tpu.memory_space<vmem>>, vector<1x1x8xf32>
    %107 = vector.shape_cast %106 : vector<1x1x8xf32> to vector<1x8xf32>
    %108 = vector.broadcast %107 : vector<1x8xf32> to vector<128x8xf32>
    %109 = arith.addf %105, %108 : vector<128x8xf32>
    %c2_87 = arith.constant 2 : index
    %c0_88 = arith.constant 0 : index
    %c0_89 = arith.constant 0 : index
    %110 = vector.load %arg11[%c2_87, %c0_88, %c0_89] : memref<8x64x8xf32, #tpu.memory_space<vmem>>, vector<1x64x8xf32>
    %111 = vector.shape_cast %110 : vector<1x64x8xf32> to vector<64x8xf32>
    %cst_90 = arith.constant dense<0.000000e+00> : vector<128x8xf32>
    %112 = tpu.matmul %22, %111, %cst_90 {dimension_numbers = #tpu.dot_dimension_numbers<[1], [0], [0], [1], [0, 0, 1, 1], [], []>} : vector<128x64xf32>, vector<64x8xf32>, vector<128x8xf32> -> vector<128x8xf32>
    %c2_91 = arith.constant 2 : index
    %c0_92 = arith.constant 0 : index
    %c0_93 = arith.constant 0 : index
    %113 = vector.load %arg14[%c2_91, %c0_92, %c0_93] : memref<8x1x8xf32, #tpu.memory_space<vmem>>, vector<1x1x8xf32>
    %114 = vector.shape_cast %113 : vector<1x1x8xf32> to vector<1x8xf32>
    %115 = vector.broadcast %114 : vector<1x8xf32> to vector<128x8xf32>
    %116 = arith.addf %112, %115 : vector<128x8xf32>
    %cst_94 = arith.constant dense<0.000000e+00> : vector<128x128xf32>
    %117 = tpu.matmul %102, %109, %cst_94 {dimension_numbers = #tpu.dot_dimension_numbers<[1], [1], [0], [0], [0, 0, 1, 0], [], []>} : vector<128x8xf32>, vector<128x8xf32>, vector<128x128xf32> -> vector<128x128xf32>
    %cst_95 = arith.constant dense<0xFF800000> : vector<128xf32>
    %118 = vector.multi_reduction <maximumf>, %117, %cst_95 [1] : vector<128x128xf32> to vector<128xf32>
    %119 = vector.shape_cast %118 : vector<128xf32> to vector<128x1xf32>
    %120 = vector.broadcast %119 : vector<128x1xf32> to vector<128x128xf32>
    %121 = arith.subf %117, %120 : vector<128x128xf32>
    %122 = math.exp %121 : vector<128x128xf32>
    %cst_96 = arith.constant dense<0.000000e+00> : vector<128xf32>
    %123 = vector.multi_reduction <add>, %122, %cst_96 [1] : vector<128x128xf32> to vector<128xf32>
    %124 = vector.shape_cast %123 : vector<128xf32> to vector<128x1xf32>
    %125 = tpu.reciprocal %124 {approx = true} : vector<128x1xf32> -> vector<128x1xf32>
    %126 = vector.broadcast %125 : vector<128x1xf32> to vector<128x128xf32>
    %127 = arith.mulf %122, %126 : vector<128x128xf32>
    %cst_97 = arith.constant dense<0.000000e+00> : vector<128x8xf32>
    %128 = tpu.matmul %127, %116, %cst_97 {dimension_numbers = #tpu.dot_dimension_numbers<[1], [0], [0], [1], [0, 0, 1, 1], [], []>} : vector<128x128xf32>, vector<128x8xf32>, vector<128x8xf32> -> vector<128x8xf32>
    %c2_98 = arith.constant 2 : index
    %c0_99 = arith.constant 0 : index
    %c0_100 = arith.constant 0 : index
    %129 = vector.load %arg15[%c2_98, %c0_99, %c0_100] : memref<8x8x64xf32, #tpu.memory_space<vmem>>, vector<1x8x64xf32>
    %130 = vector.shape_cast %129 : vector<1x8x64xf32> to vector<8x64xf32>
    %cst_101 = arith.constant dense<0.000000e+00> : vector<128x64xf32>
    %131 = tpu.matmul %128, %130, %cst_101 {dimension_numbers = #tpu.dot_dimension_numbers<[1], [0], [0], [1], [0, 0, 1, 1], [], []>} : vector<128x8xf32>, vector<8x64xf32>, vector<128x64xf32> -> vector<128x64xf32>
    %132 = arith.addf %95, %131 : vector<128x64xf32>
    %c3 = arith.constant 3 : index
    %c0_102 = arith.constant 0 : index
    %c0_103 = arith.constant 0 : index
    %133 = vector.load %arg9[%c3, %c0_102, %c0_103] : memref<8x64x8xf32, #tpu.memory_space<vmem>>, vector<1x64x8xf32>
    %134 = vector.shape_cast %133 : vector<1x64x8xf32> to vector<64x8xf32>
    %cst_104 = arith.constant dense<0.000000e+00> : vector<128x8xf32>
    %135 = tpu.matmul %22, %134, %cst_104 {dimension_numbers = #tpu.dot_dimension_numbers<[1], [0], [0], [1], [0, 0, 1, 1], [], []>} : vector<128x64xf32>, vector<64x8xf32>, vector<128x8xf32> -> vector<128x8xf32>
    %c3_105 = arith.constant 3 : index
    %c0_106 = arith.constant 0 : index
    %c0_107 = arith.constant 0 : index
    %136 = vector.load %arg12[%c3_105, %c0_106, %c0_107] : memref<8x1x8xf32, #tpu.memory_space<vmem>>, vector<1x1x8xf32>
    %137 = vector.shape_cast %136 : vector<1x1x8xf32> to vector<1x8xf32>
    %138 = vector.broadcast %137 : vector<1x8xf32> to vector<128x8xf32>
    %139 = arith.addf %135, %138 : vector<128x8xf32>
    %c3_108 = arith.constant 3 : index
    %c0_109 = arith.constant 0 : index
    %c0_110 = arith.constant 0 : index
    %140 = vector.load %arg10[%c3_108, %c0_109, %c0_110] : memref<8x64x8xf32, #tpu.memory_space<vmem>>, vector<1x64x8xf32>
    %141 = vector.shape_cast %140 : vector<1x64x8xf32> to vector<64x8xf32>
    %cst_111 = arith.constant dense<0.000000e+00> : vector<128x8xf32>
    %142 = tpu.matmul %22, %141, %cst_111 {dimension_numbers = #tpu.dot_dimension_numbers<[1], [0], [0], [1], [0, 0, 1, 1], [], []>} : vector<128x64xf32>, vector<64x8xf32>, vector<128x8xf32> -> vector<128x8xf32>
    %c3_112 = arith.constant 3 : index
    %c0_113 = arith.constant 0 : index
    %c0_114 = arith.constant 0 : index
    %143 = vector.load %arg13[%c3_112, %c0_113, %c0_114] : memref<8x1x8xf32, #tpu.memory_space<vmem>>, vector<1x1x8xf32>
    %144 = vector.shape_cast %143 : vector<1x1x8xf32> to vector<1x8xf32>
    %145 = vector.broadcast %144 : vector<1x8xf32> to vector<128x8xf32>
    %146 = arith.addf %142, %145 : vector<128x8xf32>
    %c3_115 = arith.constant 3 : index
    %c0_116 = arith.constant 0 : index
    %c0_117 = arith.constant 0 : index
    %147 = vector.load %arg11[%c3_115, %c0_116, %c0_117] : memref<8x64x8xf32, #tpu.memory_space<vmem>>, vector<1x64x8xf32>
    %148 = vector.shape_cast %147 : vector<1x64x8xf32> to vector<64x8xf32>
    %cst_118 = arith.constant dense<0.000000e+00> : vector<128x8xf32>
    %149 = tpu.matmul %22, %148, %cst_118 {dimension_numbers = #tpu.dot_dimension_numbers<[1], [0], [0], [1], [0, 0, 1, 1], [], []>} : vector<128x64xf32>, vector<64x8xf32>, vector<128x8xf32> -> vector<128x8xf32>
    %c3_119 = arith.constant 3 : index
    %c0_120 = arith.constant 0 : index
    %c0_121 = arith.constant 0 : index
    %150 = vector.load %arg14[%c3_119, %c0_120, %c0_121] : memref<8x1x8xf32, #tpu.memory_space<vmem>>, vector<1x1x8xf32>
    %151 = vector.shape_cast %150 : vector<1x1x8xf32> to vector<1x8xf32>
    %152 = vector.broadcast %151 : vector<1x8xf32> to vector<128x8xf32>
    %153 = arith.addf %149, %152 : vector<128x8xf32>
    %cst_122 = arith.constant dense<0.000000e+00> : vector<128x128xf32>
    %154 = tpu.matmul %139, %146, %cst_122 {dimension_numbers = #tpu.dot_dimension_numbers<[1], [1], [0], [0], [0, 0, 1, 0], [], []>} : vector<128x8xf32>, vector<128x8xf32>, vector<128x128xf32> -> vector<128x128xf32>
    %cst_123 = arith.constant dense<0xFF800000> : vector<128xf32>
    %155 = vector.multi_reduction <maximumf>, %154, %cst_123 [1] : vector<128x128xf32> to vector<128xf32>
    %156 = vector.shape_cast %155 : vector<128xf32> to vector<128x1xf32>
    %157 = vector.broadcast %156 : vector<128x1xf32> to vector<128x128xf32>
    %158 = arith.subf %154, %157 : vector<128x128xf32>
    %159 = math.exp %158 : vector<128x128xf32>
    %cst_124 = arith.constant dense<0.000000e+00> : vector<128xf32>
    %160 = vector.multi_reduction <add>, %159, %cst_124 [1] : vector<128x128xf32> to vector<128xf32>
    %161 = vector.shape_cast %160 : vector<128xf32> to vector<128x1xf32>
    %162 = tpu.reciprocal %161 {approx = true} : vector<128x1xf32> -> vector<128x1xf32>
    %163 = vector.broadcast %162 : vector<128x1xf32> to vector<128x128xf32>
    %164 = arith.mulf %159, %163 : vector<128x128xf32>
    %cst_125 = arith.constant dense<0.000000e+00> : vector<128x8xf32>
    %165 = tpu.matmul %164, %153, %cst_125 {dimension_numbers = #tpu.dot_dimension_numbers<[1], [0], [0], [1], [0, 0, 1, 1], [], []>} : vector<128x128xf32>, vector<128x8xf32>, vector<128x8xf32> -> vector<128x8xf32>
    %c3_126 = arith.constant 3 : index
    %c0_127 = arith.constant 0 : index
    %c0_128 = arith.constant 0 : index
    %166 = vector.load %arg15[%c3_126, %c0_127, %c0_128] : memref<8x8x64xf32, #tpu.memory_space<vmem>>, vector<1x8x64xf32>
    %167 = vector.shape_cast %166 : vector<1x8x64xf32> to vector<8x64xf32>
    %cst_129 = arith.constant dense<0.000000e+00> : vector<128x64xf32>
    %168 = tpu.matmul %165, %167, %cst_129 {dimension_numbers = #tpu.dot_dimension_numbers<[1], [0], [0], [1], [0, 0, 1, 1], [], []>} : vector<128x8xf32>, vector<8x64xf32>, vector<128x64xf32> -> vector<128x64xf32>
    %169 = arith.addf %132, %168 : vector<128x64xf32>
    %c4 = arith.constant 4 : index
    %c0_130 = arith.constant 0 : index
    %c0_131 = arith.constant 0 : index
    %170 = vector.load %arg9[%c4, %c0_130, %c0_131] : memref<8x64x8xf32, #tpu.memory_space<vmem>>, vector<1x64x8xf32>
    %171 = vector.shape_cast %170 : vector<1x64x8xf32> to vector<64x8xf32>
    %cst_132 = arith.constant dense<0.000000e+00> : vector<128x8xf32>
    %172 = tpu.matmul %22, %171, %cst_132 {dimension_numbers = #tpu.dot_dimension_numbers<[1], [0], [0], [1], [0, 0, 1, 1], [], []>} : vector<128x64xf32>, vector<64x8xf32>, vector<128x8xf32> -> vector<128x8xf32>
    %c4_133 = arith.constant 4 : index
    %c0_134 = arith.constant 0 : index
    %c0_135 = arith.constant 0 : index
    %173 = vector.load %arg12[%c4_133, %c0_134, %c0_135] : memref<8x1x8xf32, #tpu.memory_space<vmem>>, vector<1x1x8xf32>
    %174 = vector.shape_cast %173 : vector<1x1x8xf32> to vector<1x8xf32>
    %175 = vector.broadcast %174 : vector<1x8xf32> to vector<128x8xf32>
    %176 = arith.addf %172, %175 : vector<128x8xf32>
    %c4_136 = arith.constant 4 : index
    %c0_137 = arith.constant 0 : index
    %c0_138 = arith.constant 0 : index
    %177 = vector.load %arg10[%c4_136, %c0_137, %c0_138] : memref<8x64x8xf32, #tpu.memory_space<vmem>>, vector<1x64x8xf32>
    %178 = vector.shape_cast %177 : vector<1x64x8xf32> to vector<64x8xf32>
    %cst_139 = arith.constant dense<0.000000e+00> : vector<128x8xf32>
    %179 = tpu.matmul %22, %178, %cst_139 {dimension_numbers = #tpu.dot_dimension_numbers<[1], [0], [0], [1], [0, 0, 1, 1], [], []>} : vector<128x64xf32>, vector<64x8xf32>, vector<128x8xf32> -> vector<128x8xf32>
    %c4_140 = arith.constant 4 : index
    %c0_141 = arith.constant 0 : index
    %c0_142 = arith.constant 0 : index
    %180 = vector.load %arg13[%c4_140, %c0_141, %c0_142] : memref<8x1x8xf32, #tpu.memory_space<vmem>>, vector<1x1x8xf32>
    %181 = vector.shape_cast %180 : vector<1x1x8xf32> to vector<1x8xf32>
    %182 = vector.broadcast %181 : vector<1x8xf32> to vector<128x8xf32>
    %183 = arith.addf %179, %182 : vector<128x8xf32>
    %c4_143 = arith.constant 4 : index
    %c0_144 = arith.constant 0 : index
    %c0_145 = arith.constant 0 : index
    %184 = vector.load %arg11[%c4_143, %c0_144, %c0_145] : memref<8x64x8xf32, #tpu.memory_space<vmem>>, vector<1x64x8xf32>
    %185 = vector.shape_cast %184 : vector<1x64x8xf32> to vector<64x8xf32>
    %cst_146 = arith.constant dense<0.000000e+00> : vector<128x8xf32>
    %186 = tpu.matmul %22, %185, %cst_146 {dimension_numbers = #tpu.dot_dimension_numbers<[1], [0], [0], [1], [0, 0, 1, 1], [], []>} : vector<128x64xf32>, vector<64x8xf32>, vector<128x8xf32> -> vector<128x8xf32>
    %c4_147 = arith.constant 4 : index
    %c0_148 = arith.constant 0 : index
    %c0_149 = arith.constant 0 : index
    %187 = vector.load %arg14[%c4_147, %c0_148, %c0_149] : memref<8x1x8xf32, #tpu.memory_space<vmem>>, vector<1x1x8xf32>
    %188 = vector.shape_cast %187 : vector<1x1x8xf32> to vector<1x8xf32>
    %189 = vector.broadcast %188 : vector<1x8xf32> to vector<128x8xf32>
    %190 = arith.addf %186, %189 : vector<128x8xf32>
    %cst_150 = arith.constant dense<0.000000e+00> : vector<128x128xf32>
    %191 = tpu.matmul %176, %183, %cst_150 {dimension_numbers = #tpu.dot_dimension_numbers<[1], [1], [0], [0], [0, 0, 1, 0], [], []>} : vector<128x8xf32>, vector<128x8xf32>, vector<128x128xf32> -> vector<128x128xf32>
    %cst_151 = arith.constant dense<0xFF800000> : vector<128xf32>
    %192 = vector.multi_reduction <maximumf>, %191, %cst_151 [1] : vector<128x128xf32> to vector<128xf32>
    %193 = vector.shape_cast %192 : vector<128xf32> to vector<128x1xf32>
    %194 = vector.broadcast %193 : vector<128x1xf32> to vector<128x128xf32>
    %195 = arith.subf %191, %194 : vector<128x128xf32>
    %196 = math.exp %195 : vector<128x128xf32>
    %cst_152 = arith.constant dense<0.000000e+00> : vector<128xf32>
    %197 = vector.multi_reduction <add>, %196, %cst_152 [1] : vector<128x128xf32> to vector<128xf32>
    %198 = vector.shape_cast %197 : vector<128xf32> to vector<128x1xf32>
    %199 = tpu.reciprocal %198 {approx = true} : vector<128x1xf32> -> vector<128x1xf32>
    %200 = vector.broadcast %199 : vector<128x1xf32> to vector<128x128xf32>
    %201 = arith.mulf %196, %200 : vector<128x128xf32>
    %cst_153 = arith.constant dense<0.000000e+00> : vector<128x8xf32>
    %202 = tpu.matmul %201, %190, %cst_153 {dimension_numbers = #tpu.dot_dimension_numbers<[1], [0], [0], [1], [0, 0, 1, 1], [], []>} : vector<128x128xf32>, vector<128x8xf32>, vector<128x8xf32> -> vector<128x8xf32>
    %c4_154 = arith.constant 4 : index
    %c0_155 = arith.constant 0 : index
    %c0_156 = arith.constant 0 : index
    %203 = vector.load %arg15[%c4_154, %c0_155, %c0_156] : memref<8x8x64xf32, #tpu.memory_space<vmem>>, vector<1x8x64xf32>
    %204 = vector.shape_cast %203 : vector<1x8x64xf32> to vector<8x64xf32>
    %cst_157 = arith.constant dense<0.000000e+00> : vector<128x64xf32>
    %205 = tpu.matmul %202, %204, %cst_157 {dimension_numbers = #tpu.dot_dimension_numbers<[1], [0], [0], [1], [0, 0, 1, 1], [], []>} : vector<128x8xf32>, vector<8x64xf32>, vector<128x64xf32> -> vector<128x64xf32>
    %206 = arith.addf %169, %205 : vector<128x64xf32>
    %c5 = arith.constant 5 : index
    %c0_158 = arith.constant 0 : index
    %c0_159 = arith.constant 0 : index
    %207 = vector.load %arg9[%c5, %c0_158, %c0_159] : memref<8x64x8xf32, #tpu.memory_space<vmem>>, vector<1x64x8xf32>
    %208 = vector.shape_cast %207 : vector<1x64x8xf32> to vector<64x8xf32>
    %cst_160 = arith.constant dense<0.000000e+00> : vector<128x8xf32>
    %209 = tpu.matmul %22, %208, %cst_160 {dimension_numbers = #tpu.dot_dimension_numbers<[1], [0], [0], [1], [0, 0, 1, 1], [], []>} : vector<128x64xf32>, vector<64x8xf32>, vector<128x8xf32> -> vector<128x8xf32>
    %c5_161 = arith.constant 5 : index
    %c0_162 = arith.constant 0 : index
    %c0_163 = arith.constant 0 : index
    %210 = vector.load %arg12[%c5_161, %c0_162, %c0_163] : memref<8x1x8xf32, #tpu.memory_space<vmem>>, vector<1x1x8xf32>
    %211 = vector.shape_cast %210 : vector<1x1x8xf32> to vector<1x8xf32>
    %212 = vector.broadcast %211 : vector<1x8xf32> to vector<128x8xf32>
    %213 = arith.addf %209, %212 : vector<128x8xf32>
    %c5_164 = arith.constant 5 : index
    %c0_165 = arith.constant 0 : index
    %c0_166 = arith.constant 0 : index
    %214 = vector.load %arg10[%c5_164, %c0_165, %c0_166] : memref<8x64x8xf32, #tpu.memory_space<vmem>>, vector<1x64x8xf32>
    %215 = vector.shape_cast %214 : vector<1x64x8xf32> to vector<64x8xf32>
    %cst_167 = arith.constant dense<0.000000e+00> : vector<128x8xf32>
    %216 = tpu.matmul %22, %215, %cst_167 {dimension_numbers = #tpu.dot_dimension_numbers<[1], [0], [0], [1], [0, 0, 1, 1], [], []>} : vector<128x64xf32>, vector<64x8xf32>, vector<128x8xf32> -> vector<128x8xf32>
    %c5_168 = arith.constant 5 : index
    %c0_169 = arith.constant 0 : index
    %c0_170 = arith.constant 0 : index
    %217 = vector.load %arg13[%c5_168, %c0_169, %c0_170] : memref<8x1x8xf32, #tpu.memory_space<vmem>>, vector<1x1x8xf32>
    %218 = vector.shape_cast %217 : vector<1x1x8xf32> to vector<1x8xf32>
    %219 = vector.broadcast %218 : vector<1x8xf32> to vector<128x8xf32>
    %220 = arith.addf %216, %219 : vector<128x8xf32>
    %c5_171 = arith.constant 5 : index
    %c0_172 = arith.constant 0 : index
    %c0_173 = arith.constant 0 : index
    %221 = vector.load %arg11[%c5_171, %c0_172, %c0_173] : memref<8x64x8xf32, #tpu.memory_space<vmem>>, vector<1x64x8xf32>
    %222 = vector.shape_cast %221 : vector<1x64x8xf32> to vector<64x8xf32>
    %cst_174 = arith.constant dense<0.000000e+00> : vector<128x8xf32>
    %223 = tpu.matmul %22, %222, %cst_174 {dimension_numbers = #tpu.dot_dimension_numbers<[1], [0], [0], [1], [0, 0, 1, 1], [], []>} : vector<128x64xf32>, vector<64x8xf32>, vector<128x8xf32> -> vector<128x8xf32>
    %c5_175 = arith.constant 5 : index
    %c0_176 = arith.constant 0 : index
    %c0_177 = arith.constant 0 : index
    %224 = vector.load %arg14[%c5_175, %c0_176, %c0_177] : memref<8x1x8xf32, #tpu.memory_space<vmem>>, vector<1x1x8xf32>
    %225 = vector.shape_cast %224 : vector<1x1x8xf32> to vector<1x8xf32>
    %226 = vector.broadcast %225 : vector<1x8xf32> to vector<128x8xf32>
    %227 = arith.addf %223, %226 : vector<128x8xf32>
    %cst_178 = arith.constant dense<0.000000e+00> : vector<128x128xf32>
    %228 = tpu.matmul %213, %220, %cst_178 {dimension_numbers = #tpu.dot_dimension_numbers<[1], [1], [0], [0], [0, 0, 1, 0], [], []>} : vector<128x8xf32>, vector<128x8xf32>, vector<128x128xf32> -> vector<128x128xf32>
    %cst_179 = arith.constant dense<0xFF800000> : vector<128xf32>
    %229 = vector.multi_reduction <maximumf>, %228, %cst_179 [1] : vector<128x128xf32> to vector<128xf32>
    %230 = vector.shape_cast %229 : vector<128xf32> to vector<128x1xf32>
    %231 = vector.broadcast %230 : vector<128x1xf32> to vector<128x128xf32>
    %232 = arith.subf %228, %231 : vector<128x128xf32>
    %233 = math.exp %232 : vector<128x128xf32>
    %cst_180 = arith.constant dense<0.000000e+00> : vector<128xf32>
    %234 = vector.multi_reduction <add>, %233, %cst_180 [1] : vector<128x128xf32> to vector<128xf32>
    %235 = vector.shape_cast %234 : vector<128xf32> to vector<128x1xf32>
    %236 = tpu.reciprocal %235 {approx = true} : vector<128x1xf32> -> vector<128x1xf32>
    %237 = vector.broadcast %236 : vector<128x1xf32> to vector<128x128xf32>
    %238 = arith.mulf %233, %237 : vector<128x128xf32>
    %cst_181 = arith.constant dense<0.000000e+00> : vector<128x8xf32>
    %239 = tpu.matmul %238, %227, %cst_181 {dimension_numbers = #tpu.dot_dimension_numbers<[1], [0], [0], [1], [0, 0, 1, 1], [], []>} : vector<128x128xf32>, vector<128x8xf32>, vector<128x8xf32> -> vector<128x8xf32>
    %c5_182 = arith.constant 5 : index
    %c0_183 = arith.constant 0 : index
    %c0_184 = arith.constant 0 : index
    %240 = vector.load %arg15[%c5_182, %c0_183, %c0_184] : memref<8x8x64xf32, #tpu.memory_space<vmem>>, vector<1x8x64xf32>
    %241 = vector.shape_cast %240 : vector<1x8x64xf32> to vector<8x64xf32>
    %cst_185 = arith.constant dense<0.000000e+00> : vector<128x64xf32>
    %242 = tpu.matmul %239, %241, %cst_185 {dimension_numbers = #tpu.dot_dimension_numbers<[1], [0], [0], [1], [0, 0, 1, 1], [], []>} : vector<128x8xf32>, vector<8x64xf32>, vector<128x64xf32> -> vector<128x64xf32>
    %243 = arith.addf %206, %242 : vector<128x64xf32>
    %c6 = arith.constant 6 : index
    %c0_186 = arith.constant 0 : index
    %c0_187 = arith.constant 0 : index
    %244 = vector.load %arg9[%c6, %c0_186, %c0_187] : memref<8x64x8xf32, #tpu.memory_space<vmem>>, vector<1x64x8xf32>
    %245 = vector.shape_cast %244 : vector<1x64x8xf32> to vector<64x8xf32>
    %cst_188 = arith.constant dense<0.000000e+00> : vector<128x8xf32>
    %246 = tpu.matmul %22, %245, %cst_188 {dimension_numbers = #tpu.dot_dimension_numbers<[1], [0], [0], [1], [0, 0, 1, 1], [], []>} : vector<128x64xf32>, vector<64x8xf32>, vector<128x8xf32> -> vector<128x8xf32>
    %c6_189 = arith.constant 6 : index
    %c0_190 = arith.constant 0 : index
    %c0_191 = arith.constant 0 : index
    %247 = vector.load %arg12[%c6_189, %c0_190, %c0_191] : memref<8x1x8xf32, #tpu.memory_space<vmem>>, vector<1x1x8xf32>
    %248 = vector.shape_cast %247 : vector<1x1x8xf32> to vector<1x8xf32>
    %249 = vector.broadcast %248 : vector<1x8xf32> to vector<128x8xf32>
    %250 = arith.addf %246, %249 : vector<128x8xf32>
    %c6_192 = arith.constant 6 : index
    %c0_193 = arith.constant 0 : index
    %c0_194 = arith.constant 0 : index
    %251 = vector.load %arg10[%c6_192, %c0_193, %c0_194] : memref<8x64x8xf32, #tpu.memory_space<vmem>>, vector<1x64x8xf32>
    %252 = vector.shape_cast %251 : vector<1x64x8xf32> to vector<64x8xf32>
    %cst_195 = arith.constant dense<0.000000e+00> : vector<128x8xf32>
    %253 = tpu.matmul %22, %252, %cst_195 {dimension_numbers = #tpu.dot_dimension_numbers<[1], [0], [0], [1], [0, 0, 1, 1], [], []>} : vector<128x64xf32>, vector<64x8xf32>, vector<128x8xf32> -> vector<128x8xf32>
    %c6_196 = arith.constant 6 : index
    %c0_197 = arith.constant 0 : index
    %c0_198 = arith.constant 0 : index
    %254 = vector.load %arg13[%c6_196, %c0_197, %c0_198] : memref<8x1x8xf32, #tpu.memory_space<vmem>>, vector<1x1x8xf32>
    %255 = vector.shape_cast %254 : vector<1x1x8xf32> to vector<1x8xf32>
    %256 = vector.broadcast %255 : vector<1x8xf32> to vector<128x8xf32>
    %257 = arith.addf %253, %256 : vector<128x8xf32>
    %c6_199 = arith.constant 6 : index
    %c0_200 = arith.constant 0 : index
    %c0_201 = arith.constant 0 : index
    %258 = vector.load %arg11[%c6_199, %c0_200, %c0_201] : memref<8x64x8xf32, #tpu.memory_space<vmem>>, vector<1x64x8xf32>
    %259 = vector.shape_cast %258 : vector<1x64x8xf32> to vector<64x8xf32>
    %cst_202 = arith.constant dense<0.000000e+00> : vector<128x8xf32>
    %260 = tpu.matmul %22, %259, %cst_202 {dimension_numbers = #tpu.dot_dimension_numbers<[1], [0], [0], [1], [0, 0, 1, 1], [], []>} : vector<128x64xf32>, vector<64x8xf32>, vector<128x8xf32> -> vector<128x8xf32>
    %c6_203 = arith.constant 6 : index
    %c0_204 = arith.constant 0 : index
    %c0_205 = arith.constant 0 : index
    %261 = vector.load %arg14[%c6_203, %c0_204, %c0_205] : memref<8x1x8xf32, #tpu.memory_space<vmem>>, vector<1x1x8xf32>
    %262 = vector.shape_cast %261 : vector<1x1x8xf32> to vector<1x8xf32>
    %263 = vector.broadcast %262 : vector<1x8xf32> to vector<128x8xf32>
    %264 = arith.addf %260, %263 : vector<128x8xf32>
    %cst_206 = arith.constant dense<0.000000e+00> : vector<128x128xf32>
    %265 = tpu.matmul %250, %257, %cst_206 {dimension_numbers = #tpu.dot_dimension_numbers<[1], [1], [0], [0], [0, 0, 1, 0], [], []>} : vector<128x8xf32>, vector<128x8xf32>, vector<128x128xf32> -> vector<128x128xf32>
    %cst_207 = arith.constant dense<0xFF800000> : vector<128xf32>
    %266 = vector.multi_reduction <maximumf>, %265, %cst_207 [1] : vector<128x128xf32> to vector<128xf32>
    %267 = vector.shape_cast %266 : vector<128xf32> to vector<128x1xf32>
    %268 = vector.broadcast %267 : vector<128x1xf32> to vector<128x128xf32>
    %269 = arith.subf %265, %268 : vector<128x128xf32>
    %270 = math.exp %269 : vector<128x128xf32>
    %cst_208 = arith.constant dense<0.000000e+00> : vector<128xf32>
    %271 = vector.multi_reduction <add>, %270, %cst_208 [1] : vector<128x128xf32> to vector<128xf32>
    %272 = vector.shape_cast %271 : vector<128xf32> to vector<128x1xf32>
    %273 = tpu.reciprocal %272 {approx = true} : vector<128x1xf32> -> vector<128x1xf32>
    %274 = vector.broadcast %273 : vector<128x1xf32> to vector<128x128xf32>
    %275 = arith.mulf %270, %274 : vector<128x128xf32>
    %cst_209 = arith.constant dense<0.000000e+00> : vector<128x8xf32>
    %276 = tpu.matmul %275, %264, %cst_209 {dimension_numbers = #tpu.dot_dimension_numbers<[1], [0], [0], [1], [0, 0, 1, 1], [], []>} : vector<128x128xf32>, vector<128x8xf32>, vector<128x8xf32> -> vector<128x8xf32>
    %c6_210 = arith.constant 6 : index
    %c0_211 = arith.constant 0 : index
    %c0_212 = arith.constant 0 : index
    %277 = vector.load %arg15[%c6_210, %c0_211, %c0_212] : memref<8x8x64xf32, #tpu.memory_space<vmem>>, vector<1x8x64xf32>
    %278 = vector.shape_cast %277 : vector<1x8x64xf32> to vector<8x64xf32>
    %cst_213 = arith.constant dense<0.000000e+00> : vector<128x64xf32>
    %279 = tpu.matmul %276, %278, %cst_213 {dimension_numbers = #tpu.dot_dimension_numbers<[1], [0], [0], [1], [0, 0, 1, 1], [], []>} : vector<128x8xf32>, vector<8x64xf32>, vector<128x64xf32> -> vector<128x64xf32>
    %280 = arith.addf %243, %279 : vector<128x64xf32>
    %c7 = arith.constant 7 : index
    %c0_214 = arith.constant 0 : index
    %c0_215 = arith.constant 0 : index
    %281 = vector.load %arg9[%c7, %c0_214, %c0_215] : memref<8x64x8xf32, #tpu.memory_space<vmem>>, vector<1x64x8xf32>
    %282 = vector.shape_cast %281 : vector<1x64x8xf32> to vector<64x8xf32>
    %cst_216 = arith.constant dense<0.000000e+00> : vector<128x8xf32>
    %283 = tpu.matmul %22, %282, %cst_216 {dimension_numbers = #tpu.dot_dimension_numbers<[1], [0], [0], [1], [0, 0, 1, 1], [], []>} : vector<128x64xf32>, vector<64x8xf32>, vector<128x8xf32> -> vector<128x8xf32>
    %c7_217 = arith.constant 7 : index
    %c0_218 = arith.constant 0 : index
    %c0_219 = arith.constant 0 : index
    %284 = vector.load %arg12[%c7_217, %c0_218, %c0_219] : memref<8x1x8xf32, #tpu.memory_space<vmem>>, vector<1x1x8xf32>
    %285 = vector.shape_cast %284 : vector<1x1x8xf32> to vector<1x8xf32>
    %286 = vector.broadcast %285 : vector<1x8xf32> to vector<128x8xf32>
    %287 = arith.addf %283, %286 : vector<128x8xf32>
    %c7_220 = arith.constant 7 : index
    %c0_221 = arith.constant 0 : index
    %c0_222 = arith.constant 0 : index
    %288 = vector.load %arg10[%c7_220, %c0_221, %c0_222] : memref<8x64x8xf32, #tpu.memory_space<vmem>>, vector<1x64x8xf32>
    %289 = vector.shape_cast %288 : vector<1x64x8xf32> to vector<64x8xf32>
    %cst_223 = arith.constant dense<0.000000e+00> : vector<128x8xf32>
    %290 = tpu.matmul %22, %289, %cst_223 {dimension_numbers = #tpu.dot_dimension_numbers<[1], [0], [0], [1], [0, 0, 1, 1], [], []>} : vector<128x64xf32>, vector<64x8xf32>, vector<128x8xf32> -> vector<128x8xf32>
    %c7_224 = arith.constant 7 : index
    %c0_225 = arith.constant 0 : index
    %c0_226 = arith.constant 0 : index
    %291 = vector.load %arg13[%c7_224, %c0_225, %c0_226] : memref<8x1x8xf32, #tpu.memory_space<vmem>>, vector<1x1x8xf32>
    %292 = vector.shape_cast %291 : vector<1x1x8xf32> to vector<1x8xf32>
    %293 = vector.broadcast %292 : vector<1x8xf32> to vector<128x8xf32>
    %294 = arith.addf %290, %293 : vector<128x8xf32>
    %c7_227 = arith.constant 7 : index
    %c0_228 = arith.constant 0 : index
    %c0_229 = arith.constant 0 : index
    %295 = vector.load %arg11[%c7_227, %c0_228, %c0_229] : memref<8x64x8xf32, #tpu.memory_space<vmem>>, vector<1x64x8xf32>
    %296 = vector.shape_cast %295 : vector<1x64x8xf32> to vector<64x8xf32>
    %cst_230 = arith.constant dense<0.000000e+00> : vector<128x8xf32>
    %297 = tpu.matmul %22, %296, %cst_230 {dimension_numbers = #tpu.dot_dimension_numbers<[1], [0], [0], [1], [0, 0, 1, 1], [], []>} : vector<128x64xf32>, vector<64x8xf32>, vector<128x8xf32> -> vector<128x8xf32>
    %c7_231 = arith.constant 7 : index
    %c0_232 = arith.constant 0 : index
    %c0_233 = arith.constant 0 : index
    %298 = vector.load %arg14[%c7_231, %c0_232, %c0_233] : memref<8x1x8xf32, #tpu.memory_space<vmem>>, vector<1x1x8xf32>
    %299 = vector.shape_cast %298 : vector<1x1x8xf32> to vector<1x8xf32>
    %300 = vector.broadcast %299 : vector<1x8xf32> to vector<128x8xf32>
    %301 = arith.addf %297, %300 : vector<128x8xf32>
    %cst_234 = arith.constant dense<0.000000e+00> : vector<128x128xf32>
    %302 = tpu.matmul %287, %294, %cst_234 {dimension_numbers = #tpu.dot_dimension_numbers<[1], [1], [0], [0], [0, 0, 1, 0], [], []>} : vector<128x8xf32>, vector<128x8xf32>, vector<128x128xf32> -> vector<128x128xf32>
    %cst_235 = arith.constant dense<0xFF800000> : vector<128xf32>
    %303 = vector.multi_reduction <maximumf>, %302, %cst_235 [1] : vector<128x128xf32> to vector<128xf32>
    %304 = vector.shape_cast %303 : vector<128xf32> to vector<128x1xf32>
    %305 = vector.broadcast %304 : vector<128x1xf32> to vector<128x128xf32>
    %306 = arith.subf %302, %305 : vector<128x128xf32>
    %307 = math.exp %306 : vector<128x128xf32>
    %cst_236 = arith.constant dense<0.000000e+00> : vector<128xf32>
    %308 = vector.multi_reduction <add>, %307, %cst_236 [1] : vector<128x128xf32> to vector<128xf32>
    %309 = vector.shape_cast %308 : vector<128xf32> to vector<128x1xf32>
    %310 = tpu.reciprocal %309 {approx = true} : vector<128x1xf32> -> vector<128x1xf32>
    %311 = vector.broadcast %310 : vector<128x1xf32> to vector<128x128xf32>
    %312 = arith.mulf %307, %311 : vector<128x128xf32>
    %cst_237 = arith.constant dense<0.000000e+00> : vector<128x8xf32>
    %313 = tpu.matmul %312, %301, %cst_237 {dimension_numbers = #tpu.dot_dimension_numbers<[1], [0], [0], [1], [0, 0, 1, 1], [], []>} : vector<128x128xf32>, vector<128x8xf32>, vector<128x8xf32> -> vector<128x8xf32>
    %c7_238 = arith.constant 7 : index
    %c0_239 = arith.constant 0 : index
    %c0_240 = arith.constant 0 : index
    %314 = vector.load %arg15[%c7_238, %c0_239, %c0_240] : memref<8x8x64xf32, #tpu.memory_space<vmem>>, vector<1x8x64xf32>
    %315 = vector.shape_cast %314 : vector<1x8x64xf32> to vector<8x64xf32>
    %cst_241 = arith.constant dense<0.000000e+00> : vector<128x64xf32>
    %316 = tpu.matmul %313, %315, %cst_241 {dimension_numbers = #tpu.dot_dimension_numbers<[1], [0], [0], [1], [0, 0, 1, 1], [], []>} : vector<128x8xf32>, vector<8x64xf32>, vector<128x64xf32> -> vector<128x64xf32>
    %317 = arith.addf %280, %316 : vector<128x64xf32>
    %c0_242 = arith.constant 0 : index
    %c0_243 = arith.constant 0 : index
    %318 = vector.load %arg16[%c0_242, %c0_243] : memref<1x64xf32, #tpu.memory_space<vmem>>, vector<1x64xf32>
    %319 = vector.broadcast %318 : vector<1x64xf32> to vector<128x64xf32>
    %320 = arith.addf %317, %319 : vector<128x64xf32>
    %321 = arith.addf %320, %22 : vector<128x64xf32>
    %cst_244 = arith.constant dense<0.000000e+00> : vector<128xf32>
    %322 = vector.multi_reduction <add>, %321, %cst_244 [1] : vector<128x64xf32> to vector<128xf32>
    %323 = vector.shape_cast %322 : vector<128xf32> to vector<128x1xf32>
    %cst_245 = arith.constant 6.400000e+01 : f32
    %324 = vector.broadcast %cst_245 : f32 to vector<128x1xf32>
    %325 = arith.divf %323, %324 : vector<128x1xf32>
    %326 = vector.broadcast %325 : vector<128x1xf32> to vector<128x64xf32>
    %327 = arith.subf %321, %326 : vector<128x64xf32>
    %328 = arith.mulf %327, %327 : vector<128x64xf32>
    %cst_246 = arith.constant dense<0.000000e+00> : vector<128xf32>
    %329 = vector.multi_reduction <add>, %328, %cst_246 [1] : vector<128x64xf32> to vector<128xf32>
    %330 = vector.shape_cast %329 : vector<128xf32> to vector<128x1xf32>
    %cst_247 = arith.constant 6.400000e+01 : f32
    %331 = vector.broadcast %cst_247 : f32 to vector<128x1xf32>
    %332 = arith.divf %330, %331 : vector<128x1xf32>
    %cst_248 = arith.constant 9.99999974E-6 : f32
    %333 = vector.broadcast %cst_248 : f32 to vector<128x1xf32>
    %334 = arith.addf %332, %333 : vector<128x1xf32>
    %335 = math.rsqrt %334 : vector<128x1xf32>
    %336 = vector.broadcast %335 : vector<128x1xf32> to vector<128x64xf32>
    %337 = arith.mulf %327, %336 : vector<128x64xf32>
    %c0_249 = arith.constant 0 : index
    %c0_250 = arith.constant 0 : index
    %338 = vector.load %arg17[%c0_249, %c0_250] : memref<128x64xf32, #tpu.memory_space<vmem>>, vector<128x64xf32>
    tpu.vector_store %arg17[%c0_249, %c0_250], %337 {strides = array<i32>} : memref<128x64xf32, #tpu.memory_space<vmem>>, vector<128x64xf32>,
    return
  }
  func.func @transform_0(%arg0: i32) -> (i32, i32) {
    %c0_i32 = arith.constant 0 : i32
    %c0_i32_0 = arith.constant 0 : i32
    %c0_i32_1 = arith.constant 0 : i32
    return %c0_i32, %c0_i32_0 : i32, i32
  }
  func.func @transform_1(%arg0: i32) -> (i32, i32) {
    %c0_i32 = arith.constant 0 : i32
    %c0_i32_0 = arith.constant 0 : i32
    %c0_i32_1 = arith.constant 0 : i32
    return %c0_i32, %c0_i32_0 : i32, i32
  }
  func.func @transform_2(%arg0: i32) -> (i32, i32) {
    %c0_i32 = arith.constant 0 : i32
    %c0_i32_0 = arith.constant 0 : i32
    %c0_i32_1 = arith.constant 0 : i32
    return %c0_i32, %c0_i32_0 : i32, i32
  }
  func.func @transform_3(%arg0: i32) -> (i32, i32) {
    %c0_i32 = arith.constant 0 : i32
    %c0_i32_0 = arith.constant 0 : i32
    %c0_i32_1 = arith.constant 0 : i32
    return %c0_i32, %c0_i32_0 : i32, i32
  }
  func.func @transform_4(%arg0: i32) -> (i32, i32) {
    %c0_i32 = arith.constant 0 : i32
    %c0_i32_0 = arith.constant 0 : i32
    %c0_i32_1 = arith.constant 0 : i32
    return %c0_i32, %c0_i32_0 : i32, i32
  }
  func.func @transform_5(%arg0: i32) -> (i32, i32) {
    %c0_i32 = arith.constant 0 : i32
    %c0_i32_0 = arith.constant 0 : i32
    %c0_i32_1 = arith.constant 0 : i32
    return %c0_i32, %c0_i32_0 : i32, i32
  }
  func.func @transform_6(%arg0: i32) -> (i32, i32) {
    %c0_i32 = arith.constant 0 : i32
    %c0_i32_0 = arith.constant 0 : i32
    %c0_i32_1 = arith.constant 0 : i32
    return %c0_i32, %c0_i32_0 : i32, i32
  }
  func.func @transform_7(%arg0: i32) -> (i32, i32) {
    %c0_i32 = arith.constant 0 : i32
    %c0_i32_0 = arith.constant 0 : i32
    %c0_i32_1 = arith.constant 0 : i32
    return %c0_i32, %c0_i32_0 : i32, i32
  }
  func.func @transform_8(%arg0: i32) -> (i32, i32, i32) {
    %c0_i32 = arith.constant 0 : i32
    %c0_i32_0 = arith.constant 0 : i32
    %c0_i32_1 = arith.constant 0 : i32
    %c0_i32_2 = arith.constant 0 : i32
    return %c0_i32, %c0_i32_0, %c0_i32_1 : i32, i32, i32
  }
  func.func @transform_9(%arg0: i32) -> (i32, i32, i32) {
    %c0_i32 = arith.constant 0 : i32
    %c0_i32_0 = arith.constant 0 : i32
    %c0_i32_1 = arith.constant 0 : i32
    %c0_i32_2 = arith.constant 0 : i32
    return %c0_i32, %c0_i32_0, %c0_i32_1 : i32, i32, i32
  }
  func.func @transform_10(%arg0: i32) -> (i32, i32, i32) {
    %c0_i32 = arith.constant 0 : i32
    %c0_i32_0 = arith.constant 0 : i32
    %c0_i32_1 = arith.constant 0 : i32
    %c0_i32_2 = arith.constant 0 : i32
    return %c0_i32, %c0_i32_0, %c0_i32_1 : i32, i32, i32
  }
  func.func @transform_11(%arg0: i32) -> (i32, i32, i32) {
    %c0_i32 = arith.constant 0 : i32
    %c0_i32_0 = arith.constant 0 : i32
    %c0_i32_1 = arith.constant 0 : i32
    %c0_i32_2 = arith.constant 0 : i32
    return %c0_i32, %c0_i32_0, %c0_i32_1 : i32, i32, i32
  }
  func.func @transform_12(%arg0: i32) -> (i32, i32, i32) {
    %c0_i32 = arith.constant 0 : i32
    %c0_i32_0 = arith.constant 0 : i32
    %c0_i32_1 = arith.constant 0 : i32
    %c0_i32_2 = arith.constant 0 : i32
    return %c0_i32, %c0_i32_0, %c0_i32_1 : i32, i32, i32
  }
  func.func @transform_13(%arg0: i32) -> (i32, i32, i32) {
    %c0_i32 = arith.constant 0 : i32
    %c0_i32_0 = arith.constant 0 : i32
    %c0_i32_1 = arith.constant 0 : i32
    %c0_i32_2 = arith.constant 0 : i32
    return %c0_i32, %c0_i32_0, %c0_i32_1 : i32, i32, i32
  }
  func.func @transform_14(%arg0: i32) -> (i32, i32, i32) {
    %c0_i32 = arith.constant 0 : i32
    %c0_i32_0 = arith.constant 0 : i32
    %c0_i32_1 = arith.constant 0 : i32
    %c0_i32_2 = arith.constant 0 : i32
    return %c0_i32, %c0_i32_0, %c0_i32_1 : i32, i32, i32
  }
  func.func @transform_15(%arg0: i32) -> (i32, i32) {
    %c0_i32 = arith.constant 0 : i32
    %c0_i32_0 = arith.constant 0 : i32
    %c0_i32_1 = arith.constant 0 : i32
    return %c0_i32, %c0_i32_0 : i32, i32
  }
  func.func @transform_16(%arg0: i32) -> (i32, i32) {
    %c0_i32 = arith.constant 0 : i32
    %c0_i32_0 = arith.constant 0 : i32
    %c0_i32_1 = arith.constant 0 : i32
    return %c0_i32, %c0_i32_0 : i32, i32
  }
}

</mosaic_0001>

<bundles_post_ra>
// kernel: tpu_custom_call.1
= control target key start
LH: loop header
LB: loop body
LE: loop exit
PB: predicated region body
PF: predicated region fallthrough
CT: control target
= control target key end

     0   :  { %vm142_vm0 = vcmask 1042432   ;;  %vm93_vm1 = vcmask 23552   ;;  %s24913_s3 = inlined_call_operand.vmem [shape: f32[3,64], index: 3, kind: input, shape index: {}]   ;;  %s24914_s1 = inlined_call_operand.vmem [shape: f32[128,3], index: 1, kind: input, shape index: {}]   ;;  %s24915_s2 = inlined_call_operand.vmem [shape: f32[1,3], index: 2, kind: input, shape index: {}]   ;;  %s24916_s6 = inlined_call_operand.vmem [shape: f32[64,64], index: 6, kind: input, shape index: {}]   ;;  %s24917_s4 = inlined_call_operand.vmem [shape: f32[1,64], index: 4, kind: input, shape index: {}]   ;;  %s24918_s5 = inlined_call_operand.vmem [shape: f32[64,64], index: 5, kind: input, shape index: {}]   ;;  %s24919_s8 = inlined_call_operand.vmem [shape: f32[8,64,8], index: 8, kind: input, shape index: {}]   ;;  %s24920_s10 = inlined_call_operand.vmem [shape: f32[8,64,8], index: 10, kind: input, shape index: {}]   ;;  %s24921_s0 = inlined_call_operand.vmem [shape: f32[128,64], index: 0, kind: input, shape index: {}]   ;;  %s24922_s9 = inlined_call_operand.vmem [shape: f32[8,64,8], index: 9, kind: input, shape index: {}]   ;;  %s24923_s7 = inlined_call_operand.vmem [shape: f32[1,64], index: 7, kind: input, shape index: {}]   ;;  %s24924_s11 = inlined_call_operand.vmem [shape: f32[8,1,8], index: 11, kind: input, shape index: {}]   ;;  %s24925_s13 = inlined_call_operand.vmem [shape: f32[8,1,8], index: 13, kind: input, shape index: {}]   ;;  %s24926_s12 = inlined_call_operand.vmem [shape: f32[8,1,8], index: 12, kind: input, shape index: {}]   ;;  %s24927_s14 = inlined_call_operand.vmem [shape: f32[8,8,64], index: 14, kind: input, shape index: {}]   ;;  %s24928_s15 = inlined_call_operand.vmem [shape: f32[1,64], index: 15, kind: input, shape index: {}]   ;;  %s24929_s16 = inlined_call_operand.vmem [shape: f32[128,64], index: 16, kind: output, shape index: {}]  }
   0x1   :  { %25054 = sst [smem:[#allocation81_spill]] %s24913_s3  ;;  %v53_v1 = vld [vmem:[%s24914_s1] sm:$0xff]  ;;  %v54_v4 = vld [vmem:[%s24914_s1 + $0x8] sm:$0xff]  ;;  %v55_v5 = vld [vmem:[%s24914_s1 + $0x10] sm:$0xff] }
   0x2   :  { %s25055_s23 = sld [smem:[#allocation81_spill]]  ;;  %v12533_v2 = vld [vmem:[%s24915_s2] ss:$0 sm:$0xff]  ;;  %v56_v6 = vld [vmem:[%s24914_s1 + $0x18] sm:$0xff]  ;;  %v58_v12 = vld [vmem:[%s24914_s1 + $0x28] sm:$0xff] }
   0x3   :  { %v76_v3 = vsub.f32 %v53_v1, %v12533_v2  ;;  %v77_v7 = vsub.f32 %v54_v4, %v12533_v2  ;;  %v78_v8 = vsub.f32 %v55_v5, %v12533_v2  ;;  %v57_v9 = vld [vmem:[%s24914_s1 + $0x20] sm:$0xff]  ;;  %v79_v10 = vsub.f32 %v56_v6, %v12533_v2  ;;  %v59_v13 = vld [vmem:[%s24914_s1 + $0x30] sm:$0xff]  ;;  %v60_v16 = vld [vmem:[%s24914_s1 + $0x38] sm:$0xff] }
   0x4   :  { %v80_v11 = vsub.f32 %v57_v9, %v12533_v2  ;;  %v81_v14 = vsub.f32 %v58_v12, %v12533_v2  ;;  %v82_v15 = vsub.f32 %v59_v13, %v12533_v2  ;;  %v61_v17 = vld [vmem:[%s24914_s1 + $0x40] sm:$0xff]  ;;  %v83_v18 = vsub.f32 %v60_v16, %v12533_v2  ;;  %v62_v20 = vld [vmem:[%s24914_s1 + $0x48] sm:$0xff]  ;;  %v63_v21 = vld [vmem:[%s24914_s1 + $0x50] sm:$0xff] }
   0x5   :  { %14929 = vmatprep.mubr.msk.f32.mxu0 %vm93_vm1, %v76_v3  ;;  %v84_v19 = vsub.f32 %v61_v17, %v12533_v2  ;;  %v85_v22 = vsub.f32 %v62_v20, %v12533_v2  ;;  %v86_v23 = vsub.f32 %v63_v21, %v12533_v2  ;;  %v64_v24 = vld [vmem:[%s24914_s1 + $0x58] sm:$0xff]  ;;  %v65_v25 = vld [vmem:[%s24914_s1 + $0x60] sm:$0xff]  ;;  %v66_v28 = vld [vmem:[%s24914_s1 + $0x68] sm:$0xff] }
   0x6   :  { %v87_v26 = vsub.f32 %v64_v24, %v12533_v2  ;;  %v88_v27 = vsub.f32 %v65_v25, %v12533_v2  ;;  %v67_v29 = vld [vmem:[%s24914_s1 + $0x70] sm:$0xff]  ;;  %v89_v30 = vsub.f32 %v66_v28, %v12533_v2  ;;  %v68_v32 = vld [vmem:[%s24914_s1 + $0x78] sm:$0xff]  ;;  %v2021_v34 = vld [vmem:[%s24916_s6] sm:$0xff] }
   0x7   :  { %v90_v31 = vsub.f32 %v67_v29, %v12533_v2  ;;  %v91_v33 = vsub.f32 %v68_v32, %v12533_v2  ;;  %v2022_v35 = vld [vmem:[%s24916_s6 + $0x8] sm:$0xff]  ;;  %v2023_v36 = vld [vmem:[%s24916_s6 + $0x10] sm:$0xff]  ;;  %v2024_v38 = vld [vmem:[%s24916_s6 + $0x18] sm:$0xff]  ;;  %v291_v29 = vlaneseq }
   0x8   :  { %v92_v0 = vld [vmem:[%s25055_s23] sm:$0x7]  ;;  %v17097_v37 = vpack.c.bf16 %v2022_v35, %v2021_v34  ;;  %v17101_v39 = vpack.c.bf16 %v2024_v38, %v2023_v36  ;;  %v2026_v41 = vld [vmem:[%s24916_s6 + $0x28] sm:$0xff]  ;;  %v2027_v43 = vld [vmem:[%s24916_s6 + $0x30] sm:$0xff] }
   0x9   :  { %14927 = vmatprep.subr.msk.mxu0 %vm142_vm0, %v92_v0  ;;  %v2025_v40 = vld [vmem:[%s24916_s6 + $0x20] sm:$0xff]  ;;  %v2028_v44 = vld [vmem:[%s24916_s6 + $0x38] sm:$0xff] }
   0xa   :  { %14928 = vmatpush3.msk.msra.mxu0 %vm142_vm0, %v92_v0  ;;  %17098 = vmatprep.subr.bf16.mxu1 %v17097_v37  ;;  %v17105_v42 = vpack.c.bf16 %v2026_v41, %v2025_v40  ;;  %v17109_v45 = vpack.c.bf16 %v2028_v44, %v2027_v43  ;;  %v19163_v46 = vld [vmem:[%s24917_s4] ss:$0 sm:$0xff]  ;;  %v19248_v41 = vand.u32 127, %v291_v29 }
   0xb   :  { %14930 = vmatmul.mubr.msk.f32.vlgmr.msra.gmra.mrb[0].mxu0 %vm93_vm1, %v77_v7  ;;  %17100 = vmatpush3.bf16.msra.mxu1 %v17097_v37 }
   0xc   :  { %14932 = vmatprep.mubr.msk.f32.mxu0 %vm93_vm1, %v78_v8  ;;  %17102 = vmatprep.subr.bf16.mxu1 %v17101_v39  ;;  %25076 = vst [vmem:[#allocation22_spill] sm:$0xff] %v19248_v41 }
   0xf   :  { %14933 = vmatmul.mubr.msk.f32.gmra.mrb[2].mxu0 %vm93_vm1, %v79_v10  ;;  %17104 = vmatpush3.bf16.msra.mxu1 %v17101_v39 }
  0x10   :  { %14935 = vmatprep.mubr.msk.f32.mxu0 %vm93_vm1, %v80_v11  ;;  %17106 = vmatprep.subr.bf16.mxu1 %v17105_v42 }
  0x13   :  { %14936 = vmatmul.mubr.msk.f32.gmra.mrb[4].mxu0 %vm93_vm1, %v81_v14  ;;  %17108 = vmatpush3.bf16.msra.mxu1 %v17105_v42 }
  0x14   :  { %14938 = vmatprep.mubr.msk.f32.mxu0 %vm93_vm1, %v82_v15  ;;  %17110 = vmatprep.subr.bf16.mxu1 %v17109_v45 }
  0x17   :  { %14939 = vmatmul.mubr.msk.f32.gmra.mrb[6].mxu0 %vm93_vm1, %v83_v18  ;;  %17112 = vmatpush3.bf16.msra.mxu1 %v17109_v45 }
  0x18   :  { %14941 = vmatprep.mubr.msk.f32.mxu0 %vm93_vm1, %v84_v19 }
  0x1b   :  { %14942 = vmatmul.mubr.msk.f32.gmra.mrb[8].mxu0 %vm93_vm1, %v85_v22 }
  0x1c   :  { %14944 = vmatprep.mubr.msk.f32.mxu0 %vm93_vm1, %v86_v23 }
  0x1f   :  { %14945 = vmatmul.mubr.msk.f32.gmra.mrb[10].mxu0 %vm93_vm1, %v87_v26 }
  0x20   :  { %14947 = vmatprep.mubr.msk.f32.mxu0 %vm93_vm1, %v88_v27 }
  0x23   :  { %14948 = vmatmul.mubr.msk.f32.gmra.mrb[12].mxu0 %vm93_vm1, %v89_v30 }
  0x24   :  { %14950 = vmatprep.mubr.msk.f32.mxu0 %vm93_vm1, %v90_v31 }
  0x27   :  { %14951 = vmatmul.mubr.msk.f32.gmra.mrb[14].mxu0 %vm93_vm1, %v91_v33 }
  0xde   :  { %v19165_v47 = vpop.f32.mrb[0].mxu0 }
  0xdf   :  { %25056 = vst [vmem:[#allocation2_spill] sm:$0xff] %v19165_v47  ;;  %v19167_v48 = vpop.f32.mrb[1].mxu0  ;;  %v19171_v49 = vadd.f32 %v19165_v47, %v19163_v46 }
  0xe0   :  { %25057 = vst [vmem:[#allocation3_spill] sm:$0xff] %v19167_v48  ;;  %v19184_v54 = vadd.f32 %v19163_v46, %v19167_v48 }
  0xe1   :  { %v424_v52 = vand.u32 2139095040, %v19171_v49  ;;  %v24930_v16 = vand.u32 2147483647, %v19171_v49 }
  0xe2   :  { %v19173_v50 = vpop.f32.mrb[2].mxu0  ;;  %v320_v62 = vand.u32 2139095040, %v19184_v54  ;;  %v24931_v15 = vand.u32 2147483647, %v19184_v54 }
  0xe3   :  { %25058 = vst [vmem:[#allocation4_spill] sm:$0xff] %v19173_v50  ;;  %v19175_v51 = vpop.f32.mrb[3].mxu0  ;;  %v19180_v53 = vadd.f32 %v19173_v50, %v19163_v46  ;;  %v425_v59 = vshrl.u32 %v424_v52, 23  ;;  %v428_v27 = vand.u32 8388607, %v24930_v16 }
  0xe4   :  { %25059 = vst [vmem:[#allocation5_spill] sm:$0xff] %v19175_v51  ;;  %v19188_v55 = vadd.f32 %v19163_v46, %v19175_v51  ;;  %v321_v4 = vshrl.u32 %v320_v62, 23  ;;  %v324_v26 = vand.u32 8388607, %v24931_v15 }
  0xe5   :  { %v632_v60 = vand.u32 2139095040, %v19180_v53  ;;  %v12556_v2 = vadd.s32 4294967169, %v425_v59  ;;  %v429_v38 = vor.u32 8388608, %v428_v27 }
  0xe6   :  { %v19190_v56 = vpop.f32.mrb[4].mxu0  ;;  %v528_v63 = vand.u32 2139095040, %v19188_v55  ;;  %v12552_v10 = vadd.s32 4294967169, %v321_v4  ;;  %v325_v37 = vor.u32 8388608, %v324_v26 }
  0xe7   :  { %25060 = vst [vmem:[#allocation6_spill] sm:$0xff] %v19190_v56  ;;  %v19194_v57 = vadd.f32 %v19190_v56, %v19163_v46  ;;  %v19196_v58 = vpop.f32.mrb[5].mxu0  ;;  %v633_v3 = vshrl.u32 %v632_v60, 23  ;;  %v431_v8 = vadd.s32 1, %v12556_v2 }
  0xe8   :  { %25062 = vst [vmem:[#allocation8_spill] sm:$0xff] %v19196_v58  ;;  %v19201_v61 = vadd.f32 %v19163_v46, %v19196_v58  ;;  %v529_v5 = vshrl.u32 %v528_v63, 23  ;;  %v327_v19 = vadd.s32 1, %v12552_v10  ;;  %v19264_v4 = vshll.u32 %v325_v37, 8 }
  0xe9   :  { %25061 = vst [vmem:[#allocation7_spill] sm:$0xff] %v19194_v57  ;;  %v12564_v9 = vadd.s32 4294967169, %v633_v3  ;;  %v840_v12 = vand.u32 2139095040, %v19194_v57  ;;  %vm432_vm2 = vcmp.gt.s32.totalorder %v431_v8, 0  ;;  %v24942_v37 = vmov 1326507024  }
  0xea   :  { %v19205_v0 = vpop.f32.mrb[6].mxu0  ;;  %v12560_v11 = vadd.s32 4294967169, %v529_v5  ;;  %v736_v18 = vand.u32 2139095040, %v19201_v61  ;;  %v433_v24 = vsel %vm432_vm2, %v431_v8, 0  ;;  %vm328_vm4 = vcmp.gt.s32.totalorder %v327_v19, 0 }
  0xeb   :  { %25063 = vst [vmem:[#allocation9_spill] sm:$0xff] %v19205_v0  ;;  %v19207_v1 = vpop.f32.mrb[7].mxu0  ;;  %v639_v17 = vadd.s32 1, %v12564_v9  ;;  %v841_v21 = vshrl.u32 %v840_v12, 23  ;;  %v19223_v22 = vadd.f32 %v19205_v0, %v19163_v46  ;;  %v19234_v31 = vand.u32 31, %v433_v24 }
  0xec   :  { %25064 = vst [vmem:[#allocation10_spill] sm:$0xff] %v19207_v1  ;;  %v535_v20 = vadd.s32 1, %v12560_v11  ;;  %v737_v28 = vshrl.u32 %v736_v18, 23  ;;  %v19240_v35 = vadd.f32 %v19163_v46, %v19207_v1  ;;  %v329_v43 = vsel %vm328_vm4, %v327_v19, 0 }
  0xed   :  { %25069 = vst [vmem:[#allocation15_spill] sm:$0xff] %v19223_v22  ;;  %vm640_vm3 = vcmp.gt.s32.totalorder %v639_v17, 0  ;;  %v1048_v30 = vand.u32 2139095040, %v19223_v22  ;;  %v12572_v32 = vadd.s32 4294967169, %v841_v21  ;;  %v19256_v59 = vsub.s32 32, %v19234_v31 }
  0xee   :  { %v19209_v6 = vpop.f32.mrb[8].mxu0  ;;  %vm536_vm5 = vcmp.gt.s32.totalorder %v535_v20, 0  ;;  %v641_v34 = vsel %vm640_vm3, %v639_v17, 0  ;;  %25073 = vst [vmem:[#allocation19_spill] sm:$0xff] %v19240_v35  ;;  %v12568_v39 = vadd.s32 4294967169, %v737_v28  ;;  %v19261_v2 = vshrl.u32 %v433_v24, 5 }
  0xef   :  { %25065 = vst [vmem:[#allocation11_spill] sm:$0xff] %v19209_v6  ;;  %v19211_v7 = vpop.f32.mrb[9].mxu0  ;;  %v19246_v40 = vadd.f32 %v19209_v6, %v19163_v46  ;;  %v537_v44 = vsel %vm536_vm5, %v535_v20, 0  ;;  %v1049_v45 = vshrl.u32 %v1048_v30, 23  ;;  %v19258_v60 = vand.u32 31, %v641_v34 }
  0xf0   :  { %25066 = vst [vmem:[#allocation12_spill] sm:$0xff] %v19211_v7  ;;  %v19253_v52 = vadd.f32 %v19163_v46, %v19211_v7  ;;  %v847_v62 = vadd.s32 1, %v12572_v32  ;;  %v944_v3 = vand.u32 2139095040, %v19240_v35  ;;  %v19266_v5 = vshll.u32 %v429_v38, 8 }
  0xf1   :  { %25075 = vst [vmem:[#allocation21_spill] sm:$0xff] %v19246_v40  ;;  %v19268_v8 = vand.u32 31, %v329_v43  ;;  %v19270_v9 = vand.u32 31, %v537_v44  ;;  %v743_v10 = vadd.s32 1, %v12568_v39  ;;  %v1256_v11 = vand.u32 2139095040, %v19246_v40 }
  0xf2   :  { %v19214_v13 = vpop.f32.mrb[10].mxu0  ;;  %25077 = vst [vmem:[#allocation23_spill] sm:$0xff] %v19253_v52  ;;  %v19273_v12 = vshrl.u32 %v329_v43, 5  ;;  %v12580_v17 = vadd.s32 4294967169, %v1049_v45  ;;  %v24932_v20 = vmov 2102212464   ;;  %v451_v38 = vshrl.u32 %v24942_v37, %v19256_v59 }
  0xf3   :  { %25067 = vst [vmem:[#allocation13_spill] sm:$0xff] %v19214_v13  ;;  %v19216_v14 = vpop.f32.mrb[11].mxu0  ;;  %v19277_v18 = vadd.f32 %v19214_v13, %v19163_v46  ;;  %v447_v21 = vshll.u32 %v24932_v20, %v19234_v31  ;;  %v24964_v24 = vmov 920167782   ;;  %v19288_v27 = vsub.s32 32, %v19258_v60 }
  0xf4   :  { %25068 = vst [vmem:[#allocation14_spill] sm:$0xff] %v19216_v14  ;;  %v19281_v19 = vadd.f32 %v19163_v46, %v19216_v14  ;;  %v448_v26 = vshrl.u32 %v24964_v24, %v19256_v59  ;;  %vm848_vm6 = vcmp.gt.s32.totalorder %v847_v62, 0  ;;  %v450_v28 = vshll.u32 %v24964_v24, %v19234_v31 }
  0xf5   :  { %25078 = vst [vmem:[#allocation24_spill] sm:$0xff] %v19277_v18  ;;  %v945_v29 = vshrl.u32 %v944_v3, 23  ;;  %v1257_v30 = vshrl.u32 %v1256_v11, 23  ;;  %v1152_v32 = vand.u32 2139095040, %v19253_v52  ;;  %vm456_vm7 = vcmp.lt.s32.totalorder %v19261_v2, 4 }
  0xf6   :  { %v19225_v23 = vpop.f32.mrb[12].mxu0  ;;  %25079 = vst [vmem:[#allocation25_spill] sm:$0xff] %v19281_v19  ;;  %v19297_v39 = vsub.s32 32, %v19268_v8  ;;  %v19300_v43 = vsub.s32 32, %v19270_v9  ;;  %vm744_vm8 = vcmp.gt.s32.totalorder %v743_v10, 0  ;;  %v19302_v45 = vshrl.u32 %v641_v34, 5 }
  0xf7   :  { %25070 = vst [vmem:[#allocation16_spill] sm:$0xff] %v19225_v23  ;;  %v19227_v25 = vpop.f32.mrb[13].mxu0  ;;  %v849_v42 = vsel %vm848_vm6, %v847_v62, 0  ;;  %v1055_v3 = vadd.s32 1, %v12580_v17  ;;  %v1464_v11 = vand.u32 2139095040, %v19277_v18  ;;  %v19305_v16 = vor.u32 %v448_v26, %v447_v21 }
  0xf8   :  { %25071 = vst [vmem:[#allocation17_spill] sm:$0xff] %v19227_v25  ;;  %v656_v15 = vshrl.u32 %v24964_v24, %v19288_v27  ;;  %v659_v63 = vshrl.u32 %v24942_v37, %v19288_v27  ;;  %v19311_v20 = vshrl.u32 %v537_v44, 5  ;;  %v745_v13 = vsel %vm744_vm8, %v743_v10, 0 }
  0xf9   :  { %v12576_v14 = vadd.s32 4294967169, %v945_v29  ;;  %v12588_v6 = vadd.s32 4294967169, %v1257_v30  ;;  %v1153_v7 = vshrl.u32 %v1152_v32, 23  ;;  %v25080_v34 = vmov 2102212464  }
  0xfa   :  { %v19236_v33 = vpop.f32.mrb[14].mxu0  ;;  %v655_v62 = vshll.u32 %v25080_v34, %v19258_v60  ;;  %v552_v17 = vshrl.u32 %v24964_v24, %v19300_v43  ;;  %v555_v21 = vshrl.u32 %v24942_v37, %v19300_v43  ;;  %v19319_v26 = vand.u32 31, %v849_v42 }
  0xfb   :  { %25072 = vst [vmem:[#allocation18_spill] sm:$0xff] %v19236_v33  ;;  %v19242_v36 = vpop.f32.mrb[15].mxu0  ;;  %v452_v18 = vor.u32 %v451_v38, %v450_v28  ;;  %v658_v44 = vshll.u32 %v24964_v24, %v19258_v60  ;;  %vm1056_vm9 = vcmp.gt.s32.totalorder %v1055_v3, 0  ;;  %v1465_v10 = vshrl.u32 %v1464_v11, 23 }
  0xfc   :  { %25074 = vst [vmem:[#allocation20_spill] sm:$0xff] %v19242_v36  ;;  %25081 = vst [vmem:[#allocation26_spill] sm:$0xff] %v19319_v26  ;;  %v19323_v29 = vor.u32 %v656_v15, %v655_v62  ;;  %v551_v30 = vshll.u32 %v25080_v34, %v19270_v9  ;;  %v554_v32 = vshll.u32 %v24964_v24, %v19270_v9  ;;  %v19329_v0 = vand.u32 31, %v745_v13 }
  0xfd   :  { %v660_v1 = vor.u32 %v659_v63, %v658_v44  ;;  %v951_v37 = vadd.s32 1, %v12576_v14  ;;  %v1263_v40 = vadd.s32 1, %v12588_v6  ;;  %v12584_v56 = vadd.s32 4294967169, %v1153_v7 }
  0xfe   :  { %25082 = vst [vmem:[#allocation27_spill] sm:$0xff] %v19329_v0  ;;  %v19331_v28 = vor.u32 %v552_v17, %v551_v30  ;;  %v556_v38 = vor.u32 %v555_v21, %v554_v32  ;;  %v19334_v52 = vsub.s32 32, %v19319_v26  ;;  %v1057_v15 = vsel %vm1056_vm9, %v1055_v3, 0 }
  0xff   :  { %v19339_v11 = vsel %vm456_vm7, %v19305_v16, 920167782  ;;  %vm664_vm10 = vcmp.lt.s32.totalorder %v19302_v45, 4  ;;  %v19342_v62 = vshrl.u32 %v849_v42, 5  ;;  %v12596_v63 = vadd.s32 4294967169, %v1465_v10 }
 0x100   :  { %25083 = vst [vmem:[#allocation28_spill] sm:$0xff] %v19334_v52  ;;  %v19346_v6 = vsel %vm456_vm7, %v452_v18, 1326507024  ;;  %v19351_v7 = vsel %vm664_vm10, %v19323_v29, 920167782  ;;  %vm560_vm11 = vcmp.lt.s32.totalorder %v19311_v20, 4  ;;  %v864_v44 = vshrl.u32 %v24964_v24, %v19334_v52 }
 0x101   :  { %25084 = vst [vmem:[#allocation29_spill] sm:$0xff] %v19342_v62  ;;  %v19355_v14 = vsub.s32 32, %v19329_v0  ;;  %v19357_v3 = vand.u32 31, %v1057_v15  ;;  %vm952_vm12 = vcmp.gt.s32.totalorder %v951_v37, 0  ;;  %vm1264_vm13 = vcmp.gt.s32.totalorder %v1263_v40, 0 }
 0x102   :  { %v1159_v42 = vadd.s32 1, %v12584_v56  ;;  %v19361_v17 = vsel %vm664_vm10, %v660_v1, 1326507024  ;;  %v19366_v18 = vsel %vm560_vm11, %v19331_v28, 920167782  ;;  %v863_v10 = vshll.u32 %v25080_v34, %v19319_v26 }
 0x103   :  { %25085 = vst [vmem:[#allocation30_spill] sm:$0xff] %v19355_v14  ;;  %25086 = vst [vmem:[#allocation31_spill] sm:$0xff] %v19357_v3  ;;  %v19370_v21 = vsel %vm560_vm11, %v556_v38, 1326507024  ;;  %v866_v56 = vshll.u32 %v24964_v24, %v19319_v26  ;;  %vm872_vm14 = vcmp.lt.s32.totalorder %v19342_v62, 4  ;;  %v1471_v1 = vadd.s32 1, %v12596_v63 }
 0x104   :  { %v25087_v30 = vmov 1326507024   ;;  %v953_v58 = vsel %vm952_vm12, %v951_v37, 0  ;;  %v1265_v22 = vsel %vm1264_vm13, %v1263_v40, 0  ;;  %v1360_v38 = vand.u32 2139095040, %v19281_v19 }
 0x105   :  { %v867_v32 = vshrl.u32 %v25087_v30, %v19334_v52  ;;  %v19382_v50 = vshrl.u32 %v745_v13, 5  ;;  %v760_v35 = vshrl.u32 %v24964_v24, %v19355_v14  ;;  %v19387_v51 = vsub.s32 32, %v19357_v3 }
 0x106   :  { %vm1160_vm15 = vcmp.gt.s32.totalorder %v1159_v42, 0  ;;  %v19389_v26 = vor.u32 %v864_v44, %v863_v10  ;;  %v759_v63 = vshll.u32 %v25080_v34, %v19329_v0  ;;  %v762_v37 = vshll.u32 %v24964_v24, %v19329_v0 }
 0x107   :  { %25088 = vst [vmem:[#allocation32_spill] sm:$0xff] %v19382_v50  ;;  %25089 = vst [vmem:[#allocation33_spill] sm:$0xff] %v19387_v51  ;;  %v763_v40 = vshrl.u32 %v25087_v30, %v19355_v14  ;;  %v19397_v13 = vand.u32 31, %v953_v58  ;;  %v19399_v19 = vand.u32 31, %v1265_v22  ;;  %vm1472_vm0 = vcmp.gt.s32.totalorder %v1471_v1, 0 }
 0x108   :  { %25090 = vst [vmem:[#allocation34_spill] sm:$0xff] %v19389_v26  ;;  %v19403_v52 = vadd.f32 %v19225_v23, %v19163_v46  ;;  %v1161_v44 = vsel %vm1160_vm15, %v1159_v42, 0  ;;  %v1361_v10 = vshrl.u32 %v1360_v38, 23  ;;  %v19407_v57 = vadd.f32 %v19163_v46, %v19227_v25 }
 0x109   :  { %25091 = vst [vmem:[#allocation35_spill] sm:$0xff] %v19397_v13  ;;  %25092 = vst [vmem:[#allocation36_spill] sm:$0xff] %v19399_v19  ;;  %v19411_v24 = vadd.f32 %v19236_v33, %v19163_v46  ;;  %v868_v47 = vor.u32 %v867_v32, %v866_v56  ;;  %v19413_v48 = vor.u32 %v760_v35, %v759_v63  ;;  %vm768_vm1 = vcmp.lt.s32.totalorder %v19382_v50, 4 }
 0x10a   :  { %25093 = vst [vmem:[#allocation37_spill] sm:$0xff] %v19403_v52  ;;  %25094 = vst [vmem:[#allocation38_spill] sm:$0xff] %v19407_v57  ;;  %v25097_v0 = vmov 920167782   ;;  %v764_v23 = vor.u32 %v763_v40, %v762_v37  ;;  %v19418_v41 = vshrl.u32 %v1057_v15, 5  ;;  %v1075_v42 = vshrl.u32 %v25087_v30, %v19387_v51 }
 0x10b   :  { %25095 = vst [vmem:[#allocation39_spill] sm:$0xff] %v19411_v24  ;;  %25096 = vst [vmem:[#allocation40_spill] sm:$0xff] %v19413_v48  ;;  %v1072_v14 = vshrl.u32 %v25097_v0, %v19387_v51  ;;  %v1473_v38 = vsel %vm1472_vm0, %v1471_v1, 0  ;;  %v1071_v25 = vshll.u32 %v25080_v34, %v19357_v3  ;;  %v19425_v33 = vsub.s32 32, %v19397_v13 }
 0x10c   :  { %25098 = vst [vmem:[#allocation41_spill] sm:$0xff] %v19418_v41  ;;  %v19427_v35 = vand.u32 31, %v1161_v44  ;;  %v19431_v56 = vadd.f32 %v19163_v46, %v19242_v36  ;;  %v19436_v15 = vsel %vm872_vm14, %v19389_v26, 920167782  ;;  %v1074_v1 = vshll.u32 %v25097_v0, %v19357_v3 }
 0x10d   :  { %25099 = vst [vmem:[#allocation42_spill] sm:$0xff] %v19425_v33  ;;  %25102 = vst [vmem:[#allocation45_spill] sm:$0xff] %v19436_v15  ;;  %v19441_v32 = vsub.s32 32, %v19399_v19  ;;  %v12592_v63 = vadd.s32 4294967169, %v1361_v10  ;;  %v19445_v37 = vsel %vm872_vm14, %v868_v47, 1326507024  ;;  %v19447_v40 = vor.u32 %v1072_v14, %v1071_v25 }
 0x10e   :  { %25100 = vst [vmem:[#allocation43_spill] sm:$0xff] %v19427_v35  ;;  %25101 = vst [vmem:[#allocation44_spill] sm:$0xff] %v19431_v56  ;;  %v19449_v46 = vshrl.u32 %v953_v58, 5  ;;  %v19451_v36 = vand.u32 31, %v1473_v38  ;;  %v19456_v51 = vsel %vm768_vm1, %v19413_v48, 920167782  ;;  %v1076_v10 = vor.u32 %v1075_v42, %v1074_v1 }
 0x10f   :  { %25103 = vst [vmem:[#allocation46_spill] sm:$0xff] %v19441_v32  ;;  %25104 = vst [vmem:[#allocation47_spill] sm:$0xff] %v19445_v37  ;;  %v19460_v3 = vsel %vm768_vm1, %v764_v23, 1326507024  ;;  %vm1080_vm2 = vcmp.lt.s32.totalorder %v19418_v41, 4  ;;  %v967_v47 = vshll.u32 %v25080_v34, %v19397_v13  ;;  %v968_v58 = vshrl.u32 %v25097_v0, %v19425_v33 }
 0x110   :  { %25105 = vst [vmem:[#allocation48_spill] sm:$0xff] %v19447_v40  ;;  %25106 = vst [vmem:[#allocation49_spill] sm:$0xff] %v19451_v36  ;;  %v971_v25 = vshrl.u32 %v25087_v30, %v19425_v33  ;;  %v19470_v14 = vsub.s32 32, %v19427_v35  ;;  %v970_v26 = vshll.u32 %v25097_v0, %v19397_v13  ;;  %v1280_v23 = vshrl.u32 %v25097_v0, %v19441_v32 }
 0x111   :  { %25107 = vst [vmem:[#allocation50_spill] sm:$0xff] %v19456_v51  ;;  %25108 = vst [vmem:[#allocation51_spill] sm:$0xff] %v19460_v3  ;;  %v1283_v42 = vshrl.u32 %v25087_v30, %v19441_v32  ;;  %v1367_v1 = vadd.s32 1, %v12592_v63  ;;  %v19481_v37 = vsel %vm1080_vm2, %v19447_v40, 920167782  ;;  %vm976_vm3 = vcmp.lt.s32.totalorder %v19449_v46, 4 }
 0x112   :  { %25109 = vst [vmem:[#allocation52_spill] sm:$0xff] %v19470_v14  ;;  %25110 = vst [vmem:[#allocation53_spill] sm:$0xff] %v19481_v37  ;;  %v19484_v33 = vshrl.u32 %v1265_v22, 5  ;;  %v19487_v15 = vsub.s32 32, %v19451_v36  ;;  %v1279_v13 = vshll.u32 %v25080_v34, %v19399_v19  ;;  %v1282_v62 = vshll.u32 %v25097_v0, %v19399_v19 }
 0x113   :  { %v1672_v63 = vand.u32 2139095040, %v19403_v52  ;;  %v1568_v32 = vand.u32 2139095040, %v19407_v57  ;;  %v19495_v48 = vor.u32 %v968_v58, %v967_v47  ;;  %v972_v37 = vor.u32 %v971_v25, %v970_v26 }
 0x114   :  { %25111 = vst [vmem:[#allocation54_spill] sm:$0xff] %v19484_v33  ;;  %25112 = vst [vmem:[#allocation55_spill] sm:$0xff] %v19487_v15  ;;  %v19497_v40 = vshrl.u32 %v1161_v44, 5  ;;  %v1176_v22 = vshrl.u32 %v25097_v0, %v19470_v14  ;;  %v19501_v3 = vor.u32 %v1280_v23, %v1279_v13  ;;  %v1284_v51 = vor.u32 %v1283_v42, %v1282_v62 }
 0x115   :  { %25113 = vst [vmem:[#allocation56_spill] sm:$0xff] %v19495_v48  ;;  %v1179_v50 = vshrl.u32 %v25087_v30, %v19470_v14  ;;  %vm1368_vm4 = vcmp.gt.s32.totalorder %v1367_v1, 0  ;;  %v1175_v52 = vshll.u32 %v25080_v34, %v19427_v35  ;;  %v1178_v47 = vshll.u32 %v25097_v0, %v19427_v35 }
 0x116   :  { %25114 = vst [vmem:[#allocation57_spill] sm:$0xff] %v19497_v40  ;;  %25115 = vst [vmem:[#allocation58_spill] sm:$0xff] %v19501_v3  ;;  %v1488_v26 = vshrl.u32 %v25097_v0, %v19487_v15  ;;  %v1491_v44 = vshrl.u32 %v25087_v30, %v19487_v15  ;;  %v19513_v58 = vshrl.u32 %v1473_v38, 5  ;;  %v1487_v62 = vshll.u32 %v25080_v34, %v19451_v36 }
 0x117   :  { %v1673_v13 = vshrl.u32 %v1672_v63, 23  ;;  %v1569_v25 = vshrl.u32 %v1568_v32, 23  ;;  %v19517_v23 = vor.u32 %v1176_v22, %v1175_v52  ;;  %v1490_v42 = vshll.u32 %v25097_v0, %v19451_v36 }
 0x118   :  { %25116 = vst [vmem:[#allocation59_spill] sm:$0xff] %v19513_v58  ;;  %v1369_v57 = vsel %vm1368_vm4, %v1367_v1, 0  ;;  %v1880_v19 = vand.u32 2139095040, %v19411_v24  ;;  %v19524_v35 = vsel %vm1080_vm2, %v1076_v10, 1326507024  ;;  %vm25046_vm5 = vcmp.lt.s32.totalorder %v19484_v33, 4 }
 0x119   :  { %25117 = vst [vmem:[#allocation60_spill] sm:$0xff] %v19517_v23  ;;  %25118 = vst [vmem:[#allocation61_spill] sm:$0xff] %v19524_v35  ;;  %v19529_v38 = vsel %vm976_vm3, %v19495_v48, 920167782  ;;  %v1180_v32 = vor.u32 %v1179_v50, %v1178_v47  ;;  %v19534_v52 = vsel %vm976_vm3, %v972_v37, 1326507024  ;;  %v19537_v1 = vor.u32 %v1488_v26, %v1487_v62 }
 0x11a   :  { %25119 = vst [vmem:[#allocation62_spill] sm:$0xff] %v19529_v38  ;;  %25120 = vst [vmem:[#allocation63_spill] sm:$0xff] %v19534_v52  ;;  %vm25047_vm6 = vcmp.lt.s32.totalorder %v19497_v40, 4  ;;  %v1492_v63 = vor.u32 %v1491_v44, %v1490_v42  ;;  %v19542_v10 = vsel %vm25046_vm5, %v19501_v3, 920167782  ;;  %v19544_v22 = vand.u32 31, %v1369_v57 }
 0x11b   :  { %25121 = vst [vmem:[#allocation64_spill] sm:$0xff] %v19537_v1  ;;  %25122 = vst [vmem:[#allocation65_spill] sm:$0xff] %v19542_v10  ;;  %v12604_v24 = vadd.s32 4294967169, %v1673_v13  ;;  %v12600_v36 = vadd.s32 4294967169, %v1569_v25  ;;  %v19548_v50 = vsel %vm25046_vm5, %v1284_v51, 1326507024 }
 0x11c   :  { %25123 = vst [vmem:[#allocation66_spill] sm:$0xff] %v19544_v22  ;;  %25124 = vst [vmem:[#allocation67_spill] sm:$0xff] %v19548_v50  ;;  %v19553_v37 = vsel %vm25047_vm6, %v19517_v23, 920167782  ;;  %vm25033_vm8 = vcmp.lt.s32.totalorder %v19513_v58, 4  ;;  %v1881_v47 = vshrl.u32 %v1880_v19, 23  ;;  %v343_v23 = vshll.u32 %v25080_v34, %v19268_v8 }
 0x11d   :  { %25125 = vst [vmem:[#allocation68_spill] sm:$0xff] %v19553_v37  ;;  %v19558_v26 = vsel %vm25047_vm6, %v1180_v32, 1326507024  ;;  %v1776_v44 = vand.u32 2139095040, %v19431_v56  ;;  %v25010_v62 = vmov 683565275  }
 0x11e   :  { %25126 = vst [vmem:[#allocation69_spill] sm:$0xff] %v19558_v26  ;;  %v333_v13 = vshrl.u32 %v25010_v62, %v19297_v39  ;;  %v25012_v51 = vmov 2475754826   ;;  %v19568_v42 = vsel %vm25033_vm8, %v19537_v1, 920167782  ;;  %v19574_v32 = vshrl.u32 %v1369_v57, 5 }
 0x11f   :  { %v335_v25 = vshrl.u32 %v25012_v51, %v19297_v39  ;;  %25127 = vst [vmem:[#allocation70_spill] sm:$0xff] %v19568_v42  ;;  %v19572_v19 = vsel %vm25033_vm8, %v1492_v63, 1326507024  ;;  %v25021_v56 = vmov 2131351028   ;;  %v19579_v62 = vsub.s32 32, %v19544_v22 }
 0x120   :  { %25128 = vst [vmem:[#allocation71_spill] sm:$0xff] %v19572_v19  ;;  %25129 = vst [vmem:[#allocation72_spill] sm:$0xff] %v19574_v32  ;;  %v338_v15 = vshrl.u32 %v25021_v56, %v19297_v39  ;;  %v1679_v10 = vadd.s32 1, %v12604_v24  ;;  %v1575_v51 = vadd.s32 1, %v12600_v36  ;;  %v25131_v3 = vmov 683565275  }
 0x121   :  { %25130 = vst [vmem:[#allocation73_spill] sm:$0xff] %v19579_v62  ;;  %v334_v50 = vshll.u32 %v25131_v3, %v19268_v8  ;;  %v12612_v1 = vadd.s32 4294967169, %v1881_v47  ;;  %v25132_v42 = vmov 2475754826   ;;  %v340_v57 = vshll.u32 %v25021_v56, %v19268_v8 }
 0x122   :  { %v337_v58 = vshll.u32 %v25132_v42, %v19268_v8  ;;  %v341_v63 = vshrl.u32 %v25080_v34, %v19297_v39  ;;  %v1383_v19 = vshll.u32 %v25080_v34, %v19544_v22  ;;  %v19593_v24 = vshll.u32 %v25097_v0, %v19544_v22 }
 0x123   :  { %v1777_v36 = vshrl.u32 %v1776_v44, 23  ;;  %v336_v33 = vor.u32 %v335_v25, %v334_v50  ;;  %v344_v56 = vshrl.u32 %v25097_v0, %v19297_v39  ;;  %v1384_v26 = vshrl.u32 %v25097_v0, %v19579_v62 }
 0x124   :  { %v339_v37 = vor.u32 %v338_v15, %v337_v58  ;;  %v342_v47 = vor.u32 %v341_v63, %v340_v57  ;;  %v19603_v40 = vshrl.u32 %v25087_v30, %v19579_v62  ;;  %v346_v22 = vshll.u32 %v25097_v0, %v19268_v8 }
 0x125   :  { %v347_v15 = vshrl.u32 %v25087_v30, %v19297_v39  ;;  %vm1680_vm9 = vcmp.gt.s32.totalorder %v1679_v10, 0  ;;  %vm1576_vm12 = vcmp.gt.s32.totalorder %v1575_v51, 0  ;;  %v19609_v58 = vadd.s32 1, %v12612_v1 }
 0x126   :  { %v345_v50 = vor.u32 %v344_v56, %v343_v23  ;;  %v19611_v44 = vadd.s32 4294967169, %v1777_v36  ;;  %vm349_vm13 = vcmp.lt.s32.totalorder %v19273_v12, 1  ;;  %vm352_vm15 = vcmp.lt.s32.totalorder %v19273_v12, 4  ;;  %v2013_v56 = vld [vmem:[%s24918_s5] sm:$0xff]  ;;  %v2014_v23 = vld [vmem:[%s24918_s5 + $0x8] sm:$0xff] }
 0x127   :  { %v348_v25 = vor.u32 %v347_v15, %v346_v22  ;;  %vm351_vm0 = vcmp.lt.s32.totalorder %v19273_v12, 3  ;;  %v354_v57 = vsel %vm352_vm15, %v342_v47, 2102212464  ;;  %v357_v63 = vsel %vm349_vm13, %v336_v33, %v339_v37 }
 0x128   :  { %v358_v8 = vsel %vm352_vm15, %v345_v50, 920167782  ;;  %vm350_vm4 = vcmp.lt.s32.totalorder %v19273_v12, 2  ;;  %v353_v39 = vsel %vm349_vm13, %v333_v13, %v336_v33  ;;  %v355_v62 = vsel %vm351_vm0, %v339_v37, %v354_v57 }
 0x129   :  { %v359_v14 = vsel %vm351_vm0, %v342_v47, %v358_v8  ;;  %v19623_v1 = vor.u32 %v1384_v26, %v1383_v19  ;;  %v361_v36 = vsel %vm349_vm13, %v339_v37, %v342_v47  ;;  %v362_v15 = vsel %vm352_vm15, %v348_v25, 1326507024 }
 0x12a   :  { %v360_v22 = vsel %vm350_vm4, %v357_v63, %v359_v14  ;;  %v1681_v35 = vsel %vm1680_vm9, %v1679_v10, 0  ;;  %v363_v41 = vsel %vm351_vm0, %v345_v50, %v362_v15  ;;  %v1577_v13 = vsel %vm1576_vm12, %v1575_v51, 0 }
 0x12b   :  { %25133 = vst [vmem:[#allocation74_spill] sm:$0xff] %v19623_v1  ;;  %v19627_v33 = vmul.u32.u64.low %v19264_v4, %v360_v22  ;;  %v19628_v12 = vmul.u32.u64.high %v19264_v4, %v360_v22, %v19627_v33  ;;  %v356_v57 = vsel %vm350_vm4, %v353_v39, %v355_v62  ;;  %v364_v8 = vsel %vm350_vm4, %v361_v36, %v363_v41 }
 0x12c   :  { %v19632_v38 = vpack.c.bf16 %v2014_v23, %v2013_v56  ;;  %v19635_v26 = vmul.u32.u64.low %v19264_v4, %v364_v8  ;;  %v19636_v19 = vmul.u32.u64.high %v19264_v4, %v364_v8, %v19635_v26  ;;  %v438_v14 = vshll.u32 %v25131_v3, %v19234_v31 }
 0x12d   :  { %v439_v10 = vshrl.u32 %v25132_v42, %v19256_v59  ;;  %v441_v37 = vshll.u32 %v25132_v42, %v19234_v31  ;;  %v25134_v62 = vmov 2131351028   ;;  %v445_v47 = vshrl.u32 %v25080_v34, %v19256_v59 }
 0x12e   :  { %17114 = vmatprep.subr.bf16.mxu1 %v19632_v38  ;;  %v442_v41 = vshrl.u32 %v25134_v62, %v19256_v59  ;;  %v444_v51 = vshll.u32 %v25134_v62, %v19234_v31  ;;  %v372_v50 = vmul.u32 %v19264_v4, %v356_v57  ;;  %v375_v25 = vadd.s32 1, %v19628_v12 }
 0x12f   :  { %v437_v63 = vshrl.u32 %v25131_v3, %v19256_v59  ;;  %v440_v39 = vor.u32 %v439_v10, %v438_v14  ;;  %vm453_vm9 = vcmp.lt.s32.totalorder %v19261_v2, 1  ;;  %vm455_vm12 = vcmp.lt.s32.totalorder %v19261_v2, 3 }
 0x130   :  { %v443_v56 = vor.u32 %v442_v41, %v441_v37  ;;  %v446_v23 = vor.u32 %v445_v47, %v444_v51  ;;  %vm374_vm13 = vc.u32 %v19636_v19, %v19627_v33  ;;  %vm454_vm15 = vcmp.lt.s32.totalorder %v19261_v2, 2 }
 0x131   :  { %v457_v31 = vsel %vm453_vm9, %v437_v63, %v440_v39  ;;  %v467_v4 = vsel %vm455_vm12, %v19305_v16, %v19346_v6  ;;  %vm25034_vm0 = vcmp.lt.s32.totalorder %v19574_v32, 4  ;;  %v376_v59 = vsel %vm374_vm13, %v375_v25, %v19628_v12 }
 0x132   :  { %v458_v22 = vsel %vm456_vm7, %v446_v23, 2102212464  ;;  %v461_v36 = vsel %vm453_vm9, %v440_v39, %v443_v56  ;;  %v463_v15 = vsel %vm455_vm12, %v446_v23, %v19339_v11  ;;  %v377_v57 = vadd.s32 %v376_v59, %v372_v50 }
 0x133   :  { %v459_v8 = vsel %vm455_vm12, %v443_v56, %v458_v22  ;;  %v464_v26 = vsel %vm454_vm15, %v461_v36, %v463_v15  ;;  %v465_v14 = vsel %vm453_vm9, %v443_v56, %v446_v23  ;;  %v1388_v10 = vor.u32 %v19603_v40, %v19593_v24 }
 0x134   :  { %v468_v16 = vsel %vm454_vm15, %v465_v14, %v467_v4  ;;  %v19674_v6 = vmul.u32.u64.low %v19266_v5, %v464_v26  ;;  %v19675_v12 = vmul.u32.u64.high %v19266_v5, %v464_v26, %v19674_v6  ;;  %v19678_v37 = vshrl.u32 %v1681_v35, 5 }
 0x135   :  { %v378_v11 = vadd.s32 536870912, %v377_v57  ;;  %v19681_v41 = vmul.u32.u64.low %v19266_v5, %v468_v16  ;;  %v19682_v51 = vmul.u32.u64.high %v19266_v5, %v468_v16, %v19681_v41  ;;  %v19684_v47 = vand.u32 31, %v1681_v35 }
 0x136   :  { %v19686_v50 = vshrl.u32 %v1577_v13, 5  ;;  %v460_v40 = vsel %vm454_vm15, %v457_v31, %v459_v8  ;;  %v543_v24 = vshrl.u32 %v25132_v42, %v19300_v43  ;;  %v25137_v63 = vand.u32 2147483647, %v19188_v55 }
 0x137   :  { %25135 = vst [vmem:[#allocation75_spill] sm:$0xff] %v19684_v47  ;;  %v379_v25 = vshrl.u32 %v378_v11, 30  ;;  %v542_v56 = vshll.u32 %v25131_v3, %v19270_v9  ;;  %v546_v23 = vshrl.u32 %v25134_v62, %v19300_v43  ;;  %v479_v35 = vadd.s32 1, %v19675_v12 }
 0x138   :  { %25136 = vst [vmem:[#allocation76_spill] sm:$0xff] %v19686_v50  ;;  %v532_v39 = vand.u32 8388607, %v25137_v63  ;;  %v545_v4 = vshll.u32 %v25132_v42, %v19270_v9  ;;  %v548_v2 = vshll.u32 %v25134_v62, %v19270_v9  ;;  %v549_v31 = vshrl.u32 %v25080_v34, %v19300_v43 }
 0x139   :  { %v19705_v59 = vand.u32 31, %v1577_v13  ;;  %vm319_vm7 = vcmp.lt.s32.totalorder %v19184_v54, 0  ;;  %v380_v22 = vshll.u32 %v379_v25, 30  ;;  %v476_v36 = vmul.u32 %v19266_v5, %v460_v40 }
 0x13a   :  { %vm478_vm4 = vc.u32 %v19682_v51, %v19674_v6  ;;  %v544_v8 = vor.u32 %v543_v24, %v542_v56  ;;  %v547_v26 = vor.u32 %v546_v23, %v545_v4  ;;  %v550_v14 = vor.u32 %v549_v31, %v548_v2 }
 0x13b   :  { %25138 = vst [vmem:[#allocation77_spill] sm:$0xff] %v19705_v59  ;;  %v480_v15 = vsel %vm478_vm4, %v479_v35, %v19675_v12  ;;  %v19715_v9 = vsel %vm25034_vm0, %v19623_v1, 920167782  ;;  %v19719_v13 = vsel %vm25034_vm0, %v1388_v10, 1326507024  ;;  %v19721_v16 = vsub.s32 %v377_v57, %v380_v22 }
 0x13c   :  { %25139 = vst [vmem:[#allocation78_spill] sm:$0xff] %v19715_v9  ;;  %25140 = vst [vmem:[#allocation79_spill] sm:$0xff] %v19719_v13  ;;  %v481_v5 = vadd.s32 %v480_v15, %v476_v36  ;;  %v19724_v11 = vsub.s32 32, %v19684_v47  ;;  %v19728_v12 = vshll.u32 %v25080_v34, %v19684_v47  ;;  %v19731_v41 = vadd.s32 1, %v19611_v44 }
 0x13d   :  { %v533_v40 = vor.u32 8388608, %v532_v39  ;;  %vm1888_vm9 = vcmp.gt.s32.totalorder %v19609_v58, 0  ;;  %v25142_v24 = vand.u32 2147483647, %v19184_v54  ;;  %v383_v57 = vsub.s32 0, %v19721_v16 }
 0x13e   :  { %25141 = vst [vmem:[#allocation80_spill] sm:$0xff] %v19724_v11  ;;  %v482_v63 = vadd.s32 536870912, %v481_v5  ;;  %vm557_vm13 = vcmp.lt.s32.totalorder %v19311_v20, 1  ;;  %vm559_vm15 = vcmp.lt.s32.totalorder %v19311_v20, 3  ;;  %v19745_v44 = vshll.u32 %v25097_v0, %v19684_v47 }
 0x13f   :  { %vm19736_vm12 = vcmp.le.f32.partialorder %v25142_v24, 0.7853982  ;;  %v403_v39 = vsub.s32 4, %v379_v25  ;;  %vm423_vm4 = vcmp.lt.s32.totalorder %v19171_v49, 0  ;;  %v565_v56 = vsel %vm557_vm13, %v544_v8, %v547_v26 }
 0x140   :  { %v567_v23 = vsel %vm559_vm15, %v550_v14, %v19366_v18  ;;  %v19754_v35 = vsub.s32 32, %v19705_v59  ;;  %v12553_v4 = vmin.u32 %v383_v57, %v19721_v16  ;;  %v483_v2 = vshrl.u32 %v482_v63, 30 }
 0x141   :  { %v569_v31 = vsel %vm557_vm13, %v547_v26, %v550_v14  ;;  %v19761_v22 = vshll.u32 %v25080_v34, %v19705_v59  ;;  %v541_v36 = vshrl.u32 %v25131_v3, %v19300_v43  ;;  %vm558_vm8 = vcmp.lt.s32.totalorder %v19311_v20, 2 }
 0x142   :  { %v571_v18 = vsel %vm559_vm15, %v19331_v28, %v19370_v21  ;;  %v385_v15 = vclz %v12553_v4  ;;  %v25145_v24 = vand.u32 2147483647, %v19171_v49  ;;  %v562_v63 = vsel %vm560_vm11, %v550_v14, 2102212464 }
 0x143   :  { %v568_v43 = vsel %vm558_vm8, %v565_v56, %v567_v23  ;;  %v573_v47 = vshll.u32 %v533_v40, 8  ;;  %v404_v1 = vsel %vm319_vm7, %v403_v39, %v379_v25  ;;  %v484_v13 = vshll.u32 %v483_v2, 30 }
 0x144   :  { %vm19772_vm0 = vcmp.le.f32.partialorder %v25145_v24, 0.7853982  ;;  %v561_v28 = vsel %vm557_vm13, %v541_v36, %v544_v8  ;;  %v572_v21 = vsel %vm558_vm8, %v569_v31, %v571_v18  ;;  %v12554_v4 = vadd.s32 4294967294, %v385_v15 }
 0x145   :  { %v507_v24 = vsub.s32 4, %v483_v2  ;;  %v19786_v9 = vmul.u32.u64.low %v573_v47, %v572_v21  ;;  %v19787_v32 = vmul.u32.u64.high %v573_v47, %v572_v21, %v19786_v9  ;;  %v19789_v14 = vsub.s32 %v481_v5, %v484_v13 }
 0x146   :  { %v563_v40 = vsel %vm559_vm15, %v547_v26, %v562_v63  ;;  %v19793_v56 = vmul.u32.u64.low %v573_v47, %v568_v43  ;;  %v19794_v23 = vmul.u32.u64.high %v573_v47, %v568_v43, %v19793_v56  ;;  %v19799_v25 = vshrl.u32 %v25097_v0, %v19724_v11 }
 0x147   :  { %v19803_v8 = vshrl.u32 %v25087_v30, %v19724_v11  ;;  %v19807_v9 = vshll.u32 %v25097_v0, %v19705_v59  ;;  %vm12555_vm11 = vcmp.lt.s32.totalorder %v12554_v4, 0  ;;  %v373_v26 = vadd.s32 %v19627_v33, %v19636_v19 }
 0x148   :  { %v388_v13 = vsel %vm12555_vm11, 0, %v12554_v4  ;;  %v406_v5 = vsel %vm19736_vm12, 0, %v404_v1  ;;  %v487_v39 = vsub.s32 0, %v19789_v14  ;;  %v19816_v18 = vsel %vm423_vm4, %v507_v24, %v483_v2 }
 0x149   :  { %v389_v31 = vsub.s32 32, %v388_v13  ;;  %v393_v36 = vsub.s32 4294967266, %v388_v13  ;;  %v564_v15 = vsel %vm558_vm8, %v561_v28, %v563_v40  ;;  %v19823_v63 = vsel %vm1888_vm9, %v19609_v58, 0 }
 0x14a   :  { %v12557_v33 = vmin.u32 %v487_v39, %v19789_v14  ;;  %vm582_vm13 = vc.u32 %v19787_v32, %v19793_v56  ;;  %v583_v1 = vadd.s32 1, %v19794_v23  ;;  %v390_v19 = vshll.u32 %v19721_v16, %v388_v13 }
 0x14b   :  { %v391_v43 = vshrl.u32 %v373_v26, %v389_v31  ;;  %v394_v2 = vadd.s32 127, %v393_v36  ;;  %v477_v20 = vadd.s32 %v19674_v6, %v19682_v51  ;;  %v19832_v28 = vadd.s32 3, %v406_v5 }
 0x14c   :  { %v489_v21 = vclz %v12557_v33  ;;  %v510_v58 = vsel %vm19772_vm0, 0, %v19816_v18  ;;  %v580_v4 = vmul.u32 %v573_v47, %v564_v15  ;;  %v584_v39 = vsel %vm582_vm13, %v583_v1, %v19794_v23 }
 0x14d   :  { %v392_v24 = vor.u32 %v391_v43, %v390_v19  ;;  %v395_v40 = vshll.u32 %v394_v2, 23  ;;  %v25148_v11 = vand.u32 2147483647, %v19180_v53  ;;  %v645_v6 = vshrl.u32 %v25131_v3, %v19288_v27 }
 0x14e   :  { %v12558_v26 = vadd.s32 4294967294, %v489_v21  ;;  %v585_v13 = vadd.s32 %v584_v39, %v580_v4  ;;  %v647_v51 = vshrl.u32 %v25132_v42, %v19288_v27  ;;  %v650_v47 = vshrl.u32 %v25134_v62, %v19288_v27 }
 0x14f   :  { %v19840_v16 = vand.u32 8388607, %v25148_v11  ;;  %v396_v5 = vor.u32 4788187, %v395_v40  ;;  %v652_v31 = vshll.u32 %v25134_v62, %v19258_v60  ;;  %v653_v23 = vshrl.u32 %v25080_v34, %v19288_v27 }
 0x150   :  { %vm12559_vm8 = vcmp.lt.s32.totalorder %v12558_v26, 0  ;;  %vm527_vm9 = vcmp.lt.s32.totalorder %v19188_v55, 0  ;;  %v586_v11 = vadd.s32 536870912, %v585_v13  ;;  %v646_v36 = vshll.u32 %v25131_v3, %v19258_v60 }
 0x151   :  { %v649_v18 = vshll.u32 %v25132_v42, %v19258_v60  ;;  %v397_v15 = vand.u32 2147483647, %v396_v5  ;;  %v399_v33 = vcvt.s32.f32 %v392_v24  ;;  %v492_v1 = vsel %vm12559_vm8, 0, %v12558_v26 }
 0x152   :  { %v654_v19 = vor.u32 %v653_v23, %v652_v31  ;;  %v493_v43 = vsub.s32 32, %v492_v1  ;;  %v497_v2 = vsub.s32 4294967266, %v492_v1  ;;  %v587_v21 = vshrl.u32 %v586_v11, 30 }
 0x153   :  { %v637_v4 = vor.u32 8388608, %v19840_v16  ;;  %v400_v27 = vmul.f32 %v399_v33, %v397_v15  ;;  %v494_v40 = vshll.u32 %v19789_v14, %v492_v1  ;;  %v648_v39 = vor.u32 %v647_v51, %v646_v36 }
 0x154   :  { %v651_v59 = vor.u32 %v650_v47, %v649_v18  ;;  %v495_v50 = vshrl.u32 %v477_v20, %v493_v43  ;;  %v498_v48 = vadd.s32 127, %v497_v2  ;;  %v25149_v52 = vand.u32 2147483647, %v19188_v55 }
 0x155   :  { %v588_v24 = vshll.u32 %v587_v21, 30  ;;  %v666_v26 = vsel %vm664_vm10, %v654_v19, 2102212464  ;;  %v401_v5 = vxor.u32 2147483648, %v400_v27  ;;  %v611_v31 = vsub.s32 4, %v587_v21 }
 0x156   :  { %vm19861_vm15 = vcmp.le.f32.partialorder %v25149_v52, 0.7853982  ;;  %vm661_vm11 = vcmp.lt.s32.totalorder %v19302_v45, 1  ;;  %vm662_vm13 = vcmp.lt.s32.totalorder %v19302_v45, 2  ;;  %v496_v14 = vor.u32 %v495_v50, %v494_v40 }
 0x157   :  { %v499_v16 = vshll.u32 %v498_v48, 23  ;;  %v19869_v20 = vsub.s32 %v585_v13, %v588_v24  ;;  %vm663_vm8 = vcmp.lt.s32.totalorder %v19302_v45, 3  ;;  %v402_v52 = vsel %vm319_vm7, %v401_v5, %v400_v27  ;;  %v25152_v5 = vld [vmem:[#allocation22_spill] sm:$0xff] }
 0x158   :  { %v665_v51 = vsel %vm661_vm11, %v645_v6, %v648_v39  ;;  %v667_v47 = vsel %vm663_vm8, %v651_v59, %v666_v26  ;;  %v669_v23 = vsel %vm661_vm11, %v648_v39, %v651_v59  ;;  %v405_v11 = vsel %vm19736_vm12, %v19184_v54, %v402_v52 }
 0x159   :  { %v500_v50 = vor.u32 4788187, %v499_v16  ;;  %v591_v48 = vsub.s32 0, %v19869_v20  ;;  %v671_v13 = vsel %vm663_vm8, %v654_v19, %v19351_v7  ;;  %18367 = vcosq.f32 %v405_v11 }
 0x15a   :  { %v612_v36 = vsel %vm527_vm9, %v611_v31, %v587_v21  ;;  %v673_v6 = vsel %vm661_vm11, %v651_v59, %v654_v19  ;;  %v675_v18 = vsel %vm663_vm8, %v19323_v29, %v19361_v17  ;;  %18369 = vsinq.f32 %v405_v11 }
 0x15b   :  { %v501_v15 = vand.u32 2147483647, %v500_v50  ;;  %v503_v33 = vcvt.s32.f32 %v496_v14  ;;  %v12561_v10 = vmin.u32 %v591_v48, %v19869_v20  ;;  %v19892_v1 = vshrl.u32 %v25097_v0, %v19754_v35 }
 0x15c   :  { %v411_v7 = vand.u32 3, %v19832_v28  ;;  %v514_v43 = vadd.s32 3, %v510_v58  ;;  %v676_v2 = vsel %vm662_vm13, %v673_v6, %v675_v18  ;;  %v672_v29 = vsel %vm662_vm13, %v669_v23, %v671_v13 }
 0x15d   :  { %v504_v21 = vmul.f32 %v503_v33, %v501_v15  ;;  %v593_v59 = vclz %v12561_v10  ;;  %v677_v17 = vshll.u32 %v637_v4, 8  ;;  %v19901_v19 = vshrl.u32 %v25087_v30, %v19754_v35 }
 0x15e   :  { %v614_v27 = vsel %vm19861_vm15, 0, %v612_v36  ;;  %v668_v28 = vsel %vm662_vm13, %v665_v51, %v667_v47  ;;  %v733_v58 = vand.u32 2147483647, %v19201_v61  ;;  %vm293_vm10 = vcmp.lt.s32.totalorder %v25152_v5, 3  ;;  %v1999_v5 = vld [vmem:[%s24921_s0 + $0x10] sm:$0xff] }
 0x15f   :  { %v505_v40 = vxor.u32 2147483648, %v504_v21  ;;  %v12562_v39 = vadd.s32 4294967294, %v593_v59  ;;  %v19908_v24 = vmul.u32.u64.low %v677_v17, %v676_v2  ;;  %v19909_v26 = vmul.u32.u64.high %v677_v17, %v676_v2, %v19908_v24  ;;  %v25154_v2 = vld [vmem:[#allocation27_spill] sm:$0xff] }
 0x160   :  { %vm412_vm7 = vcmp.lt.s32.totalorder %v411_v7, 2  ;;  %vm413_vm12 = vcmp.eq.s32.totalorder %v411_v7, 0  ;;  %vm416_vm11 = vcmp.eq.s32.totalorder %v411_v7, 2  ;;  %vm409_vm8 = vweird.f32 %v19184_v54 }
 0x161   :  { %v19912_v4 = vmul.u32.u64.low %v677_v17, %v672_v29  ;;  %v19913_v31 = vmul.u32.u64.high %v677_v17, %v672_v29, %v19912_v4  ;;  %vm2029_vm5 = vcmask 523264   ;;  %v506_v45 = vsel %vm423_vm4, %v505_v40, %v504_v21 }
 0x162   :  { %v19919_v14 = vand.u32 3, %v514_v43  ;;  %v581_v16 = vadd.s32 %v19793_v56, %v19787_v32  ;;  %vm12563_vm13 = vcmp.lt.s32.totalorder %v12562_v39, 0  ;;  %v509_v52 = vsel %vm19772_vm0, %v19171_v49, %v506_v45  ;;  %v25153_v56 = vld [vmem:[#allocation30_spill] sm:$0xff] }
 0x163   :  { %v596_v51 = vsel %vm12563_vm13, 0, %v12562_v39  ;;  %v618_v47 = vadd.s32 3, %v614_v27  ;;  %v684_v23 = vmul.u32 %v677_v17, %v668_v28  ;;  %18371 = vcosq.f32 %v509_v52  ;;  %v18368_v13 = vpop.eup %18367 }
 0x164   :  { %v597_v11 = vsub.s32 32, %v596_v51  ;;  %v601_v50 = vsub.s32 4294967266, %v596_v51  ;;  %v19928_v48 = vand.u32 8388607, %v733_v58  ;;  %18373 = vsinq.f32 %v509_v52  ;;  %v18370_v36 = vpop.eup %18369 }
 0x165   :  { %vm686_vm4 = vc.u32 %v19909_v26, %v19912_v4  ;;  %v687_v32 = vadd.s32 1, %v19913_v31  ;;  %v751_v57 = vshrl.u32 %v25132_v42, %v25153_v56  ;;  %v417_v6 = vxor.u32 2147483648, %v18368_v13 }
 0x166   :  { %v598_v18 = vshll.u32 %v19869_v20, %v596_v51  ;;  %v599_v15 = vshrl.u32 %v581_v16, %v597_v11  ;;  %v602_v33 = vadd.s32 127, %v601_v50  ;;  %v414_v10 = vxor.u32 2147483648, %v18370_v36 }
 0x167   :  { %v688_v43 = vsel %vm686_vm4, %v687_v32, %v19913_v31  ;;  %v753_v21 = vshll.u32 %v25132_v42, %v25154_v2  ;;  %v754_v59 = vshrl.u32 %v25134_v62, %v25153_v56  ;;  %v418_v29 = vsel %vm416_vm11, %v417_v6, %v18370_v36 }
 0x168   :  { %vm520_vm0 = vcmp.eq.s32.totalorder %v19919_v14, 2  ;;  %v600_v17 = vor.u32 %v599_v15, %v598_v18  ;;  %v603_v27 = vshll.u32 %v602_v33, 23  ;;  %v689_v28 = vadd.s32 %v688_v43, %v684_v23  ;;  %v25156_v18 = vld [vmem:[#allocation32_spill] sm:$0xff] }
 0x169   :  { %v415_v20 = vsel %vm413_vm12, %v18368_v13, %v414_v10  ;;  %vm517_vm13 = vcmp.eq.s32.totalorder %v19919_v14, 0  ;;  %v750_v40 = vshll.u32 %v25131_v3, %v25154_v2  ;;  %v756_v39 = vshll.u32 %v25134_v62, %v25154_v2  ;;  %v25155_v13 = vld [vmem:[#allocation3_spill] sm:$0xff] }
 0x16a   :  { %v757_v24 = vshrl.u32 %v25080_v34, %v25153_v56  ;;  %v419_v31 = vsel %vm412_vm7, %v415_v20, %v418_v29  ;;  %vm516_vm11 = vcmp.lt.s32.totalorder %v19919_v14, 2  ;;  %v604_v45 = vor.u32 4788187, %v603_v27  ;;  %v25158_v29 = vld [vmem:[#allocation51_spill] sm:$0xff] }
 0x16b   :  { %v690_v16 = vadd.s32 536870912, %v689_v28  ;;  %v755_v52 = vor.u32 %v754_v59, %v753_v21  ;;  %v420_v51 = vsel %vm409_vm8, nan, %v419_v31  ;;  %vm513_vm12 = vweird.f32 %v19171_v49  ;;  %v25157_v59 = vld [vmem:[#allocation50_spill] sm:$0xff]  ;;  %v2015_v49 = vld [vmem:[%s24918_s5 + $0x10] sm:$0xff] }
 0x16c   :  { %v19956_v23 = vand.u32 3, %v618_v47  ;;  %v752_v11 = vor.u32 %v751_v57, %v750_v40  ;;  %v758_v50 = vor.u32 %v757_v24, %v756_v39  ;;  %vm1784_vm4 = vcmp.gt.s32.totalorder %v19731_v41, 0 }
 0x16d   :  { %v1981_v7 = vsel %vm293_vm10, %v25155_v13, %v420_v51  ;;  %v605_v32 = vand.u32 2147483647, %v604_v45  ;;  %v607_v36 = vcvt.s32.f32 %v600_v17  ;;  %v19962_v6 = vshrl.u32 %v690_v16, 30  ;;  %v18372_v57 = vpop.eup %18371 }
 0x16e   :  { %14969 = vmatprep.mubr.msk.f32.mxu1 %vm2029_vm5, %v1981_v7  ;;  %v741_v54 = vor.u32 8388608, %v19928_v48  ;;  %v749_v47 = vshrl.u32 %v25131_v3, %v25153_v56  ;;  %vm765_vm7 = vcmp.lt.s32.totalorder %v25156_v18, 1  ;;  %vm766_vm8 = vcmp.lt.s32.totalorder %v25156_v18, 2  ;;  %v18374_v43 = vpop.eup %18373  ;;  %v25159_v56 = vld [vmem:[#allocation40_spill] sm:$0xff] }
 0x16f   :  { %v608_v15 = vmul.f32 %v607_v36, %v605_v32  ;;  %v692_v33 = vshll.u32 %v19962_v6, 30  ;;  %vm767_vm6 = vcmp.lt.s32.totalorder %v25156_v18, 3  ;;  %v777_v10 = vsel %vm765_vm7, %v755_v52, %v758_v50 }
 0x170   :  { %v521_v2 = vxor.u32 2147483648, %v18372_v57  ;;  %v773_v21 = vsel %vm765_vm7, %v752_v11, %v755_v52  ;;  %v775_v48 = vsel %vm767_vm6, %v758_v50, %v25157_v59  ;;  %v779_v17 = vsel %vm767_vm6, %v25159_v56, %v25158_v29 }
 0x171   :  { %v518_v27 = vxor.u32 2147483648, %v18374_v43  ;;  %v609_v20 = vxor.u32 2147483648, %v608_v15  ;;  %v19979_v40 = vsub.s32 %v689_v28, %v692_v33  ;;  %v769_v39 = vsel %vm765_vm7, %v749_v47, %v752_v11 }
 0x172   :  { %v522_v24 = vsel %vm520_vm0, %v521_v2, %v18374_v43  ;;  %v770_v31 = vsel %vm768_vm1, %v758_v50, 2102212464  ;;  %v780_v45 = vsel %vm766_vm8, %v777_v10, %v779_v17  ;;  %v781_v16 = vshll.u32 %v741_v54, 8  ;;  %v2016_v10 = vld [vmem:[%s24918_s5 + $0x18] sm:$0xff] }
 0x173   :  { %v519_v51 = vsel %vm517_vm13, %v18372_v57, %v518_v27  ;;  %v610_v13 = vsel %vm527_vm9, %v609_v20, %v608_v15  ;;  %v695_v28 = vsub.s32 0, %v19979_v40  ;;  %v776_v11 = vsel %vm766_vm8, %v773_v21, %v775_v48  ;;  %v25160_v15 = vld [vmem:[#allocation2_spill] sm:$0xff] }
 0x174   :  { %v523_v7 = vsel %vm516_vm11, %v519_v51, %v522_v24  ;;  %v613_v50 = vsel %vm19861_vm15, %v19188_v55, %v610_v13  ;;  %v19999_v32 = vmul.u32.u64.low %v781_v16, %v780_v45  ;;  %v20000_v36 = vmul.u32.u64.high %v781_v16, %v780_v45, %v19999_v32  ;;  %v25166_v45 = vld [vmem:[#allocation28_spill] sm:$0xff] }
 0x175   :  { %v524_v54 = vsel %vm513_vm12, nan, %v523_v7  ;;  %18375 = vcosq.f32 %v613_v50  ;;  %v12565_v47 = vmin.u32 %v695_v28, %v19979_v40  ;;  %v771_v57 = vsel %vm767_vm6, %v755_v52, %v770_v31 }
 0x176   :  { %v1982_v14 = vsel %vm293_vm10, %v25160_v15, %v524_v54  ;;  %18377 = vsinq.f32 %v613_v50  ;;  %v20010_v33 = vmul.u32.u64.low %v781_v16, %v776_v11  ;;  %v20011_v60 = vmul.u32.u64.high %v781_v16, %v776_v11, %v20010_v33  ;;  %v25167_v11 = vld [vmem:[#allocation26_spill] sm:$0xff] }
 0x177   :  { %v20021_v43 = vshrl.u32 %v19823_v63, 5  ;;  %v20024_v52 = vand.u32 31, %v19823_v63  ;;  %14970 = vmatmul.mubr.msk.f32.vlgmr.msra.gmra.mrb[0].mxu1 %vm2029_vm5, %v1982_v14  ;;  %v697_v2 = vclz %v12565_v47  ;;  %v715_v21 = vsub.s32 4, %v19962_v6 }
 0x178   :  { %v20030_v59 = vor.u32 %v19799_v25, %v19728_v12  ;;  %v1700_v48 = vor.u32 %v19803_v8, %v19745_v44  ;;  %v20037_v29 = vsel %vm1784_vm4, %v19731_v41, 0  ;;  %17116 = vmatpush3.bf16.msra.mxu1 %v19632_v38  ;;  %v772_v63 = vsel %vm766_vm8, %v769_v39, %v771_v57  ;;  %v25165_v41 = vld [vmem:[#allocation7_spill] sm:$0xff] }
 0x179   :  { %25161 = vst [vmem:[#allocation22_spill] sm:$0xff] %v20024_v52  ;;  %v25162_v56 = vand.u32 2147483647, %v19180_v53  ;;  %v12566_v12 = vadd.s32 4294967294, %v697_v2  ;;  %vm790_vm6 = vc.u32 %v20000_v36, %v20010_v33  ;;  %v17117_v25 = vpack.c.bf16 %v2016_v10, %v2015_v49 }
 0x17a   :  { %vm624_vm9 = vcmp.eq.s32.totalorder %v19956_v23, 2  ;;  %vm631_vm15 = vcmp.lt.s32.totalorder %v19180_v53, 0  ;;  %v791_v38 = vadd.s32 1, %v20011_v60  ;;  %v837_v18 = vand.u32 2147483647, %v25165_v41 }
 0x17b   :  { %vm20044_vm1 = vcmp.le.f32.partialorder %v25162_v56, 0.7853982  ;;  %vm620_vm0 = vcmp.lt.s32.totalorder %v19956_v23, 2  ;;  %v685_v27 = vadd.s32 %v19912_v4, %v19909_v26  ;;  %vm12567_vm13 = vcmp.lt.s32.totalorder %v12566_v12, 0  ;;  %17118 = vmatprep.subr.bf16.mxu1 %v17117_v25 }
 0x17c   :  { %v716_v20 = vsel %vm631_vm15, %v715_v21, %v19962_v6  ;;  %v788_v39 = vmul.u32 %v781_v16, %v772_v63  ;;  %vm617_vm11 = vweird.f32 %v19188_v55  ;;  %v700_v24 = vsel %vm12567_vm13, 0, %v12566_v12  ;;  %17120 = vmatpush3.bf16.msra.mxu1 %v17117_v25 }
 0x17d   :  { %v792_v31 = vsel %vm790_vm6, %v791_v38, %v20011_v60  ;;  %v855_v51 = vshrl.u32 %v25132_v42, %v25166_v45  ;;  %v858_v13 = vshrl.u32 %v25134_v62, %v25166_v45  ;;  %v701_v26 = vsub.s32 32, %v700_v24 }
 0x17e   :  { %v705_v4 = vsub.s32 4294967266, %v700_v24  ;;  %v793_v28 = vadd.s32 %v792_v31, %v788_v39  ;;  %v854_v6 = vshll.u32 %v25131_v3, %v25167_v11  ;;  %v844_v16 = vand.u32 8388607, %v837_v18 }
 0x17f   :  { %v857_v7 = vshll.u32 %v25132_v42, %v25167_v11  ;;  %v860_v50 = vshll.u32 %v25134_v62, %v25167_v11  ;;  %v861_v32 = vshrl.u32 %v25080_v34, %v25166_v45  ;;  %v18376_v54 = vpop.eup %18375  ;;  %v702_v47 = vshll.u32 %v19979_v40, %v700_v24 }
 0x180   :  { %v703_v57 = vshrl.u32 %v685_v27, %v701_v26  ;;  %v706_v15 = vadd.s32 127, %v705_v4  ;;  %v794_v14 = vadd.s32 536870912, %v793_v28  ;;  %v18378_v60 = vpop.eup %18377  ;;  %v625_v49 = vxor.u32 2147483648, %v18376_v54  ;;  %v25168_v26 = vld [vmem:[#allocation29_spill] sm:$0xff] }
 0x181   :  { %v856_v10 = vor.u32 %v855_v51, %v854_v6  ;;  %v859_v2 = vor.u32 %v858_v13, %v857_v7  ;;  %v862_v21 = vor.u32 %v861_v32, %v860_v50  ;;  %v622_v63 = vxor.u32 2147483648, %v18378_v60  ;;  %v25170_v50 = vld [vmem:[#allocation5_spill] sm:$0xff] }
 0x182   :  { %v704_v56 = vor.u32 %v703_v57, %v702_v47  ;;  %v707_v12 = vshll.u32 %v706_v15, 23  ;;  %v795_v25 = vshrl.u32 %v794_v14, 30  ;;  %vm621_vm12 = vcmp.eq.s32.totalorder %v19956_v23, 0  ;;  %v25171_v57 = vld [vmem:[#allocation47_spill] sm:$0xff]  ;;  %v25172_v15 = vld [vmem:[#allocation34_spill] sm:$0xff] }
 0x183   :  { %v626_v38 = vsel %vm624_vm9, %v625_v49, %v18378_v60  ;;  %v718_v40 = vsel %vm20044_vm1, 0, %v716_v20  ;;  %v845_v27 = vor.u32 8388608, %v844_v16  ;;  %v623_v39 = vsel %vm621_vm12, %v18376_v54, %v622_v63  ;;  %v25169_v16 = vld [vmem:[#allocation45_spill] sm:$0xff] }
 0x184   :  { %v708_v24 = vor.u32 4788187, %v707_v12  ;;  %v796_v31 = vshll.u32 %v795_v25, 30  ;;  %vm869_vm4 = vcmp.lt.s32.totalorder %v25168_v26, 1  ;;  %v627_v51 = vsel %vm620_vm0, %v623_v39, %v626_v38 }
 0x185   :  { %v711_v13 = vcvt.s32.f32 %v704_v56  ;;  %vm871_vm7 = vcmp.lt.s32.totalorder %v25168_v26, 3  ;;  %v877_v4 = vsel %vm869_vm4, %v856_v10, %v859_v2  ;;  %v628_v11 = vsel %vm617_vm11, nan, %v627_v51 }
 0x186   :  { %v709_v6 = vand.u32 2147483647, %v708_v24  ;;  %v20090_v20 = vsub.s32 %v793_v28, %v796_v31  ;;  %v879_v7 = vsel %vm871_vm7, %v862_v21, %v25169_v16  ;;  %v1983_v23 = vsel %vm293_vm10, %v25170_v50, %v628_v11 }
 0x187   :  { %v853_v32 = vshrl.u32 %v25131_v3, %v25166_v45  ;;  %vm870_vm8 = vcmp.lt.s32.totalorder %v25168_v26, 2  ;;  %v881_v55 = vsel %vm869_vm4, %v859_v2, %v862_v21  ;;  %14972 = vmatprep.mubr.msk.f32.mxu1 %vm2029_vm5, %v1983_v23  ;;  %v874_v47 = vsel %vm872_vm14, %v862_v21, 2102212464 }
 0x188   :  { %v712_v28 = vmul.f32 %v711_v13, %v709_v6  ;;  %v799_v54 = vsub.s32 0, %v20090_v20  ;;  %v883_v14 = vsel %vm871_vm7, %v25172_v15, %v25171_v57  ;;  %v819_v60 = vsub.s32 4, %v795_v25 }
 0x189   :  { %v880_v45 = vsel %vm870_vm8, %v877_v4, %v879_v7  ;;  %v884_v49 = vsel %vm870_vm8, %v881_v55, %v883_v14  ;;  %v885_v63 = vshll.u32 %v845_v27, 8  ;;  %v722_v12 = vadd.s32 3, %v718_v40  ;;  %v25173_v7 = vld [vmem:[#allocation19_spill] sm:$0xff]  ;;  %v25176_v55 = vld [vmem:[#allocation42_spill] sm:$0xff] }
 0x18a   :  { %v713_v56 = vxor.u32 2147483648, %v712_v28  ;;  %vm735_vm6 = vcmp.lt.s32.totalorder %v19201_v61, 0  ;;  %v12569_v38 = vmin.u32 %v799_v54, %v20090_v20  ;;  %v873_v21 = vsel %vm869_vm4, %v853_v32, %v856_v10  ;;  %v25177_v14 = vld [vmem:[#allocation35_spill] sm:$0xff] }
 0x18b   :  { %v875_v39 = vsel %vm871_vm7, %v859_v2, %v874_v47  ;;  %v20121_v24 = vmul.u32.u64.low %v885_v63, %v884_v49  ;;  %v20122_v31 = vmul.u32.u64.high %v885_v63, %v884_v49, %v20121_v24  ;;  %v20132_v40 = vor.u32 %v19892_v1, %v19761_v22 }
 0x18c   :  { %v714_v51 = vsel %vm631_vm15, %v713_v56, %v712_v28  ;;  %v801_v13 = vclz %v12569_v38  ;;  %v20126_v27 = vmul.u32.u64.low %v885_v63, %v880_v45  ;;  %v20127_v4 = vmul.u32.u64.high %v885_v63, %v880_v45, %v20126_v27 }
 0x18d   :  { %v1596_v10 = vor.u32 %v19901_v19, %v19807_v9  ;;  %v717_v2 = vsel %vm20044_vm1, %v19180_v53, %v714_v51  ;;  %v820_v11 = vsel %vm735_vm6, %v819_v60, %v795_v25  ;;  %v876_v16 = vsel %vm870_vm8, %v873_v21, %v875_v39 }
 0x18e   :  { %18379 = vcosq.f32 %v717_v2  ;;  %v12570_v6 = vadd.s32 4294967294, %v801_v13  ;;  %v941_v50 = vand.u32 2147483647, %v25173_v7  ;;  %v723_v22 = vand.u32 3, %v722_v12 }
 0x18f   :  { %18381 = vsinq.f32 %v717_v2  ;;  %vm20146_vm14 = vcmp.le.f32.partialorder %v733_v58, 0.7853982  ;;  %vm894_vm1 = vc.u32 %v20122_v31, %v20126_v27  ;;  %v789_v17 = vadd.s32 %v20010_v33, %v20000_v36 }
 0x190   :  { %vm12571_vm9 = vcmp.lt.s32.totalorder %v12570_v6, 0  ;;  %v822_v25 = vsel %vm20146_vm14, 0, %v820_v11  ;;  %v895_v26 = vadd.s32 1, %v20127_v4  ;;  %v892_v32 = vmul.u32 %v885_v63, %v876_v16 }
 0x191   :  { %v804_v23 = vsel %vm12571_vm9, 0, %v12570_v6  ;;  %v959_v58 = vshrl.u32 %v25132_v42, %v25176_v55  ;;  %v962_v28 = vshrl.u32 %v25134_v62, %v25176_v55  ;;  %v948_v36 = vand.u32 8388607, %v941_v50 }
 0x192   :  { %v805_v54 = vsub.s32 32, %v804_v23  ;;  %v809_v47 = vsub.s32 4294967266, %v804_v23  ;;  %v896_v57 = vsel %vm894_vm1, %v895_v26, %v20127_v4  ;;  %v806_v33 = vshll.u32 %v20090_v20, %v804_v23 }
 0x193   :  { %v897_v15 = vadd.s32 %v896_v57, %v892_v32  ;;  %v958_v60 = vshll.u32 %v25131_v3, %v25177_v14  ;;  %v961_v45 = vshll.u32 %v25132_v42, %v25177_v14  ;;  %v964_v56 = vshll.u32 %v25134_v62, %v25177_v14  ;;  %v25178_v32 = vld [vmem:[#allocation63_spill] sm:$0xff]  ;;  %v25180_v57 = vld [vmem:[#allocation62_spill] sm:$0xff] }
 0x194   :  { %v807_v49 = vshrl.u32 %v789_v17, %v805_v54  ;;  %v810_v63 = vadd.s32 127, %v809_v47  ;;  %v965_v12 = vshrl.u32 %v25080_v34, %v25176_v55  ;;  %vm721_vm15 = vweird.f32 %v19180_v53 }
 0x195   :  { %vm724_vm0 = vcmp.lt.s32.totalorder %v723_v22, 2  ;;  %v898_v38 = vadd.s32 536870912, %v897_v15  ;;  %v960_v20 = vor.u32 %v959_v58, %v958_v60  ;;  %v963_v21 = vor.u32 %v962_v28, %v961_v45 }
 0x196   :  { %vm725_vm13 = vcmp.eq.s32.totalorder %v723_v22, 0  ;;  %v808_v39 = vor.u32 %v807_v49, %v806_v33  ;;  %v811_v24 = vshll.u32 %v810_v63, 23  ;;  %v966_v51 = vor.u32 %v965_v12, %v964_v56 }
 0x197   :  { %vm728_vm11 = vcmp.eq.s32.totalorder %v723_v22, 2  ;;  %v826_v13 = vadd.s32 3, %v822_v25  ;;  %v899_v4 = vshrl.u32 %v898_v38, 30  ;;  %v949_v2 = vor.u32 8388608, %v948_v36  ;;  %v25179_v25 = vld [vmem:[#allocation56_spill] sm:$0xff] }
 0x198   :  { %v18380_v11 = vpop.eup %18379  ;;  %v812_v6 = vor.u32 4788187, %v811_v24  ;;  %vm973_vm12 = vcmp.lt.s32.totalorder %v19449_v46, 1  ;;  %vm974_vm4 = vcmp.lt.s32.totalorder %v19449_v46, 2  ;;  %vm975_vm7 = vcmp.lt.s32.totalorder %v19449_v46, 3 }
 0x199   :  { %v18382_v16 = vpop.eup %18381  ;;  %vm1704_vm8 = vcmp.lt.s32.totalorder %v19678_v37, 4  ;;  %v729_v17 = vxor.u32 2147483648, %v18380_v11  ;;  %v900_v26 = vshll.u32 %v899_v4, 30  ;;  %v981_v23 = vsel %vm973_vm12, %v960_v20, %v963_v21 }
 0x19a   :  { %v987_v58 = vsel %vm975_vm7, %v25179_v25, %v25178_v32  ;;  %v726_v28 = vxor.u32 2147483648, %v18382_v16  ;;  %v813_v54 = vand.u32 2147483647, %v812_v6  ;;  %v815_v47 = vcvt.s32.f32 %v808_v39 }
 0x19b   :  { %v983_v36 = vsel %vm975_vm7, %v966_v51, %v25180_v57  ;;  %v730_v33 = vsel %vm728_vm11, %v729_v17, %v18382_v16  ;;  %v20188_v14 = vsub.s32 %v897_v15, %v900_v26  ;;  %v985_v60 = vsel %vm973_vm12, %v963_v21, %v966_v51  ;;  %v25183_v57 = vld [vmem:[#allocation15_spill] sm:$0xff] }
 0x19c   :  { %v989_v45 = vshll.u32 %v949_v2, 8  ;;  %v727_v49 = vsel %vm725_vm13, %v18380_v11, %v726_v28  ;;  %v816_v63 = vmul.f32 %v815_v47, %v813_v54  ;;  %v978_v56 = vsel %vm976_vm3, %v966_v51, 2102212464  ;;  %v25181_v51 = vld [vmem:[#allocation4_spill] sm:$0xff] }
 0x19d   :  { %v988_v12 = vsel %vm974_vm4, %v985_v60, %v987_v58  ;;  %v731_v38 = vsel %vm724_vm0, %v727_v49, %v730_v33  ;;  %v903_v39 = vsub.s32 0, %v20188_v14  ;;  %v957_v15 = vshrl.u32 %v25131_v3, %v25176_v55 }
 0x19e   :  { %v984_v24 = vsel %vm974_vm4, %v981_v23, %v983_v36  ;;  %v732_v2 = vsel %vm721_vm15, nan, %v731_v38  ;;  %v817_v11 = vxor.u32 2147483648, %v816_v63  ;;  %v979_v55 = vsel %vm975_vm7, %v963_v21, %v978_v56  ;;  %v25186_v56 = vld [vmem:[#allocation33_spill] sm:$0xff] }
 0x19f   :  { %v20205_v6 = vmul.u32.u64.low %v989_v45, %v988_v12  ;;  %v20206_v16 = vmul.u32.u64.high %v989_v45, %v988_v12, %v20205_v6  ;;  %v1984_v22 = vsel %vm293_vm10, %v25181_v51, %v732_v2  ;;  %v12573_v17 = vmin.u32 %v903_v39, %v20188_v14  ;;  %v25187_v2 = vld [vmem:[#allocation31_spill] sm:$0xff] }
 0x1a0   :  { %v977_v26 = vsel %vm973_vm12, %v957_v15, %v960_v20  ;;  %v20217_v23 = vsub.s32 32, %v20024_v52  ;;  %14973 = vmatmul.mubr.msk.f32.gmra.mrb[2].mxu1 %vm2029_vm5, %v1984_v22  ;;  %v818_v53 = vsel %vm735_vm6, %v817_v11, %v816_v63  ;;  %v20228_v58 = vshll.u32 %v25080_v34, %v20024_v52 }
 0x1a1   :  { %v20222_v32 = vmul.u32.u64.low %v989_v45, %v984_v24  ;;  %v20223_v25 = vmul.u32.u64.high %v989_v45, %v984_v24, %v20222_v32  ;;  %v821_v20 = vsel %vm20146_vm14, %v19201_v61, %v818_v53  ;;  %v905_v21 = vclz %v12573_v17 }
 0x1a2   :  { %25182 = vst [vmem:[#allocation30_spill] sm:$0xff] %v20217_v23  ;;  %v923_v28 = vsub.s32 4, %v899_v4  ;;  %v20236_v54 = vsel %vm1704_vm8, %v20030_v59, 920167782  ;;  %18383 = vcosq.f32 %v821_v20  ;;  %v980_v47 = vsel %vm974_vm4, %v977_v26, %v979_v55 }
 0x1a3   :  { %v1045_v36 = vand.u32 2147483647, %v25183_v57  ;;  %18385 = vsinq.f32 %v821_v20  ;;  %v827_v33 = vand.u32 3, %v826_v13  ;;  %v12574_v60 = vadd.s32 4294967294, %v905_v21 }
 0x1a4   :  { %vm998_vm3 = vc.u32 %v20206_v16, %v20222_v32  ;;  %vm20245_vm6 = vcmp.le.f32.partialorder %v837_v18, 0.7853982  ;;  %vm839_vm14 = vcmp.lt.s32.totalorder %v25165_v41, 0  ;;  %v893_v46 = vadd.s32 %v20126_v27, %v20122_v31 }
 0x1a5   :  { %v999_v49 = vadd.s32 1, %v20223_v25  ;;  %vm12575_vm1 = vcmp.lt.s32.totalorder %v12574_v60, 0  ;;  %v20255_v13 = vsel %vm839_vm14, %v923_v28, %v899_v4  ;;  %v996_v63 = vmul.u32 %v989_v45, %v980_v47  ;;  %v25188_v47 = vld [vmem:[#allocation41_spill] sm:$0xff] }
 0x1a6   :  { %v1066_v12 = vshrl.u32 %v25134_v62, %v25186_v56  ;;  %v908_v18 = vsel %vm12575_vm1, 0, %v12574_v60  ;;  %v1052_v39 = vand.u32 8388607, %v1045_v36  ;;  %v1063_v31 = vshrl.u32 %v25132_v42, %v25186_v56 }
 0x1a7   :  { %v1000_v38 = vsel %vm998_vm3, %v999_v49, %v20223_v25  ;;  %vm829_vm9 = vcmp.eq.s32.totalorder %v827_v33, 0  ;;  %v909_v27 = vsub.s32 32, %v908_v18  ;;  %v913_v15 = vsub.s32 4294967266, %v908_v18 }
 0x1a8   :  { %v1001_v24 = vadd.s32 %v1000_v38, %v996_v63  ;;  %v1065_v4 = vshll.u32 %v25132_v42, %v25187_v2  ;;  %vm828_vm15 = vcmp.lt.s32.totalorder %v827_v33, 2  ;;  %v910_v45 = vshll.u32 %v20188_v14, %v908_v18  ;;  %v25189_v63 = vld [vmem:[#allocation61_spill] sm:$0xff] }
 0x1a9   :  { %v1062_v11 = vshll.u32 %v25131_v3, %v25187_v2  ;;  %v1068_v6 = vshll.u32 %v25134_v62, %v25187_v2  ;;  %v1069_v51 = vshrl.u32 %v25080_v34, %v25186_v56  ;;  %vm825_vm0 = vweird.f32 %v19201_v61 }
 0x1aa   :  { %v911_v22 = vshrl.u32 %v893_v46, %v909_v27  ;;  %v914_v17 = vadd.s32 127, %v913_v15  ;;  %v1002_v26 = vadd.s32 536870912, %v1001_v24  ;;  %v1067_v55 = vor.u32 %v1066_v12, %v1065_v4  ;;  %v25190_v12 = vld [vmem:[#allocation48_spill] sm:$0xff] }
 0x1ab   :  { %vm832_vm13 = vcmp.eq.s32.totalorder %v827_v33, 2  ;;  %v926_v14 = vsel %vm20245_vm6, 0, %v20255_v13  ;;  %v1064_v53 = vor.u32 %v1063_v31, %v1062_v11  ;;  %v1070_v25 = vor.u32 %v1069_v51, %v1068_v6 }
 0x1ac   :  { %v912_v20 = vor.u32 %v911_v22, %v910_v45  ;;  %v915_v21 = vshll.u32 %v914_v17, 23  ;;  %v1003_v28 = vshrl.u32 %v1002_v26, 30  ;;  %vm1079_vm11 = vcmp.lt.s32.totalorder %v25188_v47, 3  ;;  %v18384_v60 = vpop.eup %18383 }
 0x1ad   :  { %v1053_v49 = vor.u32 8388608, %v1052_v39  ;;  %v1061_v46 = vshrl.u32 %v25131_v3, %v25186_v56  ;;  %vm1077_vm12 = vcmp.lt.s32.totalorder %v25188_v47, 1  ;;  %v1091_v18 = vsel %vm1079_vm11, %v25190_v12, %v25189_v63  ;;  %v18386_v13 = vpop.eup %18385  ;;  %v25191_v39 = vld [vmem:[#allocation53_spill] sm:$0xff] }
 0x1ae   :  { %v833_v38 = vxor.u32 2147483648, %v18384_v60  ;;  %v916_v31 = vor.u32 4788187, %v915_v21  ;;  %v1004_v27 = vshll.u32 %v1003_v28, 30  ;;  %v1089_v15 = vsel %vm1077_vm12, %v1067_v55, %v1070_v25 }
 0x1af   :  { %v830_v2 = vxor.u32 2147483648, %v18386_v13  ;;  %vm1078_vm4 = vcmp.lt.s32.totalorder %v25188_v47, 2  ;;  %v1085_v56 = vsel %vm1077_vm12, %v1064_v53, %v1067_v55  ;;  %v1087_v4 = vsel %vm1079_vm11, %v1070_v25, %v25191_v39 }
 0x1b0   :  { %v834_v45 = vsel %vm832_vm13, %v833_v38, %v18386_v13  ;;  %v917_v11 = vand.u32 2147483647, %v916_v31  ;;  %v919_v6 = vcvt.s32.f32 %v912_v20  ;;  %v20294_v51 = vsub.s32 %v1001_v24, %v1004_v27  ;;  %v25192_v38 = vld [vmem:[#allocation8_spill] sm:$0xff] }
 0x1b1   :  { %v831_v22 = vsel %vm829_vm9, %v18384_v60, %v830_v2  ;;  %v1082_v17 = vsel %vm1080_vm2, %v1070_v25, 2102212464  ;;  %v1092_v26 = vsel %vm1078_vm4, %v1089_v15, %v1091_v18  ;;  %v1093_v21 = vshll.u32 %v1053_v49, 8 }
 0x1b2   :  { %v835_v63 = vsel %vm828_vm15, %v831_v22, %v834_v45  ;;  %v920_v12 = vmul.f32 %v919_v6, %v917_v11  ;;  %v1007_v39 = vsub.s32 0, %v20294_v51  ;;  %v1088_v13 = vsel %vm1078_vm4, %v1085_v56, %v1087_v4  ;;  %v25195_v4 = vld [vmem:[#allocation23_spill] sm:$0xff]  ;;  %v25196_v22 = vld [vmem:[#allocation52_spill] sm:$0xff] }
 0x1b3   :  { %v836_v24 = vsel %vm825_vm0, nan, %v835_v63  ;;  %v1081_v20 = vsel %vm1077_vm12, %v1061_v46, %v1064_v53  ;;  %v20309_v60 = vmul.u32.u64.low %v1093_v21, %v1092_v26  ;;  %v20310_v25 = vmul.u32.u64.high %v1093_v21, %v1092_v26, %v20309_v60 }
 0x1b4   :  { %v1985_v33 = vsel %vm293_vm10, %v25192_v38, %v836_v24  ;;  %v921_v49 = vxor.u32 2147483648, %v920_v12  ;;  %v12577_v18 = vmin.u32 %v1007_v39, %v20294_v51  ;;  %v1083_v31 = vsel %vm1079_vm11, %v1067_v55, %v1082_v17 }
 0x1b5   :  { %v20323_v61 = vsel %vm1704_vm8, %v1700_v48, 1326507024  ;;  %14975 = vmatprep.mubr.msk.f32.mxu1 %vm2029_vm5, %v1985_v33  ;;  %v930_v53 = vadd.s32 3, %v926_v14  ;;  %v20326_v46 = vmul.u32.u64.low %v1093_v21, %v1088_v13  ;;  %v20327_v27 = vmul.u32.u64.high %v1093_v21, %v1088_v13, %v20326_v46 }
 0x1b6   :  { %v20332_v15 = vshll.u32 %v25097_v0, %v20024_v52  ;;  %v922_v55 = vsel %vm839_vm14, %v921_v49, %v920_v12  ;;  %v1009_v2 = vclz %v12577_v18  ;;  %v1027_v44 = vsub.s32 4, %v1003_v28  ;;  %v25197_v12 = vld [vmem:[#allocation43_spill] sm:$0xff] }
 0x1b7   :  { %v925_v8 = vsel %vm20245_vm6, %v25165_v41, %v922_v55  ;;  %vm20341_vm2 = vcmp.le.f32.partialorder %v941_v50, 0.7853982  ;;  %vm943_vm7 = vcmp.lt.s32.totalorder %v25173_v7, 0  ;;  %v1084_v14 = vsel %vm1078_vm4, %v1081_v20, %v1083_v31 }
 0x1b8   :  { %18387 = vcosq.f32 %v925_v8  ;;  %v12578_v56 = vadd.s32 4294967294, %v1009_v2  ;;  %vm1102_vm3 = vc.u32 %v20310_v25, %v20326_v46  ;;  %v1149_v45 = vand.u32 2147483647, %v25195_v4  ;;  %v25198_v2 = vld [vmem:[#allocation57_spill] sm:$0xff] }
 0x1b9   :  { %18389 = vsinq.f32 %v925_v8  ;;  %v20351_v1 = vand.u32 3, %v930_v53  ;;  %v997_v50 = vadd.s32 %v20222_v32, %v20206_v16  ;;  %v1103_v11 = vadd.s32 1, %v20327_v27 }
 0x1ba   :  { %vm12579_vm6 = vcmp.lt.s32.totalorder %v12578_v56, 0  ;;  %v1028_v47 = vsel %vm943_vm7, %v1027_v44, %v1003_v28  ;;  %v1100_v6 = vmul.u32 %v1093_v21, %v1084_v14  ;;  %v1167_v17 = vshrl.u32 %v25132_v42, %v25196_v22 }
 0x1bb   :  { %v1012_v26 = vsel %vm12579_vm6, 0, %v12578_v56  ;;  %v1104_v63 = vsel %vm1102_vm3, %v1103_v11, %v20327_v27  ;;  %v1169_v39 = vshll.u32 %v25132_v42, %v25197_v12  ;;  %v1170_v13 = vshrl.u32 %v25134_v62, %v25196_v22  ;;  %v25199_v56 = vld [vmem:[#allocation76_spill] sm:$0xff]  ;;  %v25200_v11 = vld [vmem:[#allocation69_spill] sm:$0xff] }
 0x1bc   :  { %v1013_v16 = vsub.s32 32, %v1012_v26  ;;  %v1017_v32 = vsub.s32 4294967266, %v1012_v26  ;;  %v1105_v24 = vadd.s32 %v1104_v63, %v1100_v6  ;;  %v1156_v20 = vand.u32 8388607, %v1149_v45 }
 0x1bd   :  { %vm933_vm14 = vcmp.eq.s32.totalorder %v20351_v1, 0  ;;  %v1166_v28 = vshll.u32 %v25131_v3, %v25197_v12  ;;  %v1171_v21 = vor.u32 %v1170_v13, %v1169_v39  ;;  %v1172_v60 = vshll.u32 %v25134_v62, %v25197_v12 }
 0x1be   :  { %v1173_v38 = vshrl.u32 %v25080_v34, %v25196_v22  ;;  %vm932_vm1 = vcmp.lt.s32.totalorder %v20351_v1, 2  ;;  %v1014_v33 = vshll.u32 %v20294_v51, %v1012_v26  ;;  %v1015_v49 = vshrl.u32 %v997_v50, %v1013_v16 }
 0x1bf   :  { %v1018_v18 = vadd.s32 127, %v1017_v32  ;;  %v1106_v31 = vadd.s32 536870912, %v1105_v24  ;;  %vm929_vm9 = vweird.f32 %v25165_v41  ;;  %v1030_v53 = vsel %vm20341_vm2, 0, %v1028_v47  ;;  %v25201_v47 = vld [vmem:[#allocation60_spill] sm:$0xff] }
 0x1c0   :  { %v1168_v27 = vor.u32 %v1167_v17, %v1166_v28  ;;  %v1174_v55 = vor.u32 %v1173_v38, %v1172_v60  ;;  %vm1181_vm15 = vcmp.lt.s32.totalorder %v25198_v2, 1  ;;  %v1016_v44 = vor.u32 %v1015_v49, %v1014_v33 }
 0x1c1   :  { %v1019_v8 = vshll.u32 %v1018_v18, 23  ;;  %v20380_v14 = vshrl.u32 %v1106_v31, 30  ;;  %vm1183_vm0 = vcmp.lt.s32.totalorder %v25198_v2, 3  ;;  %vm1600_vm13 = vcmp.lt.s32.totalorder %v25199_v56, 4 }
 0x1c2   :  { %vm936_vm11 = vcmp.eq.s32.totalorder %v20351_v1, 2  ;;  %v1157_v51 = vor.u32 8388608, %v1156_v20  ;;  %v1193_v50 = vsel %vm1181_vm15, %v1171_v21, %v1174_v55  ;;  %v1195_v6 = vsel %vm1183_vm0, %v25201_v47, %v25200_v11  ;;  %v18388_v17 = vpop.eup %18387  ;;  %v25202_v20 = vld [vmem:[#allocation68_spill] sm:$0xff] }
 0x1c3   :  { %v1020_v26 = vor.u32 4788187, %v1019_v8  ;;  %v1034_v63 = vadd.s32 3, %v1030_v53  ;;  %v1108_v12 = vshll.u32 %v20380_v14, 30  ;;  %vm1182_vm12 = vcmp.lt.s32.totalorder %v25198_v2, 2  ;;  %v18390_v39 = vpop.eup %18389 }
 0x1c4   :  { %v937_v13 = vxor.u32 2147483648, %v18388_v17  ;;  %v1023_v16 = vcvt.s32.f32 %v1016_v44  ;;  %v1189_v32 = vsel %vm1181_vm15, %v1168_v27, %v1171_v21  ;;  %v1191_v28 = vsel %vm1183_vm0, %v1174_v55, %v25202_v20 }
 0x1c5   :  { %v934_v60 = vxor.u32 2147483648, %v18390_v39  ;;  %v1021_v38 = vand.u32 2147483647, %v1020_v26  ;;  %v20398_v33 = vsub.s32 %v1105_v24, %v1108_v12  ;;  %v1196_v49 = vsel %vm1182_vm12, %v1193_v50, %v1195_v6  ;;  %v2017_v50 = vld [vmem:[%s24918_s5 + $0x20] sm:$0xff] }
 0x1c6   :  { %v938_v18 = vsel %vm936_vm11, %v937_v13, %v18390_v39  ;;  %v1165_v31 = vshrl.u32 %v25131_v3, %v25196_v22  ;;  %vm25203_vm4 = vcmp.lt.s32.totalorder %v25198_v2, 4  ;;  %v1197_v44 = vshll.u32 %v1157_v51, 8  ;;  %v2018_v22 = vld [vmem:[%s24918_s5 + $0x28] sm:$0xff] }
 0x1c7   :  { %v1186_v53 = vsel %vm25203_vm4, %v1174_v55, 2102212464  ;;  %v935_v8 = vsel %vm933_vm14, %v18388_v17, %v934_v60  ;;  %v1024_v11 = vmul.f32 %v1023_v16, %v1021_v38  ;;  %v1111_v24 = vsub.s32 0, %v20398_v33  ;;  %v25204_v16 = vld [vmem:[#allocation6_spill] sm:$0xff] }
 0x1c8   :  { %v1192_v47 = vsel %vm1182_vm12, %v1189_v32, %v1191_v28  ;;  %v939_v55 = vsel %vm932_vm1, %v935_v8, %v938_v18  ;;  %v1185_v51 = vsel %vm1181_vm15, %v1165_v31, %v1168_v27  ;;  %v1187_v13 = vsel %vm1183_vm0, %v1171_v21, %v1186_v53  ;;  %v25205_v18 = vld [vmem:[#allocation21_spill] sm:$0xff] }
 0x1c9   :  { %v20423_v6 = vmul.u32.u64.low %v1197_v44, %v1196_v49  ;;  %v20424_v17 = vmul.u32.u64.high %v1197_v44, %v1196_v49, %v20423_v6  ;;  %v940_v26 = vsel %vm929_vm9, nan, %v939_v55  ;;  %v1025_v12 = vxor.u32 2147483648, %v1024_v11 }
 0x1ca   :  { %v12581_v39 = vmin.u32 %v1111_v24, %v20398_v33  ;;  %v1986_v1 = vsel %vm293_vm10, %v25204_v16, %v940_v26  ;;  %v20434_v32 = vmul.u32.u64.low %v1197_v44, %v1192_v47  ;;  %v20435_v20 = vmul.u32.u64.high %v1197_v44, %v1192_v47, %v20434_v32 }
 0x1cb   :  { %v17121_v27 = vpack.c.bf16 %v2018_v22, %v2017_v50  ;;  %v20441_v41 = vsel %vm1600_vm13, %v20132_v40, 920167782  ;;  %v20448_v21 = vsel %vm1600_vm13, %v1596_v10, 1326507024  ;;  %14976 = vmatmul.mubr.msk.f32.gmra.mrb[4].mxu1 %vm2029_vm5, %v1986_v1  ;;  %v1026_v28 = vsel %vm943_vm7, %v1025_v12, %v1024_v11  ;;  %v25208_v50 = vld [vmem:[#allocation46_spill] sm:$0xff] }
 0x1cc   :  { %v1113_v60 = vclz %v12581_v39  ;;  %v20455_v38 = vshrl.u32 %v25097_v0, %v20217_v23  ;;  %v1029_v49 = vsel %vm20341_vm2, %v25173_v7, %v1026_v28  ;;  %v1131_v9 = vsub.s32 4, %v20380_v14 }
 0x1cd   :  { %v1188_v19 = vsel %vm1182_vm12, %v1185_v51, %v1187_v13  ;;  %17122 = vmatprep.subr.bf16.mxu1 %v17121_v27  ;;  %18391 = vcosq.f32 %v1029_v49  ;;  %vm1206_vm7 = vc.u32 %v20424_v17, %v20434_v32  ;;  %v1253_v31 = vand.u32 2147483647, %v25205_v18 }
 0x1ce   :  { %v12582_v10 = vadd.s32 4294967294, %v1113_v60  ;;  %17124 = vmatpush3.bf16.msra.mxu1 %v17121_v27  ;;  %18393 = vsinq.f32 %v1029_v49  ;;  %v20466_v53 = vand.u32 3, %v1034_v63  ;;  %vm1047_vm3 = vcmp.lt.s32.totalorder %v25183_v57, 0 }
 0x1cf   :  { %v1207_v48 = vadd.s32 1, %v20435_v20  ;;  %vm20472_vm2 = vcmp.le.f32.partialorder %v1045_v36, 0.7853982  ;;  %v1101_v8 = vadd.s32 %v20326_v46, %v20310_v25  ;;  %v1204_v11 = vmul.u32 %v1197_v44, %v1188_v19 }
 0x1d0   :  { %vm12583_vm6 = vcmp.lt.s32.totalorder %v12582_v10, 0  ;;  %v20481_v63 = vsel %vm1047_vm3, %v1131_v9, %v20380_v14  ;;  %v1274_v22 = vshrl.u32 %v25134_v62, %v25208_v50  ;;  %v1260_v6 = vand.u32 8388607, %v1253_v31  ;;  %v25209_v14 = vld [vmem:[#allocation36_spill] sm:$0xff] }
 0x1d1   :  { %v1116_v24 = vsel %vm12583_vm6, 0, %v12582_v10  ;;  %v1208_v47 = vsel %vm1206_vm7, %v1207_v48, %v20435_v20  ;;  %vm1037_vm14 = vcmp.eq.s32.totalorder %v20466_v53, 0  ;;  %v1271_v46 = vshrl.u32 %v25132_v42, %v25208_v50  ;;  %v25210_v48 = vld [vmem:[#allocation54_spill] sm:$0xff] }
 0x1d2   :  { %v1117_v36 = vsub.s32 32, %v1116_v24  ;;  %v1121_v55 = vsub.s32 4294967266, %v1116_v24  ;;  %v1209_v51 = vadd.s32 %v1208_v47, %v1204_v11  ;;  %v1118_v25 = vshll.u32 %v20398_v33, %v1116_v24 }
 0x1d3   :  { %v1273_v44 = vshll.u32 %v25132_v42, %v25209_v14  ;;  %v1276_v26 = vshll.u32 %v25134_v62, %v25209_v14  ;;  %vm1036_vm1 = vcmp.lt.s32.totalorder %v20466_v53, 2  ;;  %v1277_v16 = vshrl.u32 %v25080_v34, %v25208_v50 }
 0x1d4   :  { %v1119_v12 = vshrl.u32 %v1101_v8, %v1117_v36  ;;  %v1122_v39 = vadd.s32 127, %v1121_v55  ;;  %v1210_v13 = vadd.s32 536870912, %v1209_v51  ;;  %vm1033_vm9 = vweird.f32 %v25173_v7  ;;  %v25212_v55 = vld [vmem:[#allocation67_spill] sm:$0xff] }
 0x1d5   :  { %vm1040_vm15 = vcmp.eq.s32.totalorder %v20466_v53, 2  ;;  %v1134_v33 = vsel %vm20472_vm2, 0, %v20481_v63  ;;  %v1270_v1 = vshll.u32 %v25131_v3, %v25209_v14  ;;  %v1275_v20 = vor.u32 %v1274_v22, %v1273_v44  ;;  %v25215_v53 = vld [vmem:[#allocation10_spill] sm:$0xff] }
 0x1d6   :  { %v1120_v27 = vor.u32 %v1119_v12, %v1118_v25  ;;  %v1123_v28 = vshll.u32 %v1122_v39, 23  ;;  %v1211_v60 = vshrl.u32 %v1210_v13, 30  ;;  %v1278_v49 = vor.u32 %v1277_v16, %v1276_v26  ;;  %v25214_v39 = vld [vmem:[#allocation65_spill] sm:$0xff] }
 0x1d7   :  { %vm1151_vm0 = vcmp.lt.s32.totalorder %v25195_v4, 0  ;;  %v1261_v9 = vor.u32 8388608, %v1260_v6  ;;  %v1269_v19 = vshrl.u32 %v25131_v3, %v25208_v50  ;;  %v1272_v10 = vor.u32 %v1271_v46, %v1270_v1  ;;  %v18392_v8 = vpop.eup %18391  ;;  %v25213_v6 = vld [vmem:[#allocation58_spill] sm:$0xff] }
 0x1d8   :  { %vm1285_vm11 = vcmp.lt.s32.totalorder %v25210_v48, 1  ;;  %v1124_v11 = vor.u32 4788187, %v1123_v28  ;;  %v1212_v24 = vshll.u32 %v1211_v60, 30  ;;  %vm1286_vm12 = vcmp.lt.s32.totalorder %v25210_v48, 2  ;;  %v18394_v63 = vpop.eup %18393 }
 0x1d9   :  { %vm1287_vm4 = vcmp.lt.s32.totalorder %v25210_v48, 3  ;;  %v1041_v47 = vxor.u32 2147483648, %v18392_v8  ;;  %v1127_v22 = vcvt.s32.f32 %v1120_v27  ;;  %vm25211_vm7 = vcmp.lt.s32.totalorder %v25210_v48, 4 }
 0x1da   :  { %v1290_v36 = vsel %vm25211_vm7, %v1278_v49, 2102212464  ;;  %v1299_v50 = vsel %vm1287_vm4, %v25213_v6, %v25212_v55  ;;  %v1038_v25 = vxor.u32 2147483648, %v18394_v63  ;;  %v1125_v46 = vand.u32 2147483647, %v1124_v11 }
 0x1db   :  { %v20518_v14 = vsub.s32 %v1209_v51, %v1212_v24  ;;  %v1297_v44 = vsel %vm1285_vm11, %v1275_v20, %v1278_v49  ;;  %v1042_v26 = vsel %vm1040_vm15, %v1041_v47, %v18394_v63  ;;  %v1293_v12 = vsel %vm1285_vm11, %v1272_v10, %v1275_v20 }
 0x1dc   :  { %v1295_v13 = vsel %vm1287_vm4, %v1278_v49, %v25214_v39  ;;  %v1301_v16 = vshll.u32 %v1261_v9, 8  ;;  %v1039_v1 = vsel %vm1037_vm14, %v18392_v8, %v1038_v25  ;;  %v1128_v27 = vmul.f32 %v1127_v22, %v1125_v46 }
 0x1dd   :  { %v1215_v51 = vsub.s32 0, %v20518_v14  ;;  %v1235_v28 = vsub.s32 4, %v1211_v60  ;;  %v1043_v11 = vsel %vm1036_vm1, %v1039_v1, %v1042_v26  ;;  %v1289_v24 = vsel %vm1285_vm11, %v1269_v19, %v1272_v10 }
 0x1de   :  { %v1291_v63 = vsel %vm1287_vm4, %v1275_v20, %v1290_v36  ;;  %v1300_v49 = vsel %vm1286_vm12, %v1297_v44, %v1299_v50  ;;  %v1044_v9 = vsel %vm1033_vm9, nan, %v1043_v11  ;;  %v1129_v8 = vxor.u32 2147483648, %v1128_v27  ;;  %v25216_v44 = vld [vmem:[#allocation25_spill] sm:$0xff] }
 0x1df   :  { %v12585_v47 = vmin.u32 %v1215_v51, %v20518_v14  ;;  %v1296_v22 = vsel %vm1286_vm12, %v1293_v12, %v1295_v13  ;;  %v1987_v55 = vsel %vm293_vm10, %v25215_v53, %v1044_v9  ;;  %v1138_v19 = vadd.s32 3, %v1134_v33 }
 0x1e0   :  { %v20548_v10 = vmul.u32.u64.low %v1301_v16, %v1300_v49  ;;  %v20549_v6 = vmul.u32.u64.high %v1301_v16, %v1300_v49, %v20548_v10  ;;  %14978 = vmatprep.mubr.msk.f32.mxu1 %vm2029_vm5, %v1987_v55  ;;  %v1130_v7 = vsel %vm1047_vm3, %v1129_v8, %v1128_v27  ;;  %v1236_v36 = vsel %vm1151_vm0, %v1235_v28, %v1211_v60  ;;  %v25219_v27 = vld [vmem:[#allocation73_spill] sm:$0xff] }
 0x1e1   :  { %v1217_v20 = vclz %v12585_v47  ;;  %v1292_v50 = vsel %vm1286_vm12, %v1289_v24, %v1291_v63  ;;  %v1133_v25 = vsel %vm20472_vm2, %v25183_v57, %v1130_v7  ;;  %v25049_v26 = vand.u32 2147483647, %v25216_v44  ;;  %v25220_v24 = vld [vmem:[#allocation66_spill] sm:$0xff] }
 0x1e2   :  { %v20561_v33 = vmul.u32.u64.low %v1301_v16, %v1296_v22  ;;  %v20562_v46 = vmul.u32.u64.high %v1301_v16, %v1296_v22, %v20561_v33  ;;  %v20568_v12 = vshrl.u32 %v25087_v30, %v20217_v23  ;;  %18395 = vcosq.f32 %v1133_v25 }
 0x1e3   :  { %vm20572_vm3 = vcmp.le.f32.partialorder %v1149_v45, 0.7853982  ;;  %v12586_v48 = vadd.s32 4294967294, %v1217_v20  ;;  %18397 = vsinq.f32 %v1133_v25  ;;  %v20576_v2 = vand.u32 3, %v1138_v19 }
 0x1e4   :  { %v1205_v39 = vadd.s32 %v20434_v32, %v20424_v17  ;;  %v1238_v13 = vsel %vm20572_vm3, 0, %v1236_v36  ;;  %v1308_v1 = vmul.u32 %v1301_v16, %v1292_v50  ;;  %vm1310_vm6 = vc.u32 %v20549_v6, %v20561_v33 }
 0x1e5   :  { %vm12587_vm2 = vcmp.lt.s32.totalorder %v12586_v48, 0  ;;  %v1375_v45 = vshrl.u32 %v25132_v42, %v25219_v27  ;;  %v1311_v28 = vadd.s32 1, %v20562_v46  ;;  %v1364_v11 = vand.u32 8388607, %v25049_v26 }
 0x1e6   :  { %v1220_v51 = vsel %vm12587_vm2, 0, %v12586_v48  ;;  %v1374_v17 = vshll.u32 %v25131_v3, %v25220_v24  ;;  %v1377_v16 = vshll.u32 %v25132_v42, %v25220_v24  ;;  %vm1141_vm14 = vcmp.eq.s32.totalorder %v20576_v2, 0 }
 0x1e7   :  { %v1221_v32 = vsub.s32 32, %v1220_v51  ;;  %v1222_v63 = vshll.u32 %v20518_v14, %v1220_v51  ;;  %v1225_v49 = vsub.s32 4294967266, %v1220_v51  ;;  %v1312_v9 = vsel %vm1310_vm6, %v1311_v28, %v20562_v46  ;;  %v25221_v51 = vld [vmem:[#allocation72_spill] sm:$0xff] }
 0x1e8   :  { %v1378_v8 = vshrl.u32 %v25134_v62, %v25219_v27  ;;  %v1380_v47 = vshll.u32 %v25134_v62, %v25220_v24  ;;  %v1381_v22 = vshrl.u32 %v25080_v34, %v25219_v27  ;;  %vm1140_vm1 = vcmp.lt.s32.totalorder %v20576_v2, 2 }
 0x1e9   :  { %v1223_v14 = vshrl.u32 %v1205_v39, %v1221_v32  ;;  %v1226_v53 = vadd.s32 127, %v1225_v49  ;;  %v1313_v55 = vadd.s32 %v1312_v9, %v1308_v1  ;;  %v1376_v19 = vor.u32 %v1375_v45, %v1374_v17 }
 0x1ea   :  { %vm1137_vm9 = vweird.f32 %v25183_v57  ;;  %vm1144_vm15 = vcmp.eq.s32.totalorder %v20576_v2, 2  ;;  %v1242_v10 = vadd.s32 3, %v1238_v13  ;;  %v1379_v7 = vor.u32 %v1378_v8, %v1377_v16 }
 0x1eb   :  { %v1382_v20 = vor.u32 %v1381_v22, %v1380_v47  ;;  %v1224_v36 = vor.u32 %v1223_v14, %v1222_v63  ;;  %v1227_v50 = vshll.u32 %v1226_v53, 23  ;;  %v1314_v25 = vadd.s32 536870912, %v1313_v55  ;;  %v25222_v63 = vld [vmem:[#allocation78_spill] sm:$0xff] }
 0x1ec   :  { %v1373_v46 = vshrl.u32 %v25131_v3, %v25219_v27  ;;  %v1365_v48 = vor.u32 8388608, %v1364_v11  ;;  %vm1389_vm11 = vcmp.lt.s32.totalorder %v25221_v51, 1  ;;  %vm1390_vm12 = vcmp.lt.s32.totalorder %v25221_v51, 2  ;;  %v18396_v39 = vpop.eup %18395  ;;  %v25223_v27 = vld [vmem:[#allocation79_spill] sm:$0xff]  ;;  %v25224_v11 = vld [vmem:[#allocation74_spill] sm:$0xff] }
 0x1ed   :  { %vm1391_vm4 = vcmp.lt.s32.totalorder %v25221_v51, 3  ;;  %v1228_v1 = vor.u32 4788187, %v1227_v50  ;;  %v1315_v45 = vshrl.u32 %v1314_v25, 30  ;;  %v1401_v13 = vsel %vm1389_vm11, %v1379_v7, %v1382_v20  ;;  %v18398_v24 = vpop.eup %18397 }
 0x1ee   :  { %v1393_v28 = vsel %vm1389_vm11, %v1373_v46, %v1376_v19  ;;  %v1145_v17 = vxor.u32 2147483648, %v18396_v39  ;;  %v1397_v32 = vsel %vm1389_vm11, %v1376_v19, %v1379_v7  ;;  %v1399_v49 = vsel %vm1391_vm4, %v1382_v20, %v25222_v63 }
 0x1ef   :  { %v1403_v16 = vsel %vm1391_vm4, %v25224_v11, %v25223_v27  ;;  %v1142_v9 = vxor.u32 2147483648, %v18398_v24  ;;  %v1229_v8 = vand.u32 2147483647, %v1228_v1  ;;  %v1231_v47 = vcvt.s32.f32 %v1224_v36 }
 0x1f0   :  { %v1316_v22 = vshll.u32 %v1315_v45, 30  ;;  %v1146_v14 = vsel %vm1144_vm15, %v1145_v17, %v18398_v24  ;;  %vm25225_vm7 = vcmp.lt.s32.totalorder %v25221_v51, 4  ;;  %v1404_v19 = vsel %vm1390_vm12, %v1401_v13, %v1403_v16 }
 0x1f1   :  { %v1394_v53 = vsel %vm25225_vm7, %v1382_v20, 2102212464  ;;  %v1405_v50 = vshll.u32 %v1365_v48, 8  ;;  %v1143_v25 = vsel %vm1141_vm14, %v18396_v39, %v1142_v9  ;;  %v1232_v46 = vmul.f32 %v1231_v47, %v1229_v8 }
 0x1f2   :  { %v20625_v63 = vsub.s32 %v1313_v55, %v1316_v22  ;;  %v1400_v36 = vsel %vm1390_vm12, %v1397_v32, %v1399_v49  ;;  %v1147_v1 = vsel %vm1140_vm1, %v1143_v25, %v1146_v14  ;;  %v1339_v24 = vsub.s32 4, %v1315_v45  ;;  %v25226_v32 = vld [vmem:[#allocation9_spill] sm:$0xff]  ;;  %v25227_v14 = vld [vmem:[#allocation24_spill] sm:$0xff] }
 0x1f3   :  { %v20631_v17 = vmul.u32.u64.low %v1405_v50, %v1404_v19  ;;  %v20632_v27 = vmul.u32.u64.high %v1405_v50, %v1404_v19, %v20631_v17  ;;  %v1148_v20 = vsel %vm1137_vm9, nan, %v1147_v1  ;;  %v1233_v48 = vxor.u32 2147483648, %v1232_v46  ;;  %v25230_v1 = vld [vmem:[#allocation55_spill] sm:$0xff] }
 0x1f4   :  { %v1319_v13 = vsub.s32 0, %v20625_v63  ;;  %v1395_v55 = vsel %vm1391_vm4, %v1379_v7, %v1394_v53  ;;  %v20640_v39 = vand.u32 31, %v20037_v29  ;;  %v1988_v2 = vsel %vm293_vm10, %v25226_v32, %v1148_v20 }
 0x1f5   :  { %v20645_v49 = vmul.u32.u64.low %v1405_v50, %v1400_v36  ;;  %v20646_v11 = vmul.u32.u64.high %v1405_v50, %v1400_v36, %v20645_v49  ;;  %v20650_v57 = vshrl.u32 %v20037_v29, 5  ;;  %14979 = vmatmul.mubr.msk.f32.gmra.mrb[6].mxu1 %vm2029_vm5, %v1988_v2  ;;  %v1234_v16 = vsel %vm1151_vm0, %v1233_v48, %v1232_v46  ;;  %v25231_v48 = vld [vmem:[#allocation49_spill] sm:$0xff] }
 0x1f6   :  { %vm1255_vm2 = vcmp.lt.s32.totalorder %v25205_v18, 0  ;;  %v12589_v7 = vmin.u32 %v1319_v13, %v20625_v63  ;;  %v1237_v9 = vsel %vm20572_vm3, %v25195_v4, %v1234_v16  ;;  %v20660_v8 = vand.u32 3, %v1242_v10 }
 0x1f7   :  { %v1340_v47 = vsel %vm1255_vm2, %v1339_v24, %v1315_v45  ;;  %v1396_v29 = vsel %vm1390_vm12, %v1393_v28, %v1395_v55  ;;  %18399 = vcosq.f32 %v1237_v9  ;;  %vm1414_vm0 = vc.u32 %v20632_v27, %v20645_v49 }
 0x1f8   :  { %v1321_v22 = vclz %v12589_v7  ;;  %v25048_v53 = vand.u32 2147483647, %v25227_v14  ;;  %v20670_v19 = vsub.s32 32, %v20640_v39  ;;  %v20674_v60 = vshll.u32 %v25080_v34, %v20640_v39 }
 0x1f9   :  { %18401 = vsinq.f32 %v1237_v9  ;;  %v1415_v10 = vadd.s32 1, %v20646_v11  ;;  %v20679_v51 = vshll.u32 %v25097_v0, %v20640_v39  ;;  %vm20683_vm3 = vcmp.le.f32.partialorder %v1253_v31, 0.7853982 }
 0x1fa   :  { %v12590_v28 = vadd.s32 4294967294, %v1321_v22  ;;  %v1412_v25 = vmul.u32 %v1405_v50, %v1396_v29  ;;  %v1342_v46 = vsel %vm20683_vm3, 0, %v1340_v47  ;;  %v1479_v24 = vshrl.u32 %v25132_v42, %v25230_v1 }
 0x1fb   :  { %v1416_v36 = vsel %vm1414_vm0, %v1415_v10, %v20646_v11  ;;  %v1482_v17 = vshrl.u32 %v25134_v62, %v25230_v1  ;;  %vm1248_vm6 = vcmp.eq.s32.totalorder %v20660_v8, 2  ;;  %v1468_v20 = vand.u32 8388607, %v25048_v53 }
 0x1fc   :  { %vm12591_vm14 = vcmp.lt.s32.totalorder %v12590_v28, 0  ;;  %v1417_v31 = vadd.s32 %v1416_v36, %v1412_v25  ;;  %v1478_v50 = vshll.u32 %v25131_v3, %v25231_v48  ;;  %vm1245_vm1 = vcmp.eq.s32.totalorder %v20660_v8, 0 }
 0x1fd   :  { %v1324_v13 = vsel %vm12591_vm14, 0, %v12590_v28  ;;  %v1481_v55 = vshll.u32 %v25132_v42, %v25231_v48  ;;  %v1484_v32 = vshll.u32 %v25134_v62, %v25231_v48  ;;  %v1485_v2 = vshrl.u32 %v25080_v34, %v25230_v1 }
 0x1fe   :  { %vm1244_vm9 = vcmp.lt.s32.totalorder %v20660_v8, 2  ;;  %v1309_v11 = vadd.s32 %v20561_v33, %v20549_v6  ;;  %v1325_v16 = vsub.s32 32, %v1324_v13  ;;  %v1329_v7 = vsub.s32 4294967266, %v1324_v13  ;;  %v25232_v33 = vld [vmem:[#allocation59_spill] sm:$0xff] }
 0x1ff   :  { %v1418_v9 = vadd.s32 536870912, %v1417_v31  ;;  %vm1241_vm15 = vweird.f32 %v25195_v4  ;;  %v1346_v47 = vadd.s32 3, %v1342_v46  ;;  %v1480_v29 = vor.u32 %v1479_v24, %v1478_v50 }
 0x200   :  { %v1483_v22 = vor.u32 %v1482_v17, %v1481_v55  ;;  %v1486_v10 = vor.u32 %v1485_v2, %v1484_v32  ;;  %v1326_v28 = vshll.u32 %v20625_v63, %v1324_v13  ;;  %v1327_v25 = vshrl.u32 %v1309_v11, %v1325_v16  ;;  %v25233_v55 = vld [vmem:[#allocation71_spill] sm:$0xff] }
 0x201   :  { %v1330_v36 = vadd.s32 127, %v1329_v7  ;;  %vm1359_vm11 = vcmp.lt.s32.totalorder %v25216_v44, 0  ;;  %v1419_v48 = vshrl.u32 %v1418_v9, 30  ;;  %v1469_v53 = vor.u32 8388608, %v1468_v20  ;;  %v18400_v26 = vpop.eup %18399  ;;  %v25235_v7 = vld [vmem:[#allocation70_spill] sm:$0xff] }
 0x202   :  { %v1477_v6 = vshrl.u32 %v25131_v3, %v25230_v1  ;;  %vm1493_vm12 = vcmp.lt.s32.totalorder %v25232_v33, 1  ;;  %vm1494_vm4 = vcmp.lt.s32.totalorder %v25232_v33, 2  ;;  %v1328_v46 = vor.u32 %v1327_v25, %v1326_v28  ;;  %v25234_v1 = vld [vmem:[#allocation64_spill] sm:$0xff] }
 0x203   :  { %v1331_v24 = vshll.u32 %v1330_v36, 23  ;;  %v1420_v17 = vshll.u32 %v1419_v48, 30  ;;  %vm1495_vm7 = vcmp.lt.s32.totalorder %v25232_v33, 3  ;;  %v18402_v63 = vpop.eup %18401  ;;  %v1249_v50 = vxor.u32 2147483648, %v18400_v26 }
 0x204   :  { %v1501_v13 = vsel %vm1493_vm12, %v1480_v29, %v1483_v22  ;;  %v1505_v20 = vsel %vm1493_vm12, %v1483_v22, %v1486_v10  ;;  %v1507_v32 = vsel %vm1495_vm7, %v25234_v1, %v25233_v55  ;;  %v1246_v2 = vxor.u32 2147483648, %v18402_v63 }
 0x205   :  { %v1332_v11 = vor.u32 4788187, %v1331_v24  ;;  %v20725_v16 = vsub.s32 %v1417_v31, %v1420_v17  ;;  %v1503_v9 = vsel %vm1495_vm7, %v1486_v10, %v25235_v7  ;;  %v1250_v28 = vsel %vm1248_vm6, %v1249_v50, %v18402_v63 }
 0x206   :  { %v1335_v25 = vcvt.s32.f32 %v1328_v46  ;;  %v1443_v36 = vsub.s32 4, %v1419_v48  ;;  %vm25236_vm0 = vcmp.lt.s32.totalorder %v25232_v33, 4  ;;  %v1247_v52 = vsel %vm1245_vm1, %v18400_v26, %v1246_v2 }
 0x207   :  { %v1498_v23 = vsel %vm25236_vm0, %v1486_v10, 2102212464  ;;  %v1333_v55 = vand.u32 2147483647, %v1332_v11  ;;  %v1423_v24 = vsub.s32 0, %v20725_v16  ;;  %v1508_v31 = vsel %vm1494_vm4, %v1505_v20, %v1507_v32  ;;  %v25237_v20 = vld [vmem:[#allocation12_spill] sm:$0xff] }
 0x208   :  { %v1251_v17 = vsel %vm1244_vm9, %v1247_v52, %v1250_v28  ;;  %v1497_v63 = vsel %vm1493_vm12, %v1477_v6, %v1480_v29  ;;  %v1504_v46 = vsel %vm1494_vm4, %v1501_v13, %v1503_v9  ;;  %v1509_v50 = vshll.u32 %v1469_v53, 8  ;;  %v25238_v11 = vld [vmem:[#allocation38_spill] sm:$0xff] }
 0x209   :  { %v1252_v10 = vsel %vm1241_vm15, nan, %v1251_v17  ;;  %v1336_v26 = vmul.f32 %v1335_v25, %v1333_v55  ;;  %v12593_v1 = vmin.u32 %v1423_v24, %v20725_v16  ;;  %v1499_v2 = vsel %vm1495_vm7, %v1483_v22, %v1498_v23  ;;  %v25242_v17 = vld [vmem:[#allocation77_spill] sm:$0xff] }
 0x20a   :  { %v1989_v52 = vsel %vm293_vm10, %v25237_v20, %v1252_v10  ;;  %v1444_v8 = vsel %vm1359_vm11, %v1443_v36, %v1419_v48  ;;  %v20755_v29 = vmul.u32.u64.low %v1509_v50, %v1508_v31  ;;  %v20756_v6 = vmul.u32.u64.high %v1509_v50, %v1508_v31, %v20755_v29 }
 0x20b   :  { %14981 = vmatprep.mubr.msk.f32.mxu1 %vm2029_vm5, %v1989_v52  ;;  %v1337_v4 = vxor.u32 2147483648, %v1336_v26  ;;  %v1425_v53 = vclz %v12593_v1  ;;  %v20759_v13 = vmul.u32.u64.low %v1509_v50, %v1504_v46  ;;  %v20760_v32 = vmul.u32.u64.high %v1509_v50, %v1504_v46, %v20759_v13 }
 0x20c   :  { %v1800_v23 = vshrl.u32 %v25097_v0, %v20670_v19  ;;  %v20767_v22 = vshrl.u32 %v25087_v30, %v20670_v19  ;;  %v1500_v48 = vsel %vm1494_vm4, %v1497_v63, %v1499_v2  ;;  %v1565_v7 = vand.u32 2147483647, %v25238_v11 }
 0x20d   :  { %v1338_v9 = vsel %vm1255_vm2, %v1337_v4, %v1336_v26  ;;  %v20774_v28 = vand.u32 3, %v1346_v47  ;;  %v25239_v25 = vand.u32 2147483647, %v25216_v44  ;;  %v12594_v0 = vadd.s32 4294967294, %v1425_v53 }
 0x20e   :  { %v1341_v30 = vsel %vm20683_vm3, %v25205_v18, %v1338_v9  ;;  %v1413_v33 = vadd.s32 %v20645_v49, %v20632_v27  ;;  %vm1518_vm2 = vc.u32 %v20756_v6, %v20759_v13  ;;  %v1516_v47 = vmul.u32 %v1509_v50, %v1500_v48 }
 0x20f   :  { %vm20778_vm6 = vcmp.le.f32.partialorder %v25239_v25, 0.7853982  ;;  %18403 = vcosq.f32 %v1341_v30  ;;  %vm12595_vm14 = vcmp.lt.s32.totalorder %v12594_v0, 0  ;;  %v1519_v24 = vadd.s32 1, %v20760_v32 }
 0x210   :  { %v1446_v55 = vsel %vm20778_vm6, 0, %v1444_v8  ;;  %18405 = vsinq.f32 %v1341_v30  ;;  %v1428_v31 = vsel %vm12595_vm14, 0, %v12594_v0  ;;  %v1572_v45 = vand.u32 8388607, %v1565_v7 }
 0x211   :  { %v1582_v63 = vshll.u32 %v25131_v3, %v25242_v17  ;;  %v1429_v27 = vsub.s32 32, %v1428_v31  ;;  %v1430_v49 = vshll.u32 %v20725_v16, %v1428_v31  ;;  %v1433_v46 = vsub.s32 4294967266, %v1428_v31 }
 0x212   :  { %v1520_v10 = vsel %vm1518_vm2, %v1519_v24, %v20760_v32  ;;  %v1583_v50 = vshrl.u32 %v25132_v42, %v19754_v35  ;;  %v1585_v1 = vshll.u32 %v25132_v42, %v25242_v17  ;;  %v1586_v2 = vshrl.u32 %v25134_v62, %v19754_v35 }
 0x213   :  { %v1521_v26 = vadd.s32 %v1520_v10, %v1516_v47  ;;  %v1431_v20 = vshrl.u32 %v1413_v33, %v1429_v27  ;;  %v1434_v52 = vadd.s32 127, %v1433_v46  ;;  %v1588_v8 = vshll.u32 %v25134_v62, %v25242_v17 }
 0x214   :  { %v1589_v16 = vshrl.u32 %v25080_v34, %v19754_v35  ;;  %v20809_v29 = vor.u32 %v1800_v23, %v20674_v60  ;;  %v1584_v53 = vor.u32 %v1583_v50, %v1582_v63  ;;  %v1587_v32 = vor.u32 %v1586_v2, %v1585_v1 }
 0x215   :  { %v1522_v4 = vadd.s32 536870912, %v1521_v26  ;;  %vm1348_vm3 = vcmp.lt.s32.totalorder %v20774_v28, 2  ;;  %v1432_v48 = vor.u32 %v1431_v20, %v1430_v49  ;;  %v1435_v9 = vshll.u32 %v1434_v52, 23 }
 0x216   :  { %v1590_v25 = vor.u32 %v1589_v16, %v1588_v8  ;;  %vm1345_vm1 = vweird.f32 %v25205_v18  ;;  %vm1349_vm9 = vcmp.eq.s32.totalorder %v20774_v28, 0  ;;  %vm1352_vm15 = vcmp.eq.s32.totalorder %v20774_v28, 2  ;;  %v2019_v28 = vld [vmem:[%s24918_s5 + $0x30] sm:$0xff] }
 0x217   :  { %v1450_v0 = vadd.s32 3, %v1446_v55  ;;  %v1523_v30 = vshrl.u32 %v1522_v4, 30  ;;  %v1436_v33 = vor.u32 4788187, %v1435_v9  ;;  %v1573_v47 = vor.u32 8388608, %v1572_v45 }
 0x218   :  { %vm1597_vm12 = vcmp.lt.s32.totalorder %v25199_v56, 1  ;;  %vm1598_vm4 = vcmp.lt.s32.totalorder %v25199_v56, 2  ;;  %v1439_v60 = vcvt.s32.f32 %v1432_v48  ;;  %vm1599_vm7 = vcmp.lt.s32.totalorder %v25199_v56, 3 }
 0x219   :  { %v1524_v23 = vshll.u32 %v1523_v30, 30  ;;  %v1605_v24 = vsel %vm1597_vm12, %v1584_v53, %v1587_v32  ;;  %v18404_v31 = vpop.eup %18403  ;;  %v1437_v17 = vand.u32 2147483647, %v1436_v33  ;;  %v1607_v55 = vsel %vm1599_vm7, %v1590_v25, %v20441_v41 }
 0x21a   :  { %v1609_v45 = vsel %vm1597_vm12, %v1587_v32, %v1590_v25  ;;  %v1611_v63 = vsel %vm1599_vm7, %v20132_v40, %v20448_v21  ;;  %v18406_v27 = vpop.eup %18405  ;;  %v1353_v49 = vxor.u32 2147483648, %v18404_v31  ;;  %v1581_v10 = vshrl.u32 %v25131_v3, %v19754_v35 }
 0x21b   :  { %v20829_v46 = vsub.s32 %v1521_v26, %v1524_v23  ;;  %v1612_v50 = vsel %vm1598_vm4, %v1609_v45, %v1611_v63  ;;  %v1350_v1 = vxor.u32 2147483648, %v18406_v27  ;;  %v1440_v41 = vmul.f32 %v1439_v60, %v1437_v17 }
 0x21c   :  { %v1602_v2 = vsel %vm1600_vm13, %v1590_v25, 2102212464  ;;  %v1613_v20 = vshll.u32 %v1573_v47, 8  ;;  %v1354_v52 = vsel %vm1352_vm15, %v1353_v49, %v18406_v27  ;;  %v1547_v21 = vsub.s32 4, %v1523_v30 }
 0x21d   :  { %v1527_v40 = vsub.s32 0, %v20829_v46  ;;  %v1608_v26 = vsel %vm1598_vm4, %v1605_v24, %v1607_v55  ;;  %v1351_v35 = vsel %vm1349_vm9, %v18404_v31, %v1350_v1  ;;  %v1441_v8 = vxor.u32 2147483648, %v1440_v41  ;;  %v25243_v31 = vld [vmem:[#allocation11_spill] sm:$0xff] }
 0x21e   :  { %v20844_v16 = vmul.u32.u64.low %v1613_v20, %v1612_v50  ;;  %v20845_v4 = vmul.u32.u64.high %v1613_v20, %v1612_v50, %v20844_v16  ;;  %v1355_v48 = vsel %vm1348_vm3, %v1351_v35, %v1354_v52  ;;  %v1601_v25 = vsel %vm1597_vm12, %v1581_v10, %v1584_v53  ;;  %v2020_v53 = vld [vmem:[%s24918_s5 + $0x38] sm:$0xff]  ;;  %v25249_v35 = vld [vmem:[#allocation80_spill] sm:$0xff] }
 0x21f   :  { %v12597_v9 = vmin.u32 %v1527_v40, %v20829_v46  ;;  %v1603_v33 = vsel %vm1599_vm7, %v1587_v32, %v1602_v2  ;;  %v1356_v47 = vsel %vm1345_vm1, nan, %v1355_v48  ;;  %v1442_v60 = vsel %vm1359_vm11, %v1441_v8, %v1440_v41  ;;  %v25247_v41 = vld [vmem:[#allocation37_spill] sm:$0xff] }
 0x220   :  { %v20858_v23 = vmul.u32.u64.low %v1613_v20, %v1608_v26  ;;  %v20859_v24 = vmul.u32.u64.high %v1613_v20, %v1608_v26, %v20858_v23  ;;  %v1990_v18 = vsel %vm293_vm10, %v25243_v31, %v1356_v47  ;;  %v1445_v32 = vsel %vm20778_vm6, %v25216_v44, %v1442_v60 }
 0x221   :  { %vm1463_vm13 = vcmp.lt.s32.totalorder %v25227_v14, 0  ;;  %v1529_v17 = vclz %v12597_v9  ;;  %v1804_v55 = vor.u32 %v20767_v22, %v20679_v51  ;;  %14982 = vmatmul.mubr.msk.f32.gmra.mrb[8].mxu1 %vm2029_vm5, %v1990_v18  ;;  %18407 = vcosq.f32 %v1445_v32 }
 0x222   :  { %v1548_v45 = vsel %vm1463_vm13, %v1547_v21, %v1523_v30  ;;  %v1604_v63 = vsel %vm1598_vm4, %v1601_v25, %v1603_v33  ;;  %18409 = vsinq.f32 %v1445_v32  ;;  %vm1622_vm11 = vc.u32 %v20845_v4, %v20858_v23  ;;  %v25248_v21 = vld [vmem:[#allocation75_spill] sm:$0xff] }
 0x223   :  { %v12598_v27 = vadd.s32 4294967294, %v1529_v17  ;;  %v17125_v36 = vpack.c.bf16 %v2020_v53, %v2019_v28  ;;  %v1451_v49 = vand.u32 3, %v1450_v0  ;;  %v25244_v10 = vand.u32 2147483647, %v25227_v14 }
 0x224   :  { %v1623_v1 = vadd.s32 1, %v20859_v24  ;;  %v1669_v30 = vand.u32 2147483647, %v25247_v41  ;;  %v1517_v56 = vadd.s32 %v20759_v13, %v20756_v6  ;;  %v1620_v52 = vmul.u32 %v1613_v20, %v1604_v63 }
 0x225   :  { %vm20886_vm0 = vcmp.le.f32.partialorder %v25244_v10, 0.7853982  ;;  %vm12599_vm6 = vcmp.lt.s32.totalorder %v12598_v27, 0  ;;  %17126 = vmatprep.subr.bf16.mxu1 %v17125_v36  ;;  %v1686_v26 = vshll.u32 %v25131_v3, %v25248_v21  ;;  %v1687_v8 = vshrl.u32 %v25132_v42, %v25249_v35 }
 0x226   :  { %v1550_v2 = vsel %vm20886_vm0, 0, %v1548_v45  ;;  %v1532_v0 = vsel %vm12599_vm6, 0, %v12598_v27  ;;  %v1624_v40 = vsel %vm1622_vm11, %v1623_v1, %v20859_v24  ;;  %17128 = vmatpush3.bf16.msra.mxu1 %v17125_v36  ;;  %v1689_v6 = vshll.u32 %v25132_v42, %v25248_v21 }
 0x227   :  { %v1533_v16 = vsub.s32 32, %v1532_v0  ;;  %v1537_v48 = vsub.s32 4294967266, %v1532_v0  ;;  %v1625_v9 = vadd.s32 %v1624_v40, %v1620_v52  ;;  %v1534_v13 = vshll.u32 %v20829_v46, %v1532_v0 }
 0x228   :  { %v1676_v20 = vand.u32 8388607, %v1669_v30  ;;  %v1690_v25 = vshrl.u32 %v25134_v62, %v25249_v35  ;;  %v1692_v33 = vshll.u32 %v25134_v62, %v25248_v21  ;;  %vm1449_vm2 = vweird.f32 %v25216_v44 }
 0x229   :  { %v1535_v47 = vshrl.u32 %v1517_v56, %v1533_v16  ;;  %v1538_v60 = vadd.s32 127, %v1537_v48  ;;  %v1626_v24 = vadd.s32 536870912, %v1625_v9  ;;  %v1693_v28 = vshrl.u32 %v25080_v34, %v25249_v35 }
 0x22a   :  { %vm1452_vm14 = vcmp.lt.s32.totalorder %v1451_v49, 2  ;;  %vm1453_vm3 = vcmp.eq.s32.totalorder %v1451_v49, 0  ;;  %v1688_v46 = vor.u32 %v1687_v8, %v1686_v26  ;;  %v1691_v53 = vor.u32 %v1690_v25, %v1689_v6 }
 0x22b   :  { %v1536_v31 = vor.u32 %v1535_v47, %v1534_v13  ;;  %v1539_v18 = vshll.u32 %v1538_v60, 23  ;;  %v1627_v32 = vshrl.u32 %v1626_v24, 30  ;;  %v1694_v17 = vor.u32 %v1693_v28, %v1692_v33  ;;  %v18408_v45 = vpop.eup %18407  ;;  %v25250_v24 = vld [vmem:[#allocation14_spill] sm:$0xff] }
 0x22c   :  { %vm1456_vm1 = vcmp.eq.s32.totalorder %v1451_v49, 2  ;;  %v1554_v63 = vadd.s32 3, %v1550_v2  ;;  %v1677_v27 = vor.u32 8388608, %v1676_v20  ;;  %v1685_v36 = vshrl.u32 %v25131_v3, %v25249_v35  ;;  %v18410_v10 = vpop.eup %18409 }
 0x22d   :  { %v1457_v1 = vxor.u32 2147483648, %v18408_v45  ;;  %v1540_v56 = vor.u32 4788187, %v1539_v18  ;;  %v1628_v52 = vshll.u32 %v1627_v32, 30  ;;  %vm1701_vm9 = vcmp.lt.s32.totalorder %v19678_v37, 1 }
 0x22e   :  { %v1454_v0 = vxor.u32 2147483648, %v18410_v10  ;;  %v1543_v40 = vcvt.s32.f32 %v1536_v31  ;;  %vm1703_vm15 = vcmp.lt.s32.totalorder %v19678_v37, 3  ;;  %v1709_v21 = vsel %vm1701_vm9, %v1688_v46, %v1691_v53 }
 0x22f   :  { %v1458_v26 = vsel %vm1456_vm1, %v1457_v1, %v18410_v10  ;;  %v1541_v8 = vand.u32 2147483647, %v1540_v56  ;;  %v20919_v2 = vsub.s32 %v1625_v9, %v1628_v52  ;;  %v1711_v35 = vsel %vm1703_vm15, %v1694_v17, %v20236_v54 }
 0x230   :  { %v1455_v16 = vsel %vm1453_vm3, %v18408_v45, %v1454_v0  ;;  %vm1702_vm12 = vcmp.lt.s32.totalorder %v19678_v37, 2  ;;  %v1705_v48 = vsel %vm1701_vm9, %v1685_v36, %v1688_v46  ;;  %v1715_v6 = vsel %vm1703_vm15, %v20030_v59, %v20323_v61 }
 0x231   :  { %v1459_v13 = vsel %vm1452_vm14, %v1455_v16, %v1458_v26  ;;  %v1544_v9 = vmul.f32 %v1543_v40, %v1541_v8  ;;  %v1631_v20 = vsub.s32 0, %v20919_v2  ;;  %v1706_v54 = vsel %vm1704_vm8, %v1694_v17, 2102212464 }
 0x232   :  { %v1460_v25 = vsel %vm1449_vm2, nan, %v1459_v13  ;;  %v1712_v33 = vsel %vm1702_vm12, %v1709_v21, %v1711_v35  ;;  %v1713_v47 = vsel %vm1701_vm9, %v1691_v53, %v1694_v17  ;;  %v1717_v60 = vshll.u32 %v1677_v27, 8 }
 0x233   :  { %v1991_v59 = vsel %vm293_vm10, %v25250_v24, %v1460_v25  ;;  %v1545_v61 = vxor.u32 2147483648, %v1544_v9  ;;  %v12601_v49 = vmin.u32 %v1631_v20, %v20919_v2  ;;  %v1716_v28 = vsel %vm1702_vm12, %v1713_v47, %v1715_v6 }
 0x234   :  { %14984 = vmatprep.mubr.msk.f32.mxu1 %vm2029_vm5, %v1991_v59  ;;  %v1651_v44 = vsub.s32 4, %v1627_v32  ;;  %v1707_v46 = vsel %vm1703_vm15, %v1691_v53, %v1706_v54  ;;  %v20951_v31 = vmul.u32.u64.low %v1717_v60, %v1716_v28  ;;  %v20952_v18 = vmul.u32.u64.high %v1717_v60, %v1716_v28, %v20951_v31 }
 0x235   :  { %v1546_v17 = vsel %vm1463_vm13, %v1545_v61, %v1544_v9  ;;  %v1633_v45 = vclz %v12601_v49  ;;  %v20956_v27 = vmul.u32.u64.low %v1717_v60, %v1712_v33  ;;  %v20957_v36 = vmul.u32.u64.high %v1717_v60, %v1712_v33, %v20956_v27 }
 0x236   :  { %v20962_v10 = vor.u32 %v20455_v38, %v20228_v58  ;;  %vm1808_vm8 = vcmp.lt.s32.totalorder %v20650_v57, 4  ;;  %v1549_v53 = vsel %vm20886_vm0, %v25227_v14, %v1546_v17  ;;  %vm1567_vm4 = vcmp.lt.s32.totalorder %v25238_v11, 0  ;;  %v25251_v38 = vld [vmem:[#allocation44_spill] sm:$0xff] }
 0x237   :  { %18411 = vcosq.f32 %v1549_v53  ;;  %v20969_v1 = vand.u32 3, %v1554_v63  ;;  %v12602_v56 = vadd.s32 4294967294, %v1633_v45  ;;  %v1708_v52 = vsel %vm1702_vm12, %v1705_v48, %v1707_v46 }
 0x238   :  { %18413 = vsinq.f32 %v1549_v53  ;;  %v1652_v58 = vsel %vm1567_vm4, %v1651_v44, %v1627_v32  ;;  %vm1726_vm7 = vc.u32 %v20952_v18, %v20956_v27  ;;  %v1773_v0 = vand.u32 2147483647, %v25251_v38 }
 0x239   :  { %v1814_v50 = vsel %vm1808_vm8, %v20809_v29, 920167782  ;;  %v1818_v37 = vsel %vm1808_vm8, %v1804_v55, 1326507024  ;;  %vm12603_vm13 = vcmp.lt.s32.totalorder %v12602_v56, 0  ;;  %v1727_v63 = vadd.s32 1, %v20957_v36 }
 0x23a   :  { %vm20989_vm11 = vcmp.le.f32.partialorder %v1565_v7, 0.7853982  ;;  %v1621_v40 = vadd.s32 %v20858_v23, %v20845_v4  ;;  %v1636_v21 = vsel %vm12603_vm13, 0, %v12602_v56  ;;  %v1724_v26 = vmul.u32 %v1717_v60, %v1708_v52 }
 0x23b   :  { %v1637_v8 = vsub.s32 32, %v1636_v21  ;;  %v1641_v35 = vsub.s32 4294967266, %v1636_v21  ;;  %v1654_v51 = vsel %vm20989_vm11, 0, %v1652_v58  ;;  %v1728_v22 = vsel %vm1726_vm7, %v1727_v63, %v20957_v36 }
 0x23c   :  { %vm1557_vm0 = vcmp.eq.s32.totalorder %v20969_v1, 0  ;;  %v1729_v55 = vadd.s32 %v1728_v22, %v1724_v26  ;;  %v1780_v7 = vand.u32 8388607, %v1773_v0  ;;  %v1791_v16 = vshrl.u32 %v25132_v42, %v20670_v19 }
 0x23d   :  { %v1794_v4 = vshrl.u32 %v25134_v62, %v20670_v19  ;;  %vm1556_vm6 = vcmp.lt.s32.totalorder %v20969_v1, 2  ;;  %v1638_v23 = vshll.u32 %v20919_v2, %v1636_v21  ;;  %v1639_v48 = vshrl.u32 %v1621_v40, %v1637_v8 }
 0x23e   :  { %v1642_v6 = vadd.s32 127, %v1641_v35  ;;  %v1797_v13 = vshrl.u32 %v25080_v34, %v20670_v19  ;;  %vm1553_vm2 = vweird.f32 %v25227_v14  ;;  %vm1560_vm14 = vcmp.eq.s32.totalorder %v20969_v1, 2 }
 0x23f   :  { %v1730_v9 = vadd.s32 536870912, %v1729_v55  ;;  %v1793_v20 = vshll.u32 %v25132_v42, %v20640_v39  ;;  %v1796_v54 = vshll.u32 %v25134_v62, %v20640_v39  ;;  %v1640_v25 = vor.u32 %v1639_v48, %v1638_v23 }
 0x240   :  { %v1643_v33 = vshll.u32 %v1642_v6, 23  ;;  %v1658_v47 = vadd.s32 3, %v1654_v51  ;;  %v1790_v2 = vshll.u32 %v25131_v3, %v20640_v39  ;;  %v1789_v24 = vshrl.u32 %v25131_v3, %v20670_v19 }
 0x241   :  { %v21017_v60 = vshrl.u32 %v1730_v9, 30  ;;  %v1795_v59 = vor.u32 %v1794_v4, %v1793_v20  ;;  %v1798_v61 = vor.u32 %v1797_v13, %v1796_v54  ;;  %v18412_v49 = vpop.eup %18411  ;;  %v1781_v44 = vor.u32 8388608, %v1780_v7  ;;  %v25255_v9 = vld [vmem:[#allocation39_spill] sm:$0xff] }
 0x242   :  { %v1644_v28 = vor.u32 4788187, %v1643_v33  ;;  %v1792_v46 = vor.u32 %v1791_v16, %v1790_v2  ;;  %vm1805_vm3 = vcmp.lt.s32.totalorder %v20650_v57, 1  ;;  %v18414_v31 = vpop.eup %18413  ;;  %v1561_v17 = vxor.u32 2147483648, %v18412_v49 }
 0x243   :  { %v1732_v45 = vshll.u32 %v21017_v60, 30  ;;  %vm1806_vm1 = vcmp.lt.s32.totalorder %v20650_v57, 2  ;;  %vm1807_vm9 = vcmp.lt.s32.totalorder %v20650_v57, 3  ;;  %v1558_v39 = vxor.u32 2147483648, %v18414_v31 }
 0x244   :  { %v1645_v36 = vand.u32 2147483647, %v1644_v28  ;;  %v1647_v53 = vcvt.s32.f32 %v1640_v25  ;;  %v1819_v19 = vsel %vm1807_vm9, %v20809_v29, %v1818_v37  ;;  %v1562_v56 = vsel %vm1560_vm14, %v1561_v17, %v18414_v31  ;;  %v25256_v28 = vld [vmem:[#allocation22_spill] sm:$0xff] }
 0x245   :  { %v21030_v52 = vsub.s32 %v1729_v55, %v1732_v45  ;;  %v1810_v58 = vsel %vm1808_vm8, %v1798_v61, 2102212464  ;;  %v1817_v63 = vsel %vm1805_vm3, %v1795_v59, %v1798_v61  ;;  %v1559_v40 = vsel %vm1557_vm0, %v18412_v49, %v1558_v39 }
 0x246   :  { %v1648_v21 = vmul.f32 %v1647_v53, %v1645_v36  ;;  %v1813_v26 = vsel %vm1805_vm3, %v1792_v46, %v1795_v59  ;;  %v1815_v29 = vsel %vm1807_vm9, %v1798_v61, %v1814_v50  ;;  %v1563_v37 = vsel %vm1556_vm6, %v1559_v40, %v1562_v56  ;;  %v25254_v50 = vld [vmem:[#allocation13_spill] sm:$0xff] }
 0x247   :  { %v1735_v8 = vsub.s32 0, %v21030_v52  ;;  %v1809_v35 = vsel %vm1805_vm3, %v1789_v24, %v1792_v46  ;;  %v1820_v51 = vsel %vm1806_vm1, %v1817_v63, %v1819_v19  ;;  %v1564_v22 = vsel %vm1553_vm2, nan, %v1563_v37  ;;  %v25257_v46 = vld [vmem:[#allocation30_spill] sm:$0xff] }
 0x248   :  { %v1649_v55 = vxor.u32 2147483648, %v1648_v21  ;;  %v1811_v7 = vsel %vm1807_vm9, %v1795_v59, %v1810_v58  ;;  %v1821_v16 = vshll.u32 %v1781_v44, 8  ;;  %v1908_v1 = vor.u32 %v20568_v12, %v20332_v15 }
 0x249   :  { %v1992_v4 = vsel %vm293_vm10, %v25254_v50, %v1564_v22  ;;  %v12605_v23 = vmin.u32 %v1735_v8, %v21030_v52  ;;  %v1816_v48 = vsel %vm1806_vm1, %v1813_v26, %v1815_v29  ;;  %v1877_v20 = vand.u32 2147483647, %v25255_v9 }
 0x24a   :  { %14985 = vmatmul.mubr.msk.f32.gmra.mrb[10].mxu1 %vm2029_vm5, %v1992_v4  ;;  %v1650_v14 = vsel %vm1567_vm4, %v1649_v55, %v1648_v21  ;;  %v21064_v6 = vmul.u32.u64.low %v1821_v16, %v1820_v51  ;;  %v21065_v13 = vmul.u32.u64.high %v1821_v16, %v1820_v51, %v21064_v6  ;;  %vm1912_vm15 = vcmp.lt.s32.totalorder %v20021_v43, 4 }
 0x24b   :  { %v1653_v15 = vsel %vm20989_vm11, %v25238_v11, %v1650_v14  ;;  %v1737_v12 = vclz %v12605_v23  ;;  %v1812_v54 = vsel %vm1806_vm1, %v1809_v35, %v1811_v7  ;;  %v21074_v25 = vand.u32 3, %v1658_v47 }
 0x24c   :  { %18415 = vcosq.f32 %v1653_v15  ;;  %v21076_v33 = vmul.u32.u64.low %v1821_v16, %v1816_v48  ;;  %v21077_v2 = vmul.u32.u64.high %v1821_v16, %v1816_v48, %v21076_v33  ;;  %v1918_v24 = vsel %vm1912_vm15, %v20962_v10, 920167782 }
 0x24d   :  { %v1922_v59 = vsel %vm1912_vm15, %v1908_v1, 1326507024  ;;  %18417 = vsinq.f32 %v1653_v15  ;;  %v12606_v32 = vadd.s32 4294967294, %v1737_v12  ;;  %v1725_v57 = vadd.s32 %v20956_v27, %v20952_v18 }
 0x24e   :  { %v1755_v61 = vsub.s32 4, %v21017_v60  ;;  %v1828_v47 = vmul.u32 %v1821_v16, %v1812_v54  ;;  %v1884_v49 = vand.u32 8388607, %v1877_v20  ;;  %vm1830_vm8 = vc.u32 %v21065_v13, %v21076_v33 }
 0x24f   :  { %vm12607_vm12 = vcmp.lt.s32.totalorder %v12606_v32, 0  ;;  %v1894_v44 = vshll.u32 %v25131_v3, %v25256_v28  ;;  %v1895_v31 = vshrl.u32 %v25132_v42, %v25257_v46  ;;  %vm1664_vm4 = vcmp.eq.s32.totalorder %v21074_v25, 2 }
 0x250   :  { %v1740_v17 = vsel %vm12607_vm12, 0, %v12606_v32  ;;  %v1831_v18 = vadd.s32 1, %v21077_v2  ;;  %v1897_v27 = vshll.u32 %v25132_v42, %v25256_v28  ;;  %v1898_v45 = vshrl.u32 %v25134_v62, %v25257_v46 }
 0x251   :  { %vm1661_vm7 = vcmp.eq.s32.totalorder %v21074_v25, 0  ;;  %v1741_v39 = vsub.s32 32, %v1740_v17  ;;  %v1745_v36 = vsub.s32 4294967266, %v1740_v17  ;;  %v1893_v53 = vshrl.u32 %v25131_v3, %v25257_v46 }
 0x252   :  { %v1900_v19 = vshll.u32 %v25134_v62, %v25256_v28  ;;  %vm1660_vm13 = vcmp.lt.s32.totalorder %v21074_v25, 2  ;;  %v1832_v56 = vsel %vm1830_vm8, %v1831_v18, %v21077_v2  ;;  %v1896_v58 = vor.u32 %v1895_v31, %v1894_v44  ;;  %v2440_v25 = vld [vmem:[%s24919_s8 + $0x8] sm:$0xff]  ;;  %v25258_v18 = vld [vmem:[#allocation17_spill] sm:$0xff] }
 0x253   :  { %v1899_v63 = vor.u32 %v1898_v45, %v1897_v27  ;;  %v1901_v42 = vshrl.u32 %v25080_v34, %v25257_v46  ;;  %vm1657_vm11 = vweird.f32 %v25238_v11  ;;  %v1742_v40 = vshll.u32 %v21030_v52, %v1740_v17  ;;  %v2439_v17 = vld [vmem:[%s24919_s8] sm:$0xff] }
 0x254   :  { %v1743_v21 = vshrl.u32 %v1725_v57, %v1741_v39  ;;  %v1746_v26 = vadd.s32 127, %v1745_v36  ;;  %v1833_v29 = vadd.s32 %v1832_v56, %v1828_v47  ;;  %v1885_v3 = vor.u32 8388608, %v1884_v49  ;;  %v2441_v39 = vld [vmem:[%s24919_s8 + $0x10] sm:$0xff]  ;;  %v2442_v36 = vld [vmem:[%s24919_s8 + $0x18] sm:$0xff] }
 0x255   :  { %v1902_v37 = vor.u32 %v1901_v42, %v1900_v19  ;;  %vm1909_vm0 = vcmp.lt.s32.totalorder %v20021_v43, 1  ;;  %vm1911_vm6 = vcmp.lt.s32.totalorder %v20021_v43, 3  ;;  %vm1910_vm2 = vcmp.lt.s32.totalorder %v20021_v43, 2 }
 0x256   :  { %v1744_v62 = vor.u32 %v1743_v21, %v1742_v40  ;;  %v1747_v8 = vshll.u32 %v1746_v26, 23  ;;  %v1834_v35 = vadd.s32 536870912, %v1833_v29  ;;  %v1923_v34 = vsel %vm1911_vm6, %v20962_v10, %v1922_v59  ;;  %v18416_v51 = vpop.eup %18415  ;;  %v2808_v40 = vld [vmem:[%s24920_s10 + $0x8] sm:$0xff]  ;;  %v2443_v21 = vld [vmem:[%s24919_s8 + $0x20] sm:$0xff] }
 0x257   :  { %v1917_v52 = vsel %vm1909_vm0, %v1896_v58, %v1899_v63  ;;  %v1919_v22 = vsel %vm1911_vm6, %v1902_v37, %v1918_v24  ;;  %v1921_v55 = vsel %vm1909_vm0, %v1899_v63, %v1902_v37  ;;  %v18418_v7 = vpop.eup %18417  ;;  %v1665_v16 = vxor.u32 2147483648, %v18416_v51  ;;  %v2444_v26 = vld [vmem:[%s24919_s8 + $0x28] sm:$0xff] }
 0x258   :  { %v1748_v1 = vor.u32 4788187, %v1747_v8  ;;  %v21125_v50 = vshrl.u32 %v1834_v35, 30  ;;  %v1914_v10 = vsel %vm1912_vm15, %v1902_v37, 2102212464  ;;  %v1662_v4 = vxor.u32 2147483648, %v18418_v7 }
 0x259   :  { %v1751_v23 = vcvt.s32.f32 %v1744_v62  ;;  %v1924_v48 = vsel %vm1910_vm2, %v1921_v55, %v1923_v34  ;;  %v1925_v14 = vshll.u32 %v1885_v3, 8  ;;  %v1666_v6 = vsel %vm1664_vm4, %v1665_v16, %v18418_v7  ;;  %v2446_v55 = vld [vmem:[%s24919_s8 + $0x38] sm:$0xff] }
 0x25a   :  { %v1749_v15 = vand.u32 2147483647, %v1748_v1  ;;  %v1836_v12 = vshll.u32 %v21125_v50, 30  ;;  %v1920_v54 = vsel %vm1910_vm2, %v1917_v52, %v1919_v22  ;;  %v1663_v2 = vsel %vm1661_vm7, %v18416_v51, %v1662_v4  ;;  %v2445_v22 = vld [vmem:[%s24919_s8 + $0x30] sm:$0xff] }
 0x25b   :  { %v1913_v24 = vsel %vm1909_vm0, %v1893_v53, %v1896_v58  ;;  %v21140_v59 = vmul.u32.u64.low %v1925_v14, %v1924_v48  ;;  %v21141_v32 = vmul.u32.u64.high %v1925_v14, %v1924_v48, %v21140_v59  ;;  %v1667_v57 = vsel %vm1660_vm13, %v1663_v2, %v1666_v6  ;;  %v25261_v53 = vld [vmem:[#allocation16_spill] sm:$0xff] }
 0x25c   :  { %v1752_v47 = vmul.f32 %v1751_v23, %v1749_v15  ;;  %v21145_v49 = vsub.s32 %v1833_v29, %v1836_v12  ;;  %v1915_v28 = vsel %vm1911_vm6, %v1899_v63, %v1914_v10  ;;  %v1668_v44 = vsel %vm1657_vm11, nan, %v1667_v57 }
 0x25d   :  { %v21151_v46 = vmul.u32.u64.low %v1925_v14, %v1920_v54  ;;  %v21152_v31 = vmul.u32.u64.high %v1925_v14, %v1920_v54, %v21151_v46  ;;  %v1993_v27 = vsel %vm293_vm10, %v25258_v18, %v1668_v44  ;;  %vm1671_vm14 = vcmp.lt.s32.totalorder %v25247_v41, 0 }
 0x25e   :  { %v1753_v11 = vxor.u32 2147483648, %v1752_v47  ;;  %v1839_v45 = vsub.s32 0, %v21145_v49  ;;  %14987 = vmatprep.mubr.msk.f32.mxu1 %vm2029_vm5, %v1993_v27  ;;  %vm21175_vm3 = vcmp.le.f32.partialorder %v1669_v30, 0.7853982  ;;  %v1756_v19 = vsel %vm1671_vm14, %v1755_v61, %v21017_v60  ;;  %v2807_v30 = vld [vmem:[%s24920_s10] sm:$0xff] }
 0x25f   :  { %v1916_v56 = vsel %vm1910_vm2, %v1913_v24, %v1915_v28  ;;  %vm1934_vm1 = vc.u32 %v21141_v32, %v21151_v46  ;;  %v17129_v42 = vpack.c.bf16 %v2440_v25, %v2439_v17  ;;  %v1935_v60 = vadd.s32 1, %v21152_v31 }
 0x260   :  { %v1754_v58 = vsel %vm1671_vm14, %v1753_v11, %v1752_v47  ;;  %v12609_v63 = vmin.u32 %v1839_v45, %v21145_v49  ;;  %v17133_v61 = vpack.c.bf16 %v2442_v36, %v2441_v39  ;;  %v1758_v29 = vsel %vm21175_vm3, 0, %v1756_v19 }
 0x261   :  { %v1757_v43 = vsel %vm21175_vm3, %v25247_v41, %v1754_v58  ;;  %v1932_v37 = vmul.u32 %v1925_v14, %v1916_v56  ;;  %17130 = vmatprep.subr.bf16.mxu0 %v17129_v42  ;;  %v1936_v62 = vsel %vm1934_vm1, %v1935_v60, %v21152_v31  ;;  %v21206_v8 = vpack.c.bf16 %v2808_v40, %v2807_v30 }
 0x262   :  { %18419 = vcosq.f32 %v1757_v43  ;;  %v1841_v3 = vclz %v12609_v63  ;;  %17132 = vmatpush3.bf16.msra.mxu0 %v17129_v42  ;;  %v17137_v51 = vpack.c.bf16 %v2444_v26, %v2443_v21  ;;  %v1762_v52 = vadd.s32 3, %v1758_v29 }
 0x263   :  { %18421 = vsinq.f32 %v1757_v43  ;;  %v1937_v34 = vadd.s32 %v1936_v62, %v1932_v37  ;;  %17134 = vmatprep.subr.bf16.mxu0 %v17133_v61  ;;  %17162 = vmatprep.subr.bf16.mxu1 %v21206_v8  ;;  %v1829_v16 = vadd.s32 %v21076_v33, %v21065_v13  ;;  %v17141_v48 = vpack.c.bf16 %v2446_v55, %v2445_v22 }
 0x264   :  { %v12610_v35 = vadd.s32 4294967294, %v1841_v3  ;;  %v1763_v14 = vand.u32 3, %v1762_v52  ;;  %vm1761_vm4 = vweird.f32 %v25247_v41  ;;  %v1859_v39 = vsub.s32 4, %v21125_v50 }
 0x265   :  { %v1938_v7 = vadd.s32 536870912, %v1937_v34  ;;  %vm1775_vm7 = vcmp.lt.s32.totalorder %v25251_v38, 0  ;;  %vm1774_vm13 = vcmp.le.f32.partialorder %v1773_v0, 0.7853982  ;;  %v1933_v40 = vadd.s32 %v21151_v46, %v21141_v32 }
 0x266   :  { %vm12611_vm9 = vcmp.lt.s32.totalorder %v12610_v35, 0  ;;  %17136 = vmatpush3.bf16.msra.mxu0 %v17133_v61  ;;  %vm1768_vm15 = vcmp.eq.s32.totalorder %v1763_v14, 2  ;;  %vm1764_vm12 = vcmp.lt.s32.totalorder %v1763_v14, 2  ;;  %vm1765_vm8 = vcmp.eq.s32.totalorder %v1763_v14, 0 }
 0x267   :  { %v1844_v1 = vsel %vm12611_vm9, 0, %v12610_v35  ;;  %v21217_v23 = vshrl.u32 %v1938_v7, 30  ;;  %17138 = vmatprep.subr.bf16.mxu0 %v17137_v51  ;;  %v1860_v63 = vsel %vm1775_vm7, %v1859_v39, %v21125_v50  ;;  %vm1878_vm2 = vcmp.le.f32.partialorder %v1877_v20, 0.7853982 }
 0x268   :  { %v1845_v10 = vsub.s32 32, %v1844_v1  ;;  %v1849_v4 = vsub.s32 4294967266, %v1844_v1  ;;  %v1846_v6 = vshll.u32 %v21145_v49, %v1844_v1  ;;  %v1862_v61 = vsel %vm1774_vm13, 0, %v1860_v63  ;;  %v2009_v63 = vld [vmem:[%s24921_s0 + $0x60] sm:$0xff] }
 0x269   :  { %v1940_v54 = vshll.u32 %v21217_v23, 30  ;;  %v1866_v3 = vadd.s32 3, %v1862_v61  ;;  %v1963_v22 = vsub.s32 4, %v21217_v23  ;;  %vm1879_vm14 = vcmp.lt.s32.totalorder %v25255_v9, 0 }
 0x26a   :  { %v1847_v15 = vshrl.u32 %v1829_v16, %v1845_v10  ;;  %v1850_v12 = vadd.s32 127, %v1849_v4  ;;  %17140 = vmatpush3.bf16.msra.mxu0 %v17137_v51  ;;  %vm1865_vm1 = vweird.f32 %v25251_v38 }
 0x26b   :  { %v1941_v13 = vsub.s32 %v1937_v34, %v1940_v54  ;;  %17142 = vmatprep.subr.bf16.mxu0 %v17141_v48  ;;  %v1867_v50 = vand.u32 3, %v1866_v3  ;;  %v1964_v4 = vsel %vm1879_vm14, %v1963_v22, %v21217_v23  ;;  %v21342_v3 = vld [vmem:[%s24923_s7] ss:$0 sm:$0xff] }
 0x26c   :  { %v18420_v2 = vpop.eup %18419  ;;  %v1848_v24 = vor.u32 %v1847_v15, %v1846_v6  ;;  %v1851_v59 = vshll.u32 %v1850_v12, 23  ;;  %v25262_v15 = vld [vmem:[#allocation20_spill] sm:$0xff]  ;;  %v1966_v54 = vsel %vm1878_vm2, 0, %v1964_v4  ;;  %v2651_v22 = vld [vmem:[%s24922_s9 + $0x20] sm:$0xff]  ;;  %v2654_v4 = vld [vmem:[%s24922_s9 + $0x38] sm:$0xff] }
 0x26d   :  { %v18422_v33 = vpop.eup %18421  ;;  %v1769_v57 = vxor.u32 2147483648, %v18420_v2  ;;  %v1943_v44 = vsub.s32 0, %v1941_v13  ;;  %vm1872_vm0 = vcmp.eq.s32.totalorder %v1867_v50, 2  ;;  %vm1869_vm6 = vcmp.eq.s32.totalorder %v1867_v50, 0 }
 0x26e   :  { %v1766_v47 = vxor.u32 2147483648, %v18422_v33  ;;  %v1852_v28 = vor.u32 4788187, %v1851_v59  ;;  %17144 = vmatpush3.bf16.msra.mxu0 %v17141_v48  ;;  %v1855_v25 = vcvt.s32.f32 %v1848_v24  ;;  %vm1868_vm3 = vcmp.lt.s32.totalorder %v1867_v50, 2 }
 0x26f   :  { %v1770_v31 = vsel %vm1768_vm15, %v1769_v57, %v18422_v33  ;;  %v12613_v18 = vmin.u32 %v1943_v44, %v1941_v13  ;;  %v1970_v20 = vadd.s32 3, %v1966_v54  ;;  %v25263_v44 = vld [vmem:[#allocation18_spill] sm:$0xff] }
 0x270   :  { %v1767_v49 = vsel %vm1765_vm8, %v18420_v2, %v1766_v47  ;;  %v1853_v17 = vand.u32 2147483647, %v1852_v28  ;;  %vm1969_vm8 = vweird.f32 %v25255_v9  ;;  %v1997_v28 = vld [vmem:[%s24921_s0] sm:$0xff] }
 0x271   :  { %v1771_v27 = vsel %vm1764_vm12, %v1767_v49, %v1770_v31  ;;  %v1945_v36 = vclz %v12613_v18  ;;  %v1971_v2 = vand.u32 3, %v1970_v20  ;;  %v2809_v49 = vld [vmem:[%s24920_s10 + $0x10] sm:$0xff]  ;;  %v2811_v18 = vld [vmem:[%s24920_s10 + $0x20] sm:$0xff] }
 0x272   :  { %v1772_v11 = vsel %vm1761_vm4, nan, %v1771_v27  ;;  %v1856_v45 = vmul.f32 %v1855_v25, %v1853_v17  ;;  %v2810_v17 = vld [vmem:[%s24920_s10 + $0x18] sm:$0xff]  ;;  %v2812_v27 = vld [vmem:[%s24920_s10 + $0x28] sm:$0xff] }
 0x273   :  { %v1994_v19 = vsel %vm293_vm10, %v25261_v53, %v1772_v11  ;;  %v12614_v58 = vadd.s32 4294967294, %v1945_v36  ;;  %vm1976_vm9 = vcmp.eq.s32.totalorder %v1971_v2, 2  ;;  %vm1973_vm15 = vcmp.eq.s32.totalorder %v1971_v2, 0  ;;  %v2000_v11 = vld [vmem:[%s24921_s0 + $0x18] sm:$0xff]  ;;  %v2002_v36 = vld [vmem:[%s24921_s0 + $0x28] sm:$0xff]  ;;  %v2003_v53 = vld [vmem:[%s24921_s0 + $0x30] sm:$0xff] }
 0x274   :  { %14988 = vmatmul.mubr.msk.f32.gmra.mrb[12].mxu1 %vm2029_vm5, %v1994_v19  ;;  %v1857_v56 = vxor.u32 2147483648, %v1856_v45  ;;  %vm1972_vm12 = vcmp.lt.s32.totalorder %v1971_v2, 2  ;;  %v17165_v25 = vpack.c.bf16 %v2810_v17, %v2809_v49  ;;  %v17169_v39 = vpack.c.bf16 %v2812_v27, %v2811_v18  ;;  %v2005_v19 = vld [vmem:[%s24921_s0 + $0x40] sm:$0xff] }
 0x275   :  { %vm12615_vm11 = vcmp.lt.s32.totalorder %v12614_v58, 0  ;;  %v21509_v18 = vld [vmem:[%s24924_s11] ss:$0 sm:$0xff] }
 0x276   :  { %v1858_v41 = vsel %vm1775_vm7, %v1857_v56, %v1856_v45  ;;  %v1948_v30 = vsel %vm12615_vm11, 0, %v12614_v58  ;;  %v2001_v45 = vld [vmem:[%s24921_s0 + $0x20] sm:$0xff]  ;;  %v2006_v56 = vld [vmem:[%s24921_s0 + $0x48] sm:$0xff]  ;;  %v2007_v58 = vld [vmem:[%s24921_s0 + $0x50] sm:$0xff] }
 0x277   :  { %v1861_v42 = vsel %vm1774_vm13, %v25251_v38, %v1858_v41  ;;  %v1949_v43 = vsub.s32 32, %v1948_v30  ;;  %v1953_v60 = vsub.s32 4294967266, %v1948_v30  ;;  %v1950_v21 = vshll.u32 %v1941_v13, %v1948_v30  ;;  %v2008_v41 = vld [vmem:[%s24921_s0 + $0x58] sm:$0xff]  ;;  %v2011_v30 = vld [vmem:[%s24921_s0 + $0x70] sm:$0xff]  ;;  %v21514_v27 = vld [vmem:[%s24925_s13] ss:$0 sm:$0xff] }
 0x278   :  { %18423 = vcosq.f32 %v1861_v42 }
 0x279   :  { %18425 = vsinq.f32 %v1861_v42  ;;  %v1951_v26 = vshrl.u32 %v1933_v40, %v1949_v43  ;;  %v1954_v29 = vadd.s32 127, %v1953_v60  ;;  %v2010_v42 = vld [vmem:[%s24921_s0 + $0x68] sm:$0xff]  ;;  %v2012_v40 = vld [vmem:[%s24921_s0 + $0x78] sm:$0xff]  ;;  %v2813_v43 = vld [vmem:[%s24920_s10 + $0x30] sm:$0xff] }
 0x27a   :  { %v2814_v60 = vld [vmem:[%s24920_s10 + $0x38] sm:$0xff] }
 0x27b   :  { %v1952_v0 = vor.u32 %v1951_v26, %v1950_v21  ;;  %v1955_v37 = vshll.u32 %v1954_v29, 23  ;;  %v17173_v61 = vpack.c.bf16 %v2814_v60, %v2813_v43  ;;  %v2647_v21 = vld [vmem:[%s24922_s9] sm:$0xff]  ;;  %v2648_v26 = vld [vmem:[%s24922_s9 + $0x8] sm:$0xff] }
 0x27c   :  { %v17145_v29 = vpack.c.bf16 %v2648_v26, %v2647_v21 }
 0x27d   :  { %v1956_v62 = vor.u32 4788187, %v1955_v37  ;;  %v1959_v34 = vcvt.s32.f32 %v1952_v0  ;;  %v2649_v37 = vld [vmem:[%s24922_s9 + $0x10] sm:$0xff] }
 0x27e   :  { %17146 = vmatprep.subr.bf16.mxu0 %v17145_v29 }
 0x27f   :  { %v1957_v35 = vand.u32 2147483647, %v1956_v62  ;;  %v2650_v62 = vld [vmem:[%s24922_s9 + $0x18] sm:$0xff] }
 0x281   :  { %v1960_v52 = vmul.f32 %v1959_v34, %v1957_v35 }
 0x282   :  { %v18424_v51 = vpop.eup %18423 }
 0x283   :  { %v18426_v55 = vpop.eup %18425  ;;  %v1873_v32 = vxor.u32 2147483648, %v18424_v51  ;;  %v1961_v7 = vxor.u32 2147483648, %v1960_v52 }
 0x284   :  { %v1870_v46 = vxor.u32 2147483648, %v18426_v55 }
 0x285   :  { %v1874_v16 = vsel %vm1872_vm0, %v1873_v32, %v18426_v55  ;;  %v1962_v10 = vsel %vm1879_vm14, %v1961_v7, %v1960_v52  ;;  %v2652_v55 = vld [vmem:[%s24922_s9 + $0x28] sm:$0xff] }
 0x286   :  { %v1871_v1 = vsel %vm1869_vm6, %v18424_v51, %v1870_v46  ;;  %v1965_v14 = vsel %vm1878_vm2, %v25255_v9, %v1962_v10  ;;  %v1998_v9 = vld [vmem:[%s24921_s0 + $0x8] sm:$0xff]  ;;  %v17149_v51 = vpack.c.bf16 %v2650_v62, %v2649_v37  ;;  %v2653_v10 = vld [vmem:[%s24922_s9 + $0x30] sm:$0xff] }
 0x287   :  { %v1875_v48 = vsel %vm1868_vm3, %v1871_v1, %v1874_v16  ;;  %18427 = vcosq.f32 %v1965_v14  ;;  %v17153_v16 = vpack.c.bf16 %v2652_v55, %v2651_v22 }
 0x288   :  { %v1876_v6 = vsel %vm1865_vm1, nan, %v1875_v48  ;;  %18429 = vsinq.f32 %v1965_v14 }
 0x289   :  { %v1995_v12 = vsel %vm293_vm10, %v25262_v15, %v1876_v6  ;;  %v17157_v15 = vpack.c.bf16 %v2654_v4, %v2653_v10 }
 0x28a   :  { %14990 = vmatprep.mubr.msk.f32.mxu1 %vm2029_vm5, %v1995_v12 }
 0x291   :  { %v18428_v24 = vpop.eup %18427 }
 0x292   :  { %v18430_v59 = vpop.eup %18429  ;;  %v1977_v23 = vxor.u32 2147483648, %v18428_v24 }
 0x293   :  { %v1974_v13 = vxor.u32 2147483648, %v18430_v59 }
 0x294   :  { %v1978_v38 = vsel %vm1976_vm9, %v1977_v23, %v18430_v59 }
 0x295   :  { %v1975_v33 = vsel %vm1973_vm15, %v18428_v24, %v1974_v13 }
 0x296   :  { %v1979_v57 = vsel %vm1972_vm12, %v1975_v33, %v1978_v38 }
 0x297   :  { %v1980_v47 = vsel %vm1969_vm8, nan, %v1979_v57 }
 0x298   :  { %v1996_v31 = vsel %vm293_vm10, %v25263_v44, %v1980_v47  ;;  %vm2967_vm10 = vcmask 64512  }
 0x299   :  { %14991 = vmatmul.mubr.msk.f32.gmra.mrb[14].mxu1 %vm2029_vm5, %v1996_v31  ;;  %vm21584_vm4 = vmpackc.low %vm2967_vm10, %vm2967_vm10 }
 0x29a   :  { %15009 = vmatprep.mubr.msk.f32.mxu1 %vm2029_vm5, %v1997_v28 }
 0x29d   :  { %15010 = vmatmul.mubr.msk.f32.vlgmr.msra.gmra.mrb[0].mxu1 %vm2029_vm5, %v1998_v9 }
 0x29e   :  { %15012 = vmatprep.mubr.msk.f32.mxu1 %vm2029_vm5, %v1999_v5  ;;  %17164 = vmatpush3.bf16.msra.mxu1 %v21206_v8  ;;  %v2004_v8 = vld [vmem:[%s24921_s0 + $0x38] sm:$0xff] }
 0x29f   :  { %17166 = vmatprep.subr.bf16.mxu1 %v17165_v25 }
 0x2a1   :  { %15013 = vmatmul.mubr.msk.f32.gmra.mrb[2].mxu1 %vm2029_vm5, %v2000_v11 }
 0x2a2   :  { %15015 = vmatprep.mubr.msk.f32.mxu1 %vm2029_vm5, %v2001_v45  ;;  %17168 = vmatpush3.bf16.msra.mxu1 %v17165_v25 }
 0x2a3   :  { %17170 = vmatprep.subr.bf16.mxu1 %v17169_v39 }
 0x2a5   :  { %15016 = vmatmul.mubr.msk.f32.gmra.mrb[4].mxu1 %vm2029_vm5, %v2002_v36 }
 0x2a6   :  { %15018 = vmatprep.mubr.msk.f32.mxu1 %vm2029_vm5, %v2003_v53  ;;  %17172 = vmatpush3.bf16.msra.mxu1 %v17169_v39 }
 0x2a7   :  { %17174 = vmatprep.subr.bf16.mxu1 %v17173_v61 }
 0x2a9   :  { %15019 = vmatmul.mubr.msk.f32.gmra.mrb[6].mxu1 %vm2029_vm5, %v2004_v8 }
 0x2aa   :  { %15021 = vmatprep.mubr.msk.f32.mxu1 %vm2029_vm5, %v2005_v19  ;;  %17176 = vmatpush3.bf16.msra.mxu1 %v17173_v61 }
 0x2ad   :  { %15022 = vmatmul.mubr.msk.f32.gmra.mrb[8].mxu1 %vm2029_vm5, %v2006_v56 }
 0x2ae   :  { %15024 = vmatprep.mubr.msk.f32.mxu1 %vm2029_vm5, %v2007_v58 }
 0x2b1   :  { %15025 = vmatmul.mubr.msk.f32.gmra.mrb[10].mxu1 %vm2029_vm5, %v2008_v41 }
 0x2b2   :  { %15027 = vmatprep.mubr.msk.f32.mxu1 %vm2029_vm5, %v2009_v63 }
 0x2b5   :  { %15028 = vmatmul.mubr.msk.f32.gmra.mrb[12].mxu1 %vm2029_vm5, %v2010_v42 }
 0x2b6   :  { %15030 = vmatprep.mubr.msk.f32.mxu1 %vm2029_vm5, %v2011_v30 }
 0x2b9   :  { %15031 = vmatmul.mubr.msk.f32.gmra.mrb[14].mxu1 %vm2029_vm5, %v2012_v40 }
 0x370   :  { %v15011_v0 = vpop.f32.mrb[0].mxu1 }
 0x371   :  { %v2337_v50 = vpop.f32.mrb[1].mxu1  ;;  %v21354_v34 = vadd.f32 %v15011_v0, %v21342_v3 }
 0x372   :  { %v21351_v35 = vadd.f32 %v21342_v3, %v2337_v50 }
 0x374   :  { %v15014_v52 = vpop.f32.mrb[2].mxu1  ;;  %15049 = vmatprep.mubr.msk.f32.mxu0 %vm2029_vm5, %v21351_v35  ;;  %15129 = vmatprep.mubr.msk.f32.mxu1 %vm2029_vm5, %v21351_v35 }
 0x375   :  { %v2347_v32 = vpop.f32.mrb[3].mxu1  ;;  %15050 = vmatmul.mubr.msk.f32.vlgmr.msra.gmra.mrb[16].mxu0 %vm2029_vm5, %v21354_v34  ;;  %15130 = vmatmul.mubr.msk.f32.vlgmr.msra.gmra.mrb[16].mxu1 %vm2029_vm5, %v21354_v34  ;;  %v21374_v7 = vadd.f32 %v15014_v52, %v21342_v3 }
 0x376   :  { %v21371_v46 = vadd.f32 %v21342_v3, %v2347_v32  ;;  %17148 = vmatpush3.bf16.msra.mxu0 %v17145_v29 }
 0x377   :  { %17150 = vmatprep.subr.bf16.mxu0 %v17149_v51 }
 0x378   :  { %v15017_v1 = vpop.f32.mrb[4].mxu1  ;;  %15052 = vmatprep.mubr.msk.f32.mxu0 %vm2029_vm5, %v21371_v46  ;;  %15132 = vmatprep.mubr.msk.f32.mxu1 %vm2029_vm5, %v21371_v46 }
 0x379   :  { %v2357_v48 = vpop.f32.mrb[5].mxu1  ;;  %15053 = vmatmul.mubr.msk.f32.gmra.mrb[18].mxu0 %vm2029_vm5, %v21374_v7  ;;  %15133 = vmatmul.mubr.msk.f32.gmra.mrb[18].mxu1 %vm2029_vm5, %v21374_v7  ;;  %v21394_v6 = vadd.f32 %v15017_v1, %v21342_v3 }
 0x37a   :  { %v21391_v14 = vadd.f32 %v21342_v3, %v2357_v48  ;;  %17152 = vmatpush3.bf16.msra.mxu0 %v17149_v51 }
 0x37b   :  { %17154 = vmatprep.subr.bf16.mxu0 %v17153_v16 }
 0x37c   :  { %v15020_v12 = vpop.f32.mrb[6].mxu1  ;;  %15055 = vmatprep.mubr.msk.f32.mxu0 %vm2029_vm5, %v21391_v14  ;;  %15135 = vmatprep.mubr.msk.f32.mxu1 %vm2029_vm5, %v21391_v14 }
 0x37d   :  { %v2367_v54 = vpop.f32.mrb[7].mxu1  ;;  %15056 = vmatmul.mubr.msk.f32.gmra.mrb[20].mxu0 %vm2029_vm5, %v21394_v6  ;;  %15136 = vmatmul.mubr.msk.f32.gmra.mrb[20].mxu1 %vm2029_vm5, %v21394_v6  ;;  %v21408_v2 = vadd.f32 %v15020_v12, %v21342_v3 }
 0x37e   :  { %v21405_v20 = vadd.f32 %v21342_v3, %v2367_v54  ;;  %17156 = vmatpush3.bf16.msra.mxu0 %v17153_v16 }
 0x37f   :  { %17158 = vmatprep.subr.bf16.mxu0 %v17157_v15 }
 0x380   :  { %v15023_v24 = vpop.f32.mrb[8].mxu1  ;;  %15058 = vmatprep.mubr.msk.f32.mxu0 %vm2029_vm5, %v21405_v20  ;;  %15138 = vmatprep.mubr.msk.f32.mxu1 %vm2029_vm5, %v21405_v20 }
 0x381   :  { %v2377_v59 = vpop.f32.mrb[9].mxu1  ;;  %15059 = vmatmul.mubr.msk.f32.gmra.mrb[22].mxu0 %vm2029_vm5, %v21408_v2  ;;  %15139 = vmatmul.mubr.msk.f32.gmra.mrb[22].mxu1 %vm2029_vm5, %v21408_v2  ;;  %v21422_v13 = vadd.f32 %v15023_v24, %v21342_v3 }
 0x382   :  { %v21419_v23 = vadd.f32 %v21342_v3, %v2377_v59  ;;  %17160 = vmatpush3.bf16.msra.mxu0 %v17157_v15 }
 0x384   :  { %v15026_v38 = vpop.f32.mrb[10].mxu1  ;;  %15061 = vmatprep.mubr.msk.f32.mxu0 %vm2029_vm5, %v21419_v23  ;;  %15141 = vmatprep.mubr.msk.f32.mxu1 %vm2029_vm5, %v21419_v23 }
 0x385   :  { %v2387_v33 = vpop.f32.mrb[11].mxu1  ;;  %15062 = vmatmul.mubr.msk.f32.gmra.mrb[24].mxu0 %vm2029_vm5, %v21422_v13  ;;  %15142 = vmatmul.mubr.msk.f32.gmra.mrb[24].mxu1 %vm2029_vm5, %v21422_v13  ;;  %v21436_v47 = vadd.f32 %v15026_v38, %v21342_v3 }
 0x386   :  { %v21433_v57 = vadd.f32 %v21342_v3, %v2387_v33 }
 0x388   :  { %v15029_v28 = vpop.f32.mrb[12].mxu1  ;;  %15064 = vmatprep.mubr.msk.f32.mxu0 %vm2029_vm5, %v21433_v57  ;;  %15144 = vmatprep.mubr.msk.f32.mxu1 %vm2029_vm5, %v21433_v57 }
 0x389   :  { %v2397_v44 = vpop.f32.mrb[13].mxu1  ;;  %15065 = vmatmul.mubr.msk.f32.gmra.mrb[26].mxu0 %vm2029_vm5, %v21436_v47  ;;  %15145 = vmatmul.mubr.msk.f32.gmra.mrb[26].mxu1 %vm2029_vm5, %v21436_v47  ;;  %v21450_v49 = vadd.f32 %v15029_v28, %v21342_v3 }
 0x38a   :  { %v21447_v31 = vadd.f32 %v21342_v3, %v2397_v44 }
 0x38c   :  { %v15032_v17 = vpop.f32.mrb[14].mxu1  ;;  %15067 = vmatprep.mubr.msk.f32.mxu0 %vm2029_vm5, %v21447_v31  ;;  %15147 = vmatprep.mubr.msk.f32.mxu1 %vm2029_vm5, %v21447_v31 }
 0x38d   :  { %v2407_v9 = vpop.f32.mrb[15].mxu1  ;;  %15068 = vmatmul.mubr.msk.f32.gmra.mrb[28].mxu0 %vm2029_vm5, %v21450_v49  ;;  %15148 = vmatmul.mubr.msk.f32.gmra.mrb[28].mxu1 %vm2029_vm5, %v21450_v49  ;;  %v21464_v25 = vadd.f32 %v15032_v17, %v21342_v3 }
 0x38e   :  { %v21461_v5 = vadd.f32 %v21342_v3, %v2407_v9 }
 0x390   :  { %15070 = vmatprep.mubr.msk.f32.mxu0 %vm2029_vm5, %v21461_v5  ;;  %15150 = vmatprep.mubr.msk.f32.mxu1 %vm2029_vm5, %v21461_v5 }
 0x391   :  { %15071 = vmatmul.mubr.msk.f32.gmra.mrb[30].mxu0 %vm2029_vm5, %v21464_v25  ;;  %15151 = vmatmul.mubr.msk.f32.gmra.mrb[30].mxu1 %vm2029_vm5, %v21464_v25 }
 0x392   :  { %15089 = vmatprep.mubr.msk.f32.mxu0 %vm2029_vm5, %v21351_v35 }
 0x395   :  { %15090 = vmatmul.mubr.msk.f32.vlgmr.msra.gmra.mrb[32].mxu0 %vm2029_vm5, %v21354_v34 }
 0x396   :  { %15092 = vmatprep.mubr.msk.f32.mxu0 %vm2029_vm5, %v21371_v46 }
 0x399   :  { %15093 = vmatmul.mubr.msk.f32.gmra.mrb[34].mxu0 %vm2029_vm5, %v21374_v7 }
 0x39a   :  { %15095 = vmatprep.mubr.msk.f32.mxu0 %vm2029_vm5, %v21391_v14 }
 0x39d   :  { %15096 = vmatmul.mubr.msk.f32.gmra.mrb[36].mxu0 %vm2029_vm5, %v21394_v6 }
 0x39e   :  { %15098 = vmatprep.mubr.msk.f32.mxu0 %vm2029_vm5, %v21405_v20 }
 0x3a1   :  { %15099 = vmatmul.mubr.msk.f32.gmra.mrb[38].mxu0 %vm2029_vm5, %v21408_v2 }
 0x3a2   :  { %15101 = vmatprep.mubr.msk.f32.mxu0 %vm2029_vm5, %v21419_v23 }
 0x3a5   :  { %15102 = vmatmul.mubr.msk.f32.gmra.mrb[40].mxu0 %vm2029_vm5, %v21422_v13 }
 0x3a6   :  { %15104 = vmatprep.mubr.msk.f32.mxu0 %vm2029_vm5, %v21433_v57 }
 0x3a9   :  { %15105 = vmatmul.mubr.msk.f32.gmra.mrb[42].mxu0 %vm2029_vm5, %v21436_v47 }
 0x3aa   :  { %15107 = vmatprep.mubr.msk.f32.mxu0 %vm2029_vm5, %v21447_v31 }
 0x3ad   :  { %15108 = vmatmul.mubr.msk.f32.gmra.mrb[44].mxu0 %vm2029_vm5, %v21450_v49 }
 0x3ae   :  { %15110 = vmatprep.mubr.msk.f32.mxu0 %vm2029_vm5, %v21461_v5 }
 0x3b1   :  { %15111 = vmatmul.mubr.msk.f32.gmra.mrb[46].mxu0 %vm2029_vm5, %v21464_v25 }
 0x448   :  { %v15051_v11 = vpop.f32.mrb[16].mxu0  ;;  %v15131_v45 = vpop.f32.mrb[16].mxu1 }
 0x449   :  { %v21517_v39 = vadd.f32 %v15051_v11, %v21509_v18  ;;  %v2894_v36 = vadd.f32 %v15131_v45, %v21514_v27  ;;  %v2568_v53 = vpop.f32.mrb[17].mxu0  ;;  %v2888_v8 = vpop.f32.mrb[17].mxu1 }
 0x44a   :  { %v2569_v19 = vadd.f32 %v21509_v18, %v2568_v53  ;;  %v2889_v56 = vadd.f32 %v21514_v27, %v2888_v8 }
 0x44c   :  { %v15054_v58 = vpop.f32.mrb[18].mxu0  ;;  %v15134_v41 = vpop.f32.mrb[18].mxu1  ;;  %15185 = vmatprep.mubr.msk.f32.mxu0 %vm2967_vm10, %v2569_v19  ;;  %v17225_v63 = vpack.c.bf16 %v2894_v36, %v2889_v56 }
 0x44d   :  { %v21524_v42 = vadd.f32 %v15054_v58, %v21509_v18  ;;  %v2904_v30 = vadd.f32 %v15134_v41, %v21514_v27  ;;  %v2578_v40 = vpop.f32.mrb[19].mxu0  ;;  %v2898_v43 = vpop.f32.mrb[19].mxu1 }
 0x44e   :  { %v21528_v60 = vadd.f32 %v21509_v18, %v2578_v40  ;;  %v2899_v61 = vadd.f32 %v21514_v27, %v2898_v43  ;;  %17226 = vmatprep.subr.bf16.mxu1 %v17225_v63 }
 0x44f   :  { %17228 = vmatpush3.bf16.msra.mxu1 %v17225_v63 }
 0x450   :  { %v15057_v21 = vpop.f32.mrb[20].mxu0  ;;  %v15137_v26 = vpop.f32.mrb[20].mxu1  ;;  %v17229_v29 = vpack.c.bf16 %v2904_v30, %v2899_v61 }
 0x451   :  { %v21532_v3 = vadd.f32 %v15057_v21, %v21509_v18  ;;  %v2914_v0 = vadd.f32 %v15137_v26, %v21514_v27  ;;  %v2588_v37 = vpop.f32.mrb[21].mxu0  ;;  %v2908_v62 = vpop.f32.mrb[21].mxu1 }
 0x452   :  { %v21536_v50 = vadd.f32 %v21509_v18, %v2588_v37  ;;  %v2909_v51 = vadd.f32 %v21514_v27, %v2908_v62  ;;  %17230 = vmatprep.subr.bf16.mxu1 %v17229_v29 }
 0x453   :  { %17232 = vmatpush3.bf16.msra.mxu1 %v17229_v29 }
 0x454   :  { %v15060_v52 = vpop.f32.mrb[22].mxu0  ;;  %v15140_v22 = vpop.f32.mrb[22].mxu1  ;;  %v17233_v55 = vpack.c.bf16 %v2914_v0, %v2909_v51 }
 0x455   :  { %v21540_v32 = vadd.f32 %v15060_v52, %v21509_v18  ;;  %v2924_v16 = vadd.f32 %v15140_v22, %v21514_v27  ;;  %v2598_v1 = vpop.f32.mrb[23].mxu0  ;;  %v2918_v10 = vpop.f32.mrb[23].mxu1 }
 0x456   :  { %v21544_v4 = vadd.f32 %v21509_v18, %v2598_v1  ;;  %v2919_v48 = vadd.f32 %v21514_v27, %v2918_v10  ;;  %17234 = vmatprep.subr.bf16.mxu1 %v17233_v55  ;;  %v12666_v1 = vld [vmem:[%s24926_s12] ss:$0 sm:$0xff] }
 0x457   :  { %17236 = vmatpush3.bf16.msra.mxu1 %v17233_v55 }
 0x458   :  { %v15063_v15 = vpop.f32.mrb[24].mxu0  ;;  %v15143_v12 = vpop.f32.mrb[24].mxu1  ;;  %v17237_v54 = vpack.c.bf16 %v2924_v16, %v2919_v48 }
 0x459   :  { %v21548_v24 = vadd.f32 %v15063_v15, %v21509_v18  ;;  %v2934_v59 = vadd.f32 %v15143_v12, %v21514_v27  ;;  %v2608_v38 = vpop.f32.mrb[25].mxu0  ;;  %v2928_v33 = vpop.f32.mrb[25].mxu1 }
 0x45a   :  { %v21552_v28 = vadd.f32 %v21509_v18, %v2608_v38  ;;  %v2929_v44 = vadd.f32 %v21514_v27, %v2928_v33  ;;  %17238 = vmatprep.subr.bf16.mxu1 %v17237_v54 }
 0x45b   :  { %17240 = vmatpush3.bf16.msra.mxu1 %v17237_v54 }
 0x45c   :  { %v15066_v17 = vpop.f32.mrb[26].mxu0  ;;  %v15146_v9 = vpop.f32.mrb[26].mxu1  ;;  %v17241_v11 = vpack.c.bf16 %v2934_v59, %v2929_v44 }
 0x45d   :  { %v21556_v45 = vadd.f32 %v15066_v17, %v21509_v18  ;;  %v2944_v36 = vadd.f32 %v15146_v9, %v21514_v27  ;;  %v2618_v53 = vpop.f32.mrb[27].mxu0  ;;  %v2938_v8 = vpop.f32.mrb[27].mxu1 }
 0x45e   :  { %v21560_v19 = vadd.f32 %v21509_v18, %v2618_v53  ;;  %v2939_v56 = vadd.f32 %v21514_v27, %v2938_v8  ;;  %17242 = vmatprep.subr.bf16.mxu1 %v17241_v11 }
 0x45f   :  { %17244 = vmatpush3.bf16.msra.mxu1 %v17241_v11 }
 0x460   :  { %v15069_v58 = vpop.f32.mrb[28].mxu0  ;;  %v15149_v41 = vpop.f32.mrb[28].mxu1  ;;  %v17245_v63 = vpack.c.bf16 %v2944_v36, %v2939_v56 }
 0x461   :  { %v21564_v30 = vadd.f32 %v15069_v58, %v21509_v18  ;;  %v2954_v40 = vadd.f32 %v15149_v41, %v21514_v27  ;;  %v2628_v43 = vpop.f32.mrb[29].mxu0  ;;  %v2948_v61 = vpop.f32.mrb[29].mxu1 }
 0x462   :  { %v21568_v21 = vadd.f32 %v21509_v18, %v2628_v43  ;;  %v2949_v26 = vadd.f32 %v21514_v27, %v2948_v61  ;;  %17246 = vmatprep.subr.bf16.mxu1 %v17245_v63 }
 0x463   :  { %17248 = vmatpush3.bf16.msra.mxu1 %v17245_v63 }
 0x464   :  { %v15072_v29 = vpop.f32.mrb[30].mxu0  ;;  %v15152_v0 = vpop.f32.mrb[30].mxu1  ;;  %v17249_v37 = vpack.c.bf16 %v2954_v40, %v2949_v26 }
 0x465   :  { %v21572_v62 = vadd.f32 %v15072_v29, %v21509_v18  ;;  %v2964_v51 = vadd.f32 %v15152_v0, %v21514_v27  ;;  %v2638_v52 = vpop.f32.mrb[31].mxu0  ;;  %v2958_v22 = vpop.f32.mrb[31].mxu1 }
 0x466   :  { %v21576_v55 = vadd.f32 %v21509_v18, %v2638_v52  ;;  %v2959_v16 = vadd.f32 %v21514_v27, %v2958_v22  ;;  %17250 = vmatprep.subr.bf16.mxu1 %v17249_v37 }
 0x467   :  { %17252 = vmatpush3.bf16.msra.mxu1 %v17249_v37 }
 0x468   :  { %v15091_v10 = vpop.f32.mrb[32].mxu0  ;;  %v17253_v48 = vpack.c.bf16 %v2964_v51, %v2959_v16 }
 0x469   :  { %v2734_v15 = vadd.f32 %v15091_v10, %v12666_v1  ;;  %v2728_v12 = vpop.f32.mrb[33].mxu0 }
 0x46a   :  { %v2729_v54 = vadd.f32 %v12666_v1, %v2728_v12  ;;  %17254 = vmatprep.subr.bf16.mxu1 %v17253_v48 }
 0x46b   :  { %17256 = vmatpush3.bf16.msra.mxu1 %v17253_v48 }
 0x46c   :  { %v17177_v27 = vpack.c.bf16 %v2734_v15, %v2729_v54  ;;  %v15094_v59 = vpop.f32.mrb[34].mxu0 }
 0x46d   :  { %v2744_v38 = vadd.f32 %v15094_v59, %v12666_v1  ;;  %v2738_v33 = vpop.f32.mrb[35].mxu0 }
 0x46e   :  { %v2739_v44 = vadd.f32 %v12666_v1, %v2738_v33  ;;  %17179 = vmatprep.subr.msk.bf16.mxu0 %vm21584_vm4, %v17177_v27 }
 0x46f   :  { %17182 = vmatpush3.bf16.xpose.msk.msra.mxu0 %vm21584_vm4, %v17177_v27 }
 0x470   :  { %v17183_v17 = vpack.c.bf16 %v2744_v38, %v2739_v44  ;;  %v15097_v9 = vpop.f32.mrb[36].mxu0 }
 0x471   :  { %v2754_v11 = vadd.f32 %v15097_v9, %v12666_v1  ;;  %v2748_v36 = vpop.f32.mrb[37].mxu0 }
 0x472   :  { %v2749_v53 = vadd.f32 %v12666_v1, %v2748_v36  ;;  %17185 = vmatprep.subr.msk.bf16.mxu0 %vm21584_vm4, %v17183_v17  ;;  %v12761_v36 = vld [vmem:[%s24922_s9 + $0x58] sm:$0xff] }
 0x474   :  { %v17189_v8 = vpack.c.bf16 %v2754_v11, %v2749_v53  ;;  %v15100_v56 = vpop.f32.mrb[38].mxu0  ;;  %v12760_v11 = vld [vmem:[%s24922_s9 + $0x50] sm:$0xff] }
 0x475   :  { %v2764_v58 = vadd.f32 %v15100_v56, %v12666_v1  ;;  %v2758_v41 = vpop.f32.mrb[39].mxu0  ;;  %v17277_v53 = vpack.c.bf16 %v12761_v36, %v12760_v11  ;;  %v12763_v56 = vld [vmem:[%s24922_s9 + $0x68] sm:$0xff] }
 0x476   :  { %v2759_v63 = vadd.f32 %v12666_v1, %v2758_v41  ;;  %v12764_v41 = vld [vmem:[%s24922_s9 + $0x70] sm:$0xff] }
 0x477   :  { %17188 = vmatpush3.bf16.xpose.msk.msra.mxu0 %vm21584_vm4, %v17183_v17  ;;  %v12759_v17 = vld [vmem:[%s24922_s9 + $0x48] sm:$0xff] }
 0x478   :  { %v17195_v40 = vpack.c.bf16 %v2764_v58, %v2759_v63  ;;  %v15103_v43 = vpop.f32.mrb[40].mxu0  ;;  %17191 = vmatprep.subr.msk.bf16.mxu0 %vm21584_vm4, %v17189_v8  ;;  %v12765_v63 = vld [vmem:[%s24922_s9 + $0x78] sm:$0xff] }
 0x479   :  { %v2774_v61 = vadd.f32 %v15103_v43, %v12666_v1  ;;  %v2768_v26 = vpop.f32.mrb[41].mxu0 }
 0x47a   :  { %v2769_v29 = vadd.f32 %v12666_v1, %v2768_v26 }
 0x47c   :  { %v17201_v0 = vpack.c.bf16 %v2774_v61, %v2769_v29  ;;  %v15106_v37 = vpop.f32.mrb[42].mxu0  ;;  %v12767_v61 = vld [vmem:[%s24926_s12 + $0x1] ss:$0 sm:$0xff] }
 0x47d   :  { %v2784_v51 = vadd.f32 %v15106_v37, %v12666_v1  ;;  %v2778_v52 = vpop.f32.mrb[43].mxu0 }
 0x47e   :  { %v2779_v22 = vadd.f32 %v12666_v1, %v2778_v52 }
 0x47f   :  { %17194 = vmatpush3.bf16.xpose.msk.msra.mxu0 %vm21584_vm4, %v17189_v8  ;;  %v12762_v8 = vld [vmem:[%s24922_s9 + $0x60] sm:$0xff] }
 0x480   :  { %v17207_v16 = vpack.c.bf16 %v2784_v51, %v2779_v22  ;;  %v15109_v10 = vpop.f32.mrb[44].mxu0  ;;  %17197 = vmatprep.subr.msk.bf16.mxu0 %vm21584_vm4, %v17195_v40  ;;  %v17281_v58 = vpack.c.bf16 %v12763_v56, %v12762_v8 }
 0x481   :  { %v2794_v48 = vadd.f32 %v15109_v10, %v12666_v1  ;;  %v2788_v15 = vpop.f32.mrb[45].mxu0 }
 0x482   :  { %v2789_v12 = vadd.f32 %v12666_v1, %v2788_v15 }
 0x484   :  { %v17213_v54 = vpack.c.bf16 %v2794_v48, %v2789_v12  ;;  %v15112_v27 = vpop.f32.mrb[46].mxu0 }
 0x485   :  { %v2804_v59 = vadd.f32 %v15112_v27, %v12666_v1  ;;  %v2798_v38 = vpop.f32.mrb[47].mxu0 }
 0x486   :  { %v2799_v33 = vadd.f32 %v12666_v1, %v2798_v38  ;;  %v12758_v1 = vld [vmem:[%s24922_s9 + $0x40] sm:$0xff] }
 0x487   :  { %17200 = vmatpush3.bf16.xpose.msk.msra.mxu0 %vm21584_vm4, %v17195_v40  ;;  %v17273_v9 = vpack.c.bf16 %v12759_v17, %v12758_v1 }
 0x488   :  { %v17219_v44 = vpack.c.bf16 %v2804_v59, %v2799_v33  ;;  %17203 = vmatprep.subr.msk.bf16.mxu0 %vm21584_vm4, %v17201_v0 }
 0x48f   :  { %17206 = vmatpush3.bf16.xpose.msk.msra.mxu0 %vm21584_vm4, %v17201_v0 }
 0x490   :  { %17209 = vmatprep.subr.msk.bf16.mxu0 %vm21584_vm4, %v17207_v16 }
 0x497   :  { %17212 = vmatpush3.bf16.xpose.msk.msra.mxu0 %vm21584_vm4, %v17207_v16 }
 0x498   :  { %17215 = vmatprep.subr.msk.bf16.mxu0 %vm21584_vm4, %v17213_v54 }
 0x49f   :  { %17218 = vmatpush3.bf16.xpose.msk.msra.mxu0 %vm21584_vm4, %v17213_v54 }
 0x4a0   :  { %17221 = vmatprep.subr.msk.bf16.mxu0 %vm21584_vm4, %v17219_v44 }
 0x4a7   :  { %17224 = vmatpush3.bf16.xpose.msk.msra.mxu0 %vm21584_vm4, %v17219_v44 }
 0x4a8   :  { %17274 = vmatprep.subr.bf16.mxu0 %v17273_v9 }
 0x4ae   :  { %15186 = vmatmul.mubr.msk.f32.vlgmr.msra.gmra.mrb[48].mxu0 %vm2967_vm10, %v21517_v39  ;;  %v17285_v39 = vpack.c.bf16 %v12765_v63, %v12764_v41 }
 0x4af   :  { %15188 = vmatprep.mubr.msk.f32.mxu0 %vm2967_vm10, %v21528_v60  ;;  %17276 = vmatpush3.bf16.msra.mxu0 %v17273_v9 }
 0x4b0   :  { %17278 = vmatprep.subr.bf16.mxu0 %v17277_v53 }
 0x4b2   :  { %15189 = vmatmul.mubr.msk.f32.gmra.mrb[50].mxu0 %vm2967_vm10, %v21524_v42 }
 0x4b3   :  { %15191 = vmatprep.mubr.msk.f32.mxu0 %vm2967_vm10, %v21536_v50  ;;  %17280 = vmatpush3.bf16.msra.mxu0 %v17277_v53 }
 0x4b4   :  { %17282 = vmatprep.subr.bf16.mxu0 %v17281_v58 }
 0x4b6   :  { %15192 = vmatmul.mubr.msk.f32.gmra.mrb[52].mxu0 %vm2967_vm10, %v21532_v3 }
 0x4b7   :  { %15194 = vmatprep.mubr.msk.f32.mxu0 %vm2967_vm10, %v21544_v4  ;;  %17284 = vmatpush3.bf16.msra.mxu0 %v17281_v58 }
 0x4b8   :  { %17286 = vmatprep.subr.bf16.mxu0 %v17285_v39 }
 0x4ba   :  { %15195 = vmatmul.mubr.msk.f32.gmra.mrb[54].mxu0 %vm2967_vm10, %v21540_v32 }
 0x4bb   :  { %15197 = vmatprep.mubr.msk.f32.mxu0 %vm2967_vm10, %v21552_v28  ;;  %17288 = vmatpush3.bf16.msra.mxu0 %v17285_v39 }
 0x4be   :  { %15198 = vmatmul.mubr.msk.f32.gmra.mrb[56].mxu0 %vm2967_vm10, %v21548_v24 }
 0x4bf   :  { %15200 = vmatprep.mubr.msk.f32.mxu0 %vm2967_vm10, %v21560_v19 }
 0x4c2   :  { %15201 = vmatmul.mubr.msk.f32.gmra.mrb[58].mxu0 %vm2967_vm10, %v21556_v45 }
 0x4c3   :  { %15203 = vmatprep.mubr.msk.f32.mxu0 %vm2967_vm10, %v21568_v21 }
 0x4c6   :  { %15204 = vmatmul.mubr.msk.f32.gmra.mrb[60].mxu0 %vm2967_vm10, %v21564_v30 }
 0x4c7   :  { %15206 = vmatprep.mubr.msk.f32.mxu0 %vm2967_vm10, %v21576_v55 }
 0x4ca   :  { %15207 = vmatmul.mubr.msk.f32.gmra.mrb[62].mxu0 %vm2967_vm10, %v21572_v62 }
 0x4cb   :  { %15321 = vmatprep.mubr.msk.f32.mxu0 %vm2029_vm5, %v21351_v35 }
 0x4ce   :  { %15322 = vmatmul.mubr.msk.f32.vlgmr.msra.gmra.mrb[64].mxu0 %vm2029_vm5, %v21354_v34 }
 0x4cf   :  { %15324 = vmatprep.mubr.msk.f32.mxu0 %vm2029_vm5, %v21371_v46 }
 0x4d2   :  { %15325 = vmatmul.mubr.msk.f32.gmra.mrb[66].mxu0 %vm2029_vm5, %v21374_v7 }
 0x4d3   :  { %15327 = vmatprep.mubr.msk.f32.mxu0 %vm2029_vm5, %v21391_v14 }
 0x4d6   :  { %15328 = vmatmul.mubr.msk.f32.gmra.mrb[68].mxu0 %vm2029_vm5, %v21394_v6 }
 0x4d7   :  { %15330 = vmatprep.mubr.msk.f32.mxu0 %vm2029_vm5, %v21405_v20 }
 0x4da   :  { %15331 = vmatmul.mubr.msk.f32.gmra.mrb[70].mxu0 %vm2029_vm5, %v21408_v2 }
 0x4db   :  { %15333 = vmatprep.mubr.msk.f32.mxu0 %vm2029_vm5, %v21419_v23 }
 0x4de   :  { %15334 = vmatmul.mubr.msk.f32.gmra.mrb[72].mxu0 %vm2029_vm5, %v21422_v13 }
 0x4df   :  { %15336 = vmatprep.mubr.msk.f32.mxu0 %vm2029_vm5, %v21433_v57 }
 0x4e2   :  { %15337 = vmatmul.mubr.msk.f32.gmra.mrb[74].mxu0 %vm2029_vm5, %v21436_v47 }
 0x4e3   :  { %15339 = vmatprep.mubr.msk.f32.mxu0 %vm2029_vm5, %v21447_v31 }
 0x4e6   :  { %15340 = vmatmul.mubr.msk.f32.gmra.mrb[76].mxu0 %vm2029_vm5, %v21450_v49 }
 0x4e7   :  { %15342 = vmatprep.mubr.msk.f32.mxu0 %vm2029_vm5, %v21461_v5 }
 0x4ea   :  { %15343 = vmatmul.mubr.msk.f32.gmra.mrb[78].mxu0 %vm2029_vm5, %v21464_v25 }
 0x581   :  { %v21706_v42 = vpop.f32.mrb[48].mxu0 }
 0x582   :  { %v21708_v60 = vpop.f32.mrb[49].mxu0 }
 0x583   :  { %3209 = vmax.xlane.f32.xlu0 %v21708_v60 }
 0x585   :  { %v21711_v3 = vpop.f32.mrb[50].mxu0 }
 0x586   :  { %v21713_v50 = vpop.f32.mrb[51].mxu0 }
 0x587   :  { %3211 = vmax.xlane.f32.xlu0 %v21706_v42  ;;  %3213 = vmax.xlane.f32.xlu1 %v21713_v50 }
 0x589   :  { %v21717_v32 = vpop.f32.mrb[52].mxu0 }
 0x58a   :  { %v21719_v4 = vpop.f32.mrb[53].mxu0 }
 0x58b   :  { %3215 = vmax.xlane.f32.xlu1 %v21711_v3  ;;  %3217 = vmax.xlane.f32.xlu0 %v21719_v4 }
 0x58d   :  { %v21723_v24 = vpop.f32.mrb[54].mxu0 }
 0x58e   :  { %v21725_v28 = vpop.f32.mrb[55].mxu0 }
 0x58f   :  { %3219 = vmax.xlane.f32.xlu1 %v21717_v32  ;;  %3221 = vmax.xlane.f32.xlu0 %v21725_v28 }
 0x591   :  { %v21729_v45 = vpop.f32.mrb[56].mxu0 }
 0x592   :  { %v21731_v19 = vpop.f32.mrb[57].mxu0 }
 0x593   :  { %3223 = vmax.xlane.f32.xlu1 %v21723_v24  ;;  %3225 = vmax.xlane.f32.xlu0 %v21731_v19 }
 0x595   :  { %v21735_v30 = vpop.f32.mrb[58].mxu0 }
 0x596   :  { %v21737_v21 = vpop.f32.mrb[59].mxu0 }
 0x597   :  { %3227 = vmax.xlane.f32.xlu1 %v21729_v45  ;;  %3229 = vmax.xlane.f32.xlu0 %v21737_v21 }
 0x599   :  { %v21741_v62 = vpop.f32.mrb[60].mxu0 }
 0x59a   :  { %v21743_v55 = vpop.f32.mrb[61].mxu0 }
 0x59b   :  { %3231 = vmax.xlane.f32.xlu1 %v21735_v30  ;;  %3233 = vmax.xlane.f32.xlu0 %v21743_v55 }
 0x59d   :  { %v21747_v40 = vpop.f32.mrb[62].mxu0 }
 0x59e   :  { %v21749_v43 = vpop.f32.mrb[63].mxu0 }
 0x59f   :  { %3235 = vmax.xlane.f32.xlu1 %v21741_v62  ;;  %3237 = vmax.xlane.f32.xlu0 %v21749_v43 }
 0x5a1   :  { %v15323_v26 = vpop.f32.mrb[64].mxu0 }
 0x5a2   :  { %v3750_v29 = vadd.f32 %v15323_v26, %v12767_v61  ;;  %v3744_v0 = vpop.f32.mrb[65].mxu0 }
 0x5a3   :  { %v3745_v37 = vadd.f32 %v12767_v61, %v3744_v0  ;;  %3239 = vmax.xlane.f32.xlu1 %v21747_v40 }
 0x5a5   :  { %v17305_v51 = vpack.c.bf16 %v3750_v29, %v3745_v37  ;;  %v15326_v52 = vpop.f32.mrb[66].mxu0 }
 0x5a6   :  { %v3760_v22 = vadd.f32 %v15326_v52, %v12767_v61  ;;  %v3754_v16 = vpop.f32.mrb[67].mxu0 }
 0x5a7   :  { %v3755_v10 = vadd.f32 %v12767_v61, %v3754_v16  ;;  %17307 = vmatprep.subr.msk.bf16.mxu0 %vm21584_vm4, %v17305_v51 }
 0x5a8   :  { %17310 = vmatpush3.bf16.xpose.msk.msra.mxu0 %vm21584_vm4, %v17305_v51 }
 0x5a9   :  { %v17311_v48 = vpack.c.bf16 %v3760_v22, %v3755_v10  ;;  %v15329_v15 = vpop.f32.mrb[68].mxu0 }
 0x5aa   :  { %v3770_v12 = vadd.f32 %v15329_v15, %v12767_v61  ;;  %v3764_v54 = vpop.f32.mrb[69].mxu0 }
 0x5ab   :  { %v3765_v27 = vadd.f32 %v12767_v61, %v3764_v54  ;;  %17313 = vmatprep.subr.msk.bf16.mxu0 %vm21584_vm4, %v17311_v48 }
 0x5ad   :  { %v17317_v59 = vpack.c.bf16 %v3770_v12, %v3765_v27  ;;  %v15332_v38 = vpop.f32.mrb[70].mxu0 }
 0x5ae   :  { %v3780_v33 = vadd.f32 %v15332_v38, %v12767_v61  ;;  %v3774_v44 = vpop.f32.mrb[71].mxu0 }
 0x5af   :  { %v3775_v1 = vadd.f32 %v12767_v61, %v3774_v44 }
 0x5b0   :  { %17316 = vmatpush3.bf16.xpose.msk.msra.mxu0 %vm21584_vm4, %v17311_v48 }
 0x5b1   :  { %v17323_v17 = vpack.c.bf16 %v3780_v33, %v3775_v1  ;;  %v15335_v9 = vpop.f32.mrb[72].mxu0  ;;  %17319 = vmatprep.subr.msk.bf16.mxu0 %vm21584_vm4, %v17317_v59 }
 0x5b2   :  { %v3790_v11 = vadd.f32 %v15335_v9, %v12767_v61  ;;  %v3784_v36 = vpop.f32.mrb[73].mxu0 }
 0x5b3   :  { %v3785_v53 = vadd.f32 %v12767_v61, %v3784_v36 }
 0x5b5   :  { %v17329_v8 = vpack.c.bf16 %v3790_v11, %v3785_v53  ;;  %v15338_v56 = vpop.f32.mrb[74].mxu0 }
 0x5b6   :  { %v3800_v58 = vadd.f32 %v15338_v56, %v12767_v61  ;;  %v3794_v41 = vpop.f32.mrb[75].mxu0 }
 0x5b7   :  { %v3795_v63 = vadd.f32 %v12767_v61, %v3794_v41 }
 0x5b8   :  { %17322 = vmatpush3.bf16.xpose.msk.msra.mxu0 %vm21584_vm4, %v17317_v59 }
 0x5b9   :  { %v17335_v39 = vpack.c.bf16 %v3800_v58, %v3795_v63  ;;  %v15341_v26 = vpop.f32.mrb[76].mxu0  ;;  %17325 = vmatprep.subr.msk.bf16.mxu0 %vm21584_vm4, %v17323_v17 }
 0x5ba   :  { %v3810_v29 = vadd.f32 %v15341_v26, %v12767_v61  ;;  %v3804_v0 = vpop.f32.mrb[77].mxu0 }
 0x5bb   :  { %v3805_v37 = vadd.f32 %v12767_v61, %v3804_v0 }
 0x5bd   :  { %v17341_v51 = vpack.c.bf16 %v3810_v29, %v3805_v37  ;;  %v15344_v52 = vpop.f32.mrb[78].mxu0 }
 0x5be   :  { %v3820_v22 = vadd.f32 %v15344_v52, %v12767_v61  ;;  %v3814_v16 = vpop.f32.mrb[79].mxu0 }
 0x5bf   :  { %v3815_v10 = vadd.f32 %v12767_v61, %v3814_v16 }
 0x5c0   :  { %17328 = vmatpush3.bf16.xpose.msk.msra.mxu0 %vm21584_vm4, %v17323_v17 }
 0x5c1   :  { %v17347_v48 = vpack.c.bf16 %v3820_v22, %v3815_v10  ;;  %17331 = vmatprep.subr.msk.bf16.mxu0 %vm21584_vm4, %v17329_v8 }
 0x5c8   :  { %17334 = vmatpush3.bf16.xpose.msk.msra.mxu0 %vm21584_vm4, %v17329_v8 }
 0x5c9   :  { %17337 = vmatprep.subr.msk.bf16.mxu0 %vm21584_vm4, %v17335_v39 }
 0x5d0   :  { %17340 = vmatpush3.bf16.xpose.msk.msra.mxu0 %vm21584_vm4, %v17335_v39 }
 0x5d1   :  { %17343 = vmatprep.subr.msk.bf16.mxu0 %vm21584_vm4, %v17341_v51 }
 0x5d8   :  { %17346 = vmatpush3.bf16.xpose.msk.msra.mxu0 %vm21584_vm4, %v17341_v51 }
 0x5d9   :  { %17349 = vmatprep.subr.msk.bf16.mxu0 %vm21584_vm4, %v17347_v48 }
 0x5e0   :  { %17352 = vmatpush3.bf16.xpose.msk.msra.mxu0 %vm21584_vm4, %v17347_v48 }
 0x610   :  { %v3210_v61 = vpop.xlane.xlu0 %3209 }
 0x611   :  { %v3241_v15 = vsub.f32 %v21708_v60, %v3210_v61 }
 0x613   :  { %v3257_v12 = vmul.f32 1.442695, %v3241_v15 }
 0x614   :  { %v3212_v54 = vpop.xlane.xlu0 %3211  ;;  %v3214_v27 = vpop.xlane.xlu1 %3213 }
 0x615   :  { %18431 = vpow2.f32 %v3257_v12  ;;  %v3242_v59 = vsub.f32 %v21706_v42, %v3212_v54  ;;  %v3243_v38 = vsub.f32 %v21713_v50, %v3214_v27 }
 0x617   :  { %v3259_v33 = vmul.f32 1.442695, %v3242_v59  ;;  %v3261_v44 = vmul.f32 1.442695, %v3243_v38 }
 0x618   :  { %v3216_v1 = vpop.xlane.xlu1 %3215  ;;  %v3218_v17 = vpop.xlane.xlu0 %3217 }
 0x619   :  { %18433 = vpow2.f32 %v3259_v33  ;;  %v3244_v9 = vsub.f32 %v21711_v3, %v3216_v1  ;;  %v3245_v11 = vsub.f32 %v21719_v4, %v3218_v17 }
 0x61a   :  { %18435 = vpow2.f32 %v3261_v44 }
 0x61b   :  { %v3263_v36 = vmul.f32 1.442695, %v3244_v9  ;;  %v3265_v60 = vmul.f32 1.442695, %v3245_v11 }
 0x61c   :  { %v3220_v53 = vpop.xlane.xlu1 %3219  ;;  %v3222_v8 = vpop.xlane.xlu0 %3221 }
 0x61d   :  { %18437 = vpow2.f32 %v3263_v36  ;;  %v3246_v56 = vsub.f32 %v21717_v32, %v3220_v53  ;;  %v3247_v42 = vsub.f32 %v21725_v28, %v3222_v8 }
 0x61e   :  { %18439 = vpow2.f32 %v3265_v60 }
 0x61f   :  { %v21796_v50 = vpop.eup %18431  ;;  %v3267_v58 = vmul.f32 1.442695, %v3246_v56  ;;  %v3269_v41 = vmul.f32 1.442695, %v3247_v42  ;;  %v12732_v56 = vld [vmem:[%s24919_s8 + $0x40] sm:$0xff]  ;;  %v12733_v42 = vld [vmem:[%s24919_s8 + $0x48] sm:$0xff] }
 0x620   :  { %v3224_v63 = vpop.xlane.xlu1 %3223  ;;  %v3226_v39 = vpop.xlane.xlu0 %3225  ;;  %3289 = vadd.xlane.f32.xlu0 %v21796_v50 }
 0x621   :  { %18441 = vpow2.f32 %v3267_v58  ;;  %v3248_v3 = vsub.f32 %v21723_v24, %v3224_v63  ;;  %v3249_v4 = vsub.f32 %v21731_v19, %v3226_v39  ;;  %v17257_v58 = vpack.c.bf16 %v12733_v42, %v12732_v56 }
 0x622   :  { %18443 = vpow2.f32 %v3269_v41 }
 0x623   :  { %v21801_v26 = vpop.eup %18433  ;;  %v3271_v32 = vmul.f32 1.442695, %v3248_v3  ;;  %v3273_v29 = vmul.f32 1.442695, %v3249_v4  ;;  %17258 = vmatprep.subr.bf16.mxu1 %v17257_v58 }
 0x624   :  { %v21803_v28 = vpop.eup %18435  ;;  %v3228_v0 = vpop.xlane.xlu1 %3227  ;;  %3291 = vadd.xlane.f32.xlu1 %v21801_v26 }
 0x625   :  { %v3230_v37 = vpop.xlane.xlu0 %3229  ;;  %18445 = vpow2.f32 %v3271_v32  ;;  %v3250_v51 = vsub.f32 %v21729_v45, %v3228_v0  ;;  %3293 = vadd.xlane.f32.xlu0 %v21803_v28 }
 0x626   :  { %v3251_v52 = vsub.f32 %v21737_v21, %v3230_v37  ;;  %18447 = vpow2.f32 %v3273_v29 }
 0x627   :  { %v21809_v24 = vpop.eup %18437  ;;  %v3275_v19 = vmul.f32 1.442695, %v3250_v51  ;;  %v12734_v51 = vld [vmem:[%s24919_s8 + $0x50] sm:$0xff] }
 0x628   :  { %v3277_v22 = vmul.f32 1.442695, %v3251_v52  ;;  %v21811_v16 = vpop.eup %18439  ;;  %v3232_v10 = vpop.xlane.xlu1 %3231  ;;  %3295 = vadd.xlane.f32.xlu1 %v21809_v24  ;;  %v12735_v52 = vld [vmem:[%s24919_s8 + $0x58] sm:$0xff] }
 0x629   :  { %v3234_v48 = vpop.xlane.xlu0 %3233  ;;  %18449 = vpow2.f32 %v3275_v19  ;;  %v3252_v61 = vsub.f32 %v21735_v30, %v3232_v10  ;;  %3297 = vadd.xlane.f32.xlu0 %v21811_v16 }
 0x62a   :  { %v3253_v45 = vsub.f32 %v21743_v55, %v3234_v48  ;;  %18451 = vpow2.f32 %v3277_v22 }
 0x62b   :  { %v21817_v21 = vpop.eup %18441  ;;  %v3279_v15 = vmul.f32 1.442695, %v3252_v61  ;;  %v17261_v61 = vpack.c.bf16 %v12735_v52, %v12734_v51 }
 0x62c   :  { %v3281_v12 = vmul.f32 1.442695, %v3253_v45  ;;  %v21819_v54 = vpop.eup %18443  ;;  %v3236_v27 = vpop.xlane.xlu1 %3235  ;;  %3299 = vadd.xlane.f32.xlu1 %v21817_v21 }
 0x62d   :  { %v3238_v59 = vpop.xlane.xlu0 %3237  ;;  %18453 = vpow2.f32 %v3279_v15  ;;  %v3254_v38 = vsub.f32 %v21741_v62, %v3236_v27  ;;  %3301 = vadd.xlane.f32.xlu0 %v21819_v54  ;;  %v12736_v15 = vld [vmem:[%s24919_s8 + $0x60] sm:$0xff] }
 0x62e   :  { %v3255_v30 = vsub.f32 %v21749_v43, %v3238_v59  ;;  %18455 = vpow2.f32 %v3281_v12  ;;  %v12737_v12 = vld [vmem:[%s24919_s8 + $0x68] sm:$0xff] }
 0x62f   :  { %v21825_v55 = vpop.eup %18445  ;;  %v3283_v33 = vmul.f32 1.442695, %v3254_v38 }
 0x630   :  { %v3285_v44 = vmul.f32 1.442695, %v3255_v30  ;;  %v21827_v1 = vpop.eup %18447  ;;  %3303 = vadd.xlane.f32.xlu1 %v21825_v55  ;;  %v3240_v17 = vpop.xlane.xlu1 %3239  ;;  %v17265_v30 = vpack.c.bf16 %v12737_v12, %v12736_v15  ;;  %v12786_v15 = vld [vmem:[%s24920_s10 + $0x50] sm:$0xff] }
 0x631   :  { %18457 = vpow2.f32 %v3283_v33  ;;  %v3256_v9 = vsub.f32 %v21747_v40, %v3240_v17  ;;  %3305 = vadd.xlane.f32.xlu0 %v21827_v1  ;;  %v12739_v17 = vld [vmem:[%s24919_s8 + $0x78] sm:$0xff]  ;;  %v12790_v12 = vld [vmem:[%s24920_s10 + $0x70] sm:$0xff] }
 0x632   :  { %18459 = vpow2.f32 %v3285_v44  ;;  %v12738_v44 = vld [vmem:[%s24919_s8 + $0x70] sm:$0xff] }
 0x633   :  { %v21832_v62 = vpop.eup %18449  ;;  %v3287_v11 = vmul.f32 1.442695, %v3256_v9  ;;  %v17269_v42 = vpack.c.bf16 %v12739_v17, %v12738_v44 }
 0x634   :  { %v21834_v43 = vpop.eup %18451  ;;  %3307 = vadd.xlane.f32.xlu1 %v21832_v62 }
 0x635   :  { %18461 = vpow2.f32 %v3287_v11  ;;  %3309 = vadd.xlane.f32.xlu0 %v21834_v43 }
 0x637   :  { %v21838_v36 = vpop.eup %18453 }
 0x638   :  { %v21840_v60 = vpop.eup %18455  ;;  %3311 = vadd.xlane.f32.xlu1 %v21838_v36 }
 0x639   :  { %3313 = vadd.xlane.f32.xlu0 %v21840_v60 }
 0x63b   :  { %v21844_v40 = vpop.eup %18457 }
 0x63c   :  { %v21846_v53 = vpop.eup %18459  ;;  %3315 = vadd.xlane.f32.xlu1 %v21844_v40 }
 0x63d   :  { %3317 = vadd.xlane.f32.xlu0 %v21846_v53 }
 0x63f   :  { %v21850_v8 = vpop.eup %18461 }
 0x640   :  { %3319 = vadd.xlane.f32.xlu1 %v21850_v8 }
 0x6ad   :  { %v3290_v41 = vpop.xlane.xlu0 %3289 }
 0x6ae   :  { %18463 = vrcp.f32 %v3290_v41  ;;  %v12784_v41 = vld [vmem:[%s24920_s10 + $0x40] sm:$0xff] }
 0x6b1   :  { %v3292_v63 = vpop.xlane.xlu1 %3291 }
 0x6b2   :  { %18465 = vrcp.f32 %v3292_v63  ;;  %v3294_v39 = vpop.xlane.xlu0 %3293  ;;  %v12785_v63 = vld [vmem:[%s24920_s10 + $0x48] sm:$0xff] }
 0x6b3   :  { %18467 = vrcp.f32 %v3294_v39 }
 0x6b5   :  { %v3296_v3 = vpop.xlane.xlu1 %3295 }
 0x6b6   :  { %18469 = vrcp.f32 %v3296_v3  ;;  %v3298_v4 = vpop.xlane.xlu0 %3297 }
 0x6b7   :  { %18471 = vrcp.f32 %v3298_v4 }
 0x6b8   :  { %v18464_v32 = vpop.eup %18463 }
 0x6b9   :  { %v3300_v29 = vpop.xlane.xlu1 %3299  ;;  %v3337_v0 = vmul.f32 %v18464_v32, %v21796_v50  ;;  %v17289_v32 = vpack.c.bf16 %v12785_v63, %v12784_v41 }
 0x6ba   :  { %18473 = vrcp.f32 %v3300_v29  ;;  %v3302_v37 = vpop.xlane.xlu0 %3301 }
 0x6bb   :  { %18475 = vrcp.f32 %v3302_v37  ;;  %15241 = vmatprep.mubr.f32.mxu1 %v3337_v0 }
 0x6bc   :  { %v18466_v19 = vpop.eup %18465 }
 0x6bd   :  { %v18468_v22 = vpop.eup %18467  ;;  %v3304_v10 = vpop.xlane.xlu1 %3303  ;;  %v3338_v48 = vmul.f32 %v18466_v19, %v21801_v26 }
 0x6be   :  { %18477 = vrcp.f32 %v3304_v10  ;;  %v3306_v50 = vpop.xlane.xlu0 %3305  ;;  %v3339_v45 = vmul.f32 %v18468_v22, %v21803_v28 }
 0x6bf   :  { %18479 = vrcp.f32 %v3306_v50  ;;  %15242 = vmatmul.mubr.f32.vlgmr.msra.gmra.mrb[32].mxu1 %v3338_v48 }
 0x6c0   :  { %v18470_v27 = vpop.eup %18469  ;;  %17260 = vmatpush3.bf16.msra.mxu1 %v17257_v58  ;;  %15244 = vmatprep.mubr.f32.mxu1 %v3339_v45 }
 0x6c1   :  { %v18472_v59 = vpop.eup %18471  ;;  %v3308_v26 = vpop.xlane.xlu1 %3307  ;;  %v3340_v38 = vmul.f32 %v18470_v27, %v21809_v24  ;;  %17262 = vmatprep.subr.bf16.mxu1 %v17261_v61  ;;  %v12791_v27 = vld [vmem:[%s24920_s10 + $0x78] sm:$0xff] }
 0x6c2   :  { %18481 = vrcp.f32 %v3308_v26  ;;  %v3310_v28 = vpop.xlane.xlu0 %3309  ;;  %v3341_v33 = vmul.f32 %v18472_v59, %v21811_v16  ;;  %v17301_v59 = vpack.c.bf16 %v12791_v27, %v12790_v12 }
 0x6c3   :  { %18483 = vrcp.f32 %v3310_v28  ;;  %15245 = vmatmul.mubr.f32.gmra.mrb[34].mxu1 %v3340_v38 }
 0x6c4   :  { %v18474_v9 = vpop.eup %18473  ;;  %15247 = vmatprep.mubr.f32.mxu1 %v3341_v33  ;;  %17264 = vmatpush3.bf16.msra.mxu1 %v17261_v61 }
 0x6c5   :  { %v18476_v24 = vpop.eup %18475  ;;  %v3312_v11 = vpop.xlane.xlu1 %3311  ;;  %v3342_v56 = vmul.f32 %v18474_v9, %v21817_v21  ;;  %17266 = vmatprep.subr.bf16.mxu1 %v17265_v30 }
 0x6c6   :  { %18485 = vrcp.f32 %v3312_v11  ;;  %v3314_v16 = vpop.xlane.xlu0 %3313  ;;  %v3343_v58 = vmul.f32 %v18476_v24, %v21819_v54 }
 0x6c7   :  { %18487 = vrcp.f32 %v3314_v16  ;;  %15248 = vmatmul.mubr.f32.gmra.mrb[36].mxu1 %v3342_v56 }
 0x6c8   :  { %v18478_v39 = vpop.eup %18477  ;;  %15250 = vmatprep.mubr.f32.mxu1 %v3343_v58  ;;  %17268 = vmatpush3.bf16.msra.mxu1 %v17265_v30 }
 0x6c9   :  { %v18480_v21 = vpop.eup %18479  ;;  %v3316_v3 = vpop.xlane.xlu1 %3315  ;;  %v3344_v4 = vmul.f32 %v18478_v39, %v21825_v55  ;;  %17270 = vmatprep.subr.bf16.mxu1 %v17269_v42  ;;  %v12741_v39 = vld [vmem:[%s24924_s11 + $0x1] ss:$0 sm:$0xff] }
 0x6ca   :  { %18489 = vrcp.f32 %v3316_v3  ;;  %v3318_v54 = vpop.xlane.xlu0 %3317  ;;  %v3345_v29 = vmul.f32 %v18480_v21, %v21827_v1 }
 0x6cb   :  { %18491 = vrcp.f32 %v3318_v54  ;;  %15251 = vmatmul.mubr.f32.gmra.mrb[38].mxu1 %v3344_v4 }
 0x6cc   :  { %v18482_v0 = vpop.eup %18481  ;;  %15253 = vmatprep.mubr.f32.mxu1 %v3345_v29  ;;  %17272 = vmatpush3.bf16.msra.mxu1 %v17269_v42 }
 0x6cd   :  { %v18484_v37 = vpop.eup %18483  ;;  %v3320_v51 = vpop.xlane.xlu1 %3319  ;;  %v3346_v52 = vmul.f32 %v18482_v0, %v21832_v62  ;;  %17290 = vmatprep.subr.bf16.mxu1 %v17289_v32 }
 0x6ce   :  { %18493 = vrcp.f32 %v3320_v51  ;;  %v3347_v19 = vmul.f32 %v18484_v37, %v21834_v43 }
 0x6cf   :  { %15254 = vmatmul.mubr.f32.gmra.mrb[40].mxu1 %v3346_v52 }
 0x6d0   :  { %v18486_v55 = vpop.eup %18485  ;;  %15256 = vmatprep.mubr.f32.mxu1 %v3347_v19 }
 0x6d1   :  { %v18488_v22 = vpop.eup %18487  ;;  %v3348_v10 = vmul.f32 %v18486_v55, %v21838_v36  ;;  %v12787_v36 = vld [vmem:[%s24920_s10 + $0x58] sm:$0xff] }
 0x6d2   :  { %v3349_v1 = vmul.f32 %v18488_v22, %v21840_v60  ;;  %v17293_v60 = vpack.c.bf16 %v12787_v36, %v12786_v15 }
 0x6d3   :  { %15257 = vmatmul.mubr.f32.gmra.mrb[42].mxu1 %v3348_v10 }
 0x6d4   :  { %v18490_v48 = vpop.eup %18489  ;;  %15259 = vmatprep.mubr.f32.mxu1 %v3349_v1 }
 0x6d5   :  { %v18492_v61 = vpop.eup %18491  ;;  %v3350_v50 = vmul.f32 %v18490_v48, %v21844_v40  ;;  %v12788_v40 = vld [vmem:[%s24920_s10 + $0x60] sm:$0xff] }
 0x6d6   :  { %v3351_v62 = vmul.f32 %v18492_v61, %v21846_v53  ;;  %v12789_v53 = vld [vmem:[%s24920_s10 + $0x68] sm:$0xff] }
 0x6d7   :  { %15260 = vmatmul.mubr.f32.gmra.mrb[44].mxu1 %v3350_v50 }
 0x6d8   :  { %v18494_v45 = vpop.eup %18493  ;;  %15262 = vmatprep.mubr.f32.mxu1 %v3351_v62 }
 0x6d9   :  { %v3352_v43 = vmul.f32 %v18494_v45, %v21850_v8  ;;  %v17297_v8 = vpack.c.bf16 %v12789_v53, %v12788_v40 }
 0x6db   :  { %15263 = vmatmul.mubr.f32.gmra.mrb[46].mxu1 %v3352_v43 }
 0x6dc   :  { %15281 = vmatprep.mubr.msk.f32.mxu1 %vm2029_vm5, %v21351_v35 }
 0x6df   :  { %15282 = vmatmul.mubr.msk.f32.vlgmr.msra.gmra.mrb[48].mxu1 %vm2029_vm5, %v21354_v34 }
 0x6e0   :  { %15284 = vmatprep.mubr.msk.f32.mxu1 %vm2029_vm5, %v21371_v46  ;;  %17292 = vmatpush3.bf16.msra.mxu1 %v17289_v32 }
 0x6e1   :  { %17294 = vmatprep.subr.bf16.mxu1 %v17293_v60 }
 0x6e3   :  { %15285 = vmatmul.mubr.msk.f32.gmra.mrb[50].mxu1 %vm2029_vm5, %v21374_v7 }
 0x6e4   :  { %15287 = vmatprep.mubr.msk.f32.mxu1 %vm2029_vm5, %v21391_v14  ;;  %17296 = vmatpush3.bf16.msra.mxu1 %v17293_v60 }
 0x6e5   :  { %17298 = vmatprep.subr.bf16.mxu1 %v17297_v8 }
 0x6e7   :  { %15288 = vmatmul.mubr.msk.f32.gmra.mrb[52].mxu1 %vm2029_vm5, %v21394_v6 }
 0x6e8   :  { %15290 = vmatprep.mubr.msk.f32.mxu1 %vm2029_vm5, %v21405_v20  ;;  %17300 = vmatpush3.bf16.msra.mxu1 %v17297_v8 }
 0x6e9   :  { %17302 = vmatprep.subr.bf16.mxu1 %v17301_v59 }
 0x6eb   :  { %15291 = vmatmul.mubr.msk.f32.gmra.mrb[54].mxu1 %vm2029_vm5, %v21408_v2 }
 0x6ec   :  { %15293 = vmatprep.mubr.msk.f32.mxu1 %vm2029_vm5, %v21419_v23  ;;  %17304 = vmatpush3.bf16.msra.mxu1 %v17301_v59 }
 0x6ef   :  { %15294 = vmatmul.mubr.msk.f32.gmra.mrb[56].mxu1 %vm2029_vm5, %v21422_v13 }
 0x6f0   :  { %15296 = vmatprep.mubr.msk.f32.mxu1 %vm2029_vm5, %v21433_v57 }
 0x6f3   :  { %15297 = vmatmul.mubr.msk.f32.gmra.mrb[58].mxu1 %vm2029_vm5, %v21436_v47 }
 0x6f4   :  { %15299 = vmatprep.mubr.msk.f32.mxu1 %vm2029_vm5, %v21447_v31 }
 0x6f7   :  { %15300 = vmatmul.mubr.msk.f32.gmra.mrb[60].mxu1 %vm2029_vm5, %v21450_v49 }
 0x6f8   :  { %15302 = vmatprep.mubr.msk.f32.mxu1 %vm2029_vm5, %v21461_v5 }
 0x6fb   :  { %15303 = vmatmul.mubr.msk.f32.gmra.mrb[62].mxu1 %vm2029_vm5, %v21464_v25 }
 0x6fc   :  { %15361 = vmatprep.mubr.msk.f32.mxu1 %vm2029_vm5, %v21351_v35 }
 0x6ff   :  { %15362 = vmatmul.mubr.msk.f32.vlgmr.msra.gmra.mrb[64].mxu1 %vm2029_vm5, %v21354_v34 }
 0x700   :  { %15364 = vmatprep.mubr.msk.f32.mxu1 %vm2029_vm5, %v21371_v46 }
 0x703   :  { %15365 = vmatmul.mubr.msk.f32.gmra.mrb[66].mxu1 %vm2029_vm5, %v21374_v7 }
 0x704   :  { %15367 = vmatprep.mubr.msk.f32.mxu1 %vm2029_vm5, %v21391_v14 }
 0x707   :  { %15368 = vmatmul.mubr.msk.f32.gmra.mrb[68].mxu1 %vm2029_vm5, %v21394_v6 }
 0x708   :  { %15370 = vmatprep.mubr.msk.f32.mxu1 %vm2029_vm5, %v21405_v20 }
 0x70b   :  { %15371 = vmatmul.mubr.msk.f32.gmra.mrb[70].mxu1 %vm2029_vm5, %v21408_v2 }
 0x70c   :  { %15373 = vmatprep.mubr.msk.f32.mxu1 %vm2029_vm5, %v21419_v23 }
 0x70f   :  { %15374 = vmatmul.mubr.msk.f32.gmra.mrb[72].mxu1 %vm2029_vm5, %v21422_v13 }
 0x710   :  { %15376 = vmatprep.mubr.msk.f32.mxu1 %vm2029_vm5, %v21433_v57 }
 0x713   :  { %15377 = vmatmul.mubr.msk.f32.gmra.mrb[74].mxu1 %vm2029_vm5, %v21436_v47 }
 0x714   :  { %15379 = vmatprep.mubr.msk.f32.mxu1 %vm2029_vm5, %v21447_v31 }
 0x717   :  { %15380 = vmatmul.mubr.msk.f32.gmra.mrb[76].mxu1 %vm2029_vm5, %v21450_v49 }
 0x718   :  { %15382 = vmatprep.mubr.msk.f32.mxu1 %vm2029_vm5, %v21461_v5 }
 0x71b   :  { %15383 = vmatmul.mubr.msk.f32.gmra.mrb[78].mxu1 %vm2029_vm5, %v21464_v25 }
 0x792   :  { %v21981_v26 = vpop.f32.mrb[32].mxu1 }
 0x793   :  { %v21983_v38 = vpop.f32.mrb[33].mxu1 }
 0x796   :  { %v21985_v30 = vpop.f32.mrb[34].mxu1 }
 0x797   :  { %v21987_v28 = vpop.f32.mrb[35].mxu1 }
 0x79a   :  { %v21989_v33 = vpop.f32.mrb[36].mxu1 }
 0x79b   :  { %v21991_v44 = vpop.f32.mrb[37].mxu1 }
 0x79e   :  { %v21993_v17 = vpop.f32.mrb[38].mxu1 }
 0x79f   :  { %v21995_v9 = vpop.f32.mrb[39].mxu1 }
 0x7a2   :  { %v21997_v24 = vpop.f32.mrb[40].mxu1 }
 0x7a3   :  { %v21999_v11 = vpop.f32.mrb[41].mxu1 }
 0x7a6   :  { %v22001_v56 = vpop.f32.mrb[42].mxu1 }
 0x7a7   :  { %v22003_v42 = vpop.f32.mrb[43].mxu1 }
 0x7aa   :  { %v22005_v16 = vpop.f32.mrb[44].mxu1 }
 0x7ab   :  { %25266 = vst [vmem:[#allocation27_spill] sm:$0xff] %v22005_v16  ;;  %v22007_v58 = vpop.f32.mrb[45].mxu1 }
 0x7ae   :  { %v22009_v41 = vpop.f32.mrb[46].mxu1 }
 0x7af   :  { %25267 = vst [vmem:[#allocation3_spill] sm:$0xff] %v22009_v41  ;;  %v22011_v63 = vpop.f32.mrb[47].mxu1 }
 0x7b0   :  { %25268 = vst [vmem:[#allocation32_spill] sm:$0xff] %v22011_v63 }
 0x7b2   :  { %v15283_v21 = vpop.f32.mrb[48].mxu1 }
 0x7b3   :  { %v3582_v3 = vpop.f32.mrb[49].mxu1  ;;  %v3588_v32 = vadd.f32 %v15283_v21, %v12741_v39 }
 0x7b4   :  { %v3583_v4 = vadd.f32 %v12741_v39, %v3582_v3  ;;  %v22033_v3 = vld [vmem:[%s24925_s13 + $0x1] ss:$0 sm:$0xff] }
 0x7b6   :  { %v15286_v54 = vpop.f32.mrb[50].mxu1  ;;  %15417 = vmatprep.mubr.msk.f32.mxu0 %vm2967_vm10, %v3583_v4 }
 0x7b7   :  { %v3592_v29 = vpop.f32.mrb[51].mxu1  ;;  %15418 = vmatmul.mubr.msk.f32.vlgmr.msra.gmra.mrb[80].mxu0 %vm2967_vm10, %v3588_v32  ;;  %v3598_v37 = vadd.f32 %v15286_v54, %v12741_v39 }
 0x7b8   :  { %v3593_v0 = vadd.f32 %v12741_v39, %v3592_v29 }
 0x7ba   :  { %v15289_v51 = vpop.f32.mrb[52].mxu1  ;;  %15420 = vmatprep.mubr.msk.f32.mxu0 %vm2967_vm10, %v3593_v0 }
 0x7bb   :  { %v3602_v52 = vpop.f32.mrb[53].mxu1  ;;  %15421 = vmatmul.mubr.msk.f32.gmra.mrb[82].mxu0 %vm2967_vm10, %v3598_v37  ;;  %v3608_v55 = vadd.f32 %v15289_v51, %v12741_v39 }
 0x7bc   :  { %v3603_v19 = vadd.f32 %v12741_v39, %v3602_v52 }
 0x7be   :  { %v15292_v22 = vpop.f32.mrb[54].mxu1  ;;  %15423 = vmatprep.mubr.msk.f32.mxu0 %vm2967_vm10, %v3603_v19 }
 0x7bf   :  { %v3612_v10 = vpop.f32.mrb[55].mxu1  ;;  %15424 = vmatmul.mubr.msk.f32.gmra.mrb[84].mxu0 %vm2967_vm10, %v3608_v55  ;;  %v3618_v48 = vadd.f32 %v15292_v22, %v12741_v39 }
 0x7c0   :  { %v3613_v1 = vadd.f32 %v12741_v39, %v3612_v10 }
 0x7c2   :  { %v15295_v61 = vpop.f32.mrb[56].mxu1  ;;  %15426 = vmatprep.mubr.msk.f32.mxu0 %vm2967_vm10, %v3613_v1 }
 0x7c3   :  { %v3622_v50 = vpop.f32.mrb[57].mxu1  ;;  %15427 = vmatmul.mubr.msk.f32.gmra.mrb[86].mxu0 %vm2967_vm10, %v3618_v48  ;;  %v3628_v45 = vadd.f32 %v15295_v61, %v12741_v39 }
 0x7c4   :  { %v3623_v62 = vadd.f32 %v12741_v39, %v3622_v50 }
 0x7c6   :  { %v15298_v43 = vpop.f32.mrb[58].mxu1  ;;  %15429 = vmatprep.mubr.msk.f32.mxu0 %vm2967_vm10, %v3623_v62 }
 0x7c7   :  { %v3632_v15 = vpop.f32.mrb[59].mxu1  ;;  %15430 = vmatmul.mubr.msk.f32.gmra.mrb[88].mxu0 %vm2967_vm10, %v3628_v45  ;;  %v3638_v60 = vadd.f32 %v15298_v43, %v12741_v39 }
 0x7c8   :  { %v3633_v36 = vadd.f32 %v12741_v39, %v3632_v15 }
 0x7ca   :  { %v15301_v40 = vpop.f32.mrb[60].mxu1  ;;  %15432 = vmatprep.mubr.msk.f32.mxu0 %vm2967_vm10, %v3633_v36 }
 0x7cb   :  { %v3642_v53 = vpop.f32.mrb[61].mxu1  ;;  %15433 = vmatmul.mubr.msk.f32.gmra.mrb[90].mxu0 %vm2967_vm10, %v3638_v60  ;;  %v3648_v12 = vadd.f32 %v15301_v40, %v12741_v39 }
 0x7cc   :  { %v3643_v8 = vadd.f32 %v12741_v39, %v3642_v53 }
 0x7ce   :  { %v15304_v27 = vpop.f32.mrb[62].mxu1  ;;  %15435 = vmatprep.mubr.msk.f32.mxu0 %vm2967_vm10, %v3643_v8 }
 0x7cf   :  { %v3652_v59 = vpop.f32.mrb[63].mxu1  ;;  %15436 = vmatmul.mubr.msk.f32.gmra.mrb[92].mxu0 %vm2967_vm10, %v3648_v12  ;;  %v3658_v4 = vadd.f32 %v15304_v27, %v12741_v39 }
 0x7d0   :  { %v3653_v21 = vadd.f32 %v12741_v39, %v3652_v59 }
 0x7d2   :  { %v15363_v32 = vpop.f32.mrb[64].mxu1  ;;  %15438 = vmatprep.mubr.msk.f32.mxu0 %vm2967_vm10, %v3653_v21 }
 0x7d3   :  { %v3912_v54 = vadd.f32 %v15363_v32, %v22033_v3  ;;  %v3906_v29 = vpop.f32.mrb[65].mxu1  ;;  %15439 = vmatmul.mubr.msk.f32.gmra.mrb[94].mxu0 %vm2967_vm10, %v3658_v4 }
 0x7d4   :  { %v3907_v0 = vadd.f32 %v22033_v3, %v3906_v29 }
 0x7d6   :  { %v17353_v37 = vpack.c.bf16 %v3912_v54, %v3907_v0  ;;  %v15366_v51 = vpop.f32.mrb[66].mxu1 }
 0x7d7   :  { %v3922_v52 = vadd.f32 %v15366_v51, %v22033_v3  ;;  %v3916_v19 = vpop.f32.mrb[67].mxu1 }
 0x7d8   :  { %v3917_v55 = vadd.f32 %v22033_v3, %v3916_v19  ;;  %17354 = vmatprep.subr.bf16.mxu0 %v17353_v37  ;;  %18153 = vmatprep.subr.bf16.mxu1 %v17353_v37 }
 0x7d9   :  { %17356 = vmatpush3.bf16.msra.mxu0 %v17353_v37  ;;  %18161 = vmatpush3.bf16.msra.mxu1 %v17353_v37 }
 0x7da   :  { %v17357_v39 = vpack.c.bf16 %v3922_v52, %v3917_v55  ;;  %v15369_v22 = vpop.f32.mrb[68].mxu1 }
 0x7db   :  { %v3932_v10 = vadd.f32 %v15369_v22, %v22033_v3  ;;  %v3926_v1 = vpop.f32.mrb[69].mxu1 }
 0x7dc   :  { %v3927_v48 = vadd.f32 %v22033_v3, %v3926_v1  ;;  %17358 = vmatprep.subr.bf16.mxu0 %v17357_v39  ;;  %18154 = vmatprep.subr.bf16.mxu1 %v17357_v39 }
 0x7dd   :  { %17360 = vmatpush3.bf16.msra.mxu0 %v17357_v39  ;;  %18162 = vmatpush3.bf16.msra.mxu1 %v17357_v39 }
 0x7de   :  { %v17361_v61 = vpack.c.bf16 %v3932_v10, %v3927_v48  ;;  %v15372_v50 = vpop.f32.mrb[70].mxu1 }
 0x7df   :  { %v3942_v62 = vadd.f32 %v15372_v50, %v22033_v3  ;;  %v3936_v45 = vpop.f32.mrb[71].mxu1 }
 0x7e0   :  { %v3937_v43 = vadd.f32 %v22033_v3, %v3936_v45  ;;  %17362 = vmatprep.subr.bf16.mxu0 %v17361_v61  ;;  %18155 = vmatprep.subr.bf16.mxu1 %v17361_v61 }
 0x7e1   :  { %17364 = vmatpush3.bf16.msra.mxu0 %v17361_v61  ;;  %18163 = vmatpush3.bf16.msra.mxu1 %v17361_v61 }
 0x7e2   :  { %v17365_v15 = vpack.c.bf16 %v3942_v62, %v3937_v43  ;;  %v15375_v36 = vpop.f32.mrb[72].mxu1 }
 0x7e3   :  { %v3952_v60 = vadd.f32 %v15375_v36, %v22033_v3  ;;  %v3946_v40 = vpop.f32.mrb[73].mxu1 }
 0x7e4   :  { %v3947_v53 = vadd.f32 %v22033_v3, %v3946_v40  ;;  %17366 = vmatprep.subr.bf16.mxu0 %v17365_v15  ;;  %18156 = vmatprep.subr.bf16.mxu1 %v17365_v15 }
 0x7e5   :  { %17368 = vmatpush3.bf16.msra.mxu0 %v17365_v15  ;;  %18164 = vmatpush3.bf16.msra.mxu1 %v17365_v15 }
 0x7e6   :  { %v17369_v8 = vpack.c.bf16 %v3952_v60, %v3947_v53  ;;  %v15378_v12 = vpop.f32.mrb[74].mxu1 }
 0x7e7   :  { %v3962_v27 = vadd.f32 %v15378_v12, %v22033_v3  ;;  %v3956_v59 = vpop.f32.mrb[75].mxu1 }
 0x7e8   :  { %v3957_v21 = vadd.f32 %v22033_v3, %v3956_v59  ;;  %17370 = vmatprep.subr.bf16.mxu0 %v17369_v8  ;;  %18157 = vmatprep.subr.bf16.mxu1 %v17369_v8 }
 0x7e9   :  { %17372 = vmatpush3.bf16.msra.mxu0 %v17369_v8  ;;  %18165 = vmatpush3.bf16.msra.mxu1 %v17369_v8 }
 0x7ea   :  { %v17373_v4 = vpack.c.bf16 %v3962_v27, %v3957_v21  ;;  %v15381_v32 = vpop.f32.mrb[76].mxu1 }
 0x7eb   :  { %v3972_v54 = vadd.f32 %v15381_v32, %v22033_v3  ;;  %v3966_v29 = vpop.f32.mrb[77].mxu1 }
 0x7ec   :  { %v3967_v0 = vadd.f32 %v22033_v3, %v3966_v29  ;;  %17374 = vmatprep.subr.bf16.mxu0 %v17373_v4  ;;  %18158 = vmatprep.subr.bf16.mxu1 %v17373_v4 }
 0x7ed   :  { %17376 = vmatpush3.bf16.msra.mxu0 %v17373_v4  ;;  %18166 = vmatpush3.bf16.msra.mxu1 %v17373_v4 }
 0x7ee   :  { %v17377_v37 = vpack.c.bf16 %v3972_v54, %v3967_v0  ;;  %v15384_v51 = vpop.f32.mrb[78].mxu1 }
 0x7ef   :  { %v3982_v52 = vadd.f32 %v15384_v51, %v22033_v3  ;;  %v3976_v19 = vpop.f32.mrb[79].mxu1 }
 0x7f0   :  { %v3977_v55 = vadd.f32 %v22033_v3, %v3976_v19  ;;  %17378 = vmatprep.subr.bf16.mxu0 %v17377_v37  ;;  %18159 = vmatprep.subr.bf16.mxu1 %v17377_v37 }
 0x7f1   :  { %17380 = vmatpush3.bf16.msra.mxu0 %v17377_v37  ;;  %18167 = vmatpush3.bf16.msra.mxu1 %v17377_v37 }
 0x7f2   :  { %v17381_v39 = vpack.c.bf16 %v3982_v52, %v3977_v55 }
 0x7f4   :  { %17382 = vmatprep.subr.bf16.mxu0 %v17381_v39  ;;  %18160 = vmatprep.subr.bf16.mxu1 %v17381_v39 }
 0x7f5   :  { %17384 = vmatpush3.bf16.msra.mxu0 %v17381_v39  ;;  %18168 = vmatpush3.bf16.msra.mxu1 %v17381_v39 }
 0x88a   :  { %v15419_v22 = vpop.f32.mrb[80].mxu0 }
 0x88b   :  { %4228 = vmax.xlane.f32.xlu1 %v15419_v22  ;;  %v4147_v10 = vpop.f32.mrb[81].mxu0 }
 0x88c   :  { %4226 = vmax.xlane.f32.xlu0 %v4147_v10 }
 0x88e   :  { %v15422_v1 = vpop.f32.mrb[82].mxu0 }
 0x88f   :  { %4232 = vmax.xlane.f32.xlu1 %v15422_v1  ;;  %v4157_v48 = vpop.f32.mrb[83].mxu0 }
 0x890   :  { %4230 = vmax.xlane.f32.xlu0 %v4157_v48 }
 0x892   :  { %v15425_v61 = vpop.f32.mrb[84].mxu0 }
 0x893   :  { %4236 = vmax.xlane.f32.xlu1 %v15425_v61  ;;  %v4167_v3 = vpop.f32.mrb[85].mxu0 }
 0x894   :  { %4234 = vmax.xlane.f32.xlu0 %v4167_v3 }
 0x896   :  { %v15428_v50 = vpop.f32.mrb[86].mxu0 }
 0x897   :  { %4240 = vmax.xlane.f32.xlu1 %v15428_v50  ;;  %v4177_v62 = vpop.f32.mrb[87].mxu0 }
 0x898   :  { %4238 = vmax.xlane.f32.xlu0 %v4177_v62 }
 0x89a   :  { %v15431_v45 = vpop.f32.mrb[88].mxu0 }
 0x89b   :  { %4244 = vmax.xlane.f32.xlu1 %v15431_v45  ;;  %v4187_v43 = vpop.f32.mrb[89].mxu0 }
 0x89c   :  { %4242 = vmax.xlane.f32.xlu0 %v4187_v43 }
 0x89e   :  { %v22053_v15 = vpop.f32.mrb[90].mxu0 }
 0x89f   :  { %v22055_v36 = vpop.f32.mrb[91].mxu0 }
 0x8a2   :  { %v22057_v60 = vpop.f32.mrb[92].mxu0 }
 0x8a3   :  { %v22059_v40 = vpop.f32.mrb[93].mxu0 }
 0x8a6   :  { %v22061_v53 = vpop.f32.mrb[94].mxu0 }
 0x8a7   :  { %v22063_v8 = vpop.f32.mrb[95].mxu0 }
 0x918   :  { %v4229_v12 = vpop.xlane.xlu1 %4228 }
 0x919   :  { %v4259_v27 = vsub.f32 %v15419_v22, %v4229_v12  ;;  %v4227_v59 = vpop.xlane.xlu0 %4226 }
 0x91a   :  { %v4258_v21 = vsub.f32 %v4147_v10, %v4227_v59 }
 0x91b   :  { %v4276_v4 = vmul.f32 1.442695, %v4259_v27 }
 0x91c   :  { %v4274_v32 = vmul.f32 1.442695, %v4258_v21  ;;  %v4233_v54 = vpop.xlane.xlu1 %4232 }
 0x91d   :  { %18495 = vpow2.f32 %v4276_v4  ;;  %v4261_v29 = vsub.f32 %v15422_v1, %v4233_v54  ;;  %v4231_v0 = vpop.xlane.xlu0 %4230 }
 0x91e   :  { %18497 = vpow2.f32 %v4274_v32  ;;  %v4260_v37 = vsub.f32 %v4157_v48, %v4231_v0 }
 0x91f   :  { %v4280_v51 = vmul.f32 1.442695, %v4261_v29 }
 0x920   :  { %v4278_v52 = vmul.f32 1.442695, %v4260_v37  ;;  %v4237_v19 = vpop.xlane.xlu1 %4236 }
 0x921   :  { %18499 = vpow2.f32 %v4280_v51  ;;  %v4263_v55 = vsub.f32 %v15425_v61, %v4237_v19  ;;  %v4235_v39 = vpop.xlane.xlu0 %4234  ;;  %v12876_v19 = vld [vmem:[%s24919_s8 + $0x88] sm:$0xff] }
 0x922   :  { %18501 = vpow2.f32 %v4278_v52  ;;  %v4262_v41 = vsub.f32 %v4167_v3, %v4235_v39  ;;  %v12875_v52 = vld [vmem:[%s24919_s8 + $0x80] sm:$0xff] }
 0x923   :  { %v4284_v63 = vmul.f32 1.442695, %v4263_v55  ;;  %v17385_v55 = vpack.c.bf16 %v12876_v19, %v12875_v52 }
 0x924   :  { %v4282_v22 = vmul.f32 1.442695, %v4262_v41  ;;  %v4241_v12 = vpop.xlane.xlu1 %4240 }
 0x925   :  { %18503 = vpow2.f32 %v4284_v63  ;;  %v4265_v10 = vsub.f32 %v15428_v50, %v4241_v12  ;;  %v4239_v27 = vpop.xlane.xlu0 %4238  ;;  %17386 = vmatprep.subr.bf16.mxu0 %v17385_v55 }
 0x926   :  { %18505 = vpow2.f32 %v4282_v22  ;;  %v4264_v59 = vsub.f32 %v4177_v62, %v4239_v27 }
 0x927   :  { %v22065_v1 = vpop.eup %18495  ;;  %v4288_v21 = vmul.f32 1.442695, %v4265_v10 }
 0x928   :  { %v18498_v48 = vpop.eup %18497  ;;  %v4286_v4 = vmul.f32 1.442695, %v4264_v59  ;;  %4308 = vadd.xlane.f32.xlu1 %v22065_v1  ;;  %v4245_v32 = vpop.xlane.xlu1 %4244 }
 0x929   :  { %18507 = vpow2.f32 %v4288_v21  ;;  %v4267_v61 = vsub.f32 %v15431_v45, %v4245_v32  ;;  %4306 = vadd.xlane.f32.xlu0 %v18498_v48  ;;  %v4243_v3 = vpop.xlane.xlu0 %4242  ;;  %v12878_v32 = vld [vmem:[%s24919_s8 + $0x98] sm:$0xff] }
 0x92a   :  { %18509 = vpow2.f32 %v4286_v4  ;;  %v4266_v41 = vsub.f32 %v4187_v43, %v4243_v3  ;;  %v12877_v4 = vld [vmem:[%s24919_s8 + $0x90] sm:$0xff] }
 0x92b   :  { %v22068_v54 = vpop.eup %18499  ;;  %v4292_v63 = vmul.f32 1.442695, %v4267_v61  ;;  %v17389_v52 = vpack.c.bf16 %v12878_v32, %v12877_v4  ;;  %v12881_v4 = vld [vmem:[%s24919_s8 + $0xb0] sm:$0xff]  ;;  %v12882_v32 = vld [vmem:[%s24919_s8 + $0xb8] sm:$0xff] }
 0x92c   :  { %v18502_v50 = vpop.eup %18501  ;;  %v4290_v29 = vmul.f32 1.442695, %v4266_v41  ;;  %4312 = vadd.xlane.f32.xlu1 %v22068_v54 }
 0x92d   :  { %18511 = vpow2.f32 %v4292_v63  ;;  %4310 = vadd.xlane.f32.xlu0 %v18502_v50 }
 0x92e   :  { %18513 = vpow2.f32 %v4290_v29 }
 0x92f   :  { %v22071_v62 = vpop.eup %18503 }
 0x930   :  { %v22073_v0 = vpop.eup %18505  ;;  %4316 = vadd.xlane.f32.xlu1 %v22071_v62 }
 0x931   :  { %4314 = vadd.xlane.f32.xlu0 %v22073_v0 }
 0x933   :  { %v22077_v45 = vpop.eup %18507 }
 0x934   :  { %v22079_v43 = vpop.eup %18509  ;;  %4320 = vadd.xlane.f32.xlu1 %v22077_v45 }
 0x935   :  { %4318 = vadd.xlane.f32.xlu0 %v22079_v43 }
 0x937   :  { %v22083_v37 = vpop.eup %18511 }
 0x938   :  { %v22085_v51 = vpop.eup %18513  ;;  %4324 = vadd.xlane.f32.xlu1 %v22083_v37 }
 0x939   :  { %4322 = vadd.xlane.f32.xlu0 %v22085_v51 }
 0x93c   :  { %4248 = vmax.xlane.f32.xlu1 %v22053_v15 }
 0x93d   :  { %4246 = vmax.xlane.f32.xlu0 %v22055_v36 }
 0x940   :  { %4252 = vmax.xlane.f32.xlu1 %v22057_v60 }
 0x941   :  { %4250 = vmax.xlane.f32.xlu0 %v22059_v40 }
 0x944   :  { %4256 = vmax.xlane.f32.xlu1 %v22061_v53 }
 0x945   :  { %4254 = vmax.xlane.f32.xlu0 %v22063_v8 }
 0x9b5   :  { %v4309_v39 = vpop.xlane.xlu1 %4308 }
 0x9b6   :  { %18515 = vrcp.f32 %v4309_v39  ;;  %v4307_v22 = vpop.xlane.xlu0 %4306  ;;  %v12879_v39 = vld [vmem:[%s24919_s8 + $0xa0] sm:$0xff] }
 0x9b7   :  { %18517 = vrcp.f32 %v4307_v22  ;;  %v12880_v22 = vld [vmem:[%s24919_s8 + $0xa8] sm:$0xff] }
 0x9b9   :  { %v4313_v12 = vpop.xlane.xlu1 %4312 }
 0x9ba   :  { %18519 = vrcp.f32 %v4313_v12  ;;  %v4311_v10 = vpop.xlane.xlu0 %4310 }
 0x9bb   :  { %18521 = vrcp.f32 %v4311_v10 }
 0x9bd   :  { %v4317_v27 = vpop.xlane.xlu1 %4316 }
 0x9be   :  { %18523 = vrcp.f32 %v4317_v27  ;;  %v4315_v59 = vpop.xlane.xlu0 %4314 }
 0x9bf   :  { %18525 = vrcp.f32 %v4315_v59  ;;  %v17393_v59 = vpack.c.bf16 %v12880_v22, %v12879_v39  ;;  %v12901_v22 = vld [vmem:[%s24922_s9 + $0x80] sm:$0xff] }
 0x9c0   :  { %v18516_v21 = vpop.eup %18515 }
 0x9c1   :  { %v18518_v61 = vpop.eup %18517  ;;  %v4321_v3 = vpop.xlane.xlu1 %4320  ;;  %v4355_v29 = vmul.f32 %v18516_v21, %v22065_v1 }
 0x9c2   :  { %18527 = vrcp.f32 %v4321_v3  ;;  %v4319_v41 = vpop.xlane.xlu0 %4318  ;;  %v4354_v63 = vmul.f32 %v18518_v61, %v18498_v48 }
 0x9c3   :  { %18529 = vrcp.f32 %v4319_v41 }
 0x9c4   :  { %v18520_v19 = vpop.eup %18519  ;;  %15473 = vmatprep.mubr.f32.mxu0 %v4354_v63 }
 0x9c5   :  { %v18522_v12 = vpop.eup %18521  ;;  %v4325_v10 = vpop.xlane.xlu1 %4324  ;;  %15474 = vmatmul.mubr.f32.vlgmr.msra.gmra.mrb[96].mxu0 %v4355_v29  ;;  %v4357_v1 = vmul.f32 %v18520_v19, %v22068_v54  ;;  %v17397_v29 = vpack.c.bf16 %v12882_v32, %v12881_v4 }
 0x9c6   :  { %18531 = vrcp.f32 %v4325_v10  ;;  %17388 = vmatpush3.bf16.msra.mxu0 %v17385_v55  ;;  %v4323_v48 = vpop.xlane.xlu0 %4322  ;;  %v4356_v27 = vmul.f32 %v18522_v12, %v18502_v50 }
 0x9c7   :  { %18533 = vrcp.f32 %v4323_v48  ;;  %17390 = vmatprep.subr.bf16.mxu0 %v17389_v52 }
 0x9c8   :  { %v18524_v21 = vpop.eup %18523  ;;  %15476 = vmatprep.mubr.f32.mxu0 %v4356_v27 }
 0x9c9   :  { %v18526_v61 = vpop.eup %18525  ;;  %15477 = vmatmul.mubr.f32.gmra.mrb[98].mxu0 %v4357_v1  ;;  %v4249_v55 = vpop.xlane.xlu1 %4248  ;;  %v4359_v63 = vmul.f32 %v18524_v21, %v22071_v62 }
 0x9ca   :  { %v4269_v50 = vsub.f32 %v22053_v15, %v4249_v55  ;;  %17392 = vmatpush3.bf16.msra.mxu0 %v17389_v52  ;;  %v4247_v3 = vpop.xlane.xlu0 %4246  ;;  %v4358_v54 = vmul.f32 %v18526_v61, %v22073_v0  ;;  %v12902_v15 = vld [vmem:[%s24922_s9 + $0x88] sm:$0xff] }
 0x9cb   :  { %v4268_v41 = vsub.f32 %v22055_v36, %v4247_v3  ;;  %17394 = vmatprep.subr.bf16.mxu0 %v17393_v59  ;;  %v17401_v1 = vpack.c.bf16 %v12902_v15, %v12901_v22  ;;  %v12903_v3 = vld [vmem:[%s24922_s9 + $0x90] sm:$0xff]  ;;  %v12908_v22 = vld [vmem:[%s24922_s9 + $0xb8] sm:$0xff] }
 0x9cc   :  { %v18528_v19 = vpop.eup %18527  ;;  %v4296_v39 = vmul.f32 1.442695, %v4269_v50  ;;  %15479 = vmatprep.mubr.f32.mxu0 %v4358_v54 }
 0x9cd   :  { %v18530_v52 = vpop.eup %18529  ;;  %v4294_v12 = vmul.f32 1.442695, %v4268_v41  ;;  %15480 = vmatmul.mubr.f32.gmra.mrb[100].mxu0 %v4359_v63  ;;  %v4253_v0 = vpop.xlane.xlu1 %4252  ;;  %v4361_v27 = vmul.f32 %v18528_v19, %v22077_v45  ;;  %v12906_v41 = vld [vmem:[%s24922_s9 + $0xa8] sm:$0xff] }
 0x9ce   :  { %18535 = vpow2.f32 %v4296_v39  ;;  %v4271_v36 = vsub.f32 %v22057_v60, %v4253_v0  ;;  %v4251_v62 = vpop.xlane.xlu0 %4250  ;;  %17396 = vmatpush3.bf16.msra.mxu0 %v17393_v59  ;;  %v4360_v10 = vmul.f32 %v18530_v52, %v22079_v43  ;;  %v12907_v39 = vld [vmem:[%s24922_s9 + $0xb0] sm:$0xff] }
 0x9cf   :  { %18537 = vpow2.f32 %v4294_v12  ;;  %v4270_v48 = vsub.f32 %v22059_v40, %v4251_v62  ;;  %17398 = vmatprep.subr.bf16.mxu0 %v17397_v29  ;;  %v17413_v52 = vpack.c.bf16 %v12908_v22, %v12907_v39 }
 0x9d0   :  { %v18532_v21 = vpop.eup %18531  ;;  %v4300_v4 = vmul.f32 1.442695, %v4271_v36  ;;  %15482 = vmatprep.mubr.f32.mxu0 %v4360_v10  ;;  %v12842_v36 = vld [vmem:[%s24927_s14 + $0x8] sm:$0xff] }
 0x9d1   :  { %v18534_v32 = vpop.eup %18533  ;;  %v4298_v61 = vmul.f32 1.442695, %v4270_v48  ;;  %15483 = vmatmul.mubr.f32.gmra.mrb[102].mxu0 %v4361_v27  ;;  %v4257_v55 = vpop.xlane.xlu1 %4256  ;;  %v4363_v45 = vmul.f32 %v18532_v21, %v22083_v37  ;;  %15497 = vmatprep.subr.mxu1 %v12842_v36 }
 0x9d2   :  { %18539 = vpow2.f32 %v4300_v4  ;;  %v4273_v60 = vsub.f32 %v22061_v53, %v4257_v55  ;;  %v4255_v59 = vpop.xlane.xlu0 %4254  ;;  %v4362_v43 = vmul.f32 %v18534_v32, %v22085_v51  ;;  %17400 = vmatpush3.bf16.msra.mxu0 %v17397_v29  ;;  %v12904_v53 = vld [vmem:[%s24922_s9 + $0x98] sm:$0xff]  ;;  %v12905_v51 = vld [vmem:[%s24922_s9 + $0xa0] sm:$0xff] }
 0x9d3   :  { %18541 = vpow2.f32 %v4298_v61  ;;  %v4272_v40 = vsub.f32 %v22063_v8, %v4255_v59  ;;  %17402 = vmatprep.subr.bf16.mxu0 %v17401_v1  ;;  %v17405_v8 = vpack.c.bf16 %v12904_v53, %v12903_v3  ;;  %v17409_v29 = vpack.c.bf16 %v12906_v41, %v12905_v51 }
 0x9d4   :  { %v4304_v50 = vmul.f32 1.442695, %v4273_v60  ;;  %15485 = vmatprep.mubr.f32.mxu0 %v4362_v43 }
 0x9d5   :  { %v4302_v54 = vmul.f32 1.442695, %v4272_v40  ;;  %15486 = vmatmul.mubr.f32.gmra.mrb[104].mxu0 %v4363_v45 }
 0x9d6   :  { %18543 = vpow2.f32 %v4304_v50  ;;  %15565 = vmatprep.mubr.msk.f32.mxu0 %vm2029_vm5, %v21351_v35 }
 0x9d7   :  { %18545 = vpow2.f32 %v4302_v54 }
 0x9d8   :  { %v22147_v37 = vpop.eup %18535 }
 0x9d9   :  { %v22155_v63 = vpop.eup %18537  ;;  %15566 = vmatmul.mubr.msk.f32.vlgmr.msra.gmra.mrb[106].mxu0 %vm2029_vm5, %v21354_v34  ;;  %4328 = vadd.xlane.f32.xlu1 %v22147_v37 }
 0x9da   :  { %17404 = vmatpush3.bf16.msra.mxu0 %v17401_v1  ;;  %15568 = vmatprep.mubr.msk.f32.mxu0 %vm2029_vm5, %v21371_v46 }
 0x9db   :  { %4326 = vadd.xlane.f32.xlu0 %v22155_v63  ;;  %17406 = vmatprep.subr.bf16.mxu0 %v17405_v8 }
 0x9dc   :  { %v22163_v19 = vpop.eup %18539 }
 0x9dd   :  { %v22171_v15 = vpop.eup %18541  ;;  %15569 = vmatmul.mubr.msk.f32.gmra.mrb[108].mxu0 %vm2029_vm5, %v21374_v7  ;;  %4332 = vadd.xlane.f32.xlu1 %v22163_v19 }
 0x9de   :  { %15571 = vmatprep.mubr.msk.f32.mxu0 %vm2029_vm5, %v21391_v14  ;;  %17408 = vmatpush3.bf16.msra.mxu0 %v17405_v8 }
 0x9df   :  { %4330 = vadd.xlane.f32.xlu0 %v22171_v15  ;;  %17410 = vmatprep.subr.bf16.mxu0 %v17409_v29 }
 0x9e0   :  { %v22179_v12 = vpop.eup %18543 }
 0x9e1   :  { %v22181_v0 = vpop.eup %18545  ;;  %15572 = vmatmul.mubr.msk.f32.gmra.mrb[110].mxu0 %vm2029_vm5, %v21394_v6  ;;  %4336 = vadd.xlane.f32.xlu1 %v22179_v12 }
 0x9e2   :  { %15574 = vmatprep.mubr.msk.f32.mxu0 %vm2029_vm5, %v21405_v20  ;;  %17412 = vmatpush3.bf16.msra.mxu0 %v17409_v29 }
 0x9e3   :  { %4334 = vadd.xlane.f32.xlu0 %v22181_v0  ;;  %17414 = vmatprep.subr.bf16.mxu0 %v17413_v52 }
 0x9e5   :  { %15575 = vmatmul.mubr.msk.f32.gmra.mrb[112].mxu0 %vm2029_vm5, %v21408_v2 }
 0x9e6   :  { %15577 = vmatprep.mubr.msk.f32.mxu0 %vm2029_vm5, %v21419_v23  ;;  %17416 = vmatpush3.bf16.msra.mxu0 %v17413_v52 }
 0x9e9   :  { %15578 = vmatmul.mubr.msk.f32.gmra.mrb[114].mxu0 %vm2029_vm5, %v21422_v13 }
 0x9ea   :  { %15580 = vmatprep.mubr.msk.f32.mxu0 %vm2029_vm5, %v21433_v57 }
 0x9ed   :  { %15581 = vmatmul.mubr.msk.f32.gmra.mrb[116].mxu0 %vm2029_vm5, %v21436_v47 }
 0x9ee   :  { %15583 = vmatprep.mubr.msk.f32.mxu0 %vm2029_vm5, %v21447_v31 }
 0x9f1   :  { %15584 = vmatmul.mubr.msk.f32.gmra.mrb[118].mxu0 %vm2029_vm5, %v21450_v49 }
 0x9f2   :  { %15586 = vmatprep.mubr.msk.f32.mxu0 %vm2029_vm5, %v21461_v5 }
 0x9f5   :  { %15587 = vmatmul.mubr.msk.f32.gmra.mrb[120].mxu0 %vm2029_vm5, %v21464_v25 }
 0x9f6   :  { %15605 = vmatprep.mubr.msk.f32.mxu0 %vm2029_vm5, %v21351_v35 }
 0x9f9   :  { %15606 = vmatmul.mubr.msk.f32.vlgmr.msra.gmra.mrb[122].mxu0 %vm2029_vm5, %v21354_v34 }
 0x9fa   :  { %15608 = vmatprep.mubr.msk.f32.mxu0 %vm2029_vm5, %v21371_v46 }
 0x9fd   :  { %15609 = vmatmul.mubr.msk.f32.gmra.mrb[124].mxu0 %vm2029_vm5, %v21374_v7 }
 0x9fe   :  { %15611 = vmatprep.mubr.msk.f32.mxu0 %vm2029_vm5, %v21391_v14 }
 0xa01   :  { %15612 = vmatmul.mubr.msk.f32.gmra.mrb[126].mxu0 %vm2029_vm5, %v21394_v6 }
 0xa02   :  { %15614 = vmatprep.mubr.msk.f32.mxu0 %vm2029_vm5, %v21405_v20 }
 0xa05   :  { %15615 = vmatmul.mubr.msk.f32.gmra.mrb[128].mxu0 %vm2029_vm5, %v21408_v2 }
 0xa06   :  { %15617 = vmatprep.mubr.msk.f32.mxu0 %vm2029_vm5, %v21419_v23 }
 0xa09   :  { %15618 = vmatmul.mubr.msk.f32.gmra.mrb[130].mxu0 %vm2029_vm5, %v21422_v13 }
 0xa0a   :  { %15620 = vmatprep.mubr.msk.f32.mxu0 %vm2029_vm5, %v21433_v57 }
 0xa0d   :  { %15621 = vmatmul.mubr.msk.f32.gmra.mrb[132].mxu0 %vm2029_vm5, %v21436_v47 }
 0xa0e   :  { %15623 = vmatprep.mubr.msk.f32.mxu0 %vm2029_vm5, %v21447_v31 }
 0xa11   :  { %15624 = vmatmul.mubr.msk.f32.gmra.mrb[134].mxu0 %vm2029_vm5, %v21450_v49 }
 0xa12   :  { %15626 = vmatprep.mubr.msk.f32.mxu0 %vm2029_vm5, %v21461_v5 }
 0xa15   :  { %15627 = vmatmul.mubr.msk.f32.gmra.mrb[136].mxu0 %vm2029_vm5, %v21464_v25 }
 0xa66   :  { %v4329_v62 = vpop.xlane.xlu1 %4328 }
 0xa67   :  { %18547 = vrcp.f32 %v4329_v62 }
 0xa68   :  { %v4327_v10 = vpop.xlane.xlu0 %4326 }
 0xa69   :  { %18549 = vrcp.f32 %v4327_v10 }
 0xa6a   :  { %v4333_v48 = vpop.xlane.xlu1 %4332 }
 0xa6b   :  { %18551 = vrcp.f32 %v4333_v48 }
 0xa6c   :  { %v4331_v27 = vpop.xlane.xlu0 %4330 }
 0xa6d   :  { %18553 = vrcp.f32 %v4331_v27 }
 0xa6e   :  { %v4337_v1 = vpop.xlane.xlu1 %4336 }
 0xa6f   :  { %18555 = vrcp.f32 %v4337_v1 }
 0xa70   :  { %v4335_v21 = vpop.xlane.xlu0 %4334 }
 0xa71   :  { %18557 = vrcp.f32 %v4335_v21  ;;  %v18548_v4 = vpop.eup %18547 }
 0xa72   :  { %v4365_v55 = vmul.f32 %v18548_v4, %v22147_v37 }
 0xa73   :  { %v18550_v32 = vpop.eup %18549 }
 0xa74   :  { %v4364_v61 = vmul.f32 %v18550_v32, %v22155_v63 }
 0xa75   :  { %v18552_v60 = vpop.eup %18551 }
 0xa76   :  { %15488 = vmatprep.mubr.f32.mxu1 %v4364_v61  ;;  %v4367_v40 = vmul.f32 %v18552_v60, %v22163_v19 }
 0xa77   :  { %v18554_v59 = vpop.eup %18553  ;;  %15489 = vmatmul.mubr.f32.vlgmr.msra.gmra.mrb[80].mxu1 %v4365_v55 }
 0xa78   :  { %v4366_v43 = vmul.f32 %v18554_v59, %v22171_v15  ;;  %15498 = vmatpush3.msra.mxu1 %v12842_v36  ;;  %v12884_v15 = vld [vmem:[%s24924_s11 + $0x2] ss:$0 sm:$0xff] }
 0xa79   :  { %v18556_v45 = vpop.eup %18555 }
 0xa7a   :  { %15491 = vmatprep.mubr.f32.mxu1 %v4366_v43  ;;  %v4369_v53 = vmul.f32 %v18556_v45, %v22179_v12 }
 0xa7b   :  { %v18558_v50 = vpop.eup %18557  ;;  %15492 = vmatmul.mubr.f32.gmra.mrb[82].mxu1 %v4367_v40 }
 0xa7c   :  { %v4368_v3 = vmul.f32 %v18558_v50, %v22181_v0 }
 0xa7e   :  { %15494 = vmatprep.mubr.f32.mxu1 %v4368_v3 }
 0xa7f   :  { %15495 = vmatmul.mubr.f32.gmra.mrb[84].mxu1 %v4369_v53 }
 0xa98   :  { %v15475_v54 = vpop.f32.mrb[96].mxu0 }
 0xa99   :  { %v4436_v8 = vpop.f32.mrb[97].mxu0 }
 0xa9a   :  { %15499 = vmatprep.mubr.msk.f32.mxu1 %vm2967_vm10, %v4436_v8 }
 0xa9b   :  { %15500 = vmatmul.mubr.msk.f32.vlgmr.msra.gmra.mrb[86].mxu1 %vm2967_vm10, %v15475_v54 }
 0xa9c   :  { %v15478_v37 = vpop.f32.mrb[98].mxu0 }
 0xa9d   :  { %v4446_v51 = vpop.f32.mrb[99].mxu0 }
 0xa9e   :  { %15502 = vmatprep.mubr.msk.f32.mxu1 %vm2967_vm10, %v4446_v51 }
 0xa9f   :  { %15503 = vmatmul.mubr.msk.f32.gmra.mrb[88].mxu1 %vm2967_vm10, %v15478_v37 }
 0xaa0   :  { %v15481_v41 = vpop.f32.mrb[100].mxu0 }
 0xaa1   :  { %v4456_v63 = vpop.f32.mrb[101].mxu0 }
 0xaa2   :  { %15505 = vmatprep.mubr.msk.f32.mxu1 %vm2967_vm10, %v4456_v63 }
 0xaa3   :  { %15506 = vmatmul.mubr.msk.f32.gmra.mrb[90].mxu1 %vm2967_vm10, %v15481_v41 }
 0xaa4   :  { %v15484_v29 = vpop.f32.mrb[102].mxu0 }
 0xaa5   :  { %v4466_v19 = vpop.f32.mrb[103].mxu0 }
 0xaa6   :  { %15508 = vmatprep.mubr.msk.f32.mxu1 %vm2967_vm10, %v4466_v19 }
 0xaa7   :  { %15509 = vmatmul.mubr.msk.f32.gmra.mrb[92].mxu1 %vm2967_vm10, %v15484_v29 }
 0xaa8   :  { %v15487_v39 = vpop.f32.mrb[104].mxu0 }
 0xaa9   :  { %v4476_v22 = vpop.f32.mrb[105].mxu0 }
 0xaaa   :  { %15511 = vmatprep.mubr.msk.f32.mxu1 %vm2967_vm10, %v4476_v22 }
 0xaab   :  { %15512 = vmatmul.mubr.msk.f32.gmra.mrb[94].mxu1 %vm2967_vm10, %v15487_v39 }
 0xaac   :  { %v15567_v52 = vpop.f32.mrb[106].mxu0 }
 0xaad   :  { %v22261_v12 = vadd.f32 %v15567_v52, %v12884_v15  ;;  %v4986_v0 = vpop.f32.mrb[107].mxu0  ;;  %v12910_v52 = vld [vmem:[%s24926_s12 + $0x2] ss:$0 sm:$0xff] }
 0xaae   :  { %v4987_v36 = vadd.f32 %v12884_v15, %v4986_v0 }
 0xab0   :  { %v15570_v62 = vpop.f32.mrb[108].mxu0  ;;  %15701 = vmatprep.mubr.msk.f32.mxu0 %vm2967_vm10, %v4987_v36 }
 0xab1   :  { %v22264_v10 = vadd.f32 %v15570_v62, %v12884_v15  ;;  %v4996_v48 = vpop.f32.mrb[109].mxu0 }
 0xab2   :  { %v22266_v27 = vadd.f32 %v12884_v15, %v4996_v48 }
 0xab4   :  { %v15573_v1 = vpop.f32.mrb[110].mxu0 }
 0xab5   :  { %v22268_v21 = vadd.f32 %v15573_v1, %v12884_v15  ;;  %v5006_v4 = vpop.f32.mrb[111].mxu0 }
 0xab6   :  { %v22270_v32 = vadd.f32 %v12884_v15, %v5006_v4 }
 0xab8   :  { %v15576_v61 = vpop.f32.mrb[112].mxu0 }
 0xab9   :  { %v22272_v55 = vadd.f32 %v15576_v61, %v12884_v15  ;;  %v5016_v60 = vpop.f32.mrb[113].mxu0 }
 0xaba   :  { %v22274_v59 = vadd.f32 %v12884_v15, %v5016_v60 }
 0xabc   :  { %v15579_v43 = vpop.f32.mrb[114].mxu0 }
 0xabd   :  { %v22276_v40 = vadd.f32 %v15579_v43, %v12884_v15  ;;  %v5026_v45 = vpop.f32.mrb[115].mxu0 }
 0xabe   :  { %v22278_v50 = vadd.f32 %v12884_v15, %v5026_v45 }
 0xac0   :  { %v15582_v3 = vpop.f32.mrb[116].mxu0 }
 0xac1   :  { %v22280_v53 = vadd.f32 %v15582_v3, %v12884_v15  ;;  %v5036_v54 = vpop.f32.mrb[117].mxu0 }
 0xac2   :  { %v22282_v8 = vadd.f32 %v12884_v15, %v5036_v54 }
 0xac4   :  { %v15585_v37 = vpop.f32.mrb[118].mxu0 }
 0xac5   :  { %v22284_v51 = vadd.f32 %v15585_v37, %v12884_v15  ;;  %v5046_v41 = vpop.f32.mrb[119].mxu0 }
 0xac6   :  { %v22286_v63 = vadd.f32 %v12884_v15, %v5046_v41  ;;  %v3498_v41 = vld [vmem:[%s24927_s14] sm:$0xff] }
 0xac7   :  { %15523 = vmatprep.subr.mxu1 %v3498_v41 }
 0xac8   :  { %v15588_v29 = vpop.f32.mrb[120].mxu0  ;;  %15524 = vmatpush3.msra.mxu1 %v3498_v41 }
 0xac9   :  { %v22288_v19 = vadd.f32 %v15588_v29, %v12884_v15  ;;  %v5056_v39 = vpop.f32.mrb[121].mxu0 }
 0xaca   :  { %v22290_v22 = vadd.f32 %v12884_v15, %v5056_v39 }
 0xacc   :  { %v15607_v0 = vpop.f32.mrb[122].mxu0 }
 0xacd   :  { %v5154_v36 = vadd.f32 %v15607_v0, %v12910_v52  ;;  %v5148_v62 = vpop.f32.mrb[123].mxu0 }
 0xace   :  { %v5149_v48 = vadd.f32 %v12910_v52, %v5148_v62 }
 0xad0   :  { %v17433_v1 = vpack.c.bf16 %v5154_v36, %v5149_v48  ;;  %v15610_v4 = vpop.f32.mrb[124].mxu0 }
 0xad1   :  { %v5164_v61 = vadd.f32 %v15610_v4, %v12910_v52  ;;  %v5158_v60 = vpop.f32.mrb[125].mxu0 }
 0xad2   :  { %v5159_v43 = vadd.f32 %v12910_v52, %v5158_v60  ;;  %17435 = vmatprep.subr.msk.bf16.mxu0 %vm21584_vm4, %v17433_v1 }
 0xad3   :  { %17438 = vmatpush3.bf16.xpose.msk.msra.mxu0 %vm21584_vm4, %v17433_v1 }
 0xad4   :  { %v17439_v15 = vpack.c.bf16 %v5164_v61, %v5159_v43  ;;  %v15613_v45 = vpop.f32.mrb[126].mxu0 }
 0xad5   :  { %v5174_v3 = vadd.f32 %v15613_v45, %v12910_v52  ;;  %v5168_v54 = vpop.f32.mrb[127].mxu0 }
 0xad6   :  { %v5169_v37 = vadd.f32 %v12910_v52, %v5168_v54  ;;  %17441 = vmatprep.subr.msk.bf16.mxu0 %vm21584_vm4, %v17439_v15 }
 0xad8   :  { %v17445_v29 = vpack.c.bf16 %v5174_v3, %v5169_v37  ;;  %v15616_v39 = vpop.f32.mrb[128].mxu0 }
 0xad9   :  { %v5184_v0 = vadd.f32 %v15616_v39, %v12910_v52  ;;  %v5178_v36 = vpop.f32.mrb[129].mxu0 }
 0xada   :  { %v5179_v62 = vadd.f32 %v12910_v52, %v5178_v36 }
 0xadb   :  { %17444 = vmatpush3.bf16.xpose.msk.msra.mxu0 %vm21584_vm4, %v17439_v15 }
 0xadc   :  { %v17451_v48 = vpack.c.bf16 %v5184_v0, %v5179_v62  ;;  %v15619_v1 = vpop.f32.mrb[130].mxu0  ;;  %17447 = vmatprep.subr.msk.bf16.mxu0 %vm21584_vm4, %v17445_v29 }
 0xadd   :  { %v5194_v4 = vadd.f32 %v15619_v1, %v12910_v52  ;;  %v5188_v61 = vpop.f32.mrb[131].mxu0 }
 0xade   :  { %v5189_v60 = vadd.f32 %v12910_v52, %v5188_v61 }
 0xae0   :  { %v17457_v43 = vpack.c.bf16 %v5194_v4, %v5189_v60  ;;  %v15622_v45 = vpop.f32.mrb[132].mxu0  ;;  %v12927_v4 = vld [vmem:[%s24920_s10 + $0x80] sm:$0xff] }
 0xae1   :  { %v5204_v54 = vadd.f32 %v15622_v45, %v12910_v52  ;;  %v5198_v3 = vpop.f32.mrb[133].mxu0 }
 0xae2   :  { %v5199_v37 = vadd.f32 %v12910_v52, %v5198_v3  ;;  %v13005_v3 = vld [vmem:[%s24919_s8 + $0xd8] sm:$0xff] }
 0xae3   :  { %17450 = vmatpush3.bf16.xpose.msk.msra.mxu0 %vm21584_vm4, %v17445_v29  ;;  %v12928_v29 = vld [vmem:[%s24920_s10 + $0x88] sm:$0xff] }
 0xae4   :  { %v17463_v41 = vpack.c.bf16 %v5204_v54, %v5199_v37  ;;  %v15625_v39 = vpop.f32.mrb[134].mxu0  ;;  %17453 = vmatprep.subr.msk.bf16.mxu0 %vm21584_vm4, %v17451_v48  ;;  %v22318_v45 = vpack.c.bf16 %v12928_v29, %v12927_v4  ;;  %v12929_v29 = vld [vmem:[%s24920_s10 + $0x90] sm:$0xff] }
 0xae5   :  { %v5214_v15 = vadd.f32 %v15625_v39, %v12910_v52  ;;  %v5208_v0 = vpop.f32.mrb[135].mxu0  ;;  %v13007_v39 = vld [vmem:[%s24919_s8 + $0xe8] sm:$0xff] }
 0xae6   :  { %v5209_v36 = vadd.f32 %v12910_v52, %v5208_v0  ;;  %17418 = vmatprep.subr.bf16.mxu1 %v22318_v45  ;;  %v13008_v0 = vld [vmem:[%s24919_s8 + $0xf0] sm:$0xff] }
 0xae8   :  { %v17469_v62 = vpack.c.bf16 %v5214_v15, %v5209_v36  ;;  %v15628_v1 = vpop.f32.mrb[136].mxu0  ;;  %v13009_v36 = vld [vmem:[%s24919_s8 + $0xf8] sm:$0xff] }
 0xae9   :  { %v5224_v16 = vadd.f32 %v15628_v1, %v12910_v52  ;;  %v5218_v61 = vpop.f32.mrb[137].mxu0 }
 0xaea   :  { %v5219_v60 = vadd.f32 %v12910_v52, %v5218_v61  ;;  %v13003_v52 = vld [vmem:[%s24919_s8 + $0xc8] sm:$0xff] }
 0xaeb   :  { %17456 = vmatpush3.bf16.xpose.msk.msra.mxu0 %vm21584_vm4, %v17451_v48 }
 0xaec   :  { %v17475_v54 = vpack.c.bf16 %v5224_v16, %v5219_v60  ;;  %17459 = vmatprep.subr.msk.bf16.mxu0 %vm21584_vm4, %v17457_v43  ;;  %v13002_v16 = vld [vmem:[%s24919_s8 + $0xc0] sm:$0xff]  ;;  %v12930_v60 = vld [vmem:[%s24920_s10 + $0x98] sm:$0xff] }
 0xaed   :  { %v17513_v48 = vpack.c.bf16 %v13003_v52, %v13002_v16  ;;  %v12931_v16 = vld [vmem:[%s24920_s10 + $0xa0] sm:$0xff]  ;;  %v12932_v52 = vld [vmem:[%s24920_s10 + $0xa8] sm:$0xff] }
 0xaf3   :  { %17462 = vmatpush3.bf16.xpose.msk.msra.mxu0 %vm21584_vm4, %v17457_v43  ;;  %v13004_v43 = vld [vmem:[%s24919_s8 + $0xd0] sm:$0xff] }
 0xaf4   :  { %17465 = vmatprep.subr.msk.bf16.mxu0 %vm21584_vm4, %v17463_v41  ;;  %v17517_v37 = vpack.c.bf16 %v13005_v3, %v13004_v43 }
 0xafb   :  { %17468 = vmatpush3.bf16.xpose.msk.msra.mxu0 %vm21584_vm4, %v17463_v41  ;;  %v13006_v41 = vld [vmem:[%s24919_s8 + $0xe0] sm:$0xff] }
 0xafc   :  { %17471 = vmatprep.subr.msk.bf16.mxu0 %vm21584_vm4, %v17469_v62  ;;  %v17521_v15 = vpack.c.bf16 %v13007_v39, %v13006_v41 }
 0xb03   :  { %17474 = vmatpush3.bf16.xpose.msk.msra.mxu0 %vm21584_vm4, %v17469_v62  ;;  %v13055_v62 = vld [vmem:[%s24920_s10 + $0xc8] sm:$0xff] }
 0xb04   :  { %17477 = vmatprep.subr.msk.bf16.mxu0 %vm21584_vm4, %v17475_v54 }
 0xb0b   :  { %17480 = vmatpush3.bf16.xpose.msk.msra.mxu0 %vm21584_vm4, %v17475_v54  ;;  %v17421_v54 = vpack.c.bf16 %v12930_v60, %v12929_v29 }
 0xb0c   :  { %17514 = vmatprep.subr.bf16.mxu0 %v17513_v48 }
 0xb12   :  { %15702 = vmatmul.mubr.msk.f32.vlgmr.msra.gmra.mrb[138].mxu0 %vm2967_vm10, %v22261_v12  ;;  %v17525_v12 = vpack.c.bf16 %v13009_v36, %v13008_v0 }
 0xb13   :  { %15704 = vmatprep.mubr.msk.f32.mxu0 %vm2967_vm10, %v22266_v27  ;;  %17516 = vmatpush3.bf16.msra.mxu0 %v17513_v48  ;;  %v13054_v27 = vld [vmem:[%s24920_s10 + $0xc0] sm:$0xff] }
 0xb14   :  { %17518 = vmatprep.subr.bf16.mxu0 %v17517_v37 }
 0xb16   :  { %15705 = vmatmul.mubr.msk.f32.gmra.mrb[140].mxu0 %vm2967_vm10, %v22264_v10  ;;  %v17545_v10 = vpack.c.bf16 %v13055_v62, %v13054_v27 }
 0xb17   :  { %15707 = vmatprep.mubr.msk.f32.mxu0 %vm2967_vm10, %v22270_v32  ;;  %17520 = vmatpush3.bf16.msra.mxu0 %v17517_v37  ;;  %v13057_v32 = vld [vmem:[%s24920_s10 + $0xd8] sm:$0xff] }
 0xb18   :  { %17522 = vmatprep.subr.bf16.mxu0 %v17521_v15 }
 0xb1a   :  { %15708 = vmatmul.mubr.msk.f32.gmra.mrb[142].mxu0 %vm2967_vm10, %v22268_v21  ;;  %v13056_v21 = vld [vmem:[%s24920_s10 + $0xd0] sm:$0xff] }
 0xb1b   :  { %15710 = vmatprep.mubr.msk.f32.mxu0 %vm2967_vm10, %v22274_v59  ;;  %17524 = vmatpush3.bf16.msra.mxu0 %v17521_v15  ;;  %v13058_v59 = vld [vmem:[%s24920_s10 + $0xe0] sm:$0xff] }
 0xb1c   :  { %17526 = vmatprep.subr.bf16.mxu0 %v17525_v12 }
 0xb1e   :  { %15711 = vmatmul.mubr.msk.f32.gmra.mrb[144].mxu0 %vm2967_vm10, %v22272_v55  ;;  %v17549_v55 = vpack.c.bf16 %v13057_v32, %v13056_v21 }
 0xb1f   :  { %15713 = vmatprep.mubr.msk.f32.mxu0 %vm2967_vm10, %v22278_v50  ;;  %17528 = vmatpush3.bf16.msra.mxu0 %v17525_v12  ;;  %v22621_v12 = vld [vmem:[%s24924_s11 + $0x3] ss:$0 sm:$0xff] }
 0xb20   :  { %17546 = vmatprep.subr.bf16.mxu0 %v17545_v10 }
 0xb22   :  { %15714 = vmatmul.mubr.msk.f32.gmra.mrb[146].mxu0 %vm2967_vm10, %v22276_v40  ;;  %v13059_v40 = vld [vmem:[%s24920_s10 + $0xe8] sm:$0xff] }
 0xb23   :  { %15716 = vmatprep.mubr.msk.f32.mxu0 %vm2967_vm10, %v22282_v8  ;;  %v17553_v50 = vpack.c.bf16 %v13059_v40, %v13058_v59  ;;  %v13061_v8 = vld [vmem:[%s24920_s10 + $0xf8] sm:$0xff] }
 0xb26   :  { %15717 = vmatmul.mubr.msk.f32.gmra.mrb[148].mxu0 %vm2967_vm10, %v22280_v53  ;;  %v13060_v53 = vld [vmem:[%s24920_s10 + $0xf0] sm:$0xff] }
 0xb27   :  { %15719 = vmatprep.mubr.msk.f32.mxu0 %vm2967_vm10, %v22286_v63 }
 0xb2a   :  { %15720 = vmatmul.mubr.msk.f32.gmra.mrb[150].mxu0 %vm2967_vm10, %v22284_v51  ;;  %v17557_v51 = vpack.c.bf16 %v13061_v8, %v13060_v53 }
 0xb2b   :  { %15722 = vmatprep.mubr.msk.f32.mxu0 %vm2967_vm10, %v22290_v22 }
 0xb2e   :  { %15723 = vmatmul.mubr.msk.f32.gmra.mrb[152].mxu0 %vm2967_vm10, %v22288_v19 }
 0xb2f   :  { %15823 = vmatprep.mubr.msk.f32.mxu0 %vm2029_vm5, %v21351_v35 }
 0xb32   :  { %15824 = vmatmul.mubr.msk.f32.vlgmr.msra.gmra.mrb[154].mxu0 %vm2029_vm5, %v21354_v34 }
 0xb33   :  { %15826 = vmatprep.mubr.msk.f32.mxu0 %vm2029_vm5, %v21371_v46  ;;  %17548 = vmatpush3.bf16.msra.mxu0 %v17545_v10 }
 0xb34   :  { %17550 = vmatprep.subr.bf16.mxu0 %v17549_v55 }
 0xb36   :  { %15827 = vmatmul.mubr.msk.f32.gmra.mrb[156].mxu0 %vm2029_vm5, %v21374_v7 }
 0xb37   :  { %15829 = vmatprep.mubr.msk.f32.mxu0 %vm2029_vm5, %v21391_v14  ;;  %17552 = vmatpush3.bf16.msra.mxu0 %v17549_v55 }
 0xb38   :  { %17554 = vmatprep.subr.bf16.mxu0 %v17553_v50 }
 0xb3a   :  { %15830 = vmatmul.mubr.msk.f32.gmra.mrb[158].mxu0 %vm2029_vm5, %v21394_v6 }
 0xb3b   :  { %15832 = vmatprep.mubr.msk.f32.mxu0 %vm2029_vm5, %v21405_v20  ;;  %17556 = vmatpush3.bf16.msra.mxu0 %v17553_v50 }
 0xb3c   :  { %17558 = vmatprep.subr.bf16.mxu0 %v17557_v51 }
 0xb3e   :  { %15833 = vmatmul.mubr.msk.f32.gmra.mrb[160].mxu0 %vm2029_vm5, %v21408_v2 }
 0xb3f   :  { %15835 = vmatprep.mubr.msk.f32.mxu0 %vm2029_vm5, %v21419_v23  ;;  %17560 = vmatpush3.bf16.msra.mxu0 %v17557_v51 }
 0xb42   :  { %15836 = vmatmul.mubr.msk.f32.gmra.mrb[162].mxu0 %vm2029_vm5, %v21422_v13 }
 0xb43   :  { %15838 = vmatprep.mubr.msk.f32.mxu0 %vm2029_vm5, %v21433_v57 }
 0xb46   :  { %15839 = vmatmul.mubr.msk.f32.gmra.mrb[164].mxu0 %vm2029_vm5, %v21436_v47 }
 0xb47   :  { %15841 = vmatprep.mubr.msk.f32.mxu0 %vm2029_vm5, %v21447_v31 }
 0xb4a   :  { %v15490_v63 = vpop.f32.mrb[80].mxu1  ;;  %15842 = vmatmul.mubr.msk.f32.gmra.mrb[166].mxu0 %vm2029_vm5, %v21450_v49 }
 0xb4b   :  { %v4486_v19 = vpop.f32.mrb[81].mxu1  ;;  %15844 = vmatprep.mubr.msk.f32.mxu0 %vm2029_vm5, %v21461_v5 }
 0xb4c   :  { %15514 = vmatprep.mubr.msk.f32.mxu1 %vm2967_vm10, %v4486_v19 }
 0xb4d   :  { %15515 = vmatmul.mubr.msk.f32.gmra.mrb[96].mxu1 %vm2967_vm10, %v15490_v63 }
 0xb4e   :  { %v15493_v22 = vpop.f32.mrb[82].mxu1  ;;  %15845 = vmatmul.mubr.msk.f32.gmra.mrb[168].mxu0 %vm2029_vm5, %v21464_v25 }
 0xb4f   :  { %v4496_v1 = vpop.f32.mrb[83].mxu1  ;;  %15903 = vmatprep.mubr.msk.f32.mxu0 %vm2029_vm5, %v21351_v35 }
 0xb50   :  { %15517 = vmatprep.mubr.msk.f32.mxu1 %vm2967_vm10, %v4496_v1 }
 0xb51   :  { %15518 = vmatmul.mubr.msk.f32.gmra.mrb[98].mxu1 %vm2967_vm10, %v15493_v22 }
 0xb52   :  { %v15496_v61 = vpop.f32.mrb[84].mxu1  ;;  %15904 = vmatmul.mubr.msk.f32.vlgmr.msra.gmra.mrb[170].mxu0 %vm2029_vm5, %v21354_v34 }
 0xb53   :  { %v4506_v4 = vpop.f32.mrb[85].mxu1  ;;  %15906 = vmatprep.mubr.msk.f32.mxu0 %vm2029_vm5, %v21371_v46 }
 0xb54   :  { %15520 = vmatprep.mubr.msk.f32.mxu1 %vm2967_vm10, %v4506_v4 }
 0xb55   :  { %15521 = vmatmul.mubr.msk.f32.gmra.mrb[100].mxu1 %vm2967_vm10, %v15496_v61 }
 0xb56   :  { %15525 = vmatprep.mubr.msk.f32.mxu1 %vm2967_vm10, %v21983_v38  ;;  %15907 = vmatmul.mubr.msk.f32.gmra.mrb[172].mxu0 %vm2029_vm5, %v21374_v7  ;;  %v12933_v38 = vld [vmem:[%s24920_s10 + $0xb0] sm:$0xff] }
 0xb57   :  { %15909 = vmatprep.mubr.msk.f32.mxu0 %vm2029_vm5, %v21391_v14 }
 0xb59   :  { %15526 = vmatmul.mubr.msk.f32.vlgmr.msra.gmra.mrb[86].mxu1 %vm2967_vm10, %v21981_v26  ;;  %v17425_v26 = vpack.c.bf16 %v12932_v52, %v12931_v16 }
 0xb5a   :  { %15528 = vmatprep.mubr.msk.f32.mxu1 %vm2967_vm10, %v21987_v28  ;;  %15910 = vmatmul.mubr.msk.f32.gmra.mrb[174].mxu0 %vm2029_vm5, %v21394_v6  ;;  %v12934_v28 = vld [vmem:[%s24920_s10 + $0xb8] sm:$0xff] }
 0xb5b   :  { %15912 = vmatprep.mubr.msk.f32.mxu0 %vm2029_vm5, %v21405_v20  ;;  %17420 = vmatpush3.bf16.msra.mxu1 %v22318_v45 }
 0xb5c   :  { %17422 = vmatprep.subr.bf16.mxu1 %v17421_v54 }
 0xb5d   :  { %15529 = vmatmul.mubr.msk.f32.gmra.mrb[88].mxu1 %vm2967_vm10, %v21985_v30  ;;  %v17429_v30 = vpack.c.bf16 %v12934_v28, %v12933_v38 }
 0xb5e   :  { %15531 = vmatprep.mubr.msk.f32.mxu1 %vm2967_vm10, %v21991_v44  ;;  %15913 = vmatmul.mubr.msk.f32.gmra.mrb[176].mxu0 %vm2029_vm5, %v21408_v2  ;;  %v25270_v44 = vld [vmem:[#allocation32_spill] sm:$0xff] }
 0xb5f   :  { %15915 = vmatprep.mubr.msk.f32.mxu0 %vm2029_vm5, %v21419_v23  ;;  %17424 = vmatpush3.bf16.msra.mxu1 %v17421_v54 }
 0xb60   :  { %17426 = vmatprep.subr.bf16.mxu1 %v17425_v26 }
 0xb61   :  { %15532 = vmatmul.mubr.msk.f32.gmra.mrb[90].mxu1 %vm2967_vm10, %v21989_v33  ;;  %v25269_v33 = vld [vmem:[#allocation27_spill] sm:$0xff] }
 0xb62   :  { %15534 = vmatprep.mubr.msk.f32.mxu1 %vm2967_vm10, %v21995_v9  ;;  %15916 = vmatmul.mubr.msk.f32.gmra.mrb[178].mxu0 %vm2029_vm5, %v21422_v13 }
 0xb63   :  { %15918 = vmatprep.mubr.msk.f32.mxu0 %vm2029_vm5, %v21433_v57  ;;  %17428 = vmatpush3.bf16.msra.mxu1 %v17425_v26 }
 0xb64   :  { %17430 = vmatprep.subr.bf16.mxu1 %v17429_v30 }
 0xb65   :  { %15535 = vmatmul.mubr.msk.f32.gmra.mrb[92].mxu1 %vm2967_vm10, %v21993_v17  ;;  %v25271_v17 = vld [vmem:[#allocation3_spill] sm:$0xff] }
 0xb66   :  { %15537 = vmatprep.mubr.msk.f32.mxu1 %vm2967_vm10, %v21999_v11  ;;  %15919 = vmatmul.mubr.msk.f32.gmra.mrb[180].mxu0 %vm2029_vm5, %v21436_v47 }
 0xb67   :  { %15921 = vmatprep.mubr.msk.f32.mxu0 %vm2029_vm5, %v21447_v31  ;;  %17432 = vmatpush3.bf16.msra.mxu1 %v17429_v30 }
 0xb69   :  { %15538 = vmatmul.mubr.msk.f32.gmra.mrb[94].mxu1 %vm2967_vm10, %v21997_v24 }
 0xb6a   :  { %15540 = vmatprep.mubr.msk.f32.mxu1 %vm2967_vm10, %v22003_v42  ;;  %15922 = vmatmul.mubr.msk.f32.gmra.mrb[182].mxu0 %vm2029_vm5, %v21450_v49 }
 0xb6b   :  { %15924 = vmatprep.mubr.msk.f32.mxu0 %vm2029_vm5, %v21461_v5 }
 0xb6d   :  { %15541 = vmatmul.mubr.msk.f32.gmra.mrb[96].mxu1 %vm2967_vm10, %v22001_v56 }
 0xb6e   :  { %15543 = vmatprep.mubr.msk.f32.mxu1 %vm2967_vm10, %v22007_v58  ;;  %15925 = vmatmul.mubr.msk.f32.gmra.mrb[184].mxu0 %vm2029_vm5, %v21464_v25 }
 0xb71   :  { %15544 = vmatmul.mubr.msk.f32.gmra.mrb[98].mxu1 %vm2967_vm10, %v25269_v33 }
 0xb72   :  { %15546 = vmatprep.mubr.msk.f32.mxu1 %vm2967_vm10, %v25270_v44 }
 0xb75   :  { %15547 = vmatmul.mubr.msk.f32.gmra.mrb[100].mxu1 %vm2967_vm10, %v25271_v17 }
 0xb76   :  { %15645 = vmatprep.mubr.msk.f32.mxu1 %vm2029_vm5, %v21351_v35 }
 0xb79   :  { %15646 = vmatmul.mubr.msk.f32.vlgmr.msra.gmra.mrb[102].mxu1 %vm2029_vm5, %v21354_v34 }
 0xb7a   :  { %15648 = vmatprep.mubr.msk.f32.mxu1 %vm2029_vm5, %v21371_v46 }
 0xb7d   :  { %15649 = vmatmul.mubr.msk.f32.gmra.mrb[104].mxu1 %vm2029_vm5, %v21374_v7 }
 0xb7e   :  { %15651 = vmatprep.mubr.msk.f32.mxu1 %vm2029_vm5, %v21391_v14 }
 0xb81   :  { %15652 = vmatmul.mubr.msk.f32.gmra.mrb[106].mxu1 %vm2029_vm5, %v21394_v6 }
 0xb82   :  { %15654 = vmatprep.mubr.msk.f32.mxu1 %vm2029_vm5, %v21405_v20 }
 0xb85   :  { %15655 = vmatmul.mubr.msk.f32.gmra.mrb[108].mxu1 %vm2029_vm5, %v21408_v2 }
 0xb86   :  { %15657 = vmatprep.mubr.msk.f32.mxu1 %vm2029_vm5, %v21419_v23 }
 0xb89   :  { %15658 = vmatmul.mubr.msk.f32.gmra.mrb[110].mxu1 %vm2029_vm5, %v21422_v13 }
 0xb8a   :  { %15660 = vmatprep.mubr.msk.f32.mxu1 %vm2029_vm5, %v21433_v57 }
 0xb8d   :  { %15661 = vmatmul.mubr.msk.f32.gmra.mrb[112].mxu1 %vm2029_vm5, %v21436_v47 }
 0xb8e   :  { %15663 = vmatprep.mubr.msk.f32.mxu1 %vm2029_vm5, %v21447_v31 }
 0xb91   :  { %15664 = vmatmul.mubr.msk.f32.gmra.mrb[114].mxu1 %vm2029_vm5, %v21450_v49 }
 0xb92   :  { %15666 = vmatprep.mubr.msk.f32.mxu1 %vm2029_vm5, %v21461_v5 }
 0xb95   :  { %15667 = vmatmul.mubr.msk.f32.gmra.mrb[116].mxu1 %vm2029_vm5, %v21464_v25 }
 0xbe5   :  { %v22570_v9 = vpop.f32.mrb[138].mxu0 }
 0xbe6   :  { %5632 = vmax.xlane.f32.xlu1 %v22570_v9  ;;  %v22573_v24 = vpop.f32.mrb[139].mxu0 }
 0xbe7   :  { %5630 = vmax.xlane.f32.xlu0 %v22573_v24 }
 0xbe9   :  { %v22576_v11 = vpop.f32.mrb[140].mxu0 }
 0xbea   :  { %5636 = vmax.xlane.f32.xlu1 %v22576_v11  ;;  %v22579_v56 = vpop.f32.mrb[141].mxu0 }
 0xbeb   :  { %5634 = vmax.xlane.f32.xlu0 %v22579_v56 }
 0xbed   :  { %v22582_v42 = vpop.f32.mrb[142].mxu0 }
 0xbee   :  { %5640 = vmax.xlane.f32.xlu1 %v22582_v42  ;;  %v22585_v58 = vpop.f32.mrb[143].mxu0 }
 0xbef   :  { %5638 = vmax.xlane.f32.xlu0 %v22585_v58 }
 0xbf1   :  { %v22588_v45 = vpop.f32.mrb[144].mxu0 }
 0xbf2   :  { %5644 = vmax.xlane.f32.xlu1 %v22588_v45  ;;  %v22591_v48 = vpop.f32.mrb[145].mxu0 }
 0xbf3   :  { %5642 = vmax.xlane.f32.xlu0 %v22591_v48 }
 0xbf5   :  { %v22594_v43 = vpop.f32.mrb[146].mxu0 }
 0xbf6   :  { %5648 = vmax.xlane.f32.xlu1 %v22594_v43  ;;  %v22597_v3 = vpop.f32.mrb[147].mxu0 }
 0xbf7   :  { %5646 = vmax.xlane.f32.xlu0 %v22597_v3 }
 0xbf9   :  { %v22600_v37 = vpop.f32.mrb[148].mxu0 }
 0xbfa   :  { %5652 = vmax.xlane.f32.xlu1 %v22600_v37  ;;  %v22603_v41 = vpop.f32.mrb[149].mxu0 }
 0xbfb   :  { %5650 = vmax.xlane.f32.xlu0 %v22603_v41 }
 0xbfd   :  { %v22606_v39 = vpop.f32.mrb[150].mxu0 }
 0xbfe   :  { %5656 = vmax.xlane.f32.xlu1 %v22606_v39  ;;  %v22609_v15 = vpop.f32.mrb[151].mxu0 }
 0xbff   :  { %5654 = vmax.xlane.f32.xlu0 %v22609_v15 }
 0xc01   :  { %v22612_v0 = vpop.f32.mrb[152].mxu0 }
 0xc02   :  { %5660 = vmax.xlane.f32.xlu1 %v22612_v0  ;;  %v22615_v36 = vpop.f32.mrb[153].mxu0 }
 0xc03   :  { %5658 = vmax.xlane.f32.xlu0 %v22615_v36 }
 0xc05   :  { %v15825_v27 = vpop.f32.mrb[154].mxu0 }
 0xc06   :  { %v22624_v62 = vadd.f32 %v15825_v27, %v22621_v12  ;;  %v22626_v10 = vpop.f32.mrb[155].mxu0 }
 0xc09   :  { %v15828_v21 = vpop.f32.mrb[156].mxu0 }
 0xc0a   :  { %v22629_v32 = vadd.f32 %v15828_v21, %v22621_v12  ;;  %v6223_v55 = vpop.f32.mrb[157].mxu0  ;;  %v13063_v21 = vld [vmem:[%s24925_s13 + $0x3] ss:$0 sm:$0xff] }
 0xc0b   :  { %v22632_v59 = vadd.f32 %v22621_v12, %v6223_v55 }
 0xc0d   :  { %v15831_v40 = vpop.f32.mrb[158].mxu0 }
 0xc0e   :  { %v22635_v50 = vadd.f32 %v15831_v40, %v22621_v12  ;;  %v6233_v53 = vpop.f32.mrb[159].mxu0 }
 0xc0f   :  { %v22638_v8 = vadd.f32 %v22621_v12, %v6233_v53 }
 0xc11   :  { %v15834_v51 = vpop.f32.mrb[160].mxu0 }
 0xc12   :  { %v22641_v63 = vadd.f32 %v15834_v51, %v22621_v12  ;;  %v6243_v19 = vpop.f32.mrb[161].mxu0 }
 0xc13   :  { %v22644_v22 = vadd.f32 %v22621_v12, %v6243_v19 }
 0xc15   :  { %v15837_v1 = vpop.f32.mrb[162].mxu0 }
 0xc16   :  { %v22647_v61 = vadd.f32 %v15837_v1, %v22621_v12  ;;  %v6253_v4 = vpop.f32.mrb[163].mxu0 }
 0xc17   :  { %v22650_v29 = vadd.f32 %v22621_v12, %v6253_v4 }
 0xc19   :  { %v15840_v60 = vpop.f32.mrb[164].mxu0 }
 0xc1a   :  { %v22653_v54 = vadd.f32 %v15840_v60, %v22621_v12  ;;  %v6263_v16 = vpop.f32.mrb[165].mxu0 }
 0xc1b   :  { %v22656_v52 = vadd.f32 %v22621_v12, %v6263_v16 }
 0xc1c   :  { %25272 = vst [vmem:[#allocation50_spill] sm:$0xff] %v22653_v54 }
 0xc1d   :  { %v15843_v26 = vpop.f32.mrb[166].mxu0 }
 0xc1e   :  { %v22659_v38 = vadd.f32 %v15843_v26, %v22621_v12  ;;  %v6273_v28 = vpop.f32.mrb[167].mxu0 }
 0xc1f   :  { %v22662_v30 = vadd.f32 %v22621_v12, %v6273_v28 }
 0xc20   :  { %25273 = vst [vmem:[#allocation51_spill] sm:$0xff] %v22659_v38 }
 0xc21   :  { %25274 = vst [vmem:[#allocation40_spill] sm:$0xff] %v22662_v30  ;;  %v15846_v33 = vpop.f32.mrb[168].mxu0 }
 0xc22   :  { %v22665_v44 = vadd.f32 %v15846_v33, %v22621_v12  ;;  %v6283_v17 = vpop.f32.mrb[169].mxu0 }
 0xc23   :  { %v22668_v27 = vadd.f32 %v22621_v12, %v6283_v17 }
 0xc24   :  { %25275 = vst [vmem:[#allocation2_spill] sm:$0xff] %v22665_v44 }
 0xc25   :  { %25276 = vst [vmem:[#allocation7_spill] sm:$0xff] %v22668_v27  ;;  %v15905_v55 = vpop.f32.mrb[170].mxu0 }
 0xc26   :  { %v6543_v40 = vadd.f32 %v15905_v55, %v13063_v21  ;;  %v6537_v53 = vpop.f32.mrb[171].mxu0 }
 0xc27   :  { %v6538_v51 = vadd.f32 %v13063_v21, %v6537_v53 }
 0xc29   :  { %v17609_v19 = vpack.c.bf16 %v6543_v40, %v6538_v51  ;;  %v15908_v1 = vpop.f32.mrb[172].mxu0 }
 0xc2a   :  { %v6553_v4 = vadd.f32 %v15908_v1, %v13063_v21  ;;  %v6547_v60 = vpop.f32.mrb[173].mxu0 }
 0xc2b   :  { %v6548_v16 = vadd.f32 %v13063_v21, %v6547_v60  ;;  %17610 = vmatprep.subr.bf16.mxu0 %v17609_v19 }
 0xc2c   :  { %17612 = vmatpush3.bf16.msra.mxu0 %v17609_v19 }
 0xc2d   :  { %v17613_v26 = vpack.c.bf16 %v6553_v4, %v6548_v16  ;;  %v15911_v28 = vpop.f32.mrb[174].mxu0 }
 0xc2e   :  { %v6563_v33 = vadd.f32 %v15911_v28, %v13063_v21  ;;  %v6557_v17 = vpop.f32.mrb[175].mxu0 }
 0xc2f   :  { %v6558_v44 = vadd.f32 %v13063_v21, %v6557_v17  ;;  %17614 = vmatprep.subr.bf16.mxu0 %v17613_v26 }
 0xc30   :  { %17616 = vmatpush3.bf16.msra.mxu0 %v17613_v26 }
 0xc31   :  { %v17617_v27 = vpack.c.bf16 %v6563_v33, %v6558_v44  ;;  %v15914_v38 = vpop.f32.mrb[176].mxu0 }
 0xc32   :  { %v6573_v30 = vadd.f32 %v15914_v38, %v13063_v21  ;;  %v6567_v55 = vpop.f32.mrb[177].mxu0 }
 0xc33   :  { %v6568_v54 = vadd.f32 %v13063_v21, %v6567_v55  ;;  %17618 = vmatprep.subr.bf16.mxu0 %v17617_v27 }
 0xc34   :  { %17620 = vmatpush3.bf16.msra.mxu0 %v17617_v27 }
 0xc35   :  { %v17621_v40 = vpack.c.bf16 %v6573_v30, %v6568_v54  ;;  %v15917_v53 = vpop.f32.mrb[178].mxu0 }
 0xc36   :  { %v6583_v51 = vadd.f32 %v15917_v53, %v13063_v21  ;;  %v6577_v1 = vpop.f32.mrb[179].mxu0 }
 0xc37   :  { %v6578_v60 = vadd.f32 %v13063_v21, %v6577_v1  ;;  %17622 = vmatprep.subr.bf16.mxu0 %v17621_v40 }
 0xc38   :  { %17624 = vmatpush3.bf16.msra.mxu0 %v17621_v40 }
 0xc39   :  { %v17625_v19 = vpack.c.bf16 %v6583_v51, %v6578_v60  ;;  %v15920_v4 = vpop.f32.mrb[180].mxu0  ;;  %v12936_v51 = vld [vmem:[%s24925_s13 + $0x2] ss:$0 sm:$0xff] }
 0xc3a   :  { %v6593_v16 = vadd.f32 %v15920_v4, %v13063_v21  ;;  %v6587_v28 = vpop.f32.mrb[181].mxu0 }
 0xc3b   :  { %v6588_v17 = vadd.f32 %v13063_v21, %v6587_v28  ;;  %17626 = vmatprep.subr.bf16.mxu0 %v17625_v19 }
 0xc3c   :  { %17628 = vmatpush3.bf16.msra.mxu0 %v17625_v19 }
 0xc3d   :  { %v17629_v44 = vpack.c.bf16 %v6593_v16, %v6588_v17  ;;  %v15923_v38 = vpop.f32.mrb[182].mxu0 }
 0xc3e   :  { %v6603_v26 = vadd.f32 %v15923_v38, %v13063_v21  ;;  %v6597_v33 = vpop.f32.mrb[183].mxu0 }
 0xc3f   :  { %v6598_v55 = vadd.f32 %v13063_v21, %v6597_v33  ;;  %17630 = vmatprep.subr.bf16.mxu0 %v17629_v44 }
 0xc40   :  { %17632 = vmatpush3.bf16.msra.mxu0 %v17629_v44 }
 0xc41   :  { %v17633_v54 = vpack.c.bf16 %v6603_v26, %v6598_v55  ;;  %v15926_v30 = vpop.f32.mrb[184].mxu0 }
 0xc42   :  { %v6613_v27 = vadd.f32 %v15926_v30, %v13063_v21  ;;  %v6607_v53 = vpop.f32.mrb[185].mxu0 }
 0xc43   :  { %v6608_v1 = vadd.f32 %v13063_v21, %v6607_v53  ;;  %17634 = vmatprep.subr.bf16.mxu0 %v17633_v54 }
 0xc44   :  { %17636 = vmatpush3.bf16.msra.mxu0 %v17633_v54 }
 0xc45   :  { %v17637_v40 = vpack.c.bf16 %v6613_v27, %v6608_v1 }
 0xc47   :  { %17638 = vmatprep.subr.bf16.mxu0 %v17637_v40 }
 0xc48   :  { %17640 = vmatpush3.bf16.msra.mxu0 %v17637_v40 }
 0xc4c   :  { %v15647_v60 = vpop.f32.mrb[102].mxu1 }
 0xc4d   :  { %v5316_v19 = vadd.f32 %v15647_v60, %v12936_v51  ;;  %v5310_v4 = vpop.f32.mrb[103].mxu1 }
 0xc4e   :  { %v5311_v16 = vadd.f32 %v12936_v51, %v5310_v4 }
 0xc50   :  { %v17481_v28 = vpack.c.bf16 %v5316_v19, %v5311_v16  ;;  %v15650_v17 = vpop.f32.mrb[104].mxu1 }
 0xc51   :  { %v5326_v44 = vadd.f32 %v15650_v17, %v12936_v51  ;;  %v5320_v38 = vpop.f32.mrb[105].mxu1 }
 0xc52   :  { %v5321_v26 = vadd.f32 %v12936_v51, %v5320_v38  ;;  %17482 = vmatprep.subr.bf16.mxu1 %v17481_v28 }
 0xc53   :  { %17484 = vmatpush3.bf16.msra.mxu1 %v17481_v28 }
 0xc54   :  { %v17485_v21 = vpack.c.bf16 %v5326_v44, %v5321_v26  ;;  %v15653_v33 = vpop.f32.mrb[106].mxu1 }
 0xc55   :  { %v5336_v55 = vadd.f32 %v15653_v33, %v12936_v51  ;;  %v5330_v54 = vpop.f32.mrb[107].mxu1 }
 0xc56   :  { %v5331_v30 = vadd.f32 %v12936_v51, %v5330_v54  ;;  %17486 = vmatprep.subr.bf16.mxu1 %v17485_v21 }
 0xc57   :  { %17488 = vmatpush3.bf16.msra.mxu1 %v17485_v21 }
 0xc58   :  { %v17489_v27 = vpack.c.bf16 %v5336_v55, %v5331_v30  ;;  %v15656_v53 = vpop.f32.mrb[108].mxu1 }
 0xc59   :  { %v5346_v1 = vadd.f32 %v15656_v53, %v12936_v51  ;;  %v5340_v40 = vpop.f32.mrb[109].mxu1 }
 0xc5a   :  { %v5341_v60 = vadd.f32 %v12936_v51, %v5340_v40  ;;  %17490 = vmatprep.subr.bf16.mxu1 %v17489_v27 }
 0xc5b   :  { %17492 = vmatpush3.bf16.msra.mxu1 %v17489_v27 }
 0xc5c   :  { %v17493_v19 = vpack.c.bf16 %v5346_v1, %v5341_v60  ;;  %v15659_v4 = vpop.f32.mrb[110].mxu1 }
 0xc5d   :  { %v5356_v16 = vadd.f32 %v15659_v4, %v12936_v51  ;;  %v5350_v17 = vpop.f32.mrb[111].mxu1 }
 0xc5e   :  { %v5351_v38 = vadd.f32 %v12936_v51, %v5350_v17  ;;  %17494 = vmatprep.subr.bf16.mxu1 %v17493_v19 }
 0xc5f   :  { %17496 = vmatpush3.bf16.msra.mxu1 %v17493_v19 }
 0xc60   :  { %v17497_v28 = vpack.c.bf16 %v5356_v16, %v5351_v38  ;;  %v15662_v44 = vpop.f32.mrb[112].mxu1 }
 0xc61   :  { %v5366_v26 = vadd.f32 %v15662_v44, %v12936_v51  ;;  %v5360_v33 = vpop.f32.mrb[113].mxu1 }
 0xc62   :  { %v5361_v54 = vadd.f32 %v12936_v51, %v5360_v33  ;;  %17498 = vmatprep.subr.bf16.mxu1 %v17497_v28 }
 0xc63   :  { %17500 = vmatpush3.bf16.msra.mxu1 %v17497_v28 }
 0xc64   :  { %v17501_v21 = vpack.c.bf16 %v5366_v26, %v5361_v54  ;;  %v15665_v55 = vpop.f32.mrb[114].mxu1 }
 0xc65   :  { %v5376_v30 = vadd.f32 %v15665_v55, %v12936_v51  ;;  %v5370_v53 = vpop.f32.mrb[115].mxu1 }
 0xc66   :  { %v5371_v40 = vadd.f32 %v12936_v51, %v5370_v53  ;;  %17502 = vmatprep.subr.bf16.mxu1 %v17501_v21 }
 0xc67   :  { %17504 = vmatpush3.bf16.msra.mxu1 %v17501_v21 }
 0xc68   :  { %v17505_v27 = vpack.c.bf16 %v5376_v30, %v5371_v40  ;;  %v15668_v1 = vpop.f32.mrb[116].mxu1 }
 0xc69   :  { %v5386_v60 = vadd.f32 %v15668_v1, %v12936_v51  ;;  %v5380_v4 = vpop.f32.mrb[117].mxu1 }
 0xc6a   :  { %v5381_v17 = vadd.f32 %v12936_v51, %v5380_v4  ;;  %17506 = vmatprep.subr.bf16.mxu1 %v17505_v27 }
 0xc6b   :  { %17508 = vmatpush3.bf16.msra.mxu1 %v17505_v27 }
 0xc6c   :  { %v17509_v19 = vpack.c.bf16 %v5386_v60, %v5381_v17 }
 0xc6e   :  { %17510 = vmatprep.subr.bf16.mxu1 %v17509_v19 }
 0xc6f   :  { %17512 = vmatpush3.bf16.msra.mxu1 %v17509_v19 }
 0xc73   :  { %v5633_v16 = vpop.xlane.xlu1 %5632 }
 0xc74   :  { %v5663_v38 = vsub.f32 %v22570_v9, %v5633_v16  ;;  %v5631_v28 = vpop.xlane.xlu0 %5630 }
 0xc75   :  { %v5662_v44 = vsub.f32 %v22573_v24, %v5631_v28 }
 0xc76   :  { %v5680_v26 = vmul.f32 1.442695, %v5663_v38 }
 0xc77   :  { %v5678_v33 = vmul.f32 1.442695, %v5662_v44  ;;  %v5637_v54 = vpop.xlane.xlu1 %5636 }
 0xc78   :  { %18559 = vpow2.f32 %v5680_v26  ;;  %v5665_v21 = vsub.f32 %v22576_v11, %v5637_v54  ;;  %v5635_v55 = vpop.xlane.xlu0 %5634 }
 0xc79   :  { %18561 = vpow2.f32 %v5678_v33  ;;  %v5664_v51 = vsub.f32 %v22579_v56, %v5635_v55 }
 0xc7a   :  { %v5684_v30 = vmul.f32 1.442695, %v5665_v21 }
 0xc7b   :  { %v5682_v53 = vmul.f32 1.442695, %v5664_v51  ;;  %v5641_v40 = vpop.xlane.xlu1 %5640 }
 0xc7c   :  { %18563 = vpow2.f32 %v5684_v30  ;;  %v5667_v27 = vsub.f32 %v22582_v42, %v5641_v40  ;;  %v5639_v9 = vpop.xlane.xlu0 %5638 }
 0xc7d   :  { %18565 = vpow2.f32 %v5682_v53  ;;  %v5666_v24 = vsub.f32 %v22585_v58, %v5639_v9 }
 0xc7e   :  { %v5688_v1 = vmul.f32 1.442695, %v5667_v27 }
 0xc7f   :  { %v5686_v60 = vmul.f32 1.442695, %v5666_v24  ;;  %v5645_v4 = vpop.xlane.xlu1 %5644 }
 0xc80   :  { %18567 = vpow2.f32 %v5688_v1  ;;  %v5669_v11 = vsub.f32 %v22588_v45, %v5645_v4  ;;  %v5643_v17 = vpop.xlane.xlu0 %5642 }
 0xc81   :  { %18569 = vpow2.f32 %v5686_v60  ;;  %v5668_v56 = vsub.f32 %v22591_v48, %v5643_v17 }
 0xc82   :  { %v22684_v19 = vpop.eup %18559  ;;  %v5692_v16 = vmul.f32 1.442695, %v5669_v11 }
 0xc83   :  { %v22686_v38 = vpop.eup %18561  ;;  %v5690_v42 = vmul.f32 1.442695, %v5668_v56  ;;  %v5649_v28 = vpop.xlane.xlu1 %5648  ;;  %5712 = vadd.xlane.f32.xlu1 %v22684_v19 }
 0xc84   :  { %18571 = vpow2.f32 %v5692_v16  ;;  %v5671_v58 = vsub.f32 %v22594_v43, %v5649_v28  ;;  %v5647_v44 = vpop.xlane.xlu0 %5646  ;;  %5710 = vadd.xlane.f32.xlu0 %v22686_v38 }
 0xc85   :  { %18573 = vpow2.f32 %v5690_v42  ;;  %v5670_v45 = vsub.f32 %v22597_v3, %v5647_v44 }
 0xc86   :  { %v22692_v26 = vpop.eup %18563  ;;  %v5696_v48 = vmul.f32 1.442695, %v5671_v58 }
 0xc87   :  { %v22694_v33 = vpop.eup %18565  ;;  %v5694_v54 = vmul.f32 1.442695, %v5670_v45  ;;  %v5653_v21 = vpop.xlane.xlu1 %5652  ;;  %5716 = vadd.xlane.f32.xlu1 %v22692_v26 }
 0xc88   :  { %18575 = vpow2.f32 %v5696_v48  ;;  %v5673_v55 = vsub.f32 %v22600_v37, %v5653_v21  ;;  %v5651_v51 = vpop.xlane.xlu0 %5650  ;;  %5714 = vadd.xlane.f32.xlu0 %v22694_v33 }
 0xc89   :  { %18577 = vpow2.f32 %v5694_v54  ;;  %v5672_v43 = vsub.f32 %v22603_v41, %v5651_v51  ;;  %v12985_v54 = vld [vmem:[%s24927_s14 + $0x10] sm:$0xff] }
 0xc8a   :  { %v22700_v30 = vpop.eup %18567  ;;  %v5700_v3 = vmul.f32 1.442695, %v5673_v55  ;;  %15781 = vmatprep.subr.mxu1 %v12985_v54 }
 0xc8b   :  { %v22702_v53 = vpop.eup %18569  ;;  %v5698_v40 = vmul.f32 1.442695, %v5672_v43  ;;  %v5657_v27 = vpop.xlane.xlu1 %5656  ;;  %5720 = vadd.xlane.f32.xlu1 %v22700_v30 }
 0xc8c   :  { %18579 = vpow2.f32 %v5700_v3  ;;  %v5675_v9 = vsub.f32 %v22606_v39, %v5657_v27  ;;  %v5655_v24 = vpop.xlane.xlu0 %5654  ;;  %5718 = vadd.xlane.f32.xlu0 %v22702_v53 }
 0xc8d   :  { %18581 = vpow2.f32 %v5698_v40  ;;  %v5674_v37 = vsub.f32 %v22609_v15, %v5655_v24 }
 0xc8e   :  { %v22708_v1 = vpop.eup %18571  ;;  %v5704_v41 = vmul.f32 1.442695, %v5675_v9 }
 0xc8f   :  { %v22710_v60 = vpop.eup %18573  ;;  %v5702_v4 = vmul.f32 1.442695, %v5674_v37  ;;  %5724 = vadd.xlane.f32.xlu1 %v22708_v1  ;;  %v5661_v11 = vpop.xlane.xlu1 %5660 }
 0xc90   :  { %18583 = vpow2.f32 %v5704_v41  ;;  %v5677_v17 = vsub.f32 %v22612_v0, %v5661_v11  ;;  %5722 = vadd.xlane.f32.xlu0 %v22710_v60  ;;  %v5659_v39 = vpop.xlane.xlu0 %5658 }
 0xc91   :  { %18585 = vpow2.f32 %v5702_v4  ;;  %v5676_v56 = vsub.f32 %v22615_v36, %v5659_v39 }
 0xc92   :  { %v22716_v16 = vpop.eup %18575  ;;  %v5708_v15 = vmul.f32 1.442695, %v5677_v17 }
 0xc93   :  { %v22718_v42 = vpop.eup %18577  ;;  %v5706_v28 = vmul.f32 1.442695, %v5676_v56  ;;  %5728 = vadd.xlane.f32.xlu1 %v22716_v16 }
 0xc94   :  { %18587 = vpow2.f32 %v5708_v15  ;;  %5726 = vadd.xlane.f32.xlu0 %v22718_v42 }
 0xc95   :  { %18589 = vpow2.f32 %v5706_v28 }
 0xc96   :  { %v22722_v58 = vpop.eup %18579 }
 0xc97   :  { %v22724_v0 = vpop.eup %18581  ;;  %5732 = vadd.xlane.f32.xlu1 %v22722_v58 }
 0xc98   :  { %5730 = vadd.xlane.f32.xlu0 %v22724_v0 }
 0xc9a   :  { %v22728_v36 = vpop.eup %18583 }
 0xc9b   :  { %v22730_v44 = vpop.eup %18585  ;;  %5736 = vadd.xlane.f32.xlu1 %v22728_v36 }
 0xc9c   :  { %5734 = vadd.xlane.f32.xlu0 %v22730_v44 }
 0xc9e   :  { %v22734_v45 = vpop.eup %18587 }
 0xc9f   :  { %v22736_v48 = vpop.eup %18589  ;;  %5740 = vadd.xlane.f32.xlu1 %v22734_v45 }
 0xca0   :  { %5738 = vadd.xlane.f32.xlu0 %v22736_v48 }
 0xd10   :  { %v5713_v21 = vpop.xlane.xlu1 %5712 }
 0xd11   :  { %18591 = vrcp.f32 %v5713_v21  ;;  %v5711_v55 = vpop.xlane.xlu0 %5710 }
 0xd12   :  { %18593 = vrcp.f32 %v5711_v55 }
 0xd14   :  { %v5717_v51 = vpop.xlane.xlu1 %5716 }
 0xd15   :  { %18595 = vrcp.f32 %v5717_v51  ;;  %v5715_v43 = vpop.xlane.xlu0 %5714 }
 0xd16   :  { %18597 = vrcp.f32 %v5715_v43 }
 0xd18   :  { %v5721_v3 = vpop.xlane.xlu1 %5720 }
 0xd19   :  { %18599 = vrcp.f32 %v5721_v3  ;;  %v5719_v40 = vpop.xlane.xlu0 %5718 }
 0xd1a   :  { %18601 = vrcp.f32 %v5719_v40 }
 0xd1b   :  { %v18592_v27 = vpop.eup %18591 }
 0xd1c   :  { %v18594_v9 = vpop.eup %18593  ;;  %v5725_v24 = vpop.xlane.xlu1 %5724  ;;  %v5759_v4 = vmul.f32 %v18592_v27, %v22684_v19 }
 0xd1d   :  { %18603 = vrcp.f32 %v5725_v24  ;;  %v5723_v37 = vpop.xlane.xlu0 %5722  ;;  %v5758_v41 = vmul.f32 %v18594_v9, %v22686_v38 }
 0xd1e   :  { %18605 = vrcp.f32 %v5723_v37 }
 0xd1f   :  { %v18596_v11 = vpop.eup %18595  ;;  %15757 = vmatprep.mubr.f32.mxu1 %v5758_v41 }
 0xd20   :  { %v18598_v17 = vpop.eup %18597  ;;  %v5729_v39 = vpop.xlane.xlu1 %5728  ;;  %15758 = vmatmul.mubr.f32.vlgmr.msra.gmra.mrb[118].mxu1 %v5759_v4  ;;  %v5761_v28 = vmul.f32 %v18596_v11, %v22692_v26 }
 0xd21   :  { %18607 = vrcp.f32 %v5729_v39  ;;  %v5727_v56 = vpop.xlane.xlu0 %5726  ;;  %v5760_v15 = vmul.f32 %v18598_v17, %v22694_v33  ;;  %15782 = vmatpush3.msra.mxu1 %v12985_v54 }
 0xd22   :  { %18609 = vrcp.f32 %v5727_v56 }
 0xd23   :  { %v18600_v21 = vpop.eup %18599  ;;  %15760 = vmatprep.mubr.f32.mxu1 %v5760_v15 }
 0xd24   :  { %v18602_v55 = vpop.eup %18601  ;;  %v5733_v38 = vpop.xlane.xlu1 %5732  ;;  %15761 = vmatmul.mubr.f32.gmra.mrb[120].mxu1 %v5761_v28  ;;  %v5763_v43 = vmul.f32 %v18600_v21, %v22700_v30 }
 0xd25   :  { %18611 = vrcp.f32 %v5733_v38  ;;  %v5731_v19 = vpop.xlane.xlu0 %5730  ;;  %v5762_v51 = vmul.f32 %v18602_v55, %v22702_v53 }
 0xd26   :  { %18613 = vrcp.f32 %v5731_v19  ;;  %v13032_v19 = vld [vmem:[%s24922_s9 + $0xe0] sm:$0xff] }
 0xd27   :  { %v18604_v3 = vpop.eup %18603  ;;  %15763 = vmatprep.mubr.f32.mxu1 %v5762_v51  ;;  %v13033_v51 = vld [vmem:[%s24922_s9 + $0xe8] sm:$0xff] }
 0xd28   :  { %v18606_v40 = vpop.eup %18605  ;;  %v5737_v33 = vpop.xlane.xlu1 %5736  ;;  %15764 = vmatmul.mubr.f32.gmra.mrb[122].mxu1 %v5763_v43  ;;  %v5765_v27 = vmul.f32 %v18604_v3, %v22708_v1 }
 0xd29   :  { %18615 = vrcp.f32 %v5737_v33  ;;  %v5735_v54 = vpop.xlane.xlu0 %5734  ;;  %v5764_v26 = vmul.f32 %v18606_v40, %v22710_v60  ;;  %v17537_v40 = vpack.c.bf16 %v13033_v51, %v13032_v19  ;;  %v13034_v33 = vld [vmem:[%s24922_s9 + $0xf0] sm:$0xff] }
 0xd2a   :  { %18617 = vrcp.f32 %v5735_v54  ;;  %v13035_v54 = vld [vmem:[%s24922_s9 + $0xf8] sm:$0xff] }
 0xd2b   :  { %v18608_v9 = vpop.eup %18607  ;;  %15766 = vmatprep.mubr.f32.mxu1 %v5764_v26 }
 0xd2c   :  { %v18610_v24 = vpop.eup %18609  ;;  %v5741_v37 = vpop.xlane.xlu1 %5740  ;;  %15767 = vmatmul.mubr.f32.gmra.mrb[124].mxu1 %v5765_v27  ;;  %v5767_v41 = vmul.f32 %v18608_v9, %v22716_v16  ;;  %v17541_v9 = vpack.c.bf16 %v13035_v54, %v13034_v33 }
 0xd2d   :  { %18619 = vrcp.f32 %v5741_v37  ;;  %v5739_v53 = vpop.xlane.xlu0 %5738  ;;  %v5766_v30 = vmul.f32 %v18610_v24, %v22718_v42 }
 0xd2e   :  { %18621 = vrcp.f32 %v5739_v53 }
 0xd2f   :  { %v18612_v4 = vpop.eup %18611  ;;  %15769 = vmatprep.mubr.f32.mxu1 %v5766_v30 }
 0xd30   :  { %v18614_v11 = vpop.eup %18613  ;;  %15770 = vmatmul.mubr.f32.gmra.mrb[126].mxu1 %v5767_v41  ;;  %v5769_v1 = vmul.f32 %v18612_v4, %v22722_v58  ;;  %v13028_v58 = vld [vmem:[%s24922_s9 + $0xc0] sm:$0xff] }
 0xd31   :  { %v5768_v60 = vmul.f32 %v18614_v11, %v22724_v0  ;;  %v13029_v0 = vld [vmem:[%s24922_s9 + $0xc8] sm:$0xff] }
 0xd33   :  { %v18616_v17 = vpop.eup %18615  ;;  %15772 = vmatprep.mubr.f32.mxu1 %v5768_v60 }
 0xd34   :  { %v18618_v39 = vpop.eup %18617  ;;  %15773 = vmatmul.mubr.f32.gmra.mrb[128].mxu1 %v5769_v1  ;;  %v5771_v15 = vmul.f32 %v18616_v17, %v22728_v36  ;;  %v13030_v36 = vld [vmem:[%s24922_s9 + $0xd0] sm:$0xff] }
 0xd35   :  { %v5770_v56 = vmul.f32 %v18618_v39, %v22730_v44  ;;  %v17529_v44 = vpack.c.bf16 %v13029_v0, %v13028_v58  ;;  %v6214_v39 = vadd.f32 %v22621_v12, %v22626_v10 }
 0xd37   :  { %v18620_v42 = vpop.eup %18619  ;;  %15775 = vmatprep.mubr.f32.mxu1 %v5770_v56  ;;  %17530 = vmatprep.subr.bf16.mxu1 %v17529_v44  ;;  %v13037_v56 = vld [vmem:[%s24926_s12 + $0x3] ss:$0 sm:$0xff] }
 0xd38   :  { %v18622_v28 = vpop.eup %18621  ;;  %15776 = vmatmul.mubr.f32.gmra.mrb[130].mxu1 %v5771_v15  ;;  %v5773_v21 = vmul.f32 %v18620_v42, %v22734_v45  ;;  %v13031_v45 = vld [vmem:[%s24922_s9 + $0xd8] sm:$0xff] }
 0xd39   :  { %v5772_v16 = vmul.f32 %v18622_v28, %v22736_v48  ;;  %v17533_v38 = vpack.c.bf16 %v13031_v45, %v13030_v36 }
 0xd3b   :  { %15778 = vmatprep.mubr.f32.mxu1 %v5772_v16 }
 0xd3c   :  { %15779 = vmatmul.mubr.f32.gmra.mrb[132].mxu1 %v5773_v21 }
 0xdf3   :  { %v15759_v48 = vpop.f32.mrb[118].mxu1 }
 0xdf4   :  { %v5840_v55 = vpop.f32.mrb[119].mxu1 }
 0xdf5   :  { %15783 = vmatprep.mubr.msk.f32.mxu1 %vm2967_vm10, %v5840_v55 }
 0xdf6   :  { %15784 = vmatmul.mubr.msk.f32.vlgmr.msra.gmra.mrb[86].mxu1 %vm2967_vm10, %v15759_v48 }
 0xdf7   :  { %17532 = vmatpush3.bf16.msra.mxu1 %v17529_v44  ;;  %v15762_v43 = vpop.f32.mrb[120].mxu1 }
 0xdf8   :  { %v5850_v3 = vpop.f32.mrb[121].mxu1  ;;  %17534 = vmatprep.subr.bf16.mxu1 %v17533_v38 }
 0xdf9   :  { %15786 = vmatprep.mubr.msk.f32.mxu1 %vm2967_vm10, %v5850_v3 }
 0xdfa   :  { %15787 = vmatmul.mubr.msk.f32.gmra.mrb[88].mxu1 %vm2967_vm10, %v15762_v43 }
 0xdfb   :  { %v15765_v26 = vpop.f32.mrb[122].mxu1  ;;  %17536 = vmatpush3.bf16.msra.mxu1 %v17533_v38 }
 0xdfc   :  { %v5860_v27 = vpop.f32.mrb[123].mxu1  ;;  %17538 = vmatprep.subr.bf16.mxu1 %v17537_v40 }
 0xdfd   :  { %15789 = vmatprep.mubr.msk.f32.mxu1 %vm2967_vm10, %v5860_v27 }
 0xdfe   :  { %15790 = vmatmul.mubr.msk.f32.gmra.mrb[90].mxu1 %vm2967_vm10, %v15765_v26 }
 0xdff   :  { %v15768_v24 = vpop.f32.mrb[124].mxu1  ;;  %17540 = vmatpush3.bf16.msra.mxu1 %v17537_v40 }
 0xe00   :  { %v5870_v37 = vpop.f32.mrb[125].mxu1  ;;  %17542 = vmatprep.subr.bf16.mxu1 %v17541_v9 }
 0xe01   :  { %15792 = vmatprep.mubr.msk.f32.mxu1 %vm2967_vm10, %v5870_v37 }
 0xe02   :  { %15793 = vmatmul.mubr.msk.f32.gmra.mrb[92].mxu1 %vm2967_vm10, %v15768_v24 }
 0xe03   :  { %v15771_v53 = vpop.f32.mrb[126].mxu1  ;;  %17544 = vmatpush3.bf16.msra.mxu1 %v17541_v9 }
 0xe04   :  { %v5880_v30 = vpop.f32.mrb[127].mxu1 }
 0xe05   :  { %15795 = vmatprep.mubr.msk.f32.mxu1 %vm2967_vm10, %v5880_v30 }
 0xe06   :  { %15796 = vmatmul.mubr.msk.f32.gmra.mrb[94].mxu1 %vm2967_vm10, %v15771_v53 }
 0xe07   :  { %v15774_v41 = vpop.f32.mrb[128].mxu1 }
 0xe08   :  { %v5890_v4 = vpop.f32.mrb[129].mxu1 }
 0xe09   :  { %15798 = vmatprep.mubr.msk.f32.mxu1 %vm2967_vm10, %v5890_v4 }
 0xe0a   :  { %15799 = vmatmul.mubr.msk.f32.gmra.mrb[96].mxu1 %vm2967_vm10, %v15774_v41 }
 0xe0b   :  { %v15777_v11 = vpop.f32.mrb[130].mxu1 }
 0xe0c   :  { %v5900_v60 = vpop.f32.mrb[131].mxu1 }
 0xe0d   :  { %15801 = vmatprep.mubr.msk.f32.mxu1 %vm2967_vm10, %v5900_v60 }
 0xe0e   :  { %15802 = vmatmul.mubr.msk.f32.gmra.mrb[98].mxu1 %vm2967_vm10, %v15777_v11 }
 0xe0f   :  { %v15780_v1 = vpop.f32.mrb[132].mxu1 }
 0xe10   :  { %v5910_v17 = vpop.f32.mrb[133].mxu1 }
 0xe11   :  { %15804 = vmatprep.mubr.msk.f32.mxu1 %vm2967_vm10, %v5910_v17 }
 0xe12   :  { %15805 = vmatmul.mubr.msk.f32.gmra.mrb[100].mxu1 %vm2967_vm10, %v15780_v1 }
 0xe13   :  { %15863 = vmatprep.mubr.msk.f32.mxu1 %vm2029_vm5, %v21351_v35 }
 0xe16   :  { %15864 = vmatmul.mubr.msk.f32.vlgmr.msra.gmra.mrb[134].mxu1 %vm2029_vm5, %v21354_v34 }
 0xe17   :  { %15866 = vmatprep.mubr.msk.f32.mxu1 %vm2029_vm5, %v21371_v46 }
 0xe1a   :  { %15867 = vmatmul.mubr.msk.f32.gmra.mrb[136].mxu1 %vm2029_vm5, %v21374_v7 }
 0xe1b   :  { %15869 = vmatprep.mubr.msk.f32.mxu1 %vm2029_vm5, %v21391_v14 }
 0xe1e   :  { %15870 = vmatmul.mubr.msk.f32.gmra.mrb[138].mxu1 %vm2029_vm5, %v21394_v6 }
 0xe1f   :  { %15872 = vmatprep.mubr.msk.f32.mxu1 %vm2029_vm5, %v21405_v20 }
 0xe22   :  { %15873 = vmatmul.mubr.msk.f32.gmra.mrb[140].mxu1 %vm2029_vm5, %v21408_v2 }
 0xe23   :  { %15875 = vmatprep.mubr.msk.f32.mxu1 %vm2029_vm5, %v21419_v23 }
 0xe26   :  { %15876 = vmatmul.mubr.msk.f32.gmra.mrb[142].mxu1 %vm2029_vm5, %v21422_v13 }
 0xe27   :  { %15878 = vmatprep.mubr.msk.f32.mxu1 %vm2029_vm5, %v21433_v57 }
 0xe2a   :  { %15879 = vmatmul.mubr.msk.f32.gmra.mrb[144].mxu1 %vm2029_vm5, %v21436_v47 }
 0xe2b   :  { %15881 = vmatprep.mubr.msk.f32.mxu1 %vm2029_vm5, %v21447_v31 }
 0xe2e   :  { %15882 = vmatmul.mubr.msk.f32.gmra.mrb[146].mxu1 %vm2029_vm5, %v21450_v49 }
 0xe2f   :  { %15884 = vmatprep.mubr.msk.f32.mxu1 %vm2029_vm5, %v21461_v5 }
 0xe32   :  { %15885 = vmatmul.mubr.msk.f32.gmra.mrb[148].mxu1 %vm2029_vm5, %v21464_v25 }
 0xe33   :  { %15959 = vmatprep.mubr.msk.f32.mxu1 %vm2967_vm10, %v6214_v39 }
 0xee9   :  { %v15865_v15 = vpop.f32.mrb[134].mxu1 }
 0xeea   :  { %v6381_v42 = vadd.f32 %v15865_v15, %v13037_v56  ;;  %v6375_v28 = vpop.f32.mrb[135].mxu1 }
 0xeeb   :  { %v6376_v16 = vadd.f32 %v13037_v56, %v6375_v28 }
 0xeed   :  { %v17561_v21 = vpack.c.bf16 %v6381_v42, %v6376_v16  ;;  %v15868_v58 = vpop.f32.mrb[136].mxu1 }
 0xeee   :  { %v6391_v0 = vadd.f32 %v15868_v58, %v13037_v56  ;;  %v6385_v44 = vpop.f32.mrb[137].mxu1 }
 0xeef   :  { %v6386_v36 = vadd.f32 %v13037_v56, %v6385_v44  ;;  %17563 = vmatprep.subr.msk.bf16.mxu1 %vm21584_vm4, %v17561_v21 }
 0xef0   :  { %17566 = vmatpush3.bf16.xpose.msk.msra.mxu1 %vm21584_vm4, %v17561_v21 }
 0xef1   :  { %v17567_v12 = vpack.c.bf16 %v6391_v0, %v6386_v36  ;;  %v15871_v10 = vpop.f32.mrb[138].mxu1 }
 0xef2   :  { %v6401_v45 = vadd.f32 %v15871_v10, %v13037_v56  ;;  %v6395_v48 = vpop.f32.mrb[139].mxu1 }
 0xef3   :  { %v6396_v55 = vadd.f32 %v13037_v56, %v6395_v48  ;;  %17569 = vmatprep.subr.msk.bf16.mxu1 %vm21584_vm4, %v17567_v12 }
 0xef5   :  { %v17573_v38 = vpack.c.bf16 %v6401_v45, %v6396_v55  ;;  %v15874_v19 = vpop.f32.mrb[140].mxu1 }
 0xef6   :  { %v6411_v51 = vadd.f32 %v15874_v19, %v13037_v56  ;;  %v6405_v43 = vpop.f32.mrb[141].mxu1 }
 0xef7   :  { %v6406_v3 = vadd.f32 %v13037_v56, %v6405_v43 }
 0xef8   :  { %17572 = vmatpush3.bf16.xpose.msk.msra.mxu1 %vm21584_vm4, %v17567_v12 }
 0xef9   :  { %v17579_v40 = vpack.c.bf16 %v6411_v51, %v6406_v3  ;;  %v15877_v33 = vpop.f32.mrb[142].mxu1  ;;  %17575 = vmatprep.subr.msk.bf16.mxu1 %vm21584_vm4, %v17573_v38 }
 0xefa   :  { %v6421_v54 = vadd.f32 %v15877_v33, %v13037_v56  ;;  %v6415_v26 = vpop.f32.mrb[143].mxu1 }
 0xefb   :  { %v6416_v27 = vadd.f32 %v13037_v56, %v6415_v26 }
 0xefd   :  { %v17585_v9 = vpack.c.bf16 %v6421_v54, %v6416_v27  ;;  %v15880_v24 = vpop.f32.mrb[144].mxu1 }
 0xefe   :  { %v6431_v37 = vadd.f32 %v15880_v24, %v13037_v56  ;;  %v6425_v53 = vpop.f32.mrb[145].mxu1 }
 0xeff   :  { %v6426_v30 = vadd.f32 %v13037_v56, %v6425_v53 }
 0xf00   :  { %17578 = vmatpush3.bf16.xpose.msk.msra.mxu1 %vm21584_vm4, %v17573_v38 }
 0xf01   :  { %v17591_v41 = vpack.c.bf16 %v6431_v37, %v6426_v30  ;;  %v15883_v4 = vpop.f32.mrb[146].mxu1  ;;  %17581 = vmatprep.subr.msk.bf16.mxu1 %vm21584_vm4, %v17579_v40 }
 0xf02   :  { %v6441_v11 = vadd.f32 %v15883_v4, %v13037_v56  ;;  %v6435_v60 = vpop.f32.mrb[147].mxu1 }
 0xf03   :  { %v6436_v1 = vadd.f32 %v13037_v56, %v6435_v60 }
 0xf05   :  { %v17597_v17 = vpack.c.bf16 %v6441_v11, %v6436_v1  ;;  %v15886_v39 = vpop.f32.mrb[148].mxu1 }
 0xf06   :  { %v6451_v15 = vadd.f32 %v15886_v39, %v13037_v56  ;;  %v6445_v42 = vpop.f32.mrb[149].mxu1 }
 0xf07   :  { %v6446_v28 = vadd.f32 %v13037_v56, %v6445_v42 }
 0xf08   :  { %17584 = vmatpush3.bf16.xpose.msk.msra.mxu1 %vm21584_vm4, %v17579_v40 }
 0xf09   :  { %v17603_v16 = vpack.c.bf16 %v6451_v15, %v6446_v28  ;;  %17587 = vmatprep.subr.msk.bf16.mxu1 %vm21584_vm4, %v17585_v9 }
 0xf10   :  { %17590 = vmatpush3.bf16.xpose.msk.msra.mxu1 %vm21584_vm4, %v17585_v9 }
 0xf11   :  { %17593 = vmatprep.subr.msk.bf16.mxu1 %vm21584_vm4, %v17591_v41 }
 0xf18   :  { %17596 = vmatpush3.bf16.xpose.msk.msra.mxu1 %vm21584_vm4, %v17591_v41 }
 0xf19   :  { %17599 = vmatprep.subr.msk.bf16.mxu1 %vm21584_vm4, %v17597_v17 }
 0xf20   :  { %17602 = vmatpush3.bf16.xpose.msk.msra.mxu1 %vm21584_vm4, %v17597_v17 }
 0xf21   :  { %17605 = vmatprep.subr.msk.bf16.mxu1 %vm21584_vm4, %v17603_v16 }
 0xf28   :  { %17608 = vmatpush3.bf16.xpose.msk.msra.mxu1 %vm21584_vm4, %v17603_v16 }
 0xf2f   :  { %15960 = vmatmul.mubr.msk.f32.vlgmr.msra.gmra.mrb[150].mxu1 %vm2967_vm10, %v22624_v62  ;;  %v25277_v62 = vld [vmem:[#allocation50_spill] sm:$0xff] }
 0xf30   :  { %15962 = vmatprep.mubr.msk.f32.mxu1 %vm2967_vm10, %v22632_v59  ;;  %v25279_v59 = vld [vmem:[#allocation51_spill] sm:$0xff] }
 0xf33   :  { %15963 = vmatmul.mubr.msk.f32.gmra.mrb[152].mxu1 %vm2967_vm10, %v22629_v32  ;;  %v25278_v32 = vld [vmem:[#allocation40_spill] sm:$0xff] }
 0xf34   :  { %15965 = vmatprep.mubr.msk.f32.mxu1 %vm2967_vm10, %v22638_v8  ;;  %v25281_v8 = vld [vmem:[#allocation2_spill] sm:$0xff] }
 0xf37   :  { %15966 = vmatmul.mubr.msk.f32.gmra.mrb[154].mxu1 %vm2967_vm10, %v22635_v50  ;;  %v25280_v50 = vld [vmem:[#allocation7_spill] sm:$0xff] }
 0xf38   :  { %15968 = vmatprep.mubr.msk.f32.mxu1 %vm2967_vm10, %v22644_v22 }
 0xf3b   :  { %15969 = vmatmul.mubr.msk.f32.gmra.mrb[156].mxu1 %vm2967_vm10, %v22641_v63 }
 0xf3c   :  { %15971 = vmatprep.mubr.msk.f32.mxu1 %vm2967_vm10, %v22650_v29 }
 0xf3f   :  { %15972 = vmatmul.mubr.msk.f32.gmra.mrb[158].mxu1 %vm2967_vm10, %v22647_v61 }
 0xf40   :  { %15974 = vmatprep.mubr.msk.f32.mxu1 %vm2967_vm10, %v22656_v52 }
 0xf43   :  { %15975 = vmatmul.mubr.msk.f32.gmra.mrb[160].mxu1 %vm2967_vm10, %v25277_v62 }
 0xf44   :  { %15977 = vmatprep.mubr.msk.f32.mxu1 %vm2967_vm10, %v25278_v32 }
 0xf47   :  { %15978 = vmatmul.mubr.msk.f32.gmra.mrb[162].mxu1 %vm2967_vm10, %v25279_v59 }
 0xf48   :  { %15980 = vmatprep.mubr.msk.f32.mxu1 %vm2967_vm10, %v25280_v50 }
 0xf4b   :  { %15981 = vmatmul.mubr.msk.f32.gmra.mrb[164].mxu1 %vm2967_vm10, %v25281_v8 }
0x1002   :  { %v15961_v63 = vpop.f32.mrb[150].mxu1 }
0x1003   :  { %6859 = vmax.xlane.f32.xlu1 %v15961_v63  ;;  %v6778_v22 = vpop.f32.mrb[151].mxu1 }
0x1004   :  { %6857 = vmax.xlane.f32.xlu0 %v6778_v22 }
0x1006   :  { %v15964_v61 = vpop.f32.mrb[152].mxu1 }
0x1007   :  { %6863 = vmax.xlane.f32.xlu1 %v15964_v61  ;;  %v6788_v29 = vpop.f32.mrb[153].mxu1 }
0x1008   :  { %6861 = vmax.xlane.f32.xlu0 %v6788_v29 }
0x100a   :  { %v15967_v52 = vpop.f32.mrb[154].mxu1 }
0x100b   :  { %6867 = vmax.xlane.f32.xlu1 %v15967_v52  ;;  %v6798_v56 = vpop.f32.mrb[155].mxu1 }
0x100c   :  { %6865 = vmax.xlane.f32.xlu0 %v6798_v56 }
0x100e   :  { %v15970_v21 = vpop.f32.mrb[156].mxu1 }
0x100f   :  { %6871 = vmax.xlane.f32.xlu1 %v15970_v21  ;;  %v6808_v58 = vpop.f32.mrb[157].mxu1 }
0x1010   :  { %6869 = vmax.xlane.f32.xlu0 %v6808_v58 }
0x1012   :  { %v15973_v0 = vpop.f32.mrb[158].mxu1 }
0x1013   :  { %6875 = vmax.xlane.f32.xlu1 %v15973_v0  ;;  %v6818_v44 = vpop.f32.mrb[159].mxu1 }
0x1014   :  { %6873 = vmax.xlane.f32.xlu0 %v6818_v44 }
0x1016   :  { %v22899_v36 = vpop.f32.mrb[160].mxu1 }
0x1017   :  { %6879 = vmax.xlane.f32.xlu1 %v22899_v36  ;;  %v22902_v12 = vpop.f32.mrb[161].mxu1 }
0x1018   :  { %6877 = vmax.xlane.f32.xlu0 %v22902_v12 }
0x101a   :  { %v22905_v10 = vpop.f32.mrb[162].mxu1 }
0x101b   :  { %6883 = vmax.xlane.f32.xlu1 %v22905_v10  ;;  %v22908_v45 = vpop.f32.mrb[163].mxu1 }
0x101c   :  { %6881 = vmax.xlane.f32.xlu0 %v22908_v45 }
0x101e   :  { %v22911_v48 = vpop.f32.mrb[164].mxu1 }
0x101f   :  { %6887 = vmax.xlane.f32.xlu1 %v22911_v48  ;;  %v22914_v55 = vpop.f32.mrb[165].mxu1 }
0x1020   :  { %6885 = vmax.xlane.f32.xlu0 %v22914_v55 }
0x1090   :  { %v6860_v38 = vpop.xlane.xlu1 %6859 }
0x1091   :  { %v6890_v19 = vsub.f32 %v15961_v63, %v6860_v38  ;;  %v6858_v51 = vpop.xlane.xlu0 %6857 }
0x1092   :  { %v6889_v43 = vsub.f32 %v6778_v22, %v6858_v51 }
0x1093   :  { %v6907_v3 = vmul.f32 1.442695, %v6890_v19 }
0x1094   :  { %v6905_v40 = vmul.f32 1.442695, %v6889_v43  ;;  %v6864_v33 = vpop.xlane.xlu1 %6863 }
0x1095   :  { %18623 = vpow2.f32 %v6907_v3  ;;  %v6892_v54 = vsub.f32 %v15964_v61, %v6864_v33  ;;  %v6862_v26 = vpop.xlane.xlu0 %6861 }
0x1096   :  { %18625 = vpow2.f32 %v6905_v40  ;;  %v6891_v27 = vsub.f32 %v6788_v29, %v6862_v26 }
0x1097   :  { %v6911_v9 = vmul.f32 1.442695, %v6892_v54 }
0x1098   :  { %v6909_v24 = vmul.f32 1.442695, %v6891_v27  ;;  %v6868_v37 = vpop.xlane.xlu1 %6867 }
0x1099   :  { %18627 = vpow2.f32 %v6911_v9  ;;  %v6894_v53 = vsub.f32 %v15967_v52, %v6868_v37  ;;  %v6866_v30 = vpop.xlane.xlu0 %6865 }
0x109a   :  { %18629 = vpow2.f32 %v6909_v24  ;;  %v6893_v41 = vsub.f32 %v6798_v56, %v6866_v30 }
0x109b   :  { %v6915_v4 = vmul.f32 1.442695, %v6894_v53 }
0x109c   :  { %v6913_v11 = vmul.f32 1.442695, %v6893_v41  ;;  %v6872_v60 = vpop.xlane.xlu1 %6871 }
0x109d   :  { %18631 = vpow2.f32 %v6915_v4  ;;  %v6896_v1 = vsub.f32 %v15970_v21, %v6872_v60  ;;  %v6870_v17 = vpop.xlane.xlu0 %6869  ;;  %v13130_v60 = vld [vmem:[%s24919_s8 + $0x108] sm:$0xff] }
0x109e   :  { %18633 = vpow2.f32 %v6913_v11  ;;  %v6895_v39 = vsub.f32 %v6808_v58, %v6870_v17  ;;  %v13129_v11 = vld [vmem:[%s24919_s8 + $0x100] sm:$0xff] }
0x109f   :  { %v22917_v15 = vpop.eup %18623  ;;  %v6919_v42 = vmul.f32 1.442695, %v6896_v1  ;;  %v17641_v1 = vpack.c.bf16 %v13130_v60, %v13129_v11 }
0x10a0   :  { %v22919_v28 = vpop.eup %18625  ;;  %v6917_v16 = vmul.f32 1.442695, %v6895_v39  ;;  %v6876_v62 = vpop.xlane.xlu1 %6875  ;;  %6939 = vadd.xlane.f32.xlu1 %v22917_v15 }
0x10a1   :  { %18635 = vpow2.f32 %v6919_v42  ;;  %v6898_v32 = vsub.f32 %v15973_v0, %v6876_v62  ;;  %v6874_v59 = vpop.xlane.xlu0 %6873  ;;  %6937 = vadd.xlane.f32.xlu0 %v22919_v28  ;;  %17642 = vmatprep.subr.bf16.mxu0 %v17641_v1 }
0x10a2   :  { %18637 = vpow2.f32 %v6917_v16  ;;  %v6897_v50 = vsub.f32 %v6818_v44, %v6874_v59 }
0x10a3   :  { %v22923_v8 = vpop.eup %18627  ;;  %v6923_v63 = vmul.f32 1.442695, %v6898_v32 }
0x10a4   :  { %v22925_v22 = vpop.eup %18629  ;;  %v6921_v61 = vmul.f32 1.442695, %v6897_v50  ;;  %v6880_v29 = vpop.xlane.xlu1 %6879  ;;  %6943 = vadd.xlane.f32.xlu1 %v22923_v8  ;;  %v13131_v50 = vld [vmem:[%s24919_s8 + $0x110] sm:$0xff] }
0x10a5   :  { %18639 = vpow2.f32 %v6923_v63  ;;  %v6900_v52 = vsub.f32 %v22899_v36, %v6880_v29  ;;  %v6878_v56 = vpop.xlane.xlu0 %6877  ;;  %6941 = vadd.xlane.f32.xlu0 %v22925_v22  ;;  %v13132_v63 = vld [vmem:[%s24919_s8 + $0x118] sm:$0xff] }
0x10a6   :  { %18641 = vpow2.f32 %v6921_v61  ;;  %v6899_v21 = vsub.f32 %v22902_v12, %v6878_v56 }
0x10a7   :  { %v22931_v58 = vpop.eup %18631  ;;  %v6927_v0 = vmul.f32 1.442695, %v6900_v52 }
0x10a8   :  { %v22933_v44 = vpop.eup %18633  ;;  %v6925_v38 = vmul.f32 1.442695, %v6899_v21  ;;  %v6884_v19 = vpop.xlane.xlu1 %6883  ;;  %6947 = vadd.xlane.f32.xlu1 %v22931_v58 }
0x10a9   :  { %18643 = vpow2.f32 %v6927_v0  ;;  %v6902_v51 = vsub.f32 %v22905_v10, %v6884_v19  ;;  %v6882_v43 = vpop.xlane.xlu0 %6881  ;;  %6945 = vadd.xlane.f32.xlu0 %v22933_v44  ;;  %v17645_v0 = vpack.c.bf16 %v13132_v63, %v13131_v50  ;;  %v13133_v19 = vld [vmem:[%s24919_s8 + $0x120] sm:$0xff] }
0x10aa   :  { %18645 = vpow2.f32 %v6925_v38  ;;  %v6901_v36 = vsub.f32 %v22908_v45, %v6882_v43 }
0x10ab   :  { %v22939_v3 = vpop.eup %18635  ;;  %v6931_v12 = vmul.f32 1.442695, %v6902_v51  ;;  %v13134_v51 = vld [vmem:[%s24919_s8 + $0x128] sm:$0xff] }
0x10ac   :  { %v22941_v40 = vpop.eup %18637  ;;  %v6929_v33 = vmul.f32 1.442695, %v6901_v36  ;;  %6951 = vadd.xlane.f32.xlu1 %v22939_v3  ;;  %v6888_v54 = vpop.xlane.xlu1 %6887 }
0x10ad   :  { %18647 = vpow2.f32 %v6931_v12  ;;  %v6904_v26 = vsub.f32 %v22911_v48, %v6888_v54  ;;  %6949 = vadd.xlane.f32.xlu0 %v22941_v40  ;;  %v6886_v10 = vpop.xlane.xlu0 %6885 }
0x10ae   :  { %18649 = vpow2.f32 %v6929_v33  ;;  %v6903_v27 = vsub.f32 %v22914_v55, %v6886_v10  ;;  %v17649_v33 = vpack.c.bf16 %v13134_v51, %v13133_v19  ;;  %v13136_v10 = vld [vmem:[%s24919_s8 + $0x138] sm:$0xff] }
0x10af   :  { %v22947_v9 = vpop.eup %18639  ;;  %v6935_v45 = vmul.f32 1.442695, %v6904_v26  ;;  %v13135_v26 = vld [vmem:[%s24919_s8 + $0x130] sm:$0xff] }
0x10b0   :  { %v22949_v24 = vpop.eup %18641  ;;  %v6933_v37 = vmul.f32 1.442695, %v6903_v27  ;;  %6955 = vadd.xlane.f32.xlu1 %v22947_v9  ;;  %v17653_v11 = vpack.c.bf16 %v13136_v10, %v13135_v26  ;;  %v13183_v10 = vld [vmem:[%s24920_s10 + $0x110] sm:$0xff] }
0x10b1   :  { %18651 = vpow2.f32 %v6935_v45  ;;  %6953 = vadd.xlane.f32.xlu0 %v22949_v24 }
0x10b2   :  { %18653 = vpow2.f32 %v6933_v37 }
0x10b3   :  { %v22953_v53 = vpop.eup %18643 }
0x10b4   :  { %v22955_v48 = vpop.eup %18645  ;;  %6959 = vadd.xlane.f32.xlu1 %v22953_v53 }
0x10b5   :  { %6957 = vadd.xlane.f32.xlu0 %v22955_v48 }
0x10b7   :  { %v22959_v55 = vpop.eup %18647 }
0x10b8   :  { %v22961_v30 = vpop.eup %18649  ;;  %6963 = vadd.xlane.f32.xlu1 %v22959_v55 }
0x10b9   :  { %6961 = vadd.xlane.f32.xlu0 %v22961_v30 }
0x10bb   :  { %v22965_v41 = vpop.eup %18651 }
0x10bc   :  { %v22967_v4 = vpop.eup %18653  ;;  %6967 = vadd.xlane.f32.xlu1 %v22965_v41 }
0x10bd   :  { %6965 = vadd.xlane.f32.xlu0 %v22967_v4 }
0x112d   :  { %v6940_v17 = vpop.xlane.xlu1 %6939 }
0x112e   :  { %18655 = vrcp.f32 %v6940_v17  ;;  %v6938_v39 = vpop.xlane.xlu0 %6937  ;;  %v13156_v17 = vld [vmem:[%s24922_s9 + $0x108] sm:$0xff] }
0x112f   :  { %18657 = vrcp.f32 %v6938_v39 }
0x1131   :  { %v6944_v42 = vpop.xlane.xlu1 %6943 }
0x1132   :  { %18659 = vrcp.f32 %v6944_v42  ;;  %v6942_v16 = vpop.xlane.xlu0 %6941 }
0x1133   :  { %18661 = vrcp.f32 %v6942_v16 }
0x1135   :  { %v6948_v62 = vpop.xlane.xlu1 %6947 }
0x1136   :  { %18663 = vrcp.f32 %v6948_v62  ;;  %v6946_v32 = vpop.xlane.xlu0 %6945 }
0x1137   :  { %18665 = vrcp.f32 %v6946_v32 }
0x1138   :  { %v18656_v59 = vpop.eup %18655 }
0x1139   :  { %v18658_v61 = vpop.eup %18657  ;;  %v6952_v29 = vpop.xlane.xlu1 %6951  ;;  %v6986_v21 = vmul.f32 %v18656_v59, %v22917_v15 }
0x113a   :  { %18667 = vrcp.f32 %v6952_v29  ;;  %v6950_v52 = vpop.xlane.xlu0 %6949  ;;  %v6985_v56 = vmul.f32 %v18658_v61, %v22919_v28 }
0x113b   :  { %18669 = vrcp.f32 %v6950_v52 }
0x113c   :  { %v18660_v38 = vpop.eup %18659  ;;  %16015 = vmatprep.mubr.f32.mxu0 %v6985_v56 }
0x113d   :  { %v18662_v43 = vpop.eup %18661  ;;  %v6956_v36 = vpop.xlane.xlu1 %6955  ;;  %16016 = vmatmul.mubr.f32.vlgmr.msra.gmra.mrb[186].mxu0 %v6986_v21  ;;  %v6988_v15 = vmul.f32 %v18660_v38, %v22923_v8 }
0x113e   :  { %18671 = vrcp.f32 %v6956_v36  ;;  %17644 = vmatpush3.bf16.msra.mxu0 %v17641_v1  ;;  %v6954_v28 = vpop.xlane.xlu0 %6953  ;;  %v6987_v12 = vmul.f32 %v18662_v43, %v22925_v22  ;;  %v13155_v1 = vld [vmem:[%s24922_s9 + $0x100] sm:$0xff]  ;;  %v13161_v36 = vld [vmem:[%s24922_s9 + $0x130] sm:$0xff] }
0x113f   :  { %18673 = vrcp.f32 %v6954_v28  ;;  %17646 = vmatprep.subr.bf16.mxu0 %v17645_v0  ;;  %v17657_v62 = vpack.c.bf16 %v13156_v17, %v13155_v1  ;;  %v13162_v28 = vld [vmem:[%s24922_s9 + $0x138] sm:$0xff] }
0x1140   :  { %v18664_v54 = vpop.eup %18663  ;;  %16018 = vmatprep.mubr.f32.mxu0 %v6987_v12  ;;  %v17669_v12 = vpack.c.bf16 %v13162_v28, %v13161_v36 }
0x1141   :  { %v18666_v27 = vpop.eup %18665  ;;  %v6960_v45 = vpop.xlane.xlu1 %6959  ;;  %16019 = vmatmul.mubr.f32.gmra.mrb[188].mxu0 %v6988_v15  ;;  %v6990_v8 = vmul.f32 %v18664_v54, %v22931_v58  ;;  %v13112_v15 = vld [vmem:[%s24927_s14 + $0x18] sm:$0xff]  ;;  %v13182_v54 = vld [vmem:[%s24920_s10 + $0x108] sm:$0xff] }
0x1142   :  { %18675 = vrcp.f32 %v6960_v45  ;;  %v6958_v22 = vpop.xlane.xlu0 %6957  ;;  %v6989_v37 = vmul.f32 %v18666_v27, %v22933_v44  ;;  %17648 = vmatpush3.bf16.msra.mxu0 %v17645_v0  ;;  %16039 = vmatprep.subr.mxu1 %v13112_v15  ;;  %v13184_v27 = vld [vmem:[%s24920_s10 + $0x118] sm:$0xff] }
0x1143   :  { %18677 = vrcp.f32 %v6958_v22  ;;  %17650 = vmatprep.subr.bf16.mxu0 %v17649_v33  ;;  %16040 = vmatpush3.msra.mxu1 %v13112_v15 }
0x1144   :  { %v18668_v60 = vpop.eup %18667  ;;  %16021 = vmatprep.mubr.f32.mxu0 %v6989_v37  ;;  %v17677_v37 = vpack.c.bf16 %v13184_v27, %v13183_v10 }
0x1145   :  { %v18670_v39 = vpop.eup %18669  ;;  %v6964_v42 = vpop.xlane.xlu1 %6963  ;;  %16022 = vmatmul.mubr.f32.gmra.mrb[190].mxu0 %v6990_v8  ;;  %v6992_v58 = vmul.f32 %v18668_v60, %v22939_v3  ;;  %v13185_v8 = vld [vmem:[%s24920_s10 + $0x120] sm:$0xff] }
0x1146   :  { %18679 = vrcp.f32 %v6964_v42  ;;  %v6962_v44 = vpop.xlane.xlu0 %6961  ;;  %v6991_v16 = vmul.f32 %v18670_v39, %v22941_v40  ;;  %17652 = vmatpush3.bf16.msra.mxu0 %v17649_v33  ;;  %v13181_v33 = vld [vmem:[%s24920_s10 + $0x100] sm:$0xff]  ;;  %v13187_v39 = vld [vmem:[%s24920_s10 + $0x130] sm:$0xff]  ;;  %v13188_v42 = vld [vmem:[%s24920_s10 + $0x138] sm:$0xff] }
0x1147   :  { %18681 = vrcp.f32 %v6962_v44  ;;  %17654 = vmatprep.subr.bf16.mxu0 %v17653_v11  ;;  %v17673_v26 = vpack.c.bf16 %v13182_v54, %v13181_v33 }
0x1148   :  { %v18672_v32 = vpop.eup %18671  ;;  %16024 = vmatprep.mubr.f32.mxu0 %v6991_v16 }
0x1149   :  { %v18674_v59 = vpop.eup %18673  ;;  %v6968_v50 = vpop.xlane.xlu1 %6967  ;;  %16025 = vmatmul.mubr.f32.gmra.mrb[192].mxu0 %v6992_v58  ;;  %v6994_v29 = vmul.f32 %v18672_v32, %v22947_v9  ;;  %17674 = vmatprep.subr.bf16.mxu1 %v17673_v26  ;;  %v17685_v58 = vpack.c.bf16 %v13188_v42, %v13187_v39  ;;  %v13164_v42 = vld [vmem:[%s24926_s12 + $0x4] ss:$0 sm:$0xff] }
0x114a   :  { %18683 = vrcp.f32 %v6968_v50  ;;  %v6966_v63 = vpop.xlane.xlu0 %6965  ;;  %v6993_v61 = vmul.f32 %v18674_v59, %v22949_v24  ;;  %17656 = vmatpush3.bf16.msra.mxu0 %v17653_v11  ;;  %v13186_v11 = vld [vmem:[%s24920_s10 + $0x128] sm:$0xff] }
0x114b   :  { %18685 = vrcp.f32 %v6966_v63  ;;  %17658 = vmatprep.subr.bf16.mxu0 %v17657_v62  ;;  %v17681_v17 = vpack.c.bf16 %v13186_v11, %v13185_v8 }
0x114c   :  { %v18676_v40 = vpop.eup %18675  ;;  %16027 = vmatprep.mubr.f32.mxu0 %v6993_v61 }
0x114d   :  { %v18678_v52 = vpop.eup %18677  ;;  %16028 = vmatmul.mubr.f32.gmra.mrb[194].mxu0 %v6994_v29  ;;  %v6996_v56 = vmul.f32 %v18676_v40, %v22953_v53  ;;  %v13157_v53 = vld [vmem:[%s24922_s9 + $0x110] sm:$0xff] }
0x114e   :  { %v6995_v3 = vmul.f32 %v18678_v52, %v22955_v48  ;;  %v13158_v48 = vld [vmem:[%s24922_s9 + $0x118] sm:$0xff] }
0x1150   :  { %v18680_v21 = vpop.eup %18679  ;;  %16030 = vmatprep.mubr.f32.mxu0 %v6995_v3 }
0x1151   :  { %v18682_v0 = vpop.eup %18681  ;;  %16031 = vmatmul.mubr.f32.gmra.mrb[196].mxu0 %v6996_v56  ;;  %v6998_v24 = vmul.f32 %v18680_v21, %v22959_v55  ;;  %v17661_v55 = vpack.c.bf16 %v13158_v48, %v13157_v53  ;;  %v13138_v56 = vld [vmem:[%s24924_s11 + $0x4] ss:$0 sm:$0xff] }
0x1152   :  { %v6997_v38 = vmul.f32 %v18682_v0, %v22961_v30  ;;  %v13159_v30 = vld [vmem:[%s24922_s9 + $0x120] sm:$0xff] }
0x1154   :  { %v18684_v19 = vpop.eup %18683  ;;  %16033 = vmatprep.mubr.f32.mxu0 %v6997_v38 }
0x1155   :  { %v18686_v9 = vpop.eup %18685  ;;  %16034 = vmatmul.mubr.f32.gmra.mrb[198].mxu0 %v6998_v24  ;;  %v7000_v43 = vmul.f32 %v18684_v19, %v22965_v41  ;;  %v13160_v41 = vld [vmem:[%s24922_s9 + $0x128] sm:$0xff] }
0x1156   :  { %v6999_v51 = vmul.f32 %v18686_v9, %v22967_v4  ;;  %v17665_v4 = vpack.c.bf16 %v13160_v41, %v13159_v30 }
0x1158   :  { %16036 = vmatprep.mubr.f32.mxu0 %v6999_v51 }
0x1159   :  { %16037 = vmatmul.mubr.f32.gmra.mrb[200].mxu0 %v7000_v43 }
0x115a   :  { %16081 = vmatprep.mubr.msk.f32.mxu0 %vm2029_vm5, %v21351_v35 }
0x115d   :  { %16082 = vmatmul.mubr.msk.f32.vlgmr.msra.gmra.mrb[202].mxu0 %vm2029_vm5, %v21354_v34 }
0x115e   :  { %17660 = vmatpush3.bf16.msra.mxu0 %v17657_v62  ;;  %16084 = vmatprep.mubr.msk.f32.mxu0 %vm2029_vm5, %v21371_v46 }
0x115f   :  { %17662 = vmatprep.subr.bf16.mxu0 %v17661_v55 }
0x1161   :  { %16085 = vmatmul.mubr.msk.f32.gmra.mrb[204].mxu0 %vm2029_vm5, %v21374_v7 }
0x1162   :  { %16087 = vmatprep.mubr.msk.f32.mxu0 %vm2029_vm5, %v21391_v14  ;;  %17664 = vmatpush3.bf16.msra.mxu0 %v17661_v55 }
0x1163   :  { %17666 = vmatprep.subr.bf16.mxu0 %v17665_v4 }
0x1165   :  { %16088 = vmatmul.mubr.msk.f32.gmra.mrb[206].mxu0 %vm2029_vm5, %v21394_v6 }
0x1166   :  { %16090 = vmatprep.mubr.msk.f32.mxu0 %vm2029_vm5, %v21405_v20  ;;  %17668 = vmatpush3.bf16.msra.mxu0 %v17665_v4 }
0x1167   :  { %17670 = vmatprep.subr.bf16.mxu0 %v17669_v12 }
0x1169   :  { %16091 = vmatmul.mubr.msk.f32.gmra.mrb[208].mxu0 %vm2029_vm5, %v21408_v2 }
0x116a   :  { %16093 = vmatprep.mubr.msk.f32.mxu0 %vm2029_vm5, %v21419_v23  ;;  %17672 = vmatpush3.bf16.msra.mxu0 %v17669_v12 }
0x116d   :  { %16094 = vmatmul.mubr.msk.f32.gmra.mrb[210].mxu0 %vm2029_vm5, %v21422_v13 }
0x116e   :  { %16096 = vmatprep.mubr.msk.f32.mxu0 %vm2029_vm5, %v21433_v57 }
0x1171   :  { %16097 = vmatmul.mubr.msk.f32.gmra.mrb[212].mxu0 %vm2029_vm5, %v21436_v47 }
0x1172   :  { %16099 = vmatprep.mubr.msk.f32.mxu0 %vm2029_vm5, %v21447_v31 }
0x1175   :  { %16100 = vmatmul.mubr.msk.f32.gmra.mrb[214].mxu0 %vm2029_vm5, %v21450_v49 }
0x1176   :  { %16102 = vmatprep.mubr.msk.f32.mxu0 %vm2029_vm5, %v21461_v5 }
0x1179   :  { %16103 = vmatmul.mubr.msk.f32.gmra.mrb[216].mxu0 %vm2029_vm5, %v21464_v25 }
0x117a   :  { %16121 = vmatprep.mubr.msk.f32.mxu0 %vm2029_vm5, %v21351_v35 }
0x117d   :  { %16122 = vmatmul.mubr.msk.f32.vlgmr.msra.gmra.mrb[218].mxu0 %vm2029_vm5, %v21354_v34 }
0x117e   :  { %16124 = vmatprep.mubr.msk.f32.mxu0 %vm2029_vm5, %v21371_v46 }
0x1181   :  { %16125 = vmatmul.mubr.msk.f32.gmra.mrb[220].mxu0 %vm2029_vm5, %v21374_v7 }
0x1182   :  { %16127 = vmatprep.mubr.msk.f32.mxu0 %vm2029_vm5, %v21391_v14 }
0x1185   :  { %16128 = vmatmul.mubr.msk.f32.gmra.mrb[222].mxu0 %vm2029_vm5, %v21394_v6 }
0x1186   :  { %16130 = vmatprep.mubr.msk.f32.mxu0 %vm2029_vm5, %v21405_v20 }
0x1189   :  { %16131 = vmatmul.mubr.msk.f32.gmra.mrb[224].mxu0 %vm2029_vm5, %v21408_v2 }
0x118a   :  { %16133 = vmatprep.mubr.msk.f32.mxu0 %vm2029_vm5, %v21419_v23 }
0x118d   :  { %16134 = vmatmul.mubr.msk.f32.gmra.mrb[226].mxu0 %vm2029_vm5, %v21422_v13 }
0x118e   :  { %16136 = vmatprep.mubr.msk.f32.mxu0 %vm2029_vm5, %v21433_v57 }
0x1191   :  { %16137 = vmatmul.mubr.msk.f32.gmra.mrb[228].mxu0 %vm2029_vm5, %v21436_v47 }
0x1192   :  { %16139 = vmatprep.mubr.msk.f32.mxu0 %vm2029_vm5, %v21447_v31 }
0x1195   :  { %16140 = vmatmul.mubr.msk.f32.gmra.mrb[230].mxu0 %vm2029_vm5, %v21450_v49 }
0x1196   :  { %16142 = vmatprep.mubr.msk.f32.mxu0 %vm2029_vm5, %v21461_v5 }
0x1199   :  { %16143 = vmatmul.mubr.msk.f32.gmra.mrb[232].mxu0 %vm2029_vm5, %v21464_v25 }
0x1210   :  { %v16017_v45 = vpop.f32.mrb[186].mxu0 }
0x1211   :  { %v7067_v22 = vpop.f32.mrb[187].mxu0 }
0x1212   :  { %16041 = vmatprep.mubr.msk.f32.mxu1 %vm2967_vm10, %v7067_v22 }
0x1213   :  { %16042 = vmatmul.mubr.msk.f32.vlgmr.msra.gmra.mrb[86].mxu1 %vm2967_vm10, %v16017_v45 }
0x1214   :  { %v16020_v60 = vpop.f32.mrb[188].mxu0  ;;  %17676 = vmatpush3.bf16.msra.mxu1 %v17673_v26 }
0x1215   :  { %v7077_v1 = vpop.f32.mrb[189].mxu0  ;;  %17678 = vmatprep.subr.bf16.mxu1 %v17677_v37 }
0x1216   :  { %16044 = vmatprep.mubr.msk.f32.mxu1 %vm2967_vm10, %v7077_v1 }
0x1217   :  { %16045 = vmatmul.mubr.msk.f32.gmra.mrb[88].mxu1 %vm2967_vm10, %v16020_v60 }
0x1218   :  { %v16023_v44 = vpop.f32.mrb[190].mxu0  ;;  %17680 = vmatpush3.bf16.msra.mxu1 %v17677_v37 }
0x1219   :  { %v7087_v16 = vpop.f32.mrb[191].mxu0  ;;  %17682 = vmatprep.subr.bf16.mxu1 %v17681_v17 }
0x121a   :  { %16047 = vmatprep.mubr.msk.f32.mxu1 %vm2967_vm10, %v7087_v16 }
0x121b   :  { %16048 = vmatmul.mubr.msk.f32.gmra.mrb[90].mxu1 %vm2967_vm10, %v16023_v44 }
0x121c   :  { %v16026_v62 = vpop.f32.mrb[192].mxu0  ;;  %17684 = vmatpush3.bf16.msra.mxu1 %v17681_v17 }
0x121d   :  { %v7097_v32 = vpop.f32.mrb[193].mxu0  ;;  %17686 = vmatprep.subr.bf16.mxu1 %v17685_v58 }
0x121e   :  { %16050 = vmatprep.mubr.msk.f32.mxu1 %vm2967_vm10, %v7097_v32 }
0x121f   :  { %16051 = vmatmul.mubr.msk.f32.gmra.mrb[92].mxu1 %vm2967_vm10, %v16026_v62 }
0x1220   :  { %v16029_v59 = vpop.f32.mrb[194].mxu0  ;;  %17688 = vmatpush3.bf16.msra.mxu1 %v17685_v58 }
0x1221   :  { %v7107_v50 = vpop.f32.mrb[195].mxu0 }
0x1222   :  { %16053 = vmatprep.mubr.msk.f32.mxu1 %vm2967_vm10, %v7107_v50 }
0x1223   :  { %16054 = vmatmul.mubr.msk.f32.gmra.mrb[94].mxu1 %vm2967_vm10, %v16029_v59 }
0x1224   :  { %v16032_v63 = vpop.f32.mrb[196].mxu0 }
0x1225   :  { %v7117_v61 = vpop.f32.mrb[197].mxu0 }
0x1226   :  { %16056 = vmatprep.mubr.msk.f32.mxu1 %vm2967_vm10, %v7117_v61 }
0x1227   :  { %16057 = vmatmul.mubr.msk.f32.gmra.mrb[96].mxu1 %vm2967_vm10, %v16032_v63 }
0x1228   :  { %v16035_v29 = vpop.f32.mrb[198].mxu0 }
0x1229   :  { %v7127_v40 = vpop.f32.mrb[199].mxu0 }
0x122a   :  { %16059 = vmatprep.mubr.msk.f32.mxu1 %vm2967_vm10, %v7127_v40 }
0x122b   :  { %16060 = vmatmul.mubr.msk.f32.gmra.mrb[98].mxu1 %vm2967_vm10, %v16035_v29 }
0x122c   :  { %v16038_v52 = vpop.f32.mrb[200].mxu0 }
0x122d   :  { %v7137_v3 = vpop.f32.mrb[201].mxu0 }
0x122e   :  { %16062 = vmatprep.mubr.msk.f32.mxu1 %vm2967_vm10, %v7137_v3 }
0x122f   :  { %16063 = vmatmul.mubr.msk.f32.gmra.mrb[100].mxu1 %vm2967_vm10, %v16038_v52 }
0x1230   :  { %v16083_v21 = vpop.f32.mrb[202].mxu0  ;;  %16161 = vmatprep.mubr.msk.f32.mxu1 %vm2029_vm5, %v21351_v35 }
0x1231   :  { %v23147_v0 = vadd.f32 %v16083_v21, %v13138_v56  ;;  %v7440_v38 = vpop.f32.mrb[203].mxu0 }
0x1232   :  { %v7441_v24 = vadd.f32 %v13138_v56, %v7440_v38 }
0x1233   :  { %16162 = vmatmul.mubr.msk.f32.vlgmr.msra.gmra.mrb[166].mxu1 %vm2029_vm5, %v21354_v34 }
0x1234   :  { %v16086_v19 = vpop.f32.mrb[204].mxu0  ;;  %16164 = vmatprep.mubr.msk.f32.mxu1 %vm2029_vm5, %v21371_v46  ;;  %16217 = vmatprep.mubr.msk.f32.mxu0 %vm2967_vm10, %v7441_v24 }
0x1235   :  { %v23154_v9 = vadd.f32 %v16086_v19, %v13138_v56  ;;  %v7450_v51 = vpop.f32.mrb[205].mxu0 }
0x1236   :  { %v23156_v43 = vadd.f32 %v13138_v56, %v7450_v51 }
0x1237   :  { %16165 = vmatmul.mubr.msk.f32.gmra.mrb[168].mxu1 %vm2029_vm5, %v21374_v7 }
0x1238   :  { %v16089_v53 = vpop.f32.mrb[206].mxu0  ;;  %16167 = vmatprep.mubr.msk.f32.mxu1 %vm2029_vm5, %v21391_v14 }
0x1239   :  { %v23162_v48 = vadd.f32 %v16089_v53, %v13138_v56  ;;  %v7460_v55 = vpop.f32.mrb[207].mxu0 }
0x123a   :  { %v23164_v30 = vadd.f32 %v13138_v56, %v7460_v55 }
0x123b   :  { %16168 = vmatmul.mubr.msk.f32.gmra.mrb[170].mxu1 %vm2029_vm5, %v21394_v6 }
0x123c   :  { %v16092_v41 = vpop.f32.mrb[208].mxu0  ;;  %16170 = vmatprep.mubr.msk.f32.mxu1 %vm2029_vm5, %v21405_v20 }
0x123d   :  { %v23170_v4 = vadd.f32 %v16092_v41, %v13138_v56  ;;  %v7470_v36 = vpop.f32.mrb[209].mxu0 }
0x123e   :  { %v23172_v28 = vadd.f32 %v13138_v56, %v7470_v36 }
0x123f   :  { %16171 = vmatmul.mubr.msk.f32.gmra.mrb[172].mxu1 %vm2029_vm5, %v21408_v2 }
0x1240   :  { %v16095_v12 = vpop.f32.mrb[210].mxu0  ;;  %16173 = vmatprep.mubr.msk.f32.mxu1 %vm2029_vm5, %v21419_v23 }
0x1241   :  { %v23178_v15 = vadd.f32 %v16095_v12, %v13138_v56  ;;  %v7480_v33 = vpop.f32.mrb[211].mxu0 }
0x1242   :  { %v23180_v54 = vadd.f32 %v13138_v56, %v7480_v33 }
0x1243   :  { %16174 = vmatmul.mubr.msk.f32.gmra.mrb[174].mxu1 %vm2029_vm5, %v21422_v13 }
0x1244   :  { %v16098_v26 = vpop.f32.mrb[212].mxu0  ;;  %16176 = vmatprep.mubr.msk.f32.mxu1 %vm2029_vm5, %v21433_v57 }
0x1245   :  { %v23186_v10 = vadd.f32 %v16098_v26, %v13138_v56  ;;  %v7490_v27 = vpop.f32.mrb[213].mxu0 }
0x1246   :  { %v23188_v45 = vadd.f32 %v13138_v56, %v7490_v27 }
0x1247   :  { %16177 = vmatmul.mubr.msk.f32.gmra.mrb[176].mxu1 %vm2029_vm5, %v21436_v47 }
0x1248   :  { %v16101_v22 = vpop.f32.mrb[214].mxu0  ;;  %16179 = vmatprep.mubr.msk.f32.mxu1 %vm2029_vm5, %v21447_v31 }
0x1249   :  { %v23194_v37 = vadd.f32 %v16101_v22, %v13138_v56  ;;  %v7500_v8 = vpop.f32.mrb[215].mxu0 }
0x124a   :  { %v23196_v11 = vadd.f32 %v13138_v56, %v7500_v8 }
0x124b   :  { %16180 = vmatmul.mubr.msk.f32.gmra.mrb[178].mxu1 %vm2029_vm5, %v21450_v49 }
0x124c   :  { %v16104_v60 = vpop.f32.mrb[216].mxu0  ;;  %16182 = vmatprep.mubr.msk.f32.mxu1 %vm2029_vm5, %v21461_v5 }
0x124d   :  { %v23202_v1 = vadd.f32 %v16104_v60, %v13138_v56  ;;  %v7510_v17 = vpop.f32.mrb[217].mxu0 }
0x124e   :  { %v23204_v39 = vadd.f32 %v13138_v56, %v7510_v17 }
0x124f   :  { %16183 = vmatmul.mubr.msk.f32.gmra.mrb[180].mxu1 %vm2029_vm5, %v21464_v25 }
0x1250   :  { %v16123_v44 = vpop.f32.mrb[218].mxu0 }
0x1251   :  { %v7608_v16 = vadd.f32 %v16123_v44, %v13164_v42  ;;  %v7602_v58 = vpop.f32.mrb[219].mxu0 }
0x1252   :  { %v7603_v62 = vadd.f32 %v13164_v42, %v7602_v58 }
0x1254   :  { %v17689_v32 = vpack.c.bf16 %v7608_v16, %v7603_v62  ;;  %v16126_v59 = vpop.f32.mrb[220].mxu0 }
0x1255   :  { %v7618_v50 = vadd.f32 %v16126_v59, %v13164_v42  ;;  %v7612_v63 = vpop.f32.mrb[221].mxu0 }
0x1256   :  { %v7613_v61 = vadd.f32 %v13164_v42, %v7612_v63  ;;  %17691 = vmatprep.subr.msk.bf16.mxu0 %vm21584_vm4, %v17689_v32 }
0x1257   :  { %17694 = vmatpush3.bf16.xpose.msk.msra.mxu0 %vm21584_vm4, %v17689_v32 }
0x1258   :  { %v17695_v29 = vpack.c.bf16 %v7618_v50, %v7613_v61  ;;  %v16129_v40 = vpop.f32.mrb[222].mxu0 }
0x1259   :  { %v7628_v52 = vadd.f32 %v16129_v40, %v13164_v42  ;;  %v7622_v3 = vpop.f32.mrb[223].mxu0 }
0x125a   :  { %v7623_v56 = vadd.f32 %v13164_v42, %v7622_v3  ;;  %17697 = vmatprep.subr.msk.bf16.mxu0 %vm21584_vm4, %v17695_v29  ;;  %v13259_v3 = vld [vmem:[%s24919_s8 + $0x158] sm:$0xff] }
0x125c   :  { %v17701_v21 = vpack.c.bf16 %v7628_v52, %v7623_v56  ;;  %v16132_v38 = vpop.f32.mrb[224].mxu0  ;;  %v13258_v52 = vld [vmem:[%s24919_s8 + $0x150] sm:$0xff] }
0x125d   :  { %v7638_v24 = vadd.f32 %v16132_v38, %v13164_v42  ;;  %v7632_v19 = vpop.f32.mrb[225].mxu0  ;;  %v17773_v56 = vpack.c.bf16 %v13259_v3, %v13258_v52  ;;  %v13261_v38 = vld [vmem:[%s24919_s8 + $0x168] sm:$0xff] }
0x125e   :  { %v7633_v51 = vadd.f32 %v13164_v42, %v7632_v19  ;;  %v13262_v19 = vld [vmem:[%s24919_s8 + $0x170] sm:$0xff] }
0x125f   :  { %17700 = vmatpush3.bf16.xpose.msk.msra.mxu0 %vm21584_vm4, %v17695_v29  ;;  %v13257_v29 = vld [vmem:[%s24919_s8 + $0x148] sm:$0xff] }
0x1260   :  { %v17707_v53 = vpack.c.bf16 %v7638_v24, %v7633_v51  ;;  %v16135_v55 = vpop.f32.mrb[226].mxu0  ;;  %17703 = vmatprep.subr.msk.bf16.mxu0 %vm21584_vm4, %v17701_v21  ;;  %v13263_v51 = vld [vmem:[%s24919_s8 + $0x178] sm:$0xff] }
0x1261   :  { %v7648_v41 = vadd.f32 %v16135_v55, %v13164_v42  ;;  %v7642_v36 = vpop.f32.mrb[227].mxu0 }
0x1262   :  { %v7643_v12 = vadd.f32 %v13164_v42, %v7642_v36 }
0x1264   :  { %v17713_v33 = vpack.c.bf16 %v7648_v41, %v7643_v12  ;;  %v16138_v26 = vpop.f32.mrb[228].mxu0 }
0x1265   :  { %v7658_v27 = vadd.f32 %v16138_v26, %v13164_v42  ;;  %v7652_v22 = vpop.f32.mrb[229].mxu0 }
0x1266   :  { %v7653_v8 = vadd.f32 %v13164_v42, %v7652_v22 }
0x1267   :  { %17706 = vmatpush3.bf16.xpose.msk.msra.mxu0 %vm21584_vm4, %v17701_v21  ;;  %v13260_v21 = vld [vmem:[%s24919_s8 + $0x160] sm:$0xff] }
0x1268   :  { %v17719_v60 = vpack.c.bf16 %v7658_v27, %v7653_v8  ;;  %v16141_v17 = vpop.f32.mrb[230].mxu0  ;;  %17709 = vmatprep.subr.msk.bf16.mxu0 %vm21584_vm4, %v17707_v53  ;;  %v17777_v24 = vpack.c.bf16 %v13261_v38, %v13260_v21 }
0x1269   :  { %v7668_v44 = vadd.f32 %v16141_v17, %v13164_v42  ;;  %v7662_v16 = vpop.f32.mrb[231].mxu0 }
0x126a   :  { %v7663_v58 = vadd.f32 %v13164_v42, %v7662_v16 }
0x126c   :  { %v17725_v62 = vpack.c.bf16 %v7668_v44, %v7663_v58  ;;  %v16144_v32 = vpop.f32.mrb[232].mxu0 }
0x126d   :  { %v7678_v59 = vadd.f32 %v16144_v32, %v13164_v42  ;;  %v7672_v50 = vpop.f32.mrb[233].mxu0 }
0x126e   :  { %v7673_v63 = vadd.f32 %v13164_v42, %v7672_v50  ;;  %v13256_v42 = vld [vmem:[%s24919_s8 + $0x140] sm:$0xff] }
0x126f   :  { %17712 = vmatpush3.bf16.xpose.msk.msra.mxu0 %vm21584_vm4, %v17707_v53  ;;  %v17769_v40 = vpack.c.bf16 %v13257_v29, %v13256_v42  ;;  %v13309_v53 = vld [vmem:[%s24920_s10 + $0x148] sm:$0xff] }
0x1270   :  { %v17731_v61 = vpack.c.bf16 %v7678_v59, %v7673_v63  ;;  %17715 = vmatprep.subr.msk.bf16.mxu0 %vm21584_vm4, %v17713_v33 }
0x1277   :  { %17718 = vmatpush3.bf16.xpose.msk.msra.mxu0 %vm21584_vm4, %v17713_v33 }
0x1278   :  { %17721 = vmatprep.subr.msk.bf16.mxu0 %vm21584_vm4, %v17719_v60 }
0x127f   :  { %17724 = vmatpush3.bf16.xpose.msk.msra.mxu0 %vm21584_vm4, %v17719_v60 }
0x1280   :  { %17727 = vmatprep.subr.msk.bf16.mxu0 %vm21584_vm4, %v17725_v62 }
0x1287   :  { %17730 = vmatpush3.bf16.xpose.msk.msra.mxu0 %vm21584_vm4, %v17725_v62 }
0x1288   :  { %17733 = vmatprep.subr.msk.bf16.mxu0 %vm21584_vm4, %v17731_v61 }
0x128f   :  { %17736 = vmatpush3.bf16.xpose.msk.msra.mxu0 %vm21584_vm4, %v17731_v61 }
0x1290   :  { %17770 = vmatprep.subr.bf16.mxu0 %v17769_v40 }
0x1296   :  { %16218 = vmatmul.mubr.msk.f32.vlgmr.msra.gmra.mrb[234].mxu0 %vm2967_vm10, %v23147_v0  ;;  %v17781_v0 = vpack.c.bf16 %v13263_v51, %v13262_v19 }
0x1297   :  { %16220 = vmatprep.mubr.msk.f32.mxu0 %vm2967_vm10, %v23156_v43  ;;  %17772 = vmatpush3.bf16.msra.mxu0 %v17769_v40  ;;  %v13308_v43 = vld [vmem:[%s24920_s10 + $0x140] sm:$0xff] }
0x1298   :  { %17774 = vmatprep.subr.bf16.mxu0 %v17773_v56 }
0x129a   :  { %16221 = vmatmul.mubr.msk.f32.gmra.mrb[236].mxu0 %vm2967_vm10, %v23154_v9  ;;  %v17801_v9 = vpack.c.bf16 %v13309_v53, %v13308_v43 }
0x129b   :  { %16223 = vmatprep.mubr.msk.f32.mxu0 %vm2967_vm10, %v23164_v30  ;;  %17776 = vmatpush3.bf16.msra.mxu0 %v17773_v56  ;;  %v13311_v30 = vld [vmem:[%s24920_s10 + $0x158] sm:$0xff] }
0x129c   :  { %17778 = vmatprep.subr.bf16.mxu0 %v17777_v24 }
0x129e   :  { %16224 = vmatmul.mubr.msk.f32.gmra.mrb[238].mxu0 %vm2967_vm10, %v23162_v48  ;;  %v13310_v48 = vld [vmem:[%s24920_s10 + $0x150] sm:$0xff] }
0x129f   :  { %16226 = vmatprep.mubr.msk.f32.mxu0 %vm2967_vm10, %v23172_v28  ;;  %17780 = vmatpush3.bf16.msra.mxu0 %v17777_v24  ;;  %v13312_v28 = vld [vmem:[%s24920_s10 + $0x160] sm:$0xff] }
0x12a0   :  { %17782 = vmatprep.subr.bf16.mxu0 %v17781_v0 }
0x12a2   :  { %16227 = vmatmul.mubr.msk.f32.gmra.mrb[240].mxu0 %vm2967_vm10, %v23170_v4  ;;  %v17805_v4 = vpack.c.bf16 %v13311_v30, %v13310_v48 }
0x12a3   :  { %16229 = vmatprep.mubr.msk.f32.mxu0 %vm2967_vm10, %v23180_v54  ;;  %17784 = vmatpush3.bf16.msra.mxu0 %v17781_v0 }
0x12a4   :  { %17802 = vmatprep.subr.bf16.mxu0 %v17801_v9 }
0x12a6   :  { %16230 = vmatmul.mubr.msk.f32.gmra.mrb[242].mxu0 %vm2967_vm10, %v23178_v15  ;;  %v13313_v15 = vld [vmem:[%s24920_s10 + $0x168] sm:$0xff] }
0x12a7   :  { %16232 = vmatprep.mubr.msk.f32.mxu0 %vm2967_vm10, %v23188_v45  ;;  %v17809_v54 = vpack.c.bf16 %v13313_v15, %v13312_v28  ;;  %v13315_v45 = vld [vmem:[%s24920_s10 + $0x178] sm:$0xff] }
0x12aa   :  { %16233 = vmatmul.mubr.msk.f32.gmra.mrb[244].mxu0 %vm2967_vm10, %v23186_v10  ;;  %v13314_v10 = vld [vmem:[%s24920_s10 + $0x170] sm:$0xff] }
0x12ab   :  { %16235 = vmatprep.mubr.msk.f32.mxu0 %vm2967_vm10, %v23196_v11  ;;  %v13190_v11 = vld [vmem:[%s24925_s13 + $0x4] ss:$0 sm:$0xff] }
0x12ae   :  { %16236 = vmatmul.mubr.msk.f32.gmra.mrb[246].mxu0 %vm2967_vm10, %v23194_v37  ;;  %v17813_v37 = vpack.c.bf16 %v13315_v45, %v13314_v10 }
0x12af   :  { %16238 = vmatprep.mubr.msk.f32.mxu0 %vm2967_vm10, %v23204_v39 }
0x12b2   :  { %16239 = vmatmul.mubr.msk.f32.gmra.mrb[248].mxu0 %vm2967_vm10, %v23202_v1 }
0x12b3   :  { %16339 = vmatprep.mubr.msk.f32.mxu0 %vm2029_vm5, %v21351_v35 }
0x12b6   :  { %16340 = vmatmul.mubr.msk.f32.vlgmr.msra.gmra.mrb[250].mxu0 %vm2029_vm5, %v21354_v34 }
0x12b7   :  { %16342 = vmatprep.mubr.msk.f32.mxu0 %vm2029_vm5, %v21371_v46  ;;  %17804 = vmatpush3.bf16.msra.mxu0 %v17801_v9 }
0x12b8   :  { %17806 = vmatprep.subr.bf16.mxu0 %v17805_v4 }
0x12ba   :  { %16343 = vmatmul.mubr.msk.f32.gmra.mrb[252].mxu0 %vm2029_vm5, %v21374_v7 }
0x12bb   :  { %16345 = vmatprep.mubr.msk.f32.mxu0 %vm2029_vm5, %v21391_v14  ;;  %17808 = vmatpush3.bf16.msra.mxu0 %v17805_v4 }
0x12bc   :  { %17810 = vmatprep.subr.bf16.mxu0 %v17809_v54 }
0x12be   :  { %16346 = vmatmul.mubr.msk.f32.gmra.mrb[254].mxu0 %vm2029_vm5, %v21394_v6 }
0x12bf   :  { %16348 = vmatprep.mubr.msk.f32.mxu0 %vm2029_vm5, %v21405_v20  ;;  %17812 = vmatpush3.bf16.msra.mxu0 %v17809_v54 }
0x12c0   :  { %17814 = vmatprep.subr.bf16.mxu0 %v17813_v37 }
0x12c2   :  { %16349 = vmatmul.mubr.msk.f32.gmra.mrb[0].mxu0 %vm2029_vm5, %v21408_v2 }
0x12c3   :  { %16351 = vmatprep.mubr.msk.f32.mxu0 %vm2029_vm5, %v21419_v23  ;;  %17816 = vmatpush3.bf16.msra.mxu0 %v17813_v37 }
0x12c6   :  { %16352 = vmatmul.mubr.msk.f32.gmra.mrb[2].mxu0 %vm2029_vm5, %v21422_v13 }
0x12c7   :  { %16354 = vmatprep.mubr.msk.f32.mxu0 %vm2029_vm5, %v21433_v57 }
0x12ca   :  { %16355 = vmatmul.mubr.msk.f32.gmra.mrb[4].mxu0 %vm2029_vm5, %v21436_v47 }
0x12cb   :  { %16357 = vmatprep.mubr.msk.f32.mxu0 %vm2029_vm5, %v21447_v31 }
0x12ce   :  { %16358 = vmatmul.mubr.msk.f32.gmra.mrb[6].mxu0 %vm2029_vm5, %v21450_v49 }
0x12cf   :  { %16360 = vmatprep.mubr.msk.f32.mxu0 %vm2029_vm5, %v21461_v5 }
0x12d2   :  { %16361 = vmatmul.mubr.msk.f32.gmra.mrb[8].mxu0 %vm2029_vm5, %v21464_v25 }
0x12d3   :  { %16419 = vmatprep.mubr.msk.f32.mxu0 %vm2029_vm5, %v21351_v35 }
0x12d6   :  { %16420 = vmatmul.mubr.msk.f32.vlgmr.msra.gmra.mrb[10].mxu0 %vm2029_vm5, %v21354_v34 }
0x12d7   :  { %16422 = vmatprep.mubr.msk.f32.mxu0 %vm2029_vm5, %v21371_v46 }
0x12da   :  { %16423 = vmatmul.mubr.msk.f32.gmra.mrb[12].mxu0 %vm2029_vm5, %v21374_v7 }
0x12db   :  { %16425 = vmatprep.mubr.msk.f32.mxu0 %vm2029_vm5, %v21391_v14 }
0x12de   :  { %16426 = vmatmul.mubr.msk.f32.gmra.mrb[14].mxu0 %vm2029_vm5, %v21394_v6 }
0x12df   :  { %16428 = vmatprep.mubr.msk.f32.mxu0 %vm2029_vm5, %v21405_v20 }
0x12e2   :  { %16429 = vmatmul.mubr.msk.f32.gmra.mrb[16].mxu0 %vm2029_vm5, %v21408_v2 }
0x12e3   :  { %16431 = vmatprep.mubr.msk.f32.mxu0 %vm2029_vm5, %v21419_v23 }
0x12e6   :  { %16432 = vmatmul.mubr.msk.f32.gmra.mrb[18].mxu0 %vm2029_vm5, %v21422_v13 }
0x12e7   :  { %16434 = vmatprep.mubr.msk.f32.mxu0 %vm2029_vm5, %v21433_v57 }
0x12ea   :  { %16435 = vmatmul.mubr.msk.f32.gmra.mrb[20].mxu0 %vm2029_vm5, %v21436_v47 }
0x12eb   :  { %16437 = vmatprep.mubr.msk.f32.mxu0 %vm2029_vm5, %v21447_v31 }
0x12ee   :  { %16438 = vmatmul.mubr.msk.f32.gmra.mrb[22].mxu0 %vm2029_vm5, %v21450_v49 }
0x12ef   :  { %16440 = vmatprep.mubr.msk.f32.mxu0 %vm2029_vm5, %v21461_v5 }
0x12f2   :  { %16441 = vmatmul.mubr.msk.f32.gmra.mrb[24].mxu0 %vm2029_vm5, %v21464_v25 }
0x1306   :  { %v16163_v1 = vpop.f32.mrb[166].mxu1 }
0x1307   :  { %v7770_v39 = vadd.f32 %v16163_v1, %v13190_v11  ;;  %v7764_v55 = vpop.f32.mrb[167].mxu1 }
0x1308   :  { %v7765_v41 = vadd.f32 %v13190_v11, %v7764_v55 }
0x130a   :  { %v17737_v36 = vpack.c.bf16 %v7770_v39, %v7765_v41  ;;  %v16166_v12 = vpop.f32.mrb[168].mxu1 }
0x130b   :  { %v7780_v33 = vadd.f32 %v16166_v12, %v13190_v11  ;;  %v7774_v26 = vpop.f32.mrb[169].mxu1 }
0x130c   :  { %v7775_v27 = vadd.f32 %v13190_v11, %v7774_v26  ;;  %17738 = vmatprep.subr.bf16.mxu1 %v17737_v36 }
0x130d   :  { %17740 = vmatpush3.bf16.msra.mxu1 %v17737_v36 }
0x130e   :  { %v17741_v22 = vpack.c.bf16 %v7780_v33, %v7775_v27  ;;  %v16169_v8 = vpop.f32.mrb[170].mxu1 }
0x130f   :  { %v7790_v60 = vadd.f32 %v16169_v8, %v13190_v11  ;;  %v7784_v17 = vpop.f32.mrb[171].mxu1 }
0x1310   :  { %v7785_v44 = vadd.f32 %v13190_v11, %v7784_v17  ;;  %17742 = vmatprep.subr.bf16.mxu1 %v17741_v22 }
0x1311   :  { %17744 = vmatpush3.bf16.msra.mxu1 %v17741_v22  ;;  %v23439_v22 = vld [vmem:[%s24924_s11 + $0x5] ss:$0 sm:$0xff] }
0x1312   :  { %v17745_v16 = vpack.c.bf16 %v7790_v60, %v7785_v44  ;;  %v16172_v58 = vpop.f32.mrb[172].mxu1 }
0x1313   :  { %v7800_v62 = vadd.f32 %v16172_v58, %v13190_v11  ;;  %v7794_v32 = vpop.f32.mrb[173].mxu1 }
0x1314   :  { %v7795_v59 = vadd.f32 %v13190_v11, %v7794_v32  ;;  %17746 = vmatprep.subr.bf16.mxu1 %v17745_v16 }
0x1315   :  { %17748 = vmatpush3.bf16.msra.mxu1 %v17745_v16 }
0x1316   :  { %v17749_v50 = vpack.c.bf16 %v7800_v62, %v7795_v59  ;;  %v16175_v63 = vpop.f32.mrb[174].mxu1 }
0x1317   :  { %v7810_v61 = vadd.f32 %v16175_v63, %v13190_v11  ;;  %v7804_v42 = vpop.f32.mrb[175].mxu1 }
0x1318   :  { %v7805_v29 = vadd.f32 %v13190_v11, %v7804_v42  ;;  %17750 = vmatprep.subr.bf16.mxu1 %v17749_v50 }
0x1319   :  { %17752 = vmatpush3.bf16.msra.mxu1 %v17749_v50 }
0x131a   :  { %v17753_v40 = vpack.c.bf16 %v7810_v61, %v7805_v29  ;;  %v16178_v52 = vpop.f32.mrb[176].mxu1 }
0x131b   :  { %v7820_v3 = vadd.f32 %v16178_v52, %v13190_v11  ;;  %v7814_v56 = vpop.f32.mrb[177].mxu1 }
0x131c   :  { %v7815_v21 = vadd.f32 %v13190_v11, %v7814_v56  ;;  %17754 = vmatprep.subr.bf16.mxu1 %v17753_v40 }
0x131d   :  { %17756 = vmatpush3.bf16.msra.mxu1 %v17753_v40 }
0x131e   :  { %v17757_v38 = vpack.c.bf16 %v7820_v3, %v7815_v21  ;;  %v16181_v24 = vpop.f32.mrb[178].mxu1 }
0x131f   :  { %v7830_v19 = vadd.f32 %v16181_v24, %v13190_v11  ;;  %v7824_v51 = vpop.f32.mrb[179].mxu1 }
0x1320   :  { %v7825_v0 = vadd.f32 %v13190_v11, %v7824_v51  ;;  %17758 = vmatprep.subr.bf16.mxu1 %v17757_v38 }
0x1321   :  { %17760 = vmatpush3.bf16.msra.mxu1 %v17757_v38 }
0x1322   :  { %v17761_v43 = vpack.c.bf16 %v7830_v19, %v7825_v0  ;;  %v16184_v53 = vpop.f32.mrb[180].mxu1 }
0x1323   :  { %v7840_v9 = vadd.f32 %v16184_v53, %v13190_v11  ;;  %v7834_v48 = vpop.f32.mrb[181].mxu1 }
0x1324   :  { %v7835_v30 = vadd.f32 %v13190_v11, %v7834_v48  ;;  %17762 = vmatprep.subr.bf16.mxu1 %v17761_v43 }
0x1325   :  { %17764 = vmatpush3.bf16.msra.mxu1 %v17761_v43 }
0x1326   :  { %v17765_v4 = vpack.c.bf16 %v7840_v9, %v7835_v30 }
0x1328   :  { %17766 = vmatprep.subr.bf16.mxu1 %v17765_v4 }
0x1329   :  { %17768 = vmatpush3.bf16.msra.mxu1 %v17765_v4 }
0x1369   :  { %v23388_v28 = vpop.f32.mrb[234].mxu0 }
0x136a   :  { %8086 = vmax.xlane.f32.xlu1 %v23388_v28  ;;  %v23391_v15 = vpop.f32.mrb[235].mxu0 }
0x136b   :  { %8084 = vmax.xlane.f32.xlu0 %v23391_v15 }
0x136d   :  { %v23394_v54 = vpop.f32.mrb[236].mxu0 }
0x136e   :  { %8090 = vmax.xlane.f32.xlu1 %v23394_v54  ;;  %v23397_v10 = vpop.f32.mrb[237].mxu0 }
0x136f   :  { %8088 = vmax.xlane.f32.xlu0 %v23397_v10 }
0x1371   :  { %v23400_v45 = vpop.f32.mrb[238].mxu0 }
0x1372   :  { %8094 = vmax.xlane.f32.xlu1 %v23400_v45  ;;  %v23403_v37 = vpop.f32.mrb[239].mxu0 }
0x1373   :  { %8092 = vmax.xlane.f32.xlu0 %v23403_v37 }
0x1375   :  { %v23406_v11 = vpop.f32.mrb[240].mxu0 }
0x1376   :  { %8098 = vmax.xlane.f32.xlu1 %v23406_v11  ;;  %v23409_v1 = vpop.f32.mrb[241].mxu0 }
0x1377   :  { %8096 = vmax.xlane.f32.xlu0 %v23409_v1 }
0x1379   :  { %v23412_v39 = vpop.f32.mrb[242].mxu0 }
0x137a   :  { %8102 = vmax.xlane.f32.xlu1 %v23412_v39  ;;  %v23415_v55 = vpop.f32.mrb[243].mxu0 }
0x137b   :  { %8100 = vmax.xlane.f32.xlu0 %v23415_v55 }
0x137d   :  { %v23418_v41 = vpop.f32.mrb[244].mxu0 }
0x137e   :  { %8106 = vmax.xlane.f32.xlu1 %v23418_v41  ;;  %v23421_v36 = vpop.f32.mrb[245].mxu0 }
0x137f   :  { %8104 = vmax.xlane.f32.xlu0 %v23421_v36 }
0x1381   :  { %v23424_v12 = vpop.f32.mrb[246].mxu0 }
0x1382   :  { %8110 = vmax.xlane.f32.xlu1 %v23424_v12  ;;  %v23427_v33 = vpop.f32.mrb[247].mxu0 }
0x1383   :  { %8108 = vmax.xlane.f32.xlu0 %v23427_v33 }
0x1385   :  { %v23430_v26 = vpop.f32.mrb[248].mxu0 }
0x1386   :  { %8114 = vmax.xlane.f32.xlu1 %v23430_v26  ;;  %v23433_v27 = vpop.f32.mrb[249].mxu0 }
0x1387   :  { %8112 = vmax.xlane.f32.xlu0 %v23433_v27 }
0x1389   :  { %v16341_v8 = vpop.f32.mrb[250].mxu0 }
0x138a   :  { %v23442_v60 = vadd.f32 %v16341_v8, %v23439_v22  ;;  %v23444_v17 = vpop.f32.mrb[251].mxu0 }
0x138d   :  { %v16344_v44 = vpop.f32.mrb[252].mxu0 }
0x138e   :  { %v23447_v16 = vadd.f32 %v16344_v44, %v23439_v22  ;;  %v8677_v58 = vpop.f32.mrb[253].mxu0  ;;  %v13317_v44 = vld [vmem:[%s24925_s13 + $0x5] ss:$0 sm:$0xff] }
0x138f   :  { %v23450_v62 = vadd.f32 %v23439_v22, %v8677_v58 }
0x1391   :  { %v16347_v32 = vpop.f32.mrb[254].mxu0 }
0x1392   :  { %v23453_v59 = vadd.f32 %v16347_v32, %v23439_v22  ;;  %v8687_v50 = vpop.f32.mrb[255].mxu0 }
0x1393   :  { %v23456_v63 = vadd.f32 %v23439_v22, %v8687_v50 }
0x1395   :  { %v16350_v61 = vpop.f32.mrb[0].mxu0 }
0x1396   :  { %v23459_v42 = vadd.f32 %v16350_v61, %v23439_v22  ;;  %v8697_v29 = vpop.f32.mrb[1].mxu0 }
0x1397   :  { %v23462_v40 = vadd.f32 %v23439_v22, %v8697_v29 }
0x1399   :  { %v16353_v52 = vpop.f32.mrb[2].mxu0 }
0x139a   :  { %v23465_v3 = vadd.f32 %v16353_v52, %v23439_v22  ;;  %v8707_v56 = vpop.f32.mrb[3].mxu0 }
0x139b   :  { %v23468_v21 = vadd.f32 %v23439_v22, %v8707_v56 }
0x139d   :  { %v16356_v38 = vpop.f32.mrb[4].mxu0 }
0x139e   :  { %v23471_v24 = vadd.f32 %v16356_v38, %v23439_v22  ;;  %v8717_v19 = vpop.f32.mrb[5].mxu0 }
0x139f   :  { %v23474_v51 = vadd.f32 %v23439_v22, %v8717_v19 }
0x13a0   :  { %25282 = vst [vmem:[#allocation28_spill] sm:$0xff] %v23471_v24 }
0x13a1   :  { %v16359_v0 = vpop.f32.mrb[6].mxu0 }
0x13a2   :  { %v23477_v43 = vadd.f32 %v16359_v0, %v23439_v22  ;;  %v8727_v53 = vpop.f32.mrb[7].mxu0 }
0x13a3   :  { %v23480_v9 = vadd.f32 %v23439_v22, %v8727_v53 }
0x13a4   :  { %25283 = vst [vmem:[#allocation26_spill] sm:$0xff] %v23477_v43 }
0x13a5   :  { %25284 = vst [vmem:[#allocation29_spill] sm:$0xff] %v23480_v9  ;;  %v16362_v48 = vpop.f32.mrb[8].mxu0 }
0x13a6   :  { %v23483_v30 = vadd.f32 %v16362_v48, %v23439_v22  ;;  %v8737_v4 = vpop.f32.mrb[9].mxu0 }
0x13a7   :  { %v23486_v8 = vadd.f32 %v23439_v22, %v8737_v4 }
0x13a8   :  { %25285 = vst [vmem:[#allocation45_spill] sm:$0xff] %v23483_v30 }
0x13a9   :  { %25286 = vst [vmem:[#allocation5_spill] sm:$0xff] %v23486_v8  ;;  %v16421_v58 = vpop.f32.mrb[10].mxu0 }
0x13aa   :  { %v8997_v32 = vadd.f32 %v16421_v58, %v13317_v44  ;;  %v8991_v50 = vpop.f32.mrb[11].mxu0 }
0x13ab   :  { %v8992_v61 = vadd.f32 %v13317_v44, %v8991_v50 }
0x13ad   :  { %v17865_v29 = vpack.c.bf16 %v8997_v32, %v8992_v61  ;;  %v16424_v52 = vpop.f32.mrb[12].mxu0 }
0x13ae   :  { %v9007_v56 = vadd.f32 %v16424_v52, %v13317_v44  ;;  %v9001_v38 = vpop.f32.mrb[13].mxu0 }
0x13af   :  { %v9002_v19 = vadd.f32 %v13317_v44, %v9001_v38  ;;  %17866 = vmatprep.subr.bf16.mxu0 %v17865_v29 }
0x13b0   :  { %17868 = vmatpush3.bf16.msra.mxu0 %v17865_v29 }
0x13b1   :  { %v17869_v0 = vpack.c.bf16 %v9007_v56, %v9002_v19  ;;  %v16427_v53 = vpop.f32.mrb[14].mxu0 }
0x13b2   :  { %v9017_v48 = vadd.f32 %v16427_v53, %v13317_v44  ;;  %v9011_v4 = vpop.f32.mrb[15].mxu0 }
0x13b3   :  { %v9012_v30 = vadd.f32 %v13317_v44, %v9011_v4  ;;  %17870 = vmatprep.subr.bf16.mxu0 %v17869_v0 }
0x13b4   :  { %17872 = vmatpush3.bf16.msra.mxu0 %v17869_v0 }
0x13b5   :  { %v17873_v8 = vpack.c.bf16 %v9017_v48, %v9012_v30  ;;  %v16430_v43 = vpop.f32.mrb[16].mxu0 }
0x13b6   :  { %v9027_v9 = vadd.f32 %v16430_v43, %v13317_v44  ;;  %v9021_v58 = vpop.f32.mrb[17].mxu0 }
0x13b7   :  { %v9022_v24 = vadd.f32 %v13317_v44, %v9021_v58  ;;  %17874 = vmatprep.subr.bf16.mxu0 %v17873_v8 }
0x13b8   :  { %17876 = vmatpush3.bf16.msra.mxu0 %v17873_v8 }
0x13b9   :  { %v17877_v32 = vpack.c.bf16 %v9027_v9, %v9022_v24  ;;  %v16433_v50 = vpop.f32.mrb[18].mxu0 }
0x13ba   :  { %v9037_v61 = vadd.f32 %v16433_v50, %v13317_v44  ;;  %v9031_v52 = vpop.f32.mrb[19].mxu0 }
0x13bb   :  { %v9032_v38 = vadd.f32 %v13317_v44, %v9031_v52  ;;  %17878 = vmatprep.subr.bf16.mxu0 %v17877_v32 }
0x13bc   :  { %17880 = vmatpush3.bf16.msra.mxu0 %v17877_v32 }
0x13bd   :  { %v17881_v29 = vpack.c.bf16 %v9037_v61, %v9032_v38  ;;  %v16436_v56 = vpop.f32.mrb[20].mxu0 }
0x13be   :  { %v9047_v19 = vadd.f32 %v16436_v56, %v13317_v44  ;;  %v9041_v53 = vpop.f32.mrb[21].mxu0 }
0x13bf   :  { %v9042_v4 = vadd.f32 %v13317_v44, %v9041_v53  ;;  %17882 = vmatprep.subr.bf16.mxu0 %v17881_v29 }
0x13c0   :  { %17884 = vmatpush3.bf16.msra.mxu0 %v17881_v29 }
0x13c1   :  { %v17885_v30 = vpack.c.bf16 %v9047_v19, %v9042_v4  ;;  %v16439_v43 = vpop.f32.mrb[22].mxu0 }
0x13c2   :  { %v9057_v0 = vadd.f32 %v16439_v43, %v13317_v44  ;;  %v9051_v48 = vpop.f32.mrb[23].mxu0 }
0x13c3   :  { %v9052_v58 = vadd.f32 %v13317_v44, %v9051_v48  ;;  %17886 = vmatprep.subr.bf16.mxu0 %v17885_v30 }
0x13c4   :  { %17888 = vmatpush3.bf16.msra.mxu0 %v17885_v30 }
0x13c5   :  { %v17889_v24 = vpack.c.bf16 %v9057_v0, %v9052_v58  ;;  %v16442_v9 = vpop.f32.mrb[24].mxu0 }
0x13c6   :  { %v9067_v8 = vadd.f32 %v16442_v9, %v13317_v44  ;;  %v9061_v50 = vpop.f32.mrb[25].mxu0 }
0x13c7   :  { %v9062_v52 = vadd.f32 %v13317_v44, %v9061_v50  ;;  %17890 = vmatprep.subr.bf16.mxu0 %v17889_v24 }
0x13c8   :  { %17892 = vmatpush3.bf16.msra.mxu0 %v17889_v24 }
0x13c9   :  { %v17893_v32 = vpack.c.bf16 %v9067_v8, %v9062_v52 }
0x13cb   :  { %17894 = vmatprep.subr.bf16.mxu0 %v17893_v32 }
0x13cc   :  { %17896 = vmatpush3.bf16.msra.mxu0 %v17893_v32 }
0x13f7   :  { %v8087_v61 = vpop.xlane.xlu1 %8086 }
0x13f8   :  { %v8117_v38 = vsub.f32 %v23388_v28, %v8087_v61  ;;  %v8085_v29 = vpop.xlane.xlu0 %8084 }
0x13f9   :  { %v8116_v56 = vsub.f32 %v23391_v15, %v8085_v29 }
0x13fa   :  { %v8134_v19 = vmul.f32 1.442695, %v8117_v38 }
0x13fb   :  { %v8132_v53 = vmul.f32 1.442695, %v8116_v56  ;;  %v8091_v4 = vpop.xlane.xlu1 %8090 }
0x13fc   :  { %18687 = vpow2.f32 %v8134_v19  ;;  %v8119_v30 = vsub.f32 %v23394_v54, %v8091_v4  ;;  %v8089_v43 = vpop.xlane.xlu0 %8088 }
0x13fd   :  { %18689 = vpow2.f32 %v8132_v53  ;;  %v8118_v44 = vsub.f32 %v23397_v10, %v8089_v43 }
0x13fe   :  { %v8138_v0 = vmul.f32 1.442695, %v8119_v30 }
0x13ff   :  { %v8136_v48 = vmul.f32 1.442695, %v8118_v44  ;;  %v8095_v58 = vpop.xlane.xlu1 %8094 }
0x1400   :  { %18691 = vpow2.f32 %v8138_v0  ;;  %v8121_v24 = vsub.f32 %v23400_v45, %v8095_v58  ;;  %v8093_v28 = vpop.xlane.xlu0 %8092 }
0x1401   :  { %18693 = vpow2.f32 %v8136_v48  ;;  %v8120_v15 = vsub.f32 %v23403_v37, %v8093_v28 }
0x1402   :  { %v8142_v9 = vmul.f32 1.442695, %v8121_v24 }
0x1403   :  { %v8140_v8 = vmul.f32 1.442695, %v8120_v15  ;;  %v8099_v50 = vpop.xlane.xlu1 %8098 }
0x1404   :  { %18695 = vpow2.f32 %v8142_v9  ;;  %v8123_v54 = vsub.f32 %v23406_v11, %v8099_v50  ;;  %v8097_v52 = vpop.xlane.xlu0 %8096 }
0x1405   :  { %18697 = vpow2.f32 %v8140_v8  ;;  %v8122_v10 = vsub.f32 %v23409_v1, %v8097_v52 }
0x1406   :  { %v23499_v32 = vpop.eup %18687  ;;  %v8146_v61 = vmul.f32 1.442695, %v8123_v54 }
0x1407   :  { %v23501_v38 = vpop.eup %18689  ;;  %v8144_v45 = vmul.f32 1.442695, %v8122_v10  ;;  %v8103_v29 = vpop.xlane.xlu1 %8102  ;;  %8166 = vadd.xlane.f32.xlu1 %v23499_v32 }
0x1408   :  { %18699 = vpow2.f32 %v8146_v61  ;;  %v8125_v37 = vsub.f32 %v23412_v39, %v8103_v29  ;;  %v8101_v56 = vpop.xlane.xlu0 %8100  ;;  %8164 = vadd.xlane.f32.xlu0 %v23501_v38 }
0x1409   :  { %18701 = vpow2.f32 %v8144_v45  ;;  %v8124_v11 = vsub.f32 %v23415_v55, %v8101_v56 }
0x140a   :  { %v23507_v19 = vpop.eup %18691  ;;  %v8150_v1 = vmul.f32 1.442695, %v8125_v37 }
0x140b   :  { %v23509_v53 = vpop.eup %18693  ;;  %v8148_v4 = vmul.f32 1.442695, %v8124_v11  ;;  %v8107_v30 = vpop.xlane.xlu1 %8106  ;;  %8170 = vadd.xlane.f32.xlu1 %v23507_v19 }
0x140c   :  { %18703 = vpow2.f32 %v8150_v1  ;;  %v8127_v43 = vsub.f32 %v23418_v41, %v8107_v30  ;;  %v8105_v44 = vpop.xlane.xlu0 %8104  ;;  %8168 = vadd.xlane.f32.xlu0 %v23509_v53 }
0x140d   :  { %18705 = vpow2.f32 %v8148_v4  ;;  %v8126_v39 = vsub.f32 %v23421_v36, %v8105_v44  ;;  %v13239_v4 = vld [vmem:[%s24927_s14 + $0x20] sm:$0xff] }
0x140e   :  { %v23515_v0 = vpop.eup %18695  ;;  %v8154_v55 = vmul.f32 1.442695, %v8127_v43  ;;  %16297 = vmatprep.subr.mxu1 %v13239_v4 }
0x140f   :  { %v23517_v48 = vpop.eup %18697  ;;  %v8152_v58 = vmul.f32 1.442695, %v8126_v39  ;;  %v8111_v24 = vpop.xlane.xlu1 %8110  ;;  %8174 = vadd.xlane.f32.xlu1 %v23515_v0 }
0x1410   :  { %18707 = vpow2.f32 %v8154_v55  ;;  %v8129_v28 = vsub.f32 %v23424_v12, %v8111_v24  ;;  %v8109_v15 = vpop.xlane.xlu0 %8108  ;;  %8172 = vadd.xlane.f32.xlu0 %v23517_v48 }
0x1411   :  { %18709 = vpow2.f32 %v8152_v58  ;;  %v8128_v41 = vsub.f32 %v23427_v33, %v8109_v15 }
0x1412   :  { %v23523_v9 = vpop.eup %18699  ;;  %v8158_v36 = vmul.f32 1.442695, %v8129_v28 }
0x1413   :  { %v23525_v8 = vpop.eup %18701  ;;  %v8156_v50 = vmul.f32 1.442695, %v8128_v41  ;;  %8178 = vadd.xlane.f32.xlu1 %v23523_v9  ;;  %v8115_v54 = vpop.xlane.xlu1 %8114 }
0x1414   :  { %18711 = vpow2.f32 %v8158_v36  ;;  %v8131_v52 = vsub.f32 %v23430_v26, %v8115_v54  ;;  %8176 = vadd.xlane.f32.xlu0 %v23525_v8  ;;  %v8113_v12 = vpop.xlane.xlu0 %8112 }
0x1415   :  { %18713 = vpow2.f32 %v8156_v50  ;;  %v8130_v10 = vsub.f32 %v23433_v27, %v8113_v12 }
0x1416   :  { %v23531_v61 = vpop.eup %18703  ;;  %v8162_v33 = vmul.f32 1.442695, %v8131_v52 }
0x1417   :  { %v23533_v45 = vpop.eup %18705  ;;  %v8160_v29 = vmul.f32 1.442695, %v8130_v10  ;;  %8182 = vadd.xlane.f32.xlu1 %v23531_v61 }
0x1418   :  { %18715 = vpow2.f32 %v8162_v33  ;;  %8180 = vadd.xlane.f32.xlu0 %v23533_v45 }
0x1419   :  { %18717 = vpow2.f32 %v8160_v29 }
0x141a   :  { %v23537_v37 = vpop.eup %18707 }
0x141b   :  { %v23539_v26 = vpop.eup %18709  ;;  %8186 = vadd.xlane.f32.xlu1 %v23537_v37 }
0x141c   :  { %8184 = vadd.xlane.f32.xlu0 %v23539_v26 }
0x141e   :  { %v23543_v27 = vpop.eup %18711 }
0x141f   :  { %v23545_v56 = vpop.eup %18713  ;;  %8190 = vadd.xlane.f32.xlu1 %v23543_v27 }
0x1420   :  { %8188 = vadd.xlane.f32.xlu0 %v23545_v56 }
0x1422   :  { %v23549_v11 = vpop.eup %18715 }
0x1423   :  { %v23551_v1 = vpop.eup %18717  ;;  %8194 = vadd.xlane.f32.xlu1 %v23549_v11 }
0x1424   :  { %8192 = vadd.xlane.f32.xlu0 %v23551_v1 }
0x1494   :  { %v8167_v30 = vpop.xlane.xlu1 %8166 }
0x1495   :  { %18719 = vrcp.f32 %v8167_v30  ;;  %v8165_v43 = vpop.xlane.xlu0 %8164 }
0x1496   :  { %18721 = vrcp.f32 %v8165_v43 }
0x1498   :  { %v8171_v44 = vpop.xlane.xlu1 %8170 }
0x1499   :  { %18723 = vrcp.f32 %v8171_v44  ;;  %v8169_v39 = vpop.xlane.xlu0 %8168 }
0x149a   :  { %18725 = vrcp.f32 %v8169_v39 }
0x149c   :  { %v8175_v55 = vpop.xlane.xlu1 %8174 }
0x149d   :  { %18727 = vrcp.f32 %v8175_v55  ;;  %v8173_v58 = vpop.xlane.xlu0 %8172 }
0x149e   :  { %18729 = vrcp.f32 %v8173_v58 }
0x149f   :  { %v18720_v24 = vpop.eup %18719 }
0x14a0   :  { %v18722_v28 = vpop.eup %18721  ;;  %v8179_v15 = vpop.xlane.xlu1 %8178  ;;  %v8213_v50 = vmul.f32 %v18720_v24, %v23499_v32 }
0x14a1   :  { %18731 = vrcp.f32 %v8179_v15  ;;  %v8177_v41 = vpop.xlane.xlu0 %8176  ;;  %v8212_v36 = vmul.f32 %v18722_v28, %v23501_v38 }
0x14a2   :  { %18733 = vrcp.f32 %v8177_v41 }
0x14a3   :  { %v18724_v54 = vpop.eup %18723  ;;  %16273 = vmatprep.mubr.f32.mxu1 %v8212_v36 }
0x14a4   :  { %v18726_v52 = vpop.eup %18725  ;;  %v8183_v12 = vpop.xlane.xlu1 %8182  ;;  %16274 = vmatmul.mubr.f32.vlgmr.msra.gmra.mrb[182].mxu1 %v8213_v50  ;;  %v8215_v29 = vmul.f32 %v18724_v54, %v23507_v19 }
0x14a5   :  { %18735 = vrcp.f32 %v8183_v12  ;;  %v8181_v10 = vpop.xlane.xlu0 %8180  ;;  %v8214_v33 = vmul.f32 %v18726_v52, %v23509_v53  ;;  %16298 = vmatpush3.msra.mxu1 %v13239_v4 }
0x14a6   :  { %18737 = vrcp.f32 %v8181_v10 }
0x14a7   :  { %v18728_v30 = vpop.eup %18727  ;;  %16276 = vmatprep.mubr.f32.mxu1 %v8214_v33 }
0x14a8   :  { %v18730_v43 = vpop.eup %18729  ;;  %v8187_v38 = vpop.xlane.xlu1 %8186  ;;  %16277 = vmatmul.mubr.f32.gmra.mrb[184].mxu1 %v8215_v29  ;;  %v8217_v39 = vmul.f32 %v18728_v30, %v23515_v0 }
0x14a9   :  { %18739 = vrcp.f32 %v8187_v38  ;;  %v8185_v32 = vpop.xlane.xlu0 %8184  ;;  %v8216_v44 = vmul.f32 %v18730_v43, %v23517_v48 }
0x14aa   :  { %18741 = vrcp.f32 %v8185_v32  ;;  %v13286_v32 = vld [vmem:[%s24922_s9 + $0x160] sm:$0xff] }
0x14ab   :  { %v18732_v55 = vpop.eup %18731  ;;  %16279 = vmatprep.mubr.f32.mxu1 %v8216_v44  ;;  %v13287_v44 = vld [vmem:[%s24922_s9 + $0x168] sm:$0xff] }
0x14ac   :  { %v18734_v58 = vpop.eup %18733  ;;  %v8191_v53 = vpop.xlane.xlu1 %8190  ;;  %16280 = vmatmul.mubr.f32.gmra.mrb[186].mxu1 %v8217_v39  ;;  %v8219_v24 = vmul.f32 %v18732_v55, %v23523_v9 }
0x14ad   :  { %18743 = vrcp.f32 %v8191_v53  ;;  %v8189_v4 = vpop.xlane.xlu0 %8188  ;;  %v8218_v19 = vmul.f32 %v18734_v58, %v23525_v8  ;;  %v17793_v58 = vpack.c.bf16 %v13287_v44, %v13286_v32  ;;  %v13288_v53 = vld [vmem:[%s24922_s9 + $0x170] sm:$0xff] }
0x14ae   :  { %18745 = vrcp.f32 %v8189_v4  ;;  %v13289_v4 = vld [vmem:[%s24922_s9 + $0x178] sm:$0xff] }
0x14af   :  { %v18736_v28 = vpop.eup %18735  ;;  %16282 = vmatprep.mubr.f32.mxu1 %v8218_v19 }
0x14b0   :  { %v18738_v15 = vpop.eup %18737  ;;  %v8195_v41 = vpop.xlane.xlu1 %8194  ;;  %16283 = vmatmul.mubr.f32.gmra.mrb[188].mxu1 %v8219_v24  ;;  %v8221_v36 = vmul.f32 %v18736_v28, %v23531_v61  ;;  %v17797_v28 = vpack.c.bf16 %v13289_v4, %v13288_v53 }
0x14b1   :  { %18747 = vrcp.f32 %v8195_v41  ;;  %v8193_v48 = vpop.xlane.xlu0 %8192  ;;  %v8220_v0 = vmul.f32 %v18738_v15, %v23533_v45 }
0x14b2   :  { %18749 = vrcp.f32 %v8193_v48 }
0x14b3   :  { %v18740_v50 = vpop.eup %18739  ;;  %16285 = vmatprep.mubr.f32.mxu1 %v8220_v0 }
0x14b4   :  { %v18742_v54 = vpop.eup %18741  ;;  %16286 = vmatmul.mubr.f32.gmra.mrb[190].mxu1 %v8221_v36  ;;  %v8223_v9 = vmul.f32 %v18740_v50, %v23537_v37  ;;  %v13282_v37 = vld [vmem:[%s24922_s9 + $0x140] sm:$0xff] }
0x14b5   :  { %v8222_v8 = vmul.f32 %v18742_v54, %v23539_v26  ;;  %v13283_v26 = vld [vmem:[%s24922_s9 + $0x148] sm:$0xff] }
0x14b7   :  { %v18744_v52 = vpop.eup %18743  ;;  %16288 = vmatprep.mubr.f32.mxu1 %v8222_v8 }
0x14b8   :  { %v18746_v12 = vpop.eup %18745  ;;  %16289 = vmatmul.mubr.f32.gmra.mrb[192].mxu1 %v8223_v9  ;;  %v8225_v33 = vmul.f32 %v18744_v52, %v23543_v27  ;;  %v13284_v27 = vld [vmem:[%s24922_s9 + $0x150] sm:$0xff] }
0x14b9   :  { %v8224_v10 = vmul.f32 %v18746_v12, %v23545_v56  ;;  %v17785_v56 = vpack.c.bf16 %v13283_v26, %v13282_v37  ;;  %v8668_v12 = vadd.f32 %v23439_v22, %v23444_v17 }
0x14bb   :  { %v18748_v45 = vpop.eup %18747  ;;  %16291 = vmatprep.mubr.f32.mxu1 %v8224_v10  ;;  %17786 = vmatprep.subr.bf16.mxu1 %v17785_v56  ;;  %v13291_v10 = vld [vmem:[%s24926_s12 + $0x5] ss:$0 sm:$0xff] }
0x14bc   :  { %v18750_v29 = vpop.eup %18749  ;;  %16292 = vmatmul.mubr.f32.gmra.mrb[194].mxu1 %v8225_v33  ;;  %v8227_v30 = vmul.f32 %v18748_v45, %v23549_v11  ;;  %v13285_v11 = vld [vmem:[%s24922_s9 + $0x158] sm:$0xff] }
0x14bd   :  { %v8226_v61 = vmul.f32 %v18750_v29, %v23551_v1  ;;  %v17789_v38 = vpack.c.bf16 %v13285_v11, %v13284_v27 }
0x14bf   :  { %16294 = vmatprep.mubr.f32.mxu1 %v8226_v61 }
0x14c0   :  { %16295 = vmatmul.mubr.f32.gmra.mrb[196].mxu1 %v8227_v30 }
0x1577   :  { %v16275_v1 = vpop.f32.mrb[182].mxu1 }
0x1578   :  { %v8294_v43 = vpop.f32.mrb[183].mxu1 }
0x1579   :  { %16299 = vmatprep.mubr.msk.f32.mxu1 %vm2967_vm10, %v8294_v43 }
0x157a   :  { %16300 = vmatmul.mubr.msk.f32.vlgmr.msra.gmra.mrb[86].mxu1 %vm2967_vm10, %v16275_v1 }
0x157b   :  { %17788 = vmatpush3.bf16.msra.mxu1 %v17785_v56  ;;  %v16278_v39 = vpop.f32.mrb[184].mxu1 }
0x157c   :  { %v8304_v55 = vpop.f32.mrb[185].mxu1  ;;  %17790 = vmatprep.subr.bf16.mxu1 %v17789_v38 }
0x157d   :  { %16302 = vmatprep.mubr.msk.f32.mxu1 %vm2967_vm10, %v8304_v55 }
0x157e   :  { %16303 = vmatmul.mubr.msk.f32.gmra.mrb[88].mxu1 %vm2967_vm10, %v16278_v39 }
0x157f   :  { %v16281_v19 = vpop.f32.mrb[186].mxu1  ;;  %17792 = vmatpush3.bf16.msra.mxu1 %v17789_v38 }
0x1580   :  { %v8314_v24 = vpop.f32.mrb[187].mxu1  ;;  %17794 = vmatprep.subr.bf16.mxu1 %v17793_v58 }
0x1581   :  { %16305 = vmatprep.mubr.msk.f32.mxu1 %vm2967_vm10, %v8314_v24 }
0x1582   :  { %16306 = vmatmul.mubr.msk.f32.gmra.mrb[90].mxu1 %vm2967_vm10, %v16281_v19 }
0x1583   :  { %v16284_v15 = vpop.f32.mrb[188].mxu1  ;;  %17796 = vmatpush3.bf16.msra.mxu1 %v17793_v58 }
0x1584   :  { %v8324_v41 = vpop.f32.mrb[189].mxu1  ;;  %17798 = vmatprep.subr.bf16.mxu1 %v17797_v28 }
0x1585   :  { %16308 = vmatprep.mubr.msk.f32.mxu1 %vm2967_vm10, %v8324_v41 }
0x1586   :  { %16309 = vmatmul.mubr.msk.f32.gmra.mrb[92].mxu1 %vm2967_vm10, %v16284_v15 }
0x1587   :  { %v16287_v48 = vpop.f32.mrb[190].mxu1  ;;  %17800 = vmatpush3.bf16.msra.mxu1 %v17797_v28 }
0x1588   :  { %v8334_v0 = vpop.f32.mrb[191].mxu1 }
0x1589   :  { %16311 = vmatprep.mubr.msk.f32.mxu1 %vm2967_vm10, %v8334_v0 }
0x158a   :  { %16312 = vmatmul.mubr.msk.f32.gmra.mrb[94].mxu1 %vm2967_vm10, %v16287_v48 }
0x158b   :  { %v16290_v36 = vpop.f32.mrb[192].mxu1 }
0x158c   :  { %v8344_v50 = vpop.f32.mrb[193].mxu1 }
0x158d   :  { %16314 = vmatprep.mubr.msk.f32.mxu1 %vm2967_vm10, %v8344_v50 }
0x158e   :  { %16315 = vmatmul.mubr.msk.f32.gmra.mrb[96].mxu1 %vm2967_vm10, %v16290_v36 }
0x158f   :  { %v16293_v54 = vpop.f32.mrb[194].mxu1 }
0x1590   :  { %v8354_v8 = vpop.f32.mrb[195].mxu1 }
0x1591   :  { %16317 = vmatprep.mubr.msk.f32.mxu1 %vm2967_vm10, %v8354_v8 }
0x1592   :  { %16318 = vmatmul.mubr.msk.f32.gmra.mrb[98].mxu1 %vm2967_vm10, %v16293_v54 }
0x1593   :  { %v16296_v9 = vpop.f32.mrb[196].mxu1 }
0x1594   :  { %v8364_v52 = vpop.f32.mrb[197].mxu1 }
0x1595   :  { %16320 = vmatprep.mubr.msk.f32.mxu1 %vm2967_vm10, %v8364_v52 }
0x1596   :  { %16321 = vmatmul.mubr.msk.f32.gmra.mrb[100].mxu1 %vm2967_vm10, %v16296_v9 }
0x1597   :  { %16379 = vmatprep.mubr.msk.f32.mxu1 %vm2029_vm5, %v21351_v35 }
0x159a   :  { %16380 = vmatmul.mubr.msk.f32.vlgmr.msra.gmra.mrb[198].mxu1 %vm2029_vm5, %v21354_v34 }
0x159b   :  { %16382 = vmatprep.mubr.msk.f32.mxu1 %vm2029_vm5, %v21371_v46 }
0x159e   :  { %16383 = vmatmul.mubr.msk.f32.gmra.mrb[200].mxu1 %vm2029_vm5, %v21374_v7 }
0x159f   :  { %16385 = vmatprep.mubr.msk.f32.mxu1 %vm2029_vm5, %v21391_v14 }
0x15a2   :  { %16386 = vmatmul.mubr.msk.f32.gmra.mrb[202].mxu1 %vm2029_vm5, %v21394_v6 }
0x15a3   :  { %16388 = vmatprep.mubr.msk.f32.mxu1 %vm2029_vm5, %v21405_v20 }
0x15a6   :  { %16389 = vmatmul.mubr.msk.f32.gmra.mrb[204].mxu1 %vm2029_vm5, %v21408_v2 }
0x15a7   :  { %16391 = vmatprep.mubr.msk.f32.mxu1 %vm2029_vm5, %v21419_v23 }
0x15aa   :  { %16392 = vmatmul.mubr.msk.f32.gmra.mrb[206].mxu1 %vm2029_vm5, %v21422_v13 }
0x15ab   :  { %16394 = vmatprep.mubr.msk.f32.mxu1 %vm2029_vm5, %v21433_v57 }
0x15ae   :  { %16395 = vmatmul.mubr.msk.f32.gmra.mrb[208].mxu1 %vm2029_vm5, %v21436_v47 }
0x15af   :  { %16397 = vmatprep.mubr.msk.f32.mxu1 %vm2029_vm5, %v21447_v31 }
0x15b2   :  { %16398 = vmatmul.mubr.msk.f32.gmra.mrb[210].mxu1 %vm2029_vm5, %v21450_v49 }
0x15b3   :  { %16400 = vmatprep.mubr.msk.f32.mxu1 %vm2029_vm5, %v21461_v5 }
0x15b6   :  { %16401 = vmatmul.mubr.msk.f32.gmra.mrb[212].mxu1 %vm2029_vm5, %v21464_v25 }
0x15b7   :  { %16475 = vmatprep.mubr.msk.f32.mxu1 %vm2967_vm10, %v8668_v12 }
0x166d   :  { %v16381_v33 = vpop.f32.mrb[198].mxu1 }
0x166e   :  { %v8835_v45 = vadd.f32 %v16381_v33, %v13291_v10  ;;  %v8829_v29 = vpop.f32.mrb[199].mxu1 }
0x166f   :  { %v8830_v61 = vadd.f32 %v13291_v10, %v8829_v29 }
0x1671   :  { %v17817_v30 = vpack.c.bf16 %v8835_v45, %v8830_v61  ;;  %v16384_v37 = vpop.f32.mrb[200].mxu1 }
0x1672   :  { %v8845_v26 = vadd.f32 %v16384_v37, %v13291_v10  ;;  %v8839_v56 = vpop.f32.mrb[201].mxu1 }
0x1673   :  { %v8840_v27 = vadd.f32 %v13291_v10, %v8839_v56  ;;  %17819 = vmatprep.subr.msk.bf16.mxu1 %vm21584_vm4, %v17817_v30 }
0x1674   :  { %17822 = vmatpush3.bf16.xpose.msk.msra.mxu1 %vm21584_vm4, %v17817_v30 }
0x1675   :  { %v17823_v22 = vpack.c.bf16 %v8845_v26, %v8840_v27  ;;  %v16387_v17 = vpop.f32.mrb[202].mxu1 }
0x1676   :  { %v8855_v11 = vadd.f32 %v16387_v17, %v13291_v10  ;;  %v8849_v1 = vpop.f32.mrb[203].mxu1 }
0x1677   :  { %v8850_v43 = vadd.f32 %v13291_v10, %v8849_v1  ;;  %17825 = vmatprep.subr.msk.bf16.mxu1 %vm21584_vm4, %v17823_v22 }
0x1679   :  { %v17829_v38 = vpack.c.bf16 %v8855_v11, %v8850_v43  ;;  %v16390_v32 = vpop.f32.mrb[204].mxu1 }
0x167a   :  { %v8865_v44 = vadd.f32 %v16390_v32, %v13291_v10  ;;  %v8859_v39 = vpop.f32.mrb[205].mxu1 }
0x167b   :  { %v8860_v55 = vadd.f32 %v13291_v10, %v8859_v39 }
0x167c   :  { %17828 = vmatpush3.bf16.xpose.msk.msra.mxu1 %vm21584_vm4, %v17823_v22 }
0x167d   :  { %v17835_v58 = vpack.c.bf16 %v8865_v44, %v8860_v55  ;;  %v16393_v53 = vpop.f32.mrb[206].mxu1  ;;  %17831 = vmatprep.subr.msk.bf16.mxu1 %vm21584_vm4, %v17829_v38 }
0x167e   :  { %v8875_v4 = vadd.f32 %v16393_v53, %v13291_v10  ;;  %v8869_v19 = vpop.f32.mrb[207].mxu1 }
0x167f   :  { %v8870_v24 = vadd.f32 %v13291_v10, %v8869_v19 }
0x1681   :  { %v17841_v28 = vpack.c.bf16 %v8875_v4, %v8870_v24  ;;  %v16396_v15 = vpop.f32.mrb[208].mxu1 }
0x1682   :  { %v8885_v41 = vadd.f32 %v16396_v15, %v13291_v10  ;;  %v8879_v48 = vpop.f32.mrb[209].mxu1 }
0x1683   :  { %v8880_v0 = vadd.f32 %v13291_v10, %v8879_v48 }
0x1684   :  { %17834 = vmatpush3.bf16.xpose.msk.msra.mxu1 %vm21584_vm4, %v17829_v38 }
0x1685   :  { %v17847_v36 = vpack.c.bf16 %v8885_v41, %v8880_v0  ;;  %v16399_v50 = vpop.f32.mrb[210].mxu1  ;;  %17837 = vmatprep.subr.msk.bf16.mxu1 %vm21584_vm4, %v17835_v58 }
0x1686   :  { %v8895_v54 = vadd.f32 %v16399_v50, %v13291_v10  ;;  %v8889_v8 = vpop.f32.mrb[211].mxu1 }
0x1687   :  { %v8890_v9 = vadd.f32 %v13291_v10, %v8889_v8 }
0x1689   :  { %v17853_v52 = vpack.c.bf16 %v8895_v54, %v8890_v9  ;;  %v16402_v12 = vpop.f32.mrb[212].mxu1 }
0x168a   :  { %v8905_v33 = vadd.f32 %v16402_v12, %v13291_v10  ;;  %v8899_v45 = vpop.f32.mrb[213].mxu1 }
0x168b   :  { %v8900_v29 = vadd.f32 %v13291_v10, %v8899_v45 }
0x168c   :  { %17840 = vmatpush3.bf16.xpose.msk.msra.mxu1 %vm21584_vm4, %v17835_v58 }
0x168d   :  { %v17859_v61 = vpack.c.bf16 %v8905_v33, %v8900_v29  ;;  %17843 = vmatprep.subr.msk.bf16.mxu1 %vm21584_vm4, %v17841_v28 }
0x1694   :  { %17846 = vmatpush3.bf16.xpose.msk.msra.mxu1 %vm21584_vm4, %v17841_v28 }
0x1695   :  { %17849 = vmatprep.subr.msk.bf16.mxu1 %vm21584_vm4, %v17847_v36 }
0x169c   :  { %17852 = vmatpush3.bf16.xpose.msk.msra.mxu1 %vm21584_vm4, %v17847_v36 }
0x169d   :  { %17855 = vmatprep.subr.msk.bf16.mxu1 %vm21584_vm4, %v17853_v52 }
0x16a4   :  { %17858 = vmatpush3.bf16.xpose.msk.msra.mxu1 %vm21584_vm4, %v17853_v52 }
0x16a5   :  { %17861 = vmatprep.subr.msk.bf16.mxu1 %vm21584_vm4, %v17859_v61 }
0x16ac   :  { %17864 = vmatpush3.bf16.xpose.msk.msra.mxu1 %vm21584_vm4, %v17859_v61 }
0x16b3   :  { %16476 = vmatmul.mubr.msk.f32.vlgmr.msra.gmra.mrb[214].mxu1 %vm2967_vm10, %v23442_v60  ;;  %v25287_v60 = vld [vmem:[#allocation28_spill] sm:$0xff] }
0x16b4   :  { %16478 = vmatprep.mubr.msk.f32.mxu1 %vm2967_vm10, %v23450_v62  ;;  %v25289_v62 = vld [vmem:[#allocation26_spill] sm:$0xff] }
0x16b7   :  { %16479 = vmatmul.mubr.msk.f32.gmra.mrb[216].mxu1 %vm2967_vm10, %v23447_v16  ;;  %v25288_v16 = vld [vmem:[#allocation29_spill] sm:$0xff] }
0x16b8   :  { %16481 = vmatprep.mubr.msk.f32.mxu1 %vm2967_vm10, %v23456_v63  ;;  %v25291_v63 = vld [vmem:[#allocation45_spill] sm:$0xff] }
0x16bb   :  { %16482 = vmatmul.mubr.msk.f32.gmra.mrb[218].mxu1 %vm2967_vm10, %v23453_v59  ;;  %v25290_v59 = vld [vmem:[#allocation5_spill] sm:$0xff] }
0x16bc   :  { %16484 = vmatprep.mubr.msk.f32.mxu1 %vm2967_vm10, %v23462_v40 }
0x16bf   :  { %16485 = vmatmul.mubr.msk.f32.gmra.mrb[220].mxu1 %vm2967_vm10, %v23459_v42 }
0x16c0   :  { %16487 = vmatprep.mubr.msk.f32.mxu1 %vm2967_vm10, %v23468_v21 }
0x16c3   :  { %16488 = vmatmul.mubr.msk.f32.gmra.mrb[222].mxu1 %vm2967_vm10, %v23465_v3 }
0x16c4   :  { %16490 = vmatprep.mubr.msk.f32.mxu1 %vm2967_vm10, %v23474_v51 }
0x16c7   :  { %16491 = vmatmul.mubr.msk.f32.gmra.mrb[224].mxu1 %vm2967_vm10, %v25287_v60 }
0x16c8   :  { %16493 = vmatprep.mubr.msk.f32.mxu1 %vm2967_vm10, %v25288_v16 }
0x16cb   :  { %16494 = vmatmul.mubr.msk.f32.gmra.mrb[226].mxu1 %vm2967_vm10, %v25289_v62 }
0x16cc   :  { %16496 = vmatprep.mubr.msk.f32.mxu1 %vm2967_vm10, %v25290_v59 }
0x16cf   :  { %16497 = vmatmul.mubr.msk.f32.gmra.mrb[228].mxu1 %vm2967_vm10, %v25291_v63 }
0x1786   :  { %v16477_v42 = vpop.f32.mrb[214].mxu1 }
0x1787   :  { %9313 = vmax.xlane.f32.xlu1 %v16477_v42  ;;  %v9232_v40 = vpop.f32.mrb[215].mxu1 }
0x1788   :  { %9311 = vmax.xlane.f32.xlu0 %v9232_v40 }
0x178a   :  { %v16480_v3 = vpop.f32.mrb[216].mxu1 }
0x178b   :  { %9317 = vmax.xlane.f32.xlu1 %v16480_v3  ;;  %v9242_v21 = vpop.f32.mrb[217].mxu1 }
0x178c   :  { %9315 = vmax.xlane.f32.xlu0 %v9242_v21 }
0x178e   :  { %v16483_v51 = vpop.f32.mrb[218].mxu1 }
0x178f   :  { %9321 = vmax.xlane.f32.xlu1 %v16483_v51  ;;  %v9252_v10 = vpop.f32.mrb[219].mxu1 }
0x1790   :  { %9319 = vmax.xlane.f32.xlu0 %v9252_v10 }
0x1792   :  { %v16486_v30 = vpop.f32.mrb[220].mxu1 }
0x1793   :  { %9325 = vmax.xlane.f32.xlu1 %v16486_v30  ;;  %v9262_v37 = vpop.f32.mrb[221].mxu1 }
0x1794   :  { %9323 = vmax.xlane.f32.xlu0 %v9262_v37 }
0x1796   :  { %v16489_v26 = vpop.f32.mrb[222].mxu1 }
0x1797   :  { %9329 = vmax.xlane.f32.xlu1 %v16489_v26  ;;  %v9272_v56 = vpop.f32.mrb[223].mxu1 }
0x1798   :  { %9327 = vmax.xlane.f32.xlu0 %v9272_v56 }
0x179a   :  { %v23714_v27 = vpop.f32.mrb[224].mxu1 }
0x179b   :  { %9333 = vmax.xlane.f32.xlu1 %v23714_v27  ;;  %v23717_v22 = vpop.f32.mrb[225].mxu1 }
0x179c   :  { %9331 = vmax.xlane.f32.xlu0 %v23717_v22 }
0x179e   :  { %v23720_v17 = vpop.f32.mrb[226].mxu1 }
0x179f   :  { %9337 = vmax.xlane.f32.xlu1 %v23720_v17  ;;  %v23723_v11 = vpop.f32.mrb[227].mxu1 }
0x17a0   :  { %9335 = vmax.xlane.f32.xlu0 %v23723_v11 }
0x17a2   :  { %v23726_v1 = vpop.f32.mrb[228].mxu1 }
0x17a3   :  { %9341 = vmax.xlane.f32.xlu1 %v23726_v1  ;;  %v23729_v43 = vpop.f32.mrb[229].mxu1 }
0x17a4   :  { %9339 = vmax.xlane.f32.xlu0 %v23729_v43 }
0x1814   :  { %v9314_v38 = vpop.xlane.xlu1 %9313 }
0x1815   :  { %v9344_v32 = vsub.f32 %v16477_v42, %v9314_v38  ;;  %v9312_v44 = vpop.xlane.xlu0 %9311 }
0x1816   :  { %v9343_v39 = vsub.f32 %v9232_v40, %v9312_v44 }
0x1817   :  { %v9361_v55 = vmul.f32 1.442695, %v9344_v32 }
0x1818   :  { %v9359_v58 = vmul.f32 1.442695, %v9343_v39  ;;  %v9318_v53 = vpop.xlane.xlu1 %9317 }
0x1819   :  { %18751 = vpow2.f32 %v9361_v55  ;;  %v9346_v4 = vsub.f32 %v16480_v3, %v9318_v53  ;;  %v9316_v19 = vpop.xlane.xlu0 %9315 }
0x181a   :  { %18753 = vpow2.f32 %v9359_v58  ;;  %v9345_v24 = vsub.f32 %v9242_v21, %v9316_v19 }
0x181b   :  { %v9365_v28 = vmul.f32 1.442695, %v9346_v4 }
0x181c   :  { %v9363_v15 = vmul.f32 1.442695, %v9345_v24  ;;  %v9322_v41 = vpop.xlane.xlu1 %9321 }
0x181d   :  { %18755 = vpow2.f32 %v9365_v28  ;;  %v9348_v48 = vsub.f32 %v16483_v51, %v9322_v41  ;;  %v9320_v0 = vpop.xlane.xlu0 %9319 }
0x181e   :  { %18757 = vpow2.f32 %v9363_v15  ;;  %v9347_v36 = vsub.f32 %v9252_v10, %v9320_v0 }
0x181f   :  { %v9369_v50 = vmul.f32 1.442695, %v9348_v48 }
0x1820   :  { %v9367_v54 = vmul.f32 1.442695, %v9347_v36  ;;  %v9326_v8 = vpop.xlane.xlu1 %9325 }
0x1821   :  { %18759 = vpow2.f32 %v9369_v50  ;;  %v9350_v9 = vsub.f32 %v16486_v30, %v9326_v8  ;;  %v9324_v52 = vpop.xlane.xlu0 %9323  ;;  %v13384_v8 = vld [vmem:[%s24919_s8 + $0x188] sm:$0xff] }
0x1822   :  { %18761 = vpow2.f32 %v9367_v54  ;;  %v9349_v12 = vsub.f32 %v9262_v37, %v9324_v52  ;;  %v13383_v54 = vld [vmem:[%s24919_s8 + $0x180] sm:$0xff] }
0x1823   :  { %v23732_v33 = vpop.eup %18751  ;;  %v9373_v45 = vmul.f32 1.442695, %v9350_v9  ;;  %v17897_v9 = vpack.c.bf16 %v13384_v8, %v13383_v54 }
0x1824   :  { %v23734_v29 = vpop.eup %18753  ;;  %v9371_v61 = vmul.f32 1.442695, %v9349_v12  ;;  %v9330_v60 = vpop.xlane.xlu1 %9329  ;;  %9393 = vadd.xlane.f32.xlu1 %v23732_v33 }
0x1825   :  { %18763 = vpow2.f32 %v9373_v45  ;;  %v9352_v16 = vsub.f32 %v16489_v26, %v9330_v60  ;;  %v9328_v62 = vpop.xlane.xlu0 %9327  ;;  %9391 = vadd.xlane.f32.xlu0 %v23734_v29  ;;  %17898 = vmatprep.subr.bf16.mxu0 %v17897_v9 }
0x1826   :  { %18765 = vpow2.f32 %v9371_v61  ;;  %v9351_v59 = vsub.f32 %v9272_v56, %v9328_v62 }
0x1827   :  { %v23738_v63 = vpop.eup %18755  ;;  %v9377_v42 = vmul.f32 1.442695, %v9352_v16 }
0x1828   :  { %v23740_v40 = vpop.eup %18757  ;;  %v9375_v3 = vmul.f32 1.442695, %v9351_v59  ;;  %v9334_v21 = vpop.xlane.xlu1 %9333  ;;  %9397 = vadd.xlane.f32.xlu1 %v23738_v63  ;;  %v13385_v59 = vld [vmem:[%s24919_s8 + $0x190] sm:$0xff] }
0x1829   :  { %18767 = vpow2.f32 %v9377_v42  ;;  %v9354_v51 = vsub.f32 %v23714_v27, %v9334_v21  ;;  %v9332_v10 = vpop.xlane.xlu0 %9331  ;;  %9395 = vadd.xlane.f32.xlu0 %v23740_v40  ;;  %v13386_v42 = vld [vmem:[%s24919_s8 + $0x198] sm:$0xff] }
0x182a   :  { %18769 = vpow2.f32 %v9375_v3  ;;  %v9353_v30 = vsub.f32 %v23717_v22, %v9332_v10 }
0x182b   :  { %v23746_v37 = vpop.eup %18759  ;;  %v9381_v26 = vmul.f32 1.442695, %v9354_v51 }
0x182c   :  { %v23748_v56 = vpop.eup %18761  ;;  %v9379_v38 = vmul.f32 1.442695, %v9353_v30  ;;  %v9338_v32 = vpop.xlane.xlu1 %9337  ;;  %9401 = vadd.xlane.f32.xlu1 %v23746_v37 }
0x182d   :  { %18771 = vpow2.f32 %v9381_v26  ;;  %v9356_v44 = vsub.f32 %v23720_v17, %v9338_v32  ;;  %v9336_v39 = vpop.xlane.xlu0 %9335  ;;  %9399 = vadd.xlane.f32.xlu0 %v23748_v56  ;;  %v17901_v26 = vpack.c.bf16 %v13386_v42, %v13385_v59  ;;  %v13387_v32 = vld [vmem:[%s24919_s8 + $0x1a0] sm:$0xff] }
0x182e   :  { %18773 = vpow2.f32 %v9379_v38  ;;  %v9355_v27 = vsub.f32 %v23723_v11, %v9336_v39 }
0x182f   :  { %v23754_v55 = vpop.eup %18763  ;;  %v9385_v22 = vmul.f32 1.442695, %v9356_v44  ;;  %v13388_v44 = vld [vmem:[%s24919_s8 + $0x1a8] sm:$0xff] }
0x1830   :  { %v23756_v58 = vpop.eup %18765  ;;  %v9383_v53 = vmul.f32 1.442695, %v9355_v27  ;;  %9405 = vadd.xlane.f32.xlu1 %v23754_v55  ;;  %v9342_v4 = vpop.xlane.xlu1 %9341 }
0x1831   :  { %18775 = vpow2.f32 %v9385_v22  ;;  %v9358_v19 = vsub.f32 %v23726_v1, %v9342_v4  ;;  %9403 = vadd.xlane.f32.xlu0 %v23756_v58  ;;  %v9340_v17 = vpop.xlane.xlu0 %9339 }
0x1832   :  { %18777 = vpow2.f32 %v9383_v53  ;;  %v9357_v24 = vsub.f32 %v23729_v43, %v9340_v17  ;;  %v17905_v53 = vpack.c.bf16 %v13388_v44, %v13387_v32  ;;  %v13390_v17 = vld [vmem:[%s24919_s8 + $0x1b8] sm:$0xff] }
0x1833   :  { %v23762_v28 = vpop.eup %18767  ;;  %v9389_v11 = vmul.f32 1.442695, %v9358_v19  ;;  %v13389_v19 = vld [vmem:[%s24919_s8 + $0x1b0] sm:$0xff] }
0x1834   :  { %v23764_v15 = vpop.eup %18769  ;;  %v9387_v41 = vmul.f32 1.442695, %v9357_v24  ;;  %9409 = vadd.xlane.f32.xlu1 %v23762_v28  ;;  %v17909_v54 = vpack.c.bf16 %v13390_v17, %v13389_v19  ;;  %v13437_v17 = vld [vmem:[%s24920_s10 + $0x190] sm:$0xff] }
0x1835   :  { %18779 = vpow2.f32 %v9389_v11  ;;  %9407 = vadd.xlane.f32.xlu0 %v23764_v15 }
0x1836   :  { %18781 = vpow2.f32 %v9387_v41 }
0x1837   :  { %v23768_v48 = vpop.eup %18771 }
0x1838   :  { %v23770_v1 = vpop.eup %18773  ;;  %9413 = vadd.xlane.f32.xlu1 %v23768_v48 }
0x1839   :  { %9411 = vadd.xlane.f32.xlu0 %v23770_v1 }
0x183b   :  { %v23774_v43 = vpop.eup %18775 }
0x183c   :  { %v23776_v0 = vpop.eup %18777  ;;  %9417 = vadd.xlane.f32.xlu1 %v23774_v43 }
0x183d   :  { %9415 = vadd.xlane.f32.xlu0 %v23776_v0 }
0x183f   :  { %v23780_v36 = vpop.eup %18779 }
0x1840   :  { %v23782_v50 = vpop.eup %18781  ;;  %9421 = vadd.xlane.f32.xlu1 %v23780_v36 }
0x1841   :  { %9419 = vadd.xlane.f32.xlu0 %v23782_v50 }
0x18b1   :  { %v9394_v52 = vpop.xlane.xlu1 %9393 }
0x18b2   :  { %18783 = vrcp.f32 %v9394_v52  ;;  %v9392_v12 = vpop.xlane.xlu0 %9391  ;;  %v13410_v52 = vld [vmem:[%s24922_s9 + $0x188] sm:$0xff] }
0x18b3   :  { %18785 = vrcp.f32 %v9392_v12 }
0x18b5   :  { %v9398_v45 = vpop.xlane.xlu1 %9397 }
0x18b6   :  { %18787 = vrcp.f32 %v9398_v45  ;;  %v9396_v61 = vpop.xlane.xlu0 %9395 }
0x18b7   :  { %18789 = vrcp.f32 %v9396_v61 }
0x18b9   :  { %v9402_v60 = vpop.xlane.xlu1 %9401 }
0x18ba   :  { %18791 = vrcp.f32 %v9402_v60  ;;  %v9400_v16 = vpop.xlane.xlu0 %9399 }
0x18bb   :  { %18793 = vrcp.f32 %v9400_v16 }
0x18bc   :  { %v18784_v62 = vpop.eup %18783 }
0x18bd   :  { %v18786_v3 = vpop.eup %18785  ;;  %v9406_v21 = vpop.xlane.xlu1 %9405  ;;  %v9440_v30 = vmul.f32 %v18784_v62, %v23732_v33 }
0x18be   :  { %18795 = vrcp.f32 %v9406_v21  ;;  %v9404_v51 = vpop.xlane.xlu0 %9403  ;;  %v9439_v10 = vmul.f32 %v18786_v3, %v23734_v29 }
0x18bf   :  { %18797 = vrcp.f32 %v9404_v51 }
0x18c0   :  { %v18788_v38 = vpop.eup %18787  ;;  %16531 = vmatprep.mubr.f32.mxu0 %v9439_v10 }
0x18c1   :  { %v18790_v39 = vpop.eup %18789  ;;  %v9410_v27 = vpop.xlane.xlu1 %9409  ;;  %16532 = vmatmul.mubr.f32.vlgmr.msra.gmra.mrb[26].mxu0 %v9440_v30  ;;  %v9442_v22 = vmul.f32 %v18788_v38, %v23738_v63 }
0x18c2   :  { %18799 = vrcp.f32 %v9410_v27  ;;  %17900 = vmatpush3.bf16.msra.mxu0 %v17897_v9  ;;  %v9408_v29 = vpop.xlane.xlu0 %9407  ;;  %v9441_v33 = vmul.f32 %v18790_v39, %v23740_v40  ;;  %v13409_v9 = vld [vmem:[%s24922_s9 + $0x180] sm:$0xff]  ;;  %v13415_v27 = vld [vmem:[%s24922_s9 + $0x1b0] sm:$0xff] }
0x18c3   :  { %18801 = vrcp.f32 %v9408_v29  ;;  %17902 = vmatprep.subr.bf16.mxu0 %v17901_v26  ;;  %v17913_v60 = vpack.c.bf16 %v13410_v52, %v13409_v9  ;;  %v13416_v29 = vld [vmem:[%s24922_s9 + $0x1b8] sm:$0xff] }
0x18c4   :  { %v18792_v4 = vpop.eup %18791  ;;  %16534 = vmatprep.mubr.f32.mxu0 %v9441_v33  ;;  %v17925_v33 = vpack.c.bf16 %v13416_v29, %v13415_v27 }
0x18c5   :  { %v18794_v24 = vpop.eup %18793  ;;  %v9414_v11 = vpop.xlane.xlu1 %9413  ;;  %16535 = vmatmul.mubr.f32.gmra.mrb[28].mxu0 %v9442_v22  ;;  %v9444_v63 = vmul.f32 %v18792_v4, %v23746_v37  ;;  %v13366_v22 = vld [vmem:[%s24927_s14 + $0x28] sm:$0xff] }
0x18c6   :  { %18803 = vrcp.f32 %v9414_v11  ;;  %v9412_v40 = vpop.xlane.xlu0 %9411  ;;  %v9443_v41 = vmul.f32 %v18794_v24, %v23748_v56  ;;  %17904 = vmatpush3.bf16.msra.mxu0 %v17901_v26  ;;  %16555 = vmatprep.subr.mxu1 %v13366_v22  ;;  %v13436_v4 = vld [vmem:[%s24920_s10 + $0x188] sm:$0xff]  ;;  %v13438_v24 = vld [vmem:[%s24920_s10 + $0x198] sm:$0xff] }
0x18c7   :  { %18805 = vrcp.f32 %v9412_v40  ;;  %17906 = vmatprep.subr.bf16.mxu0 %v17905_v53  ;;  %16556 = vmatpush3.msra.mxu1 %v13366_v22 }
0x18c8   :  { %v18796_v8 = vpop.eup %18795  ;;  %16537 = vmatprep.mubr.f32.mxu0 %v9443_v41  ;;  %v17933_v41 = vpack.c.bf16 %v13438_v24, %v13437_v17 }
0x18c9   :  { %v18798_v12 = vpop.eup %18797  ;;  %v9418_v45 = vpop.xlane.xlu1 %9417  ;;  %16538 = vmatmul.mubr.f32.gmra.mrb[30].mxu0 %v9444_v63  ;;  %v9446_v37 = vmul.f32 %v18796_v8, %v23754_v55  ;;  %v13439_v63 = vld [vmem:[%s24920_s10 + $0x1a0] sm:$0xff] }
0x18ca   :  { %18807 = vrcp.f32 %v9418_v45  ;;  %v9416_v56 = vpop.xlane.xlu0 %9415  ;;  %v9445_v61 = vmul.f32 %v18798_v12, %v23756_v58  ;;  %17908 = vmatpush3.bf16.msra.mxu0 %v17905_v53  ;;  %v13435_v53 = vld [vmem:[%s24920_s10 + $0x180] sm:$0xff]  ;;  %v13441_v12 = vld [vmem:[%s24920_s10 + $0x1b0] sm:$0xff]  ;;  %v13442_v45 = vld [vmem:[%s24920_s10 + $0x1b8] sm:$0xff] }
0x18cb   :  { %18809 = vrcp.f32 %v9416_v56  ;;  %17910 = vmatprep.subr.bf16.mxu0 %v17909_v54  ;;  %v17929_v19 = vpack.c.bf16 %v13436_v4, %v13435_v53 }
0x18cc   :  { %v18800_v16 = vpop.eup %18799  ;;  %16540 = vmatprep.mubr.f32.mxu0 %v9445_v61 }
0x18cd   :  { %v18802_v62 = vpop.eup %18801  ;;  %v9422_v59 = vpop.xlane.xlu1 %9421  ;;  %16541 = vmatmul.mubr.f32.gmra.mrb[32].mxu0 %v9446_v37  ;;  %v9448_v21 = vmul.f32 %v18800_v16, %v23762_v28  ;;  %17930 = vmatprep.subr.bf16.mxu1 %v17929_v19  ;;  %v17941_v37 = vpack.c.bf16 %v13442_v45, %v13441_v12  ;;  %v13418_v45 = vld [vmem:[%s24926_s12 + $0x6] ss:$0 sm:$0xff] }
0x18ce   :  { %18811 = vrcp.f32 %v9422_v59  ;;  %v9420_v42 = vpop.xlane.xlu0 %9419  ;;  %v9447_v3 = vmul.f32 %v18802_v62, %v23764_v15  ;;  %17912 = vmatpush3.bf16.msra.mxu0 %v17909_v54  ;;  %v13440_v54 = vld [vmem:[%s24920_s10 + $0x1a8] sm:$0xff] }
0x18cf   :  { %18813 = vrcp.f32 %v9420_v42  ;;  %17914 = vmatprep.subr.bf16.mxu0 %v17913_v60  ;;  %v17937_v52 = vpack.c.bf16 %v13440_v54, %v13439_v63 }
0x18d0   :  { %v18804_v58 = vpop.eup %18803  ;;  %16543 = vmatprep.mubr.f32.mxu0 %v9447_v3 }
0x18d1   :  { %v18806_v51 = vpop.eup %18805  ;;  %16544 = vmatmul.mubr.f32.gmra.mrb[34].mxu0 %v9448_v21  ;;  %v9450_v10 = vmul.f32 %v18804_v58, %v23768_v48  ;;  %v13411_v48 = vld [vmem:[%s24922_s9 + $0x190] sm:$0xff] }
0x18d2   :  { %v9449_v55 = vmul.f32 %v18806_v51, %v23770_v1  ;;  %v13412_v1 = vld [vmem:[%s24922_s9 + $0x198] sm:$0xff] }
0x18d4   :  { %v18808_v30 = vpop.eup %18807  ;;  %16546 = vmatprep.mubr.f32.mxu0 %v9449_v55 }
0x18d5   :  { %v18810_v26 = vpop.eup %18809  ;;  %16547 = vmatmul.mubr.f32.gmra.mrb[36].mxu0 %v9450_v10  ;;  %v9452_v15 = vmul.f32 %v18808_v30, %v23774_v43  ;;  %v17917_v43 = vpack.c.bf16 %v13412_v1, %v13411_v48  ;;  %v13392_v10 = vld [vmem:[%s24924_s11 + $0x6] ss:$0 sm:$0xff] }
0x18d6   :  { %v9451_v38 = vmul.f32 %v18810_v26, %v23776_v0  ;;  %v13413_v0 = vld [vmem:[%s24922_s9 + $0x1a0] sm:$0xff] }
0x18d8   :  { %v18812_v32 = vpop.eup %18811  ;;  %16549 = vmatprep.mubr.f32.mxu0 %v9451_v38 }
0x18d9   :  { %v18814_v28 = vpop.eup %18813  ;;  %16550 = vmatmul.mubr.f32.gmra.mrb[38].mxu0 %v9452_v15  ;;  %v9454_v39 = vmul.f32 %v18812_v32, %v23780_v36  ;;  %v13414_v36 = vld [vmem:[%s24922_s9 + $0x1a8] sm:$0xff] }
0x18da   :  { %v9453_v44 = vmul.f32 %v18814_v28, %v23782_v50  ;;  %v17921_v50 = vpack.c.bf16 %v13414_v36, %v13413_v0 }
0x18dc   :  { %16552 = vmatprep.mubr.f32.mxu0 %v9453_v44 }
0x18dd   :  { %16553 = vmatmul.mubr.f32.gmra.mrb[40].mxu0 %v9454_v39 }
0x18de   :  { %16597 = vmatprep.mubr.msk.f32.mxu0 %vm2029_vm5, %v21351_v35 }
0x18e1   :  { %16598 = vmatmul.mubr.msk.f32.vlgmr.msra.gmra.mrb[42].mxu0 %vm2029_vm5, %v21354_v34 }
0x18e2   :  { %17916 = vmatpush3.bf16.msra.mxu0 %v17913_v60  ;;  %16600 = vmatprep.mubr.msk.f32.mxu0 %vm2029_vm5, %v21371_v46 }
0x18e3   :  { %17918 = vmatprep.subr.bf16.mxu0 %v17917_v43 }
0x18e5   :  { %16601 = vmatmul.mubr.msk.f32.gmra.mrb[44].mxu0 %vm2029_vm5, %v21374_v7 }
0x18e6   :  { %16603 = vmatprep.mubr.msk.f32.mxu0 %vm2029_vm5, %v21391_v14  ;;  %17920 = vmatpush3.bf16.msra.mxu0 %v17917_v43 }
0x18e7   :  { %17922 = vmatprep.subr.bf16.mxu0 %v17921_v50 }
0x18e9   :  { %16604 = vmatmul.mubr.msk.f32.gmra.mrb[46].mxu0 %vm2029_vm5, %v21394_v6 }
0x18ea   :  { %16606 = vmatprep.mubr.msk.f32.mxu0 %vm2029_vm5, %v21405_v20  ;;  %17924 = vmatpush3.bf16.msra.mxu0 %v17921_v50 }
0x18eb   :  { %17926 = vmatprep.subr.bf16.mxu0 %v17925_v33 }
0x18ed   :  { %16607 = vmatmul.mubr.msk.f32.gmra.mrb[48].mxu0 %vm2029_vm5, %v21408_v2 }
0x18ee   :  { %16609 = vmatprep.mubr.msk.f32.mxu0 %vm2029_vm5, %v21419_v23  ;;  %17928 = vmatpush3.bf16.msra.mxu0 %v17925_v33 }
0x18f1   :  { %16610 = vmatmul.mubr.msk.f32.gmra.mrb[50].mxu0 %vm2029_vm5, %v21422_v13 }
0x18f2   :  { %16612 = vmatprep.mubr.msk.f32.mxu0 %vm2029_vm5, %v21433_v57 }
0x18f5   :  { %16613 = vmatmul.mubr.msk.f32.gmra.mrb[52].mxu0 %vm2029_vm5, %v21436_v47 }
0x18f6   :  { %16615 = vmatprep.mubr.msk.f32.mxu0 %vm2029_vm5, %v21447_v31 }
0x18f9   :  { %16616 = vmatmul.mubr.msk.f32.gmra.mrb[54].mxu0 %vm2029_vm5, %v21450_v49 }
0x18fa   :  { %16618 = vmatprep.mubr.msk.f32.mxu0 %vm2029_vm5, %v21461_v5 }
0x18fd   :  { %16619 = vmatmul.mubr.msk.f32.gmra.mrb[56].mxu0 %vm2029_vm5, %v21464_v25 }
0x18fe   :  { %16637 = vmatprep.mubr.msk.f32.mxu0 %vm2029_vm5, %v21351_v35 }
0x1901   :  { %16638 = vmatmul.mubr.msk.f32.vlgmr.msra.gmra.mrb[58].mxu0 %vm2029_vm5, %v21354_v34 }
0x1902   :  { %16640 = vmatprep.mubr.msk.f32.mxu0 %vm2029_vm5, %v21371_v46 }
0x1905   :  { %16641 = vmatmul.mubr.msk.f32.gmra.mrb[60].mxu0 %vm2029_vm5, %v21374_v7 }
0x1906   :  { %16643 = vmatprep.mubr.msk.f32.mxu0 %vm2029_vm5, %v21391_v14 }
0x1909   :  { %16644 = vmatmul.mubr.msk.f32.gmra.mrb[62].mxu0 %vm2029_vm5, %v21394_v6 }
0x190a   :  { %16646 = vmatprep.mubr.msk.f32.mxu0 %vm2029_vm5, %v21405_v20 }
0x190d   :  { %16647 = vmatmul.mubr.msk.f32.gmra.mrb[64].mxu0 %vm2029_vm5, %v21408_v2 }
0x190e   :  { %16649 = vmatprep.mubr.msk.f32.mxu0 %vm2029_vm5, %v21419_v23 }
0x1911   :  { %16650 = vmatmul.mubr.msk.f32.gmra.mrb[66].mxu0 %vm2029_vm5, %v21422_v13 }
0x1912   :  { %16652 = vmatprep.mubr.msk.f32.mxu0 %vm2029_vm5, %v21433_v57 }
0x1915   :  { %16653 = vmatmul.mubr.msk.f32.gmra.mrb[68].mxu0 %vm2029_vm5, %v21436_v47 }
0x1916   :  { %16655 = vmatprep.mubr.msk.f32.mxu0 %vm2029_vm5, %v21447_v31 }
0x1919   :  { %16656 = vmatmul.mubr.msk.f32.gmra.mrb[70].mxu0 %vm2029_vm5, %v21450_v49 }
0x191a   :  { %16658 = vmatprep.mubr.msk.f32.mxu0 %vm2029_vm5, %v21461_v5 }
0x191d   :  { %16659 = vmatmul.mubr.msk.f32.gmra.mrb[72].mxu0 %vm2029_vm5, %v21464_v25 }
0x1994   :  { %v16533_v11 = vpop.f32.mrb[26].mxu0 }
0x1995   :  { %v9521_v40 = vpop.f32.mrb[27].mxu0 }
0x1996   :  { %16557 = vmatprep.mubr.msk.f32.mxu1 %vm2967_vm10, %v9521_v40 }
0x1997   :  { %16558 = vmatmul.mubr.msk.f32.vlgmr.msra.gmra.mrb[86].mxu1 %vm2967_vm10, %v16533_v11 }
0x1998   :  { %v16536_v8 = vpop.f32.mrb[28].mxu0  ;;  %17932 = vmatpush3.bf16.msra.mxu1 %v17929_v19 }
0x1999   :  { %v9531_v9 = vpop.f32.mrb[29].mxu0  ;;  %17934 = vmatprep.subr.bf16.mxu1 %v17933_v41 }
0x199a   :  { %16560 = vmatprep.mubr.msk.f32.mxu1 %vm2967_vm10, %v9531_v9 }
0x199b   :  { %16561 = vmatmul.mubr.msk.f32.gmra.mrb[88].mxu1 %vm2967_vm10, %v16536_v8 }
0x199c   :  { %v16539_v56 = vpop.f32.mrb[30].mxu0  ;;  %17936 = vmatpush3.bf16.msra.mxu1 %v17933_v41 }
0x199d   :  { %v9541_v61 = vpop.f32.mrb[31].mxu0  ;;  %17938 = vmatprep.subr.bf16.mxu1 %v17937_v52 }
0x199e   :  { %16563 = vmatprep.mubr.msk.f32.mxu1 %vm2967_vm10, %v9541_v61 }
0x199f   :  { %16564 = vmatmul.mubr.msk.f32.gmra.mrb[90].mxu1 %vm2967_vm10, %v16539_v56 }
0x19a0   :  { %v16542_v60 = vpop.f32.mrb[32].mxu0  ;;  %17940 = vmatpush3.bf16.msra.mxu1 %v17937_v52 }
0x19a1   :  { %v9551_v16 = vpop.f32.mrb[33].mxu0  ;;  %17942 = vmatprep.subr.bf16.mxu1 %v17941_v37 }
0x19a2   :  { %16566 = vmatprep.mubr.msk.f32.mxu1 %vm2967_vm10, %v9551_v16 }
0x19a3   :  { %16567 = vmatmul.mubr.msk.f32.gmra.mrb[92].mxu1 %vm2967_vm10, %v16542_v60 }
0x19a4   :  { %v16545_v62 = vpop.f32.mrb[34].mxu0  ;;  %17944 = vmatpush3.bf16.msra.mxu1 %v17941_v37 }
0x19a5   :  { %v9561_v59 = vpop.f32.mrb[35].mxu0 }
0x19a6   :  { %16569 = vmatprep.mubr.msk.f32.mxu1 %vm2967_vm10, %v9561_v59 }
0x19a7   :  { %16570 = vmatmul.mubr.msk.f32.gmra.mrb[94].mxu1 %vm2967_vm10, %v16545_v62 }
0x19a8   :  { %v16548_v42 = vpop.f32.mrb[36].mxu0 }
0x19a9   :  { %v9571_v3 = vpop.f32.mrb[37].mxu0 }
0x19aa   :  { %16572 = vmatprep.mubr.msk.f32.mxu1 %vm2967_vm10, %v9571_v3 }
0x19ab   :  { %16573 = vmatmul.mubr.msk.f32.gmra.mrb[96].mxu1 %vm2967_vm10, %v16548_v42 }
0x19ac   :  { %v16551_v21 = vpop.f32.mrb[38].mxu0 }
0x19ad   :  { %v9581_v58 = vpop.f32.mrb[39].mxu0 }
0x19ae   :  { %16575 = vmatprep.mubr.msk.f32.mxu1 %vm2967_vm10, %v9581_v58 }
0x19af   :  { %16576 = vmatmul.mubr.msk.f32.gmra.mrb[98].mxu1 %vm2967_vm10, %v16551_v21 }
0x19b0   :  { %v16554_v51 = vpop.f32.mrb[40].mxu0 }
0x19b1   :  { %v9591_v55 = vpop.f32.mrb[41].mxu0 }
0x19b2   :  { %16578 = vmatprep.mubr.msk.f32.mxu1 %vm2967_vm10, %v9591_v55 }
0x19b3   :  { %16579 = vmatmul.mubr.msk.f32.gmra.mrb[100].mxu1 %vm2967_vm10, %v16554_v51 }
0x19b4   :  { %v16599_v30 = vpop.f32.mrb[42].mxu0  ;;  %16677 = vmatprep.mubr.msk.f32.mxu1 %vm2029_vm5, %v21351_v35 }
0x19b5   :  { %v23962_v26 = vadd.f32 %v16599_v30, %v13392_v10  ;;  %v9894_v38 = vpop.f32.mrb[43].mxu0 }
0x19b6   :  { %v9895_v15 = vadd.f32 %v13392_v10, %v9894_v38 }
0x19b7   :  { %16678 = vmatmul.mubr.msk.f32.vlgmr.msra.gmra.mrb[230].mxu1 %vm2029_vm5, %v21354_v34 }
0x19b8   :  { %v16602_v32 = vpop.f32.mrb[44].mxu0  ;;  %16680 = vmatprep.mubr.msk.f32.mxu1 %vm2029_vm5, %v21371_v46  ;;  %16733 = vmatprep.mubr.msk.f32.mxu0 %vm2967_vm10, %v9895_v15 }
0x19b9   :  { %v23969_v28 = vadd.f32 %v16602_v32, %v13392_v10  ;;  %v9904_v44 = vpop.f32.mrb[45].mxu0 }
0x19ba   :  { %v23971_v39 = vadd.f32 %v13392_v10, %v9904_v44 }
0x19bb   :  { %16681 = vmatmul.mubr.msk.f32.gmra.mrb[232].mxu1 %vm2029_vm5, %v21374_v7 }
0x19bc   :  { %v16605_v48 = vpop.f32.mrb[46].mxu0  ;;  %16683 = vmatprep.mubr.msk.f32.mxu1 %vm2029_vm5, %v21391_v14 }
0x19bd   :  { %v23977_v1 = vadd.f32 %v16605_v48, %v13392_v10  ;;  %v9914_v43 = vpop.f32.mrb[47].mxu0 }
0x19be   :  { %v23979_v0 = vadd.f32 %v13392_v10, %v9914_v43 }
0x19bf   :  { %16684 = vmatmul.mubr.msk.f32.gmra.mrb[234].mxu1 %vm2029_vm5, %v21394_v6 }
0x19c0   :  { %v16608_v36 = vpop.f32.mrb[48].mxu0  ;;  %16686 = vmatprep.mubr.msk.f32.mxu1 %vm2029_vm5, %v21405_v20 }
0x19c1   :  { %v23985_v50 = vadd.f32 %v16608_v36, %v13392_v10  ;;  %v9924_v27 = vpop.f32.mrb[49].mxu0 }
0x19c2   :  { %v23987_v29 = vadd.f32 %v13392_v10, %v9924_v27 }
0x19c3   :  { %16687 = vmatmul.mubr.msk.f32.gmra.mrb[236].mxu1 %vm2029_vm5, %v21408_v2 }
0x19c4   :  { %v16611_v33 = vpop.f32.mrb[50].mxu0  ;;  %16689 = vmatprep.mubr.msk.f32.mxu1 %vm2029_vm5, %v21419_v23 }
0x19c5   :  { %v23993_v22 = vadd.f32 %v16611_v33, %v13392_v10  ;;  %v9934_v53 = vpop.f32.mrb[51].mxu0 }
0x19c6   :  { %v23995_v4 = vadd.f32 %v13392_v10, %v9934_v53 }
0x19c7   :  { %16690 = vmatmul.mubr.msk.f32.gmra.mrb[238].mxu1 %vm2029_vm5, %v21422_v13 }
0x19c8   :  { %v16614_v19 = vpop.f32.mrb[52].mxu0  ;;  %16692 = vmatprep.mubr.msk.f32.mxu1 %vm2029_vm5, %v21433_v57 }
0x19c9   :  { %v24001_v17 = vadd.f32 %v16614_v19, %v13392_v10  ;;  %v9944_v24 = vpop.f32.mrb[53].mxu0 }
0x19ca   :  { %v24003_v11 = vadd.f32 %v13392_v10, %v9944_v24 }
0x19cb   :  { %16693 = vmatmul.mubr.msk.f32.gmra.mrb[240].mxu1 %vm2029_vm5, %v21436_v47 }
0x19cc   :  { %v16617_v40 = vpop.f32.mrb[54].mxu0  ;;  %16695 = vmatprep.mubr.msk.f32.mxu1 %vm2029_vm5, %v21447_v31 }
0x19cd   :  { %v24009_v41 = vadd.f32 %v16617_v40, %v13392_v10  ;;  %v9954_v63 = vpop.f32.mrb[55].mxu0 }
0x19ce   :  { %v24011_v54 = vadd.f32 %v13392_v10, %v9954_v63 }
0x19cf   :  { %16696 = vmatmul.mubr.msk.f32.gmra.mrb[242].mxu1 %vm2029_vm5, %v21450_v49 }
0x19d0   :  { %v16620_v8 = vpop.f32.mrb[56].mxu0  ;;  %16698 = vmatprep.mubr.msk.f32.mxu1 %vm2029_vm5, %v21461_v5 }
0x19d1   :  { %v24017_v9 = vadd.f32 %v16620_v8, %v13392_v10  ;;  %v9964_v52 = vpop.f32.mrb[57].mxu0 }
0x19d2   :  { %v24019_v12 = vadd.f32 %v13392_v10, %v9964_v52 }
0x19d3   :  { %16699 = vmatmul.mubr.msk.f32.gmra.mrb[244].mxu1 %vm2029_vm5, %v21464_v25 }
0x19d4   :  { %v16639_v56 = vpop.f32.mrb[58].mxu0 }
0x19d5   :  { %v10062_v61 = vadd.f32 %v16639_v56, %v13418_v45  ;;  %v10056_v37 = vpop.f32.mrb[59].mxu0 }
0x19d6   :  { %v10057_v60 = vadd.f32 %v13418_v45, %v10056_v37 }
0x19d8   :  { %v17945_v16 = vpack.c.bf16 %v10062_v61, %v10057_v60  ;;  %v16642_v62 = vpop.f32.mrb[60].mxu0 }
0x19d9   :  { %v10072_v59 = vadd.f32 %v16642_v62, %v13418_v45  ;;  %v10066_v42 = vpop.f32.mrb[61].mxu0 }
0x19da   :  { %v10067_v3 = vadd.f32 %v13418_v45, %v10066_v42  ;;  %17947 = vmatprep.subr.msk.bf16.mxu0 %vm21584_vm4, %v17945_v16 }
0x19db   :  { %17950 = vmatpush3.bf16.xpose.msk.msra.mxu0 %vm21584_vm4, %v17945_v16 }
0x19dc   :  { %v17951_v21 = vpack.c.bf16 %v10072_v59, %v10067_v3  ;;  %v16645_v58 = vpop.f32.mrb[62].mxu0 }
0x19dd   :  { %v10082_v51 = vadd.f32 %v16645_v58, %v13418_v45  ;;  %v10076_v55 = vpop.f32.mrb[63].mxu0 }
0x19de   :  { %v10077_v10 = vadd.f32 %v13418_v45, %v10076_v55  ;;  %17953 = vmatprep.subr.msk.bf16.mxu0 %vm21584_vm4, %v17951_v21  ;;  %v13513_v55 = vld [vmem:[%s24919_s8 + $0x1d8] sm:$0xff] }
0x19e0   :  { %v17957_v30 = vpack.c.bf16 %v10082_v51, %v10077_v10  ;;  %v16648_v38 = vpop.f32.mrb[64].mxu0  ;;  %v13512_v51 = vld [vmem:[%s24919_s8 + $0x1d0] sm:$0xff] }
0x19e1   :  { %v10092_v15 = vadd.f32 %v16648_v38, %v13418_v45  ;;  %v10086_v32 = vpop.f32.mrb[65].mxu0  ;;  %v18029_v10 = vpack.c.bf16 %v13513_v55, %v13512_v51  ;;  %v13515_v38 = vld [vmem:[%s24919_s8 + $0x1e8] sm:$0xff] }
0x19e2   :  { %v10087_v44 = vadd.f32 %v13418_v45, %v10086_v32  ;;  %v13516_v32 = vld [vmem:[%s24919_s8 + $0x1f0] sm:$0xff] }
0x19e3   :  { %17956 = vmatpush3.bf16.xpose.msk.msra.mxu0 %vm21584_vm4, %v17951_v21  ;;  %v13511_v21 = vld [vmem:[%s24919_s8 + $0x1c8] sm:$0xff] }
0x19e4   :  { %v17963_v48 = vpack.c.bf16 %v10092_v15, %v10087_v44  ;;  %v16651_v43 = vpop.f32.mrb[66].mxu0  ;;  %17959 = vmatprep.subr.msk.bf16.mxu0 %vm21584_vm4, %v17957_v30  ;;  %v13517_v44 = vld [vmem:[%s24919_s8 + $0x1f8] sm:$0xff] }
0x19e5   :  { %v10102_v36 = vadd.f32 %v16651_v43, %v13418_v45  ;;  %v10096_v27 = vpop.f32.mrb[67].mxu0 }
0x19e6   :  { %v10097_v33 = vadd.f32 %v13418_v45, %v10096_v27 }
0x19e8   :  { %v17969_v53 = vpack.c.bf16 %v10102_v36, %v10097_v33  ;;  %v16654_v19 = vpop.f32.mrb[68].mxu0 }
0x19e9   :  { %v10112_v24 = vadd.f32 %v16654_v19, %v13418_v45  ;;  %v10106_v40 = vpop.f32.mrb[69].mxu0 }
0x19ea   :  { %v10107_v63 = vadd.f32 %v13418_v45, %v10106_v40 }
0x19eb   :  { %17962 = vmatpush3.bf16.xpose.msk.msra.mxu0 %vm21584_vm4, %v17957_v30  ;;  %v13514_v30 = vld [vmem:[%s24919_s8 + $0x1e0] sm:$0xff] }
0x19ec   :  { %v17975_v8 = vpack.c.bf16 %v10112_v24, %v10107_v63  ;;  %v16657_v52 = vpop.f32.mrb[70].mxu0  ;;  %17965 = vmatprep.subr.msk.bf16.mxu0 %vm21584_vm4, %v17963_v48  ;;  %v18033_v15 = vpack.c.bf16 %v13515_v38, %v13514_v30 }
0x19ed   :  { %v10122_v56 = vadd.f32 %v16657_v52, %v13418_v45  ;;  %v10116_v61 = vpop.f32.mrb[71].mxu0 }
0x19ee   :  { %v10117_v37 = vadd.f32 %v13418_v45, %v10116_v61 }
0x19f0   :  { %v17981_v60 = vpack.c.bf16 %v10122_v56, %v10117_v37  ;;  %v16660_v16 = vpop.f32.mrb[72].mxu0 }
0x19f1   :  { %v10132_v62 = vadd.f32 %v16660_v16, %v13418_v45  ;;  %v10126_v59 = vpop.f32.mrb[73].mxu0 }
0x19f2   :  { %v10127_v42 = vadd.f32 %v13418_v45, %v10126_v59  ;;  %v13510_v45 = vld [vmem:[%s24919_s8 + $0x1c0] sm:$0xff] }
0x19f3   :  { %17968 = vmatpush3.bf16.xpose.msk.msra.mxu0 %vm21584_vm4, %v17963_v48  ;;  %v18025_v58 = vpack.c.bf16 %v13511_v21, %v13510_v45  ;;  %v13563_v48 = vld [vmem:[%s24920_s10 + $0x1c8] sm:$0xff] }
0x19f4   :  { %v17987_v3 = vpack.c.bf16 %v10132_v62, %v10127_v42  ;;  %17971 = vmatprep.subr.msk.bf16.mxu0 %vm21584_vm4, %v17969_v53 }
0x19fb   :  { %17974 = vmatpush3.bf16.xpose.msk.msra.mxu0 %vm21584_vm4, %v17969_v53 }
0x19fc   :  { %17977 = vmatprep.subr.msk.bf16.mxu0 %vm21584_vm4, %v17975_v8 }
0x1a03   :  { %17980 = vmatpush3.bf16.xpose.msk.msra.mxu0 %vm21584_vm4, %v17975_v8 }
0x1a04   :  { %17983 = vmatprep.subr.msk.bf16.mxu0 %vm21584_vm4, %v17981_v60 }
0x1a0b   :  { %17986 = vmatpush3.bf16.xpose.msk.msra.mxu0 %vm21584_vm4, %v17981_v60 }
0x1a0c   :  { %17989 = vmatprep.subr.msk.bf16.mxu0 %vm21584_vm4, %v17987_v3 }
0x1a13   :  { %17992 = vmatpush3.bf16.xpose.msk.msra.mxu0 %vm21584_vm4, %v17987_v3 }
0x1a14   :  { %18026 = vmatprep.subr.bf16.mxu0 %v18025_v58 }
0x1a1a   :  { %16734 = vmatmul.mubr.msk.f32.vlgmr.msra.gmra.mrb[74].mxu0 %vm2967_vm10, %v23962_v26  ;;  %v18037_v26 = vpack.c.bf16 %v13517_v44, %v13516_v32 }
0x1a1b   :  { %16736 = vmatprep.mubr.msk.f32.mxu0 %vm2967_vm10, %v23971_v39  ;;  %18028 = vmatpush3.bf16.msra.mxu0 %v18025_v58  ;;  %v13562_v39 = vld [vmem:[%s24920_s10 + $0x1c0] sm:$0xff] }
0x1a1c   :  { %18030 = vmatprep.subr.bf16.mxu0 %v18029_v10 }
0x1a1e   :  { %16737 = vmatmul.mubr.msk.f32.gmra.mrb[76].mxu0 %vm2967_vm10, %v23969_v28  ;;  %v18057_v28 = vpack.c.bf16 %v13563_v48, %v13562_v39 }
0x1a1f   :  { %16739 = vmatprep.mubr.msk.f32.mxu0 %vm2967_vm10, %v23979_v0  ;;  %18032 = vmatpush3.bf16.msra.mxu0 %v18029_v10  ;;  %v13565_v0 = vld [vmem:[%s24920_s10 + $0x1d8] sm:$0xff] }
0x1a20   :  { %18034 = vmatprep.subr.bf16.mxu0 %v18033_v15 }
0x1a22   :  { %16740 = vmatmul.mubr.msk.f32.gmra.mrb[78].mxu0 %vm2967_vm10, %v23977_v1  ;;  %v13564_v1 = vld [vmem:[%s24920_s10 + $0x1d0] sm:$0xff] }
0x1a23   :  { %16742 = vmatprep.mubr.msk.f32.mxu0 %vm2967_vm10, %v23987_v29  ;;  %18036 = vmatpush3.bf16.msra.mxu0 %v18033_v15  ;;  %v13566_v29 = vld [vmem:[%s24920_s10 + $0x1e0] sm:$0xff] }
0x1a24   :  { %18038 = vmatprep.subr.bf16.mxu0 %v18037_v26 }
0x1a26   :  { %16743 = vmatmul.mubr.msk.f32.gmra.mrb[80].mxu0 %vm2967_vm10, %v23985_v50  ;;  %v18061_v50 = vpack.c.bf16 %v13565_v0, %v13564_v1 }
0x1a27   :  { %16745 = vmatprep.mubr.msk.f32.mxu0 %vm2967_vm10, %v23995_v4  ;;  %18040 = vmatpush3.bf16.msra.mxu0 %v18037_v26 }
0x1a28   :  { %18058 = vmatprep.subr.bf16.mxu0 %v18057_v28 }
0x1a2a   :  { %16746 = vmatmul.mubr.msk.f32.gmra.mrb[82].mxu0 %vm2967_vm10, %v23993_v22  ;;  %v13567_v22 = vld [vmem:[%s24920_s10 + $0x1e8] sm:$0xff] }
0x1a2b   :  { %16748 = vmatprep.mubr.msk.f32.mxu0 %vm2967_vm10, %v24003_v11  ;;  %v18065_v4 = vpack.c.bf16 %v13567_v22, %v13566_v29  ;;  %v13569_v11 = vld [vmem:[%s24920_s10 + $0x1f8] sm:$0xff] }
0x1a2e   :  { %16749 = vmatmul.mubr.msk.f32.gmra.mrb[84].mxu0 %vm2967_vm10, %v24001_v17  ;;  %v13568_v17 = vld [vmem:[%s24920_s10 + $0x1f0] sm:$0xff] }
0x1a2f   :  { %16751 = vmatprep.mubr.msk.f32.mxu0 %vm2967_vm10, %v24011_v54  ;;  %v13444_v54 = vld [vmem:[%s24925_s13 + $0x6] ss:$0 sm:$0xff] }
0x1a32   :  { %16752 = vmatmul.mubr.msk.f32.gmra.mrb[86].mxu0 %vm2967_vm10, %v24009_v41  ;;  %v18069_v41 = vpack.c.bf16 %v13569_v11, %v13568_v17 }
0x1a33   :  { %16754 = vmatprep.mubr.msk.f32.mxu0 %vm2967_vm10, %v24019_v12 }
0x1a36   :  { %16755 = vmatmul.mubr.msk.f32.gmra.mrb[88].mxu0 %vm2967_vm10, %v24017_v9 }
0x1a37   :  { %16855 = vmatprep.mubr.msk.f32.mxu0 %vm2029_vm5, %v21351_v35 }
0x1a3a   :  { %16856 = vmatmul.mubr.msk.f32.vlgmr.msra.gmra.mrb[90].mxu0 %vm2029_vm5, %v21354_v34 }
0x1a3b   :  { %16858 = vmatprep.mubr.msk.f32.mxu0 %vm2029_vm5, %v21371_v46  ;;  %18060 = vmatpush3.bf16.msra.mxu0 %v18057_v28 }
0x1a3c   :  { %18062 = vmatprep.subr.bf16.mxu0 %v18061_v50 }
0x1a3e   :  { %16859 = vmatmul.mubr.msk.f32.gmra.mrb[92].mxu0 %vm2029_vm5, %v21374_v7 }
0x1a3f   :  { %16861 = vmatprep.mubr.msk.f32.mxu0 %vm2029_vm5, %v21391_v14  ;;  %18064 = vmatpush3.bf16.msra.mxu0 %v18061_v50 }
0x1a40   :  { %18066 = vmatprep.subr.bf16.mxu0 %v18065_v4 }
0x1a42   :  { %16862 = vmatmul.mubr.msk.f32.gmra.mrb[94].mxu0 %vm2029_vm5, %v21394_v6 }
0x1a43   :  { %16864 = vmatprep.mubr.msk.f32.mxu0 %vm2029_vm5, %v21405_v20  ;;  %18068 = vmatpush3.bf16.msra.mxu0 %v18065_v4 }
0x1a44   :  { %18070 = vmatprep.subr.bf16.mxu0 %v18069_v41 }
0x1a46   :  { %16865 = vmatmul.mubr.msk.f32.gmra.mrb[96].mxu0 %vm2029_vm5, %v21408_v2 }
0x1a47   :  { %16867 = vmatprep.mubr.msk.f32.mxu0 %vm2029_vm5, %v21419_v23  ;;  %18072 = vmatpush3.bf16.msra.mxu0 %v18069_v41 }
0x1a4a   :  { %16868 = vmatmul.mubr.msk.f32.gmra.mrb[98].mxu0 %vm2029_vm5, %v21422_v13 }
0x1a4b   :  { %16870 = vmatprep.mubr.msk.f32.mxu0 %vm2029_vm5, %v21433_v57 }
0x1a4e   :  { %16871 = vmatmul.mubr.msk.f32.gmra.mrb[100].mxu0 %vm2029_vm5, %v21436_v47 }
0x1a4f   :  { %16873 = vmatprep.mubr.msk.f32.mxu0 %vm2029_vm5, %v21447_v31 }
0x1a52   :  { %16874 = vmatmul.mubr.msk.f32.gmra.mrb[102].mxu0 %vm2029_vm5, %v21450_v49 }
0x1a53   :  { %16876 = vmatprep.mubr.msk.f32.mxu0 %vm2029_vm5, %v21461_v5 }
0x1a56   :  { %16877 = vmatmul.mubr.msk.f32.gmra.mrb[104].mxu0 %vm2029_vm5, %v21464_v25 }
0x1a57   :  { %16935 = vmatprep.mubr.msk.f32.mxu0 %vm2029_vm5, %v21351_v35 }
0x1a5a   :  { %16936 = vmatmul.mubr.msk.f32.vlgmr.msra.gmra.mrb[106].mxu0 %vm2029_vm5, %v21354_v34 }
0x1a5b   :  { %16938 = vmatprep.mubr.msk.f32.mxu0 %vm2029_vm5, %v21371_v46 }
0x1a5e   :  { %16939 = vmatmul.mubr.msk.f32.gmra.mrb[108].mxu0 %vm2029_vm5, %v21374_v7 }
0x1a5f   :  { %16941 = vmatprep.mubr.msk.f32.mxu0 %vm2029_vm5, %v21391_v14 }
0x1a62   :  { %16942 = vmatmul.mubr.msk.f32.gmra.mrb[110].mxu0 %vm2029_vm5, %v21394_v6 }
0x1a63   :  { %16944 = vmatprep.mubr.msk.f32.mxu0 %vm2029_vm5, %v21405_v20 }
0x1a66   :  { %16945 = vmatmul.mubr.msk.f32.gmra.mrb[112].mxu0 %vm2029_vm5, %v21408_v2 }
0x1a67   :  { %16947 = vmatprep.mubr.msk.f32.mxu0 %vm2029_vm5, %v21419_v23 }
0x1a6a   :  { %16948 = vmatmul.mubr.msk.f32.gmra.mrb[114].mxu0 %vm2029_vm5, %v21422_v13 }
0x1a6b   :  { %16950 = vmatprep.mubr.msk.f32.mxu0 %vm2029_vm5, %v21433_v57 }
0x1a6e   :  { %16951 = vmatmul.mubr.msk.f32.gmra.mrb[116].mxu0 %vm2029_vm5, %v21436_v47 }
0x1a6f   :  { %16953 = vmatprep.mubr.msk.f32.mxu0 %vm2029_vm5, %v21447_v31 }
0x1a72   :  { %16954 = vmatmul.mubr.msk.f32.gmra.mrb[118].mxu0 %vm2029_vm5, %v21450_v49 }
0x1a73   :  { %16956 = vmatprep.mubr.msk.f32.mxu0 %vm2029_vm5, %v21461_v5 }
0x1a76   :  { %16957 = vmatmul.mubr.msk.f32.gmra.mrb[120].mxu0 %vm2029_vm5, %v21464_v25 }
0x1a8a   :  { %v16679_v9 = vpop.f32.mrb[230].mxu1 }
0x1a8b   :  { %v10224_v12 = vadd.f32 %v16679_v9, %v13444_v54  ;;  %v10218_v43 = vpop.f32.mrb[231].mxu1 }
0x1a8c   :  { %v10219_v36 = vadd.f32 %v13444_v54, %v10218_v43 }
0x1a8e   :  { %v17993_v27 = vpack.c.bf16 %v10224_v12, %v10219_v36  ;;  %v16682_v33 = vpop.f32.mrb[232].mxu1 }
0x1a8f   :  { %v10234_v53 = vadd.f32 %v16682_v33, %v13444_v54  ;;  %v10228_v19 = vpop.f32.mrb[233].mxu1 }
0x1a90   :  { %v10229_v24 = vadd.f32 %v13444_v54, %v10228_v19  ;;  %17994 = vmatprep.subr.bf16.mxu1 %v17993_v27 }
0x1a91   :  { %17996 = vmatpush3.bf16.msra.mxu1 %v17993_v27 }
0x1a92   :  { %v17997_v40 = vpack.c.bf16 %v10234_v53, %v10229_v24  ;;  %v16685_v63 = vpop.f32.mrb[234].mxu1 }
0x1a93   :  { %v10244_v8 = vadd.f32 %v16685_v63, %v13444_v54  ;;  %v10238_v52 = vpop.f32.mrb[235].mxu1 }
0x1a94   :  { %v10239_v56 = vadd.f32 %v13444_v54, %v10238_v52  ;;  %17998 = vmatprep.subr.bf16.mxu1 %v17997_v40 }
0x1a95   :  { %18000 = vmatpush3.bf16.msra.mxu1 %v17997_v40  ;;  %v24254_v40 = vld [vmem:[%s24924_s11 + $0x7] ss:$0 sm:$0xff] }
0x1a96   :  { %v18001_v61 = vpack.c.bf16 %v10244_v8, %v10239_v56  ;;  %v16688_v37 = vpop.f32.mrb[236].mxu1 }
0x1a97   :  { %v10254_v60 = vadd.f32 %v16688_v37, %v13444_v54  ;;  %v10248_v16 = vpop.f32.mrb[237].mxu1 }
0x1a98   :  { %v10249_v62 = vadd.f32 %v13444_v54, %v10248_v16  ;;  %18002 = vmatprep.subr.bf16.mxu1 %v18001_v61 }
0x1a99   :  { %18004 = vmatpush3.bf16.msra.mxu1 %v18001_v61 }
0x1a9a   :  { %v18005_v59 = vpack.c.bf16 %v10254_v60, %v10249_v62  ;;  %v16691_v42 = vpop.f32.mrb[238].mxu1 }
0x1a9b   :  { %v10264_v3 = vadd.f32 %v16691_v42, %v13444_v54  ;;  %v10258_v45 = vpop.f32.mrb[239].mxu1 }
0x1a9c   :  { %v10259_v21 = vadd.f32 %v13444_v54, %v10258_v45  ;;  %18006 = vmatprep.subr.bf16.mxu1 %v18005_v59 }
0x1a9d   :  { %18008 = vmatpush3.bf16.msra.mxu1 %v18005_v59 }
0x1a9e   :  { %v18009_v58 = vpack.c.bf16 %v10264_v3, %v10259_v21  ;;  %v16694_v51 = vpop.f32.mrb[240].mxu1 }
0x1a9f   :  { %v10274_v55 = vadd.f32 %v16694_v51, %v13444_v54  ;;  %v10268_v10 = vpop.f32.mrb[241].mxu1 }
0x1aa0   :  { %v10269_v30 = vadd.f32 %v13444_v54, %v10268_v10  ;;  %18010 = vmatprep.subr.bf16.mxu1 %v18009_v58 }
0x1aa1   :  { %18012 = vmatpush3.bf16.msra.mxu1 %v18009_v58 }
0x1aa2   :  { %v18013_v38 = vpack.c.bf16 %v10274_v55, %v10269_v30  ;;  %v16697_v15 = vpop.f32.mrb[242].mxu1 }
0x1aa3   :  { %v10284_v32 = vadd.f32 %v16697_v15, %v13444_v54  ;;  %v10278_v44 = vpop.f32.mrb[243].mxu1 }
0x1aa4   :  { %v10279_v26 = vadd.f32 %v13444_v54, %v10278_v44  ;;  %18014 = vmatprep.subr.bf16.mxu1 %v18013_v38 }
0x1aa5   :  { %18016 = vmatpush3.bf16.msra.mxu1 %v18013_v38 }
0x1aa6   :  { %v18017_v39 = vpack.c.bf16 %v10284_v32, %v10279_v26  ;;  %v16700_v48 = vpop.f32.mrb[244].mxu1 }
0x1aa7   :  { %v10294_v28 = vadd.f32 %v16700_v48, %v13444_v54  ;;  %v10288_v1 = vpop.f32.mrb[245].mxu1 }
0x1aa8   :  { %v10289_v0 = vadd.f32 %v13444_v54, %v10288_v1  ;;  %18018 = vmatprep.subr.bf16.mxu1 %v18017_v39 }
0x1aa9   :  { %18020 = vmatpush3.bf16.msra.mxu1 %v18017_v39 }
0x1aaa   :  { %v18021_v50 = vpack.c.bf16 %v10294_v28, %v10289_v0 }
0x1aac   :  { %18022 = vmatprep.subr.bf16.mxu1 %v18021_v50 }
0x1aad   :  { %18024 = vmatpush3.bf16.msra.mxu1 %v18021_v50 }
0x1aed   :  { %v24203_v29 = vpop.f32.mrb[74].mxu0 }
0x1aee   :  { %10540 = vmax.xlane.f32.xlu1 %v24203_v29  ;;  %v24206_v22 = vpop.f32.mrb[75].mxu0 }
0x1aef   :  { %10538 = vmax.xlane.f32.xlu0 %v24206_v22 }
0x1af1   :  { %v24209_v4 = vpop.f32.mrb[76].mxu0 }
0x1af2   :  { %10544 = vmax.xlane.f32.xlu1 %v24209_v4  ;;  %v24212_v17 = vpop.f32.mrb[77].mxu0 }
0x1af3   :  { %10542 = vmax.xlane.f32.xlu0 %v24212_v17 }
0x1af5   :  { %v24215_v11 = vpop.f32.mrb[78].mxu0 }
0x1af6   :  { %10548 = vmax.xlane.f32.xlu1 %v24215_v11  ;;  %v24218_v41 = vpop.f32.mrb[79].mxu0 }
0x1af7   :  { %10546 = vmax.xlane.f32.xlu0 %v24218_v41 }
0x1af9   :  { %v24221_v54 = vpop.f32.mrb[80].mxu0 }
0x1afa   :  { %10552 = vmax.xlane.f32.xlu1 %v24221_v54  ;;  %v24224_v9 = vpop.f32.mrb[81].mxu0 }
0x1afb   :  { %10550 = vmax.xlane.f32.xlu0 %v24224_v9 }
0x1afd   :  { %v24227_v12 = vpop.f32.mrb[82].mxu0 }
0x1afe   :  { %10556 = vmax.xlane.f32.xlu1 %v24227_v12  ;;  %v24230_v43 = vpop.f32.mrb[83].mxu0 }
0x1aff   :  { %10554 = vmax.xlane.f32.xlu0 %v24230_v43 }
0x1b01   :  { %v24233_v36 = vpop.f32.mrb[84].mxu0 }
0x1b02   :  { %10560 = vmax.xlane.f32.xlu1 %v24233_v36  ;;  %v24236_v27 = vpop.f32.mrb[85].mxu0 }
0x1b03   :  { %10558 = vmax.xlane.f32.xlu0 %v24236_v27 }
0x1b05   :  { %v24239_v33 = vpop.f32.mrb[86].mxu0 }
0x1b06   :  { %10564 = vmax.xlane.f32.xlu1 %v24239_v33  ;;  %v24242_v53 = vpop.f32.mrb[87].mxu0 }
0x1b07   :  { %10562 = vmax.xlane.f32.xlu0 %v24242_v53 }
0x1b09   :  { %v24245_v19 = vpop.f32.mrb[88].mxu0 }
0x1b0a   :  { %10568 = vmax.xlane.f32.xlu1 %v24245_v19  ;;  %v24248_v24 = vpop.f32.mrb[89].mxu0 }
0x1b0b   :  { %10566 = vmax.xlane.f32.xlu0 %v24248_v24 }
0x1b0d   :  { %v16857_v63 = vpop.f32.mrb[90].mxu0 }
0x1b0e   :  { %v24257_v8 = vadd.f32 %v16857_v63, %v24254_v40  ;;  %v24259_v52 = vpop.f32.mrb[91].mxu0 }
0x1b11   :  { %v16860_v56 = vpop.f32.mrb[92].mxu0 }
0x1b12   :  { %v24262_v61 = vadd.f32 %v16860_v56, %v24254_v40  ;;  %v11131_v37 = vpop.f32.mrb[93].mxu0  ;;  %v13571_v56 = vld [vmem:[%s24925_s13 + $0x7] ss:$0 sm:$0xff] }
0x1b13   :  { %v24265_v60 = vadd.f32 %v24254_v40, %v11131_v37 }
0x1b15   :  { %v16863_v16 = vpop.f32.mrb[94].mxu0 }
0x1b16   :  { %v24268_v62 = vadd.f32 %v16863_v16, %v24254_v40  ;;  %v11141_v59 = vpop.f32.mrb[95].mxu0 }
0x1b17   :  { %v24271_v42 = vadd.f32 %v24254_v40, %v11141_v59 }
0x1b19   :  { %v16866_v3 = vpop.f32.mrb[96].mxu0 }
0x1b1a   :  { %v24274_v45 = vadd.f32 %v16866_v3, %v24254_v40  ;;  %v11151_v21 = vpop.f32.mrb[97].mxu0 }
0x1b1b   :  { %v24277_v58 = vadd.f32 %v24254_v40, %v11151_v21 }
0x1b1d   :  { %v16869_v51 = vpop.f32.mrb[98].mxu0 }
0x1b1e   :  { %v24280_v55 = vadd.f32 %v16869_v51, %v24254_v40  ;;  %v11161_v10 = vpop.f32.mrb[99].mxu0 }
0x1b1f   :  { %v24283_v30 = vadd.f32 %v24254_v40, %v11161_v10 }
0x1b21   :  { %v16872_v38 = vpop.f32.mrb[100].mxu0 }
0x1b22   :  { %v24286_v15 = vadd.f32 %v16872_v38, %v24254_v40  ;;  %v11171_v32 = vpop.f32.mrb[101].mxu0 }
0x1b23   :  { %v24289_v44 = vadd.f32 %v24254_v40, %v11171_v32 }
0x1b24   :  { %25292 = vst [vmem:[#allocation47_spill] sm:$0xff] %v24286_v15 }
0x1b25   :  { %v16875_v26 = vpop.f32.mrb[102].mxu0 }
0x1b26   :  { %v24292_v39 = vadd.f32 %v16875_v26, %v24254_v40  ;;  %v11181_v48 = vpop.f32.mrb[103].mxu0 }
0x1b27   :  { %v24295_v28 = vadd.f32 %v24254_v40, %v11181_v48 }
0x1b28   :  { %25293 = vst [vmem:[#allocation34_spill] sm:$0xff] %v24292_v39 }
0x1b29   :  { %25294 = vst [vmem:[#allocation19_spill] sm:$0xff] %v24295_v28  ;;  %v16878_v1 = vpop.f32.mrb[104].mxu0 }
0x1b2a   :  { %v24298_v0 = vadd.f32 %v16878_v1, %v24254_v40  ;;  %v11191_v50 = vpop.f32.mrb[105].mxu0 }
0x1b2b   :  { %v24301_v63 = vadd.f32 %v24254_v40, %v11191_v50  ;;  %v25297_v18 = vld [vmem:[#allocation47_spill] sm:$0xff] }
0x1b2c   :  { %25295 = vst [vmem:[#allocation42_spill] sm:$0xff] %v24298_v0 }
0x1b2d   :  { %25296 = vst [vmem:[#allocation35_spill] sm:$0xff] %v24301_v63  ;;  %v16937_v37 = vpop.f32.mrb[106].mxu0 }
0x1b2e   :  { %v11451_v16 = vadd.f32 %v16937_v37, %v13571_v56  ;;  %v11445_v59 = vpop.f32.mrb[107].mxu0 }
0x1b2f   :  { %v11446_v3 = vadd.f32 %v13571_v56, %v11445_v59 }
0x1b31   :  { %v18121_v21 = vpack.c.bf16 %v11451_v16, %v11446_v3  ;;  %v16940_v51 = vpop.f32.mrb[108].mxu0 }
0x1b32   :  { %v11461_v10 = vadd.f32 %v16940_v51, %v13571_v56  ;;  %v11455_v38 = vpop.f32.mrb[109].mxu0 }
0x1b33   :  { %v11456_v32 = vadd.f32 %v13571_v56, %v11455_v38  ;;  %18122 = vmatprep.subr.bf16.mxu0 %v18121_v21 }
0x1b34   :  { %18124 = vmatpush3.bf16.msra.mxu0 %v18121_v21 }
0x1b35   :  { %v18125_v26 = vpack.c.bf16 %v11461_v10, %v11456_v32  ;;  %v16943_v48 = vpop.f32.mrb[110].mxu0 }
0x1b36   :  { %v11471_v1 = vadd.f32 %v16943_v48, %v13571_v56  ;;  %v11465_v50 = vpop.f32.mrb[111].mxu0 }
0x1b37   :  { %v11466_v0 = vadd.f32 %v13571_v56, %v11465_v50  ;;  %18126 = vmatprep.subr.bf16.mxu0 %v18125_v26 }
0x1b38   :  { %18128 = vmatpush3.bf16.msra.mxu0 %v18125_v26 }
0x1b39   :  { %v18129_v63 = vpack.c.bf16 %v11471_v1, %v11466_v0  ;;  %v16946_v39 = vpop.f32.mrb[112].mxu0 }
0x1b3a   :  { %v11481_v28 = vadd.f32 %v16946_v39, %v13571_v56  ;;  %v11475_v37 = vpop.f32.mrb[113].mxu0 }
0x1b3b   :  { %v11476_v15 = vadd.f32 %v13571_v56, %v11475_v37  ;;  %18130 = vmatprep.subr.bf16.mxu0 %v18129_v63 }
0x1b3c   :  { %18132 = vmatpush3.bf16.msra.mxu0 %v18129_v63 }
0x1b3d   :  { %v18133_v16 = vpack.c.bf16 %v11481_v28, %v11476_v15  ;;  %v16949_v59 = vpop.f32.mrb[114].mxu0 }
0x1b3e   :  { %v11491_v3 = vadd.f32 %v16949_v59, %v13571_v56  ;;  %v11485_v51 = vpop.f32.mrb[115].mxu0 }
0x1b3f   :  { %v11486_v38 = vadd.f32 %v13571_v56, %v11485_v51  ;;  %18134 = vmatprep.subr.bf16.mxu0 %v18133_v16 }
0x1b40   :  { %18136 = vmatpush3.bf16.msra.mxu0 %v18133_v16 }
0x1b41   :  { %v18137_v21 = vpack.c.bf16 %v11491_v3, %v11486_v38  ;;  %v16952_v10 = vpop.f32.mrb[116].mxu0 }
0x1b42   :  { %v11501_v32 = vadd.f32 %v16952_v10, %v13571_v56  ;;  %v11495_v48 = vpop.f32.mrb[117].mxu0 }
0x1b43   :  { %v11496_v50 = vadd.f32 %v13571_v56, %v11495_v48  ;;  %18138 = vmatprep.subr.bf16.mxu0 %v18137_v21 }
0x1b44   :  { %18140 = vmatpush3.bf16.msra.mxu0 %v18137_v21 }
0x1b45   :  { %v18141_v0 = vpack.c.bf16 %v11501_v32, %v11496_v50  ;;  %v16955_v39 = vpop.f32.mrb[118].mxu0 }
0x1b46   :  { %v11511_v26 = vadd.f32 %v16955_v39, %v13571_v56  ;;  %v11505_v1 = vpop.f32.mrb[119].mxu0 }
0x1b47   :  { %v11506_v37 = vadd.f32 %v13571_v56, %v11505_v1  ;;  %18142 = vmatprep.subr.bf16.mxu0 %v18141_v0 }
0x1b48   :  { %18144 = vmatpush3.bf16.msra.mxu0 %v18141_v0 }
0x1b49   :  { %v18145_v15 = vpack.c.bf16 %v11511_v26, %v11506_v37  ;;  %v16958_v28 = vpop.f32.mrb[120].mxu0 }
0x1b4a   :  { %v11521_v63 = vadd.f32 %v16958_v28, %v13571_v56  ;;  %v11515_v59 = vpop.f32.mrb[121].mxu0 }
0x1b4b   :  { %v11516_v51 = vadd.f32 %v13571_v56, %v11515_v59  ;;  %18146 = vmatprep.subr.bf16.mxu0 %v18145_v15 }
0x1b4c   :  { %18148 = vmatpush3.bf16.msra.mxu0 %v18145_v15 }
0x1b4d   :  { %v18149_v16 = vpack.c.bf16 %v11521_v63, %v11516_v51 }
0x1b4f   :  { %18150 = vmatprep.subr.bf16.mxu0 %v18149_v16 }
0x1b50   :  { %18152 = vmatpush3.bf16.msra.mxu0 %v18149_v16 }
0x1b7b   :  { %v10541_v3 = vpop.xlane.xlu1 %10540 }
0x1b7c   :  { %v10571_v38 = vsub.f32 %v24203_v29, %v10541_v3  ;;  %v10539_v21 = vpop.xlane.xlu0 %10538 }
0x1b7d   :  { %v10570_v10 = vsub.f32 %v24206_v22, %v10539_v21 }
0x1b7e   :  { %v10588_v32 = vmul.f32 1.442695, %v10571_v38 }
0x1b7f   :  { %v10586_v48 = vmul.f32 1.442695, %v10570_v10  ;;  %v10545_v50 = vpop.xlane.xlu1 %10544 }
0x1b80   :  { %18815 = vpow2.f32 %v10588_v32  ;;  %v10573_v0 = vsub.f32 %v24209_v4, %v10545_v50  ;;  %v10543_v39 = vpop.xlane.xlu0 %10542 }
0x1b81   :  { %18817 = vpow2.f32 %v10586_v48  ;;  %v10572_v56 = vsub.f32 %v24212_v17, %v10543_v39 }
0x1b82   :  { %v10592_v26 = vmul.f32 1.442695, %v10573_v0 }
0x1b83   :  { %v10590_v1 = vmul.f32 1.442695, %v10572_v56  ;;  %v10549_v37 = vpop.xlane.xlu1 %10548 }
0x1b84   :  { %18819 = vpow2.f32 %v10592_v26  ;;  %v10575_v15 = vsub.f32 %v24215_v11, %v10549_v37  ;;  %v10547_v29 = vpop.xlane.xlu0 %10546 }
0x1b85   :  { %18821 = vpow2.f32 %v10590_v1  ;;  %v10574_v22 = vsub.f32 %v24218_v41, %v10547_v29 }
0x1b86   :  { %v10596_v28 = vmul.f32 1.442695, %v10575_v15 }
0x1b87   :  { %v10594_v63 = vmul.f32 1.442695, %v10574_v22  ;;  %v10553_v59 = vpop.xlane.xlu1 %10552 }
0x1b88   :  { %18823 = vpow2.f32 %v10596_v28  ;;  %v10577_v4 = vsub.f32 %v24221_v54, %v10553_v59  ;;  %v10551_v51 = vpop.xlane.xlu0 %10550 }
0x1b89   :  { %18825 = vpow2.f32 %v10594_v63  ;;  %v10576_v17 = vsub.f32 %v24224_v9, %v10551_v51 }
0x1b8a   :  { %v24314_v16 = vpop.eup %18815  ;;  %v10600_v3 = vmul.f32 1.442695, %v10577_v4 }
0x1b8b   :  { %v24316_v38 = vpop.eup %18817  ;;  %v10598_v11 = vmul.f32 1.442695, %v10576_v17  ;;  %v10557_v21 = vpop.xlane.xlu1 %10556  ;;  %10620 = vadd.xlane.f32.xlu1 %v24314_v16 }
0x1b8c   :  { %18827 = vpow2.f32 %v10600_v3  ;;  %v10579_v41 = vsub.f32 %v24227_v12, %v10557_v21  ;;  %v10555_v10 = vpop.xlane.xlu0 %10554  ;;  %10618 = vadd.xlane.f32.xlu0 %v24316_v38 }
0x1b8d   :  { %18829 = vpow2.f32 %v10598_v11  ;;  %v10578_v54 = vsub.f32 %v24230_v43, %v10555_v10 }
0x1b8e   :  { %v24322_v32 = vpop.eup %18819  ;;  %v10604_v9 = vmul.f32 1.442695, %v10579_v41 }
0x1b8f   :  { %v24324_v48 = vpop.eup %18821  ;;  %v10602_v50 = vmul.f32 1.442695, %v10578_v54  ;;  %v10561_v0 = vpop.xlane.xlu1 %10560  ;;  %10624 = vadd.xlane.f32.xlu1 %v24322_v32 }
0x1b90   :  { %18831 = vpow2.f32 %v10604_v9  ;;  %v10581_v39 = vsub.f32 %v24233_v36, %v10561_v0  ;;  %v10559_v56 = vpop.xlane.xlu0 %10558  ;;  %10622 = vadd.xlane.f32.xlu0 %v24324_v48 }
0x1b91   :  { %18833 = vpow2.f32 %v10602_v50  ;;  %v10580_v12 = vsub.f32 %v24236_v27, %v10559_v56  ;;  %v13493_v50 = vld [vmem:[%s24927_s14 + $0x30] sm:$0xff] }
0x1b92   :  { %v24330_v26 = vpop.eup %18823  ;;  %v10608_v43 = vmul.f32 1.442695, %v10581_v39  ;;  %16813 = vmatprep.subr.mxu1 %v13493_v50 }
0x1b93   :  { %v24332_v1 = vpop.eup %18825  ;;  %v10606_v37 = vmul.f32 1.442695, %v10580_v12  ;;  %v10565_v15 = vpop.xlane.xlu1 %10564  ;;  %10628 = vadd.xlane.f32.xlu1 %v24330_v26 }
0x1b94   :  { %18835 = vpow2.f32 %v10608_v43  ;;  %v10583_v29 = vsub.f32 %v24239_v33, %v10565_v15  ;;  %v10563_v22 = vpop.xlane.xlu0 %10562  ;;  %10626 = vadd.xlane.f32.xlu0 %v24332_v1 }
0x1b95   :  { %18837 = vpow2.f32 %v10606_v37  ;;  %v10582_v36 = vsub.f32 %v24242_v53, %v10563_v22 }
0x1b96   :  { %v24338_v28 = vpop.eup %18827  ;;  %v10612_v27 = vmul.f32 1.442695, %v10583_v29 }
0x1b97   :  { %v24340_v63 = vpop.eup %18829  ;;  %v10610_v59 = vmul.f32 1.442695, %v10582_v36  ;;  %10632 = vadd.xlane.f32.xlu1 %v24338_v28  ;;  %v10569_v4 = vpop.xlane.xlu1 %10568 }
0x1b98   :  { %18839 = vpow2.f32 %v10612_v27  ;;  %v10585_v51 = vsub.f32 %v24245_v19, %v10569_v4  ;;  %10630 = vadd.xlane.f32.xlu0 %v24340_v63  ;;  %v10567_v33 = vpop.xlane.xlu0 %10566 }
0x1b99   :  { %18841 = vpow2.f32 %v10610_v59  ;;  %v10584_v17 = vsub.f32 %v24248_v24, %v10567_v33 }
0x1b9a   :  { %v24346_v3 = vpop.eup %18831  ;;  %v10616_v53 = vmul.f32 1.442695, %v10585_v51 }
0x1b9b   :  { %v24348_v11 = vpop.eup %18833  ;;  %v10614_v21 = vmul.f32 1.442695, %v10584_v17  ;;  %10636 = vadd.xlane.f32.xlu1 %v24346_v3 }
0x1b9c   :  { %18843 = vpow2.f32 %v10616_v53  ;;  %10634 = vadd.xlane.f32.xlu0 %v24348_v11 }
0x1b9d   :  { %18845 = vpow2.f32 %v10614_v21 }
0x1b9e   :  { %v24352_v41 = vpop.eup %18835 }
0x1b9f   :  { %v24354_v19 = vpop.eup %18837  ;;  %10640 = vadd.xlane.f32.xlu1 %v24352_v41 }
0x1ba0   :  { %10638 = vadd.xlane.f32.xlu0 %v24354_v19 }
0x1ba2   :  { %v24358_v24 = vpop.eup %18839 }
0x1ba3   :  { %v24360_v10 = vpop.eup %18841  ;;  %10644 = vadd.xlane.f32.xlu1 %v24358_v24 }
0x1ba4   :  { %10642 = vadd.xlane.f32.xlu0 %v24360_v10 }
0x1ba6   :  { %v24364_v54 = vpop.eup %18843 }
0x1ba7   :  { %v24366_v9 = vpop.eup %18845  ;;  %10648 = vadd.xlane.f32.xlu1 %v24364_v54 }
0x1ba8   :  { %10646 = vadd.xlane.f32.xlu0 %v24366_v9 }
0x1c18   :  { %v10621_v0 = vpop.xlane.xlu1 %10620 }
0x1c19   :  { %18847 = vrcp.f32 %v10621_v0  ;;  %v10619_v39 = vpop.xlane.xlu0 %10618 }
0x1c1a   :  { %18849 = vrcp.f32 %v10619_v39 }
0x1c1c   :  { %v10625_v56 = vpop.xlane.xlu1 %10624 }
0x1c1d   :  { %18851 = vrcp.f32 %v10625_v56  ;;  %v10623_v12 = vpop.xlane.xlu0 %10622 }
0x1c1e   :  { %18853 = vrcp.f32 %v10623_v12 }
0x1c20   :  { %v10629_v43 = vpop.xlane.xlu1 %10628 }
0x1c21   :  { %18855 = vrcp.f32 %v10629_v43  ;;  %v10627_v37 = vpop.xlane.xlu0 %10626 }
0x1c22   :  { %18857 = vrcp.f32 %v10627_v37 }
0x1c23   :  { %v18848_v15 = vpop.eup %18847 }
0x1c24   :  { %v18850_v29 = vpop.eup %18849  ;;  %v10633_v22 = vpop.xlane.xlu1 %10632  ;;  %v10667_v59 = vmul.f32 %v18848_v15, %v24314_v16 }
0x1c25   :  { %18859 = vrcp.f32 %v10633_v22  ;;  %v10631_v36 = vpop.xlane.xlu0 %10630  ;;  %v10666_v27 = vmul.f32 %v18850_v29, %v24316_v38 }
0x1c26   :  { %18861 = vrcp.f32 %v10631_v36 }
0x1c27   :  { %v18852_v4 = vpop.eup %18851  ;;  %16789 = vmatprep.mubr.f32.mxu1 %v10666_v27 }
0x1c28   :  { %v18854_v51 = vpop.eup %18853  ;;  %v10637_v33 = vpop.xlane.xlu1 %10636  ;;  %16790 = vmatmul.mubr.f32.vlgmr.msra.gmra.mrb[246].mxu1 %v10667_v59  ;;  %v10669_v21 = vmul.f32 %v18852_v4, %v24322_v32 }
0x1c29   :  { %18863 = vrcp.f32 %v10637_v33  ;;  %v10635_v17 = vpop.xlane.xlu0 %10634  ;;  %v10668_v53 = vmul.f32 %v18854_v51, %v24324_v48  ;;  %16814 = vmatpush3.msra.mxu1 %v13493_v50 }
0x1c2a   :  { %18865 = vrcp.f32 %v10635_v17 }
0x1c2b   :  { %v18856_v0 = vpop.eup %18855  ;;  %16792 = vmatprep.mubr.f32.mxu1 %v10668_v53 }
0x1c2c   :  { %v18858_v39 = vpop.eup %18857  ;;  %v10641_v38 = vpop.xlane.xlu1 %10640  ;;  %16793 = vmatmul.mubr.f32.gmra.mrb[248].mxu1 %v10669_v21  ;;  %v10671_v12 = vmul.f32 %v18856_v0, %v24330_v26 }
0x1c2d   :  { %18867 = vrcp.f32 %v10641_v38  ;;  %v10639_v16 = vpop.xlane.xlu0 %10638  ;;  %v10670_v56 = vmul.f32 %v18858_v39, %v24332_v1 }
0x1c2e   :  { %18869 = vrcp.f32 %v10639_v16  ;;  %v13540_v16 = vld [vmem:[%s24922_s9 + $0x1e0] sm:$0xff] }
0x1c2f   :  { %v18860_v43 = vpop.eup %18859  ;;  %16795 = vmatprep.mubr.f32.mxu1 %v10670_v56  ;;  %v13541_v56 = vld [vmem:[%s24922_s9 + $0x1e8] sm:$0xff] }
0x1c30   :  { %v18862_v37 = vpop.eup %18861  ;;  %v10645_v48 = vpop.xlane.xlu1 %10644  ;;  %16796 = vmatmul.mubr.f32.gmra.mrb[250].mxu1 %v10671_v12  ;;  %v10673_v15 = vmul.f32 %v18860_v43, %v24338_v28 }
0x1c31   :  { %18871 = vrcp.f32 %v10645_v48  ;;  %v10643_v50 = vpop.xlane.xlu0 %10642  ;;  %v10672_v32 = vmul.f32 %v18862_v37, %v24340_v63  ;;  %v18049_v37 = vpack.c.bf16 %v13541_v56, %v13540_v16  ;;  %v13542_v48 = vld [vmem:[%s24922_s9 + $0x1f0] sm:$0xff] }
0x1c32   :  { %18873 = vrcp.f32 %v10643_v50  ;;  %v13543_v50 = vld [vmem:[%s24922_s9 + $0x1f8] sm:$0xff] }
0x1c33   :  { %v18864_v29 = vpop.eup %18863  ;;  %16798 = vmatprep.mubr.f32.mxu1 %v10672_v32 }
0x1c34   :  { %v18866_v22 = vpop.eup %18865  ;;  %v10649_v36 = vpop.xlane.xlu1 %10648  ;;  %16799 = vmatmul.mubr.f32.gmra.mrb[252].mxu1 %v10673_v15  ;;  %v10675_v27 = vmul.f32 %v18864_v29, %v24346_v3  ;;  %v18053_v29 = vpack.c.bf16 %v13543_v50, %v13542_v48 }
0x1c35   :  { %18875 = vrcp.f32 %v10649_v36  ;;  %v10647_v1 = vpop.xlane.xlu0 %10646  ;;  %v10674_v26 = vmul.f32 %v18866_v22, %v24348_v11 }
0x1c36   :  { %18877 = vrcp.f32 %v10647_v1 }
0x1c37   :  { %v18868_v59 = vpop.eup %18867  ;;  %16801 = vmatprep.mubr.f32.mxu1 %v10674_v26 }
0x1c38   :  { %v18870_v4 = vpop.eup %18869  ;;  %16802 = vmatmul.mubr.f32.gmra.mrb[254].mxu1 %v10675_v27  ;;  %v10677_v28 = vmul.f32 %v18868_v59, %v24352_v41  ;;  %v13536_v41 = vld [vmem:[%s24922_s9 + $0x1c0] sm:$0xff] }
0x1c39   :  { %v10676_v63 = vmul.f32 %v18870_v4, %v24354_v19  ;;  %v13537_v19 = vld [vmem:[%s24922_s9 + $0x1c8] sm:$0xff] }
0x1c3b   :  { %v18872_v51 = vpop.eup %18871  ;;  %16804 = vmatprep.mubr.f32.mxu1 %v10676_v63 }
0x1c3c   :  { %v18874_v33 = vpop.eup %18873  ;;  %16805 = vmatmul.mubr.f32.gmra.mrb[0].mxu1 %v10677_v28  ;;  %v10679_v53 = vmul.f32 %v18872_v51, %v24358_v24  ;;  %v13538_v24 = vld [vmem:[%s24922_s9 + $0x1d0] sm:$0xff] }
0x1c3d   :  { %v10678_v17 = vmul.f32 %v18874_v33, %v24360_v10  ;;  %v18041_v10 = vpack.c.bf16 %v13537_v19, %v13536_v41  ;;  %v11122_v33 = vadd.f32 %v24254_v40, %v24259_v52 }
0x1c3f   :  { %v18876_v11 = vpop.eup %18875  ;;  %16807 = vmatprep.mubr.f32.mxu1 %v10678_v17  ;;  %18042 = vmatprep.subr.bf16.mxu1 %v18041_v10  ;;  %v13545_v17 = vld [vmem:[%s24926_s12 + $0x7] ss:$0 sm:$0xff] }
0x1c40   :  { %v18878_v21 = vpop.eup %18877  ;;  %16808 = vmatmul.mubr.f32.gmra.mrb[2].mxu1 %v10679_v53  ;;  %v10681_v0 = vmul.f32 %v18876_v11, %v24364_v54  ;;  %v13539_v54 = vld [vmem:[%s24922_s9 + $0x1d8] sm:$0xff] }
0x1c41   :  { %v10680_v3 = vmul.f32 %v18878_v21, %v24366_v9  ;;  %v18045_v38 = vpack.c.bf16 %v13539_v54, %v13538_v24 }
0x1c43   :  { %16810 = vmatprep.mubr.f32.mxu1 %v10680_v3 }
0x1c44   :  { %16811 = vmatmul.mubr.f32.gmra.mrb[4].mxu1 %v10681_v0 }
0x1cfb   :  { %v16791_v9 = vpop.f32.mrb[246].mxu1 }
0x1cfc   :  { %v10748_v39 = vpop.f32.mrb[247].mxu1 }
0x1cfd   :  { %16815 = vmatprep.mubr.msk.f32.mxu1 %vm2967_vm10, %v10748_v39 }
0x1cfe   :  { %16816 = vmatmul.mubr.msk.f32.vlgmr.msra.gmra.mrb[86].mxu1 %vm2967_vm10, %v16791_v9 }
0x1cff   :  { %18044 = vmatpush3.bf16.msra.mxu1 %v18041_v10  ;;  %v16794_v12 = vpop.f32.mrb[248].mxu1 }
0x1d00   :  { %v10758_v43 = vpop.f32.mrb[249].mxu1  ;;  %18046 = vmatprep.subr.bf16.mxu1 %v18045_v38 }
0x1d01   :  { %16818 = vmatprep.mubr.msk.f32.mxu1 %vm2967_vm10, %v10758_v43 }
0x1d02   :  { %16819 = vmatmul.mubr.msk.f32.gmra.mrb[88].mxu1 %vm2967_vm10, %v16794_v12 }
0x1d03   :  { %v16797_v32 = vpop.f32.mrb[250].mxu1  ;;  %18048 = vmatpush3.bf16.msra.mxu1 %v18045_v38 }
0x1d04   :  { %v10768_v15 = vpop.f32.mrb[251].mxu1  ;;  %18050 = vmatprep.subr.bf16.mxu1 %v18049_v37 }
0x1d05   :  { %16821 = vmatprep.mubr.msk.f32.mxu1 %vm2967_vm10, %v10768_v15 }
0x1d06   :  { %16822 = vmatmul.mubr.msk.f32.gmra.mrb[90].mxu1 %vm2967_vm10, %v16797_v32 }
0x1d07   :  { %v16800_v22 = vpop.f32.mrb[252].mxu1  ;;  %18052 = vmatpush3.bf16.msra.mxu1 %v18049_v37 }
0x1d08   :  { %v10778_v36 = vpop.f32.mrb[253].mxu1  ;;  %18054 = vmatprep.subr.bf16.mxu1 %v18053_v29 }
0x1d09   :  { %16824 = vmatprep.mubr.msk.f32.mxu1 %vm2967_vm10, %v10778_v36 }
0x1d0a   :  { %16825 = vmatmul.mubr.msk.f32.gmra.mrb[92].mxu1 %vm2967_vm10, %v16800_v22 }
0x1d0b   :  { %v16803_v1 = vpop.f32.mrb[254].mxu1  ;;  %18056 = vmatpush3.bf16.msra.mxu1 %v18053_v29 }
0x1d0c   :  { %v10788_v26 = vpop.f32.mrb[255].mxu1 }
0x1d0d   :  { %16827 = vmatprep.mubr.msk.f32.mxu1 %vm2967_vm10, %v10788_v26 }
0x1d0e   :  { %16828 = vmatmul.mubr.msk.f32.gmra.mrb[94].mxu1 %vm2967_vm10, %v16803_v1 }
0x1d0f   :  { %v16806_v27 = vpop.f32.mrb[0].mxu1 }
0x1d10   :  { %v10798_v59 = vpop.f32.mrb[1].mxu1 }
0x1d11   :  { %16830 = vmatprep.mubr.msk.f32.mxu1 %vm2967_vm10, %v10798_v59 }
0x1d12   :  { %16831 = vmatmul.mubr.msk.f32.gmra.mrb[96].mxu1 %vm2967_vm10, %v16806_v27 }
0x1d13   :  { %v16809_v4 = vpop.f32.mrb[2].mxu1 }
0x1d14   :  { %v10808_v63 = vpop.f32.mrb[3].mxu1 }
0x1d15   :  { %16833 = vmatprep.mubr.msk.f32.mxu1 %vm2967_vm10, %v10808_v63 }
0x1d16   :  { %16834 = vmatmul.mubr.msk.f32.gmra.mrb[98].mxu1 %vm2967_vm10, %v16809_v4 }
0x1d17   :  { %v16812_v28 = vpop.f32.mrb[4].mxu1 }
0x1d18   :  { %v10818_v51 = vpop.f32.mrb[5].mxu1 }
0x1d19   :  { %16836 = vmatprep.mubr.msk.f32.mxu1 %vm2967_vm10, %v10818_v51 }
0x1d1a   :  { %16837 = vmatmul.mubr.msk.f32.gmra.mrb[100].mxu1 %vm2967_vm10, %v16812_v28 }
0x1d1b   :  { %16895 = vmatprep.mubr.msk.f32.mxu1 %vm2029_vm5, %v21351_v35 }
0x1d1e   :  { %16896 = vmatmul.mubr.msk.f32.vlgmr.msra.gmra.mrb[6].mxu1 %vm2029_vm5, %v21354_v34 }
0x1d1f   :  { %16898 = vmatprep.mubr.msk.f32.mxu1 %vm2029_vm5, %v21371_v46 }
0x1d22   :  { %16899 = vmatmul.mubr.msk.f32.gmra.mrb[8].mxu1 %vm2029_vm5, %v21374_v7 }
0x1d23   :  { %16901 = vmatprep.mubr.msk.f32.mxu1 %vm2029_vm5, %v21391_v14 }
0x1d26   :  { %16902 = vmatmul.mubr.msk.f32.gmra.mrb[10].mxu1 %vm2029_vm5, %v21394_v6 }
0x1d27   :  { %16904 = vmatprep.mubr.msk.f32.mxu1 %vm2029_vm5, %v21405_v20 }
0x1d2a   :  { %16905 = vmatmul.mubr.msk.f32.gmra.mrb[12].mxu1 %vm2029_vm5, %v21408_v2 }
0x1d2b   :  { %16907 = vmatprep.mubr.msk.f32.mxu1 %vm2029_vm5, %v21419_v23 }
0x1d2e   :  { %16908 = vmatmul.mubr.msk.f32.gmra.mrb[14].mxu1 %vm2029_vm5, %v21422_v13 }
0x1d2f   :  { %16910 = vmatprep.mubr.msk.f32.mxu1 %vm2029_vm5, %v21433_v57 }
0x1d32   :  { %16911 = vmatmul.mubr.msk.f32.gmra.mrb[16].mxu1 %vm2029_vm5, %v21436_v47 }
0x1d33   :  { %16913 = vmatprep.mubr.msk.f32.mxu1 %vm2029_vm5, %v21447_v31 }
0x1d36   :  { %16914 = vmatmul.mubr.msk.f32.gmra.mrb[18].mxu1 %vm2029_vm5, %v21450_v49 }
0x1d37   :  { %16916 = vmatprep.mubr.msk.f32.mxu1 %vm2029_vm5, %v21461_v5 }
0x1d3a   :  { %16917 = vmatmul.mubr.msk.f32.gmra.mrb[20].mxu1 %vm2029_vm5, %v21464_v25 }
0x1d3b   :  { %16991 = vmatprep.mubr.msk.f32.mxu1 %vm2967_vm10, %v11122_v33 }
0x1df1   :  { %v16897_v53 = vpop.f32.mrb[6].mxu1 }
0x1df2   :  { %v11289_v11 = vadd.f32 %v16897_v53, %v13545_v17  ;;  %v11283_v21 = vpop.f32.mrb[7].mxu1 }
0x1df3   :  { %v11284_v3 = vadd.f32 %v13545_v17, %v11283_v21 }
0x1df5   :  { %v18073_v0 = vpack.c.bf16 %v11289_v11, %v11284_v3  ;;  %v16900_v41 = vpop.f32.mrb[8].mxu1 }
0x1df6   :  { %v11299_v19 = vadd.f32 %v16900_v41, %v13545_v17  ;;  %v11293_v10 = vpop.f32.mrb[9].mxu1 }
0x1df7   :  { %v11294_v24 = vadd.f32 %v13545_v17, %v11293_v10  ;;  %18075 = vmatprep.subr.msk.bf16.mxu1 %vm21584_vm4, %v18073_v0 }
0x1df8   :  { %18078 = vmatpush3.bf16.xpose.msk.msra.mxu1 %vm21584_vm4, %v18073_v0 }
0x1df9   :  { %v18079_v40 = vpack.c.bf16 %v11299_v19, %v11294_v24  ;;  %v16903_v52 = vpop.f32.mrb[10].mxu1 }
0x1dfa   :  { %v11309_v54 = vadd.f32 %v16903_v52, %v13545_v17  ;;  %v11303_v9 = vpop.f32.mrb[11].mxu1 }
0x1dfb   :  { %v11304_v39 = vadd.f32 %v13545_v17, %v11303_v9  ;;  %18081 = vmatprep.subr.msk.bf16.mxu1 %vm21584_vm4, %v18079_v40 }
0x1dfd   :  { %v18085_v38 = vpack.c.bf16 %v11309_v54, %v11304_v39  ;;  %v16906_v16 = vpop.f32.mrb[12].mxu1 }
0x1dfe   :  { %v11319_v56 = vadd.f32 %v16906_v16, %v13545_v17  ;;  %v11313_v12 = vpop.f32.mrb[13].mxu1 }
0x1dff   :  { %v11314_v43 = vadd.f32 %v13545_v17, %v11313_v12 }
0x1e00   :  { %18084 = vmatpush3.bf16.xpose.msk.msra.mxu1 %vm21584_vm4, %v18079_v40 }
0x1e01   :  { %v18091_v37 = vpack.c.bf16 %v11319_v56, %v11314_v43  ;;  %v16909_v48 = vpop.f32.mrb[14].mxu1  ;;  %18087 = vmatprep.subr.msk.bf16.mxu1 %vm21584_vm4, %v18085_v38 }
0x1e02   :  { %v11329_v50 = vadd.f32 %v16909_v48, %v13545_v17  ;;  %v11323_v32 = vpop.f32.mrb[15].mxu1 }
0x1e03   :  { %v11324_v15 = vadd.f32 %v13545_v17, %v11323_v32 }
0x1e05   :  { %v18097_v29 = vpack.c.bf16 %v11329_v50, %v11324_v15  ;;  %v16912_v22 = vpop.f32.mrb[16].mxu1 }
0x1e06   :  { %v11339_v36 = vadd.f32 %v16912_v22, %v13545_v17  ;;  %v11333_v1 = vpop.f32.mrb[17].mxu1 }
0x1e07   :  { %v11334_v26 = vadd.f32 %v13545_v17, %v11333_v1 }
0x1e08   :  { %18090 = vmatpush3.bf16.xpose.msk.msra.mxu1 %vm21584_vm4, %v18085_v38 }
0x1e09   :  { %v18103_v27 = vpack.c.bf16 %v11339_v36, %v11334_v26  ;;  %v16915_v59 = vpop.f32.mrb[18].mxu1  ;;  %18093 = vmatprep.subr.msk.bf16.mxu1 %vm21584_vm4, %v18091_v37 }
0x1e0a   :  { %v11349_v4 = vadd.f32 %v16915_v59, %v13545_v17  ;;  %v11343_v63 = vpop.f32.mrb[19].mxu1 }
0x1e0b   :  { %v11344_v28 = vadd.f32 %v13545_v17, %v11343_v63 }
0x1e0d   :  { %v18109_v51 = vpack.c.bf16 %v11349_v4, %v11344_v28  ;;  %v16918_v33 = vpop.f32.mrb[20].mxu1 }
0x1e0e   :  { %v11359_v53 = vadd.f32 %v16918_v33, %v13545_v17  ;;  %v11353_v11 = vpop.f32.mrb[21].mxu1 }
0x1e0f   :  { %v11354_v21 = vadd.f32 %v13545_v17, %v11353_v11 }
0x1e10   :  { %18096 = vmatpush3.bf16.xpose.msk.msra.mxu1 %vm21584_vm4, %v18091_v37 }
0x1e11   :  { %v18115_v3 = vpack.c.bf16 %v11359_v53, %v11354_v21  ;;  %18099 = vmatprep.subr.msk.bf16.mxu1 %vm21584_vm4, %v18097_v29 }
0x1e18   :  { %18102 = vmatpush3.bf16.xpose.msk.msra.mxu1 %vm21584_vm4, %v18097_v29 }
0x1e19   :  { %18105 = vmatprep.subr.msk.bf16.mxu1 %vm21584_vm4, %v18103_v27 }
0x1e20   :  { %18108 = vmatpush3.bf16.xpose.msk.msra.mxu1 %vm21584_vm4, %v18103_v27 }
0x1e21   :  { %18111 = vmatprep.subr.msk.bf16.mxu1 %vm21584_vm4, %v18109_v51 }
0x1e28   :  { %18114 = vmatpush3.bf16.xpose.msk.msra.mxu1 %vm21584_vm4, %v18109_v51 }
0x1e29   :  { %18117 = vmatprep.subr.msk.bf16.mxu1 %vm21584_vm4, %v18115_v3 }
0x1e30   :  { %18120 = vmatpush3.bf16.xpose.msk.msra.mxu1 %vm21584_vm4, %v18115_v3 }
0x1e37   :  { %16992 = vmatmul.mubr.msk.f32.vlgmr.msra.gmra.mrb[22].mxu1 %vm2967_vm10, %v24257_v8  ;;  %v25298_v8 = vld [vmem:[#allocation19_spill] sm:$0xff] }
0x1e38   :  { %16994 = vmatprep.mubr.msk.f32.mxu1 %vm2967_vm10, %v24265_v60  ;;  %v25300_v60 = vld [vmem:[#allocation35_spill] sm:$0xff] }
0x1e3b   :  { %16995 = vmatmul.mubr.msk.f32.gmra.mrb[24].mxu1 %vm2967_vm10, %v24262_v61  ;;  %v25299_v61 = vld [vmem:[#allocation34_spill] sm:$0xff] }
0x1e3c   :  { %16997 = vmatprep.mubr.msk.f32.mxu1 %vm2967_vm10, %v24271_v42 }
0x1e3f   :  { %16998 = vmatmul.mubr.msk.f32.gmra.mrb[26].mxu1 %vm2967_vm10, %v24268_v62  ;;  %v25301_v62 = vld [vmem:[#allocation42_spill] sm:$0xff] }
0x1e40   :  { %17000 = vmatprep.mubr.msk.f32.mxu1 %vm2967_vm10, %v24277_v58 }
0x1e43   :  { %17001 = vmatmul.mubr.msk.f32.gmra.mrb[28].mxu1 %vm2967_vm10, %v24274_v45 }
0x1e44   :  { %17003 = vmatprep.mubr.msk.f32.mxu1 %vm2967_vm10, %v24283_v30 }
0x1e47   :  { %17004 = vmatmul.mubr.msk.f32.gmra.mrb[30].mxu1 %vm2967_vm10, %v24280_v55 }
0x1e48   :  { %17006 = vmatprep.mubr.msk.f32.mxu1 %vm2967_vm10, %v24289_v44 }
0x1e4b   :  { %17007 = vmatmul.mubr.msk.f32.gmra.mrb[32].mxu1 %vm2967_vm10, %v25297_v18 }
0x1e4c   :  { %17009 = vmatprep.mubr.msk.f32.mxu1 %vm2967_vm10, %v25298_v8 }
0x1e4f   :  { %17010 = vmatmul.mubr.msk.f32.gmra.mrb[34].mxu1 %vm2967_vm10, %v25299_v61 }
0x1e50   :  { %17012 = vmatprep.mubr.msk.f32.mxu1 %vm2967_vm10, %v25300_v60 }
0x1e53   :  { %17013 = vmatmul.mubr.msk.f32.gmra.mrb[36].mxu1 %vm2967_vm10, %v25301_v62 }
0x1f0a   :  { %v16993_v42 = vpop.f32.mrb[22].mxu1 }
0x1f0b   :  { %11767 = vmax.xlane.f32.xlu1 %v16993_v42  ;;  %v11686_v45 = vpop.f32.mrb[23].mxu1 }
0x1f0c   :  { %11765 = vmax.xlane.f32.xlu0 %v11686_v45 }
0x1f0e   :  { %v16996_v58 = vpop.f32.mrb[24].mxu1 }
0x1f0f   :  { %11771 = vmax.xlane.f32.xlu1 %v16996_v58  ;;  %v11696_v55 = vpop.f32.mrb[25].mxu1 }
0x1f10   :  { %11769 = vmax.xlane.f32.xlu0 %v11696_v55 }
0x1f12   :  { %v16999_v30 = vpop.f32.mrb[26].mxu1 }
0x1f13   :  { %11775 = vmax.xlane.f32.xlu1 %v16999_v30  ;;  %v11706_v44 = vpop.f32.mrb[27].mxu1 }
0x1f14   :  { %11773 = vmax.xlane.f32.xlu0 %v11706_v44 }
0x1f16   :  { %v17002_v17 = vpop.f32.mrb[28].mxu1 }
0x1f17   :  { %11779 = vmax.xlane.f32.xlu1 %v17002_v17  ;;  %v11716_v0 = vpop.f32.mrb[29].mxu1 }
0x1f18   :  { %11777 = vmax.xlane.f32.xlu0 %v11716_v0 }
0x1f1a   :  { %v17005_v41 = vpop.f32.mrb[30].mxu1 }
0x1f1b   :  { %11783 = vmax.xlane.f32.xlu1 %v17005_v41  ;;  %v11726_v19 = vpop.f32.mrb[31].mxu1 }
0x1f1c   :  { %11781 = vmax.xlane.f32.xlu0 %v11726_v19 }
0x1f1e   :  { %v24529_v10 = vpop.f32.mrb[32].mxu1 }
0x1f1f   :  { %11787 = vmax.xlane.f32.xlu1 %v24529_v10  ;;  %v24532_v24 = vpop.f32.mrb[33].mxu1 }
0x1f20   :  { %11785 = vmax.xlane.f32.xlu0 %v24532_v24 }
0x1f22   :  { %v24535_v40 = vpop.f32.mrb[34].mxu1 }
0x1f23   :  { %11791 = vmax.xlane.f32.xlu1 %v24535_v40  ;;  %v24538_v52 = vpop.f32.mrb[35].mxu1 }
0x1f24   :  { %11789 = vmax.xlane.f32.xlu0 %v24538_v52 }
0x1f26   :  { %v24541_v54 = vpop.f32.mrb[36].mxu1 }
0x1f27   :  { %11795 = vmax.xlane.f32.xlu1 %v24541_v54  ;;  %v24544_v9 = vpop.f32.mrb[37].mxu1 }
0x1f28   :  { %11793 = vmax.xlane.f32.xlu0 %v24544_v9 }
0x1f98   :  { %v11768_v39 = vpop.xlane.xlu1 %11767 }
0x1f99   :  { %v11798_v38 = vsub.f32 %v16993_v42, %v11768_v39  ;;  %v11766_v16 = vpop.xlane.xlu0 %11765 }
0x1f9a   :  { %v11797_v56 = vsub.f32 %v11686_v45, %v11766_v16 }
0x1f9b   :  { %v11815_v12 = vmul.f32 1.442695, %v11798_v38 }
0x1f9c   :  { %v11813_v43 = vmul.f32 1.442695, %v11797_v56  ;;  %v11772_v37 = vpop.xlane.xlu1 %11771 }
0x1f9d   :  { %18879 = vpow2.f32 %v11815_v12  ;;  %v11800_v48 = vsub.f32 %v16996_v58, %v11772_v37  ;;  %v11770_v50 = vpop.xlane.xlu0 %11769 }
0x1f9e   :  { %18881 = vpow2.f32 %v11813_v43  ;;  %v11799_v32 = vsub.f32 %v11696_v55, %v11770_v50 }
0x1f9f   :  { %v11819_v15 = vmul.f32 1.442695, %v11800_v48 }
0x1fa0   :  { %v11817_v29 = vmul.f32 1.442695, %v11799_v32  ;;  %v11776_v22 = vpop.xlane.xlu1 %11775 }
0x1fa1   :  { %18883 = vpow2.f32 %v11819_v15  ;;  %v11802_v36 = vsub.f32 %v16999_v30, %v11776_v22  ;;  %v11774_v1 = vpop.xlane.xlu0 %11773 }
0x1fa2   :  { %18885 = vpow2.f32 %v11817_v29  ;;  %v11801_v26 = vsub.f32 %v11706_v44, %v11774_v1 }
0x1fa3   :  { %v11823_v27 = vmul.f32 1.442695, %v11802_v36 }
0x1fa4   :  { %v11821_v59 = vmul.f32 1.442695, %v11801_v26  ;;  %v11780_v4 = vpop.xlane.xlu1 %11779 }
0x1fa5   :  { %18887 = vpow2.f32 %v11823_v27  ;;  %v11804_v63 = vsub.f32 %v17002_v17, %v11780_v4  ;;  %v11778_v28 = vpop.xlane.xlu0 %11777  ;;  %v13620_v27 = vld [vmem:[%s24927_s14 + $0x38] sm:$0xff] }
0x1fa6   :  { %18889 = vpow2.f32 %v11821_v59  ;;  %v11803_v51 = vsub.f32 %v11716_v0, %v11778_v28  ;;  %17071 = vmatprep.subr.mxu1 %v13620_v27 }
0x1fa7   :  { %v24547_v33 = vpop.eup %18879  ;;  %v11827_v53 = vmul.f32 1.442695, %v11804_v63  ;;  %17072 = vmatpush3.msra.mxu1 %v13620_v27 }
0x1fa8   :  { %v24549_v11 = vpop.eup %18881  ;;  %v11825_v21 = vmul.f32 1.442695, %v11803_v51  ;;  %v11784_v3 = vpop.xlane.xlu1 %11783  ;;  %11847 = vadd.xlane.f32.xlu1 %v24547_v33 }
0x1fa9   :  { %18891 = vpow2.f32 %v11827_v53  ;;  %v11806_v18 = vsub.f32 %v17005_v41, %v11784_v3  ;;  %v11782_v8 = vpop.xlane.xlu0 %11781  ;;  %11845 = vadd.xlane.f32.xlu0 %v24549_v11 }
0x1faa   :  { %18893 = vpow2.f32 %v11825_v21  ;;  %v11805_v61 = vsub.f32 %v11726_v19, %v11782_v8 }
0x1fab   :  { %v24553_v60 = vpop.eup %18883  ;;  %v11831_v62 = vmul.f32 1.442695, %v11806_v18 }
0x1fac   :  { %v24555_v42 = vpop.eup %18885  ;;  %v11829_v45 = vmul.f32 1.442695, %v11805_v61  ;;  %v11788_v58 = vpop.xlane.xlu1 %11787  ;;  %11851 = vadd.xlane.f32.xlu1 %v24553_v60 }
0x1fad   :  { %18895 = vpow2.f32 %v11831_v62  ;;  %v11808_v55 = vsub.f32 %v24529_v10, %v11788_v58  ;;  %v11786_v30 = vpop.xlane.xlu0 %11785  ;;  %11849 = vadd.xlane.f32.xlu0 %v24555_v42 }
0x1fae   :  { %18897 = vpow2.f32 %v11829_v45  ;;  %v11807_v44 = vsub.f32 %v24532_v24, %v11786_v30 }
0x1faf   :  { %v24561_v17 = vpop.eup %18887  ;;  %v11835_v0 = vmul.f32 1.442695, %v11808_v55 }
0x1fb0   :  { %v24563_v41 = vpop.eup %18889  ;;  %v11833_v19 = vmul.f32 1.442695, %v11807_v44  ;;  %v11792_v39 = vpop.xlane.xlu1 %11791  ;;  %11855 = vadd.xlane.f32.xlu1 %v24561_v17 }
0x1fb1   :  { %18899 = vpow2.f32 %v11835_v0  ;;  %v11810_v38 = vsub.f32 %v24535_v40, %v11792_v39  ;;  %v11790_v16 = vpop.xlane.xlu0 %11789  ;;  %11853 = vadd.xlane.f32.xlu0 %v24563_v41 }
0x1fb2   :  { %18901 = vpow2.f32 %v11833_v19  ;;  %v11809_v10 = vsub.f32 %v24538_v52, %v11790_v16 }
0x1fb3   :  { %v24569_v56 = vpop.eup %18891  ;;  %v11839_v24 = vmul.f32 1.442695, %v11810_v38 }
0x1fb4   :  { %v24571_v12 = vpop.eup %18893  ;;  %v11837_v43 = vmul.f32 1.442695, %v11809_v10  ;;  %11859 = vadd.xlane.f32.xlu1 %v24569_v56  ;;  %v11796_v37 = vpop.xlane.xlu1 %11795 }
0x1fb5   :  { %18903 = vpow2.f32 %v11839_v24  ;;  %v11812_v48 = vsub.f32 %v24541_v54, %v11796_v37  ;;  %11857 = vadd.xlane.f32.xlu0 %v24571_v12  ;;  %v11794_v40 = vpop.xlane.xlu0 %11793 }
0x1fb6   :  { %18905 = vpow2.f32 %v11837_v43  ;;  %v11811_v50 = vsub.f32 %v24544_v9, %v11794_v40 }
0x1fb7   :  { %v24577_v32 = vpop.eup %18895  ;;  %v11843_v52 = vmul.f32 1.442695, %v11812_v48 }
0x1fb8   :  { %v24579_v15 = vpop.eup %18897  ;;  %v11841_v29 = vmul.f32 1.442695, %v11811_v50  ;;  %11863 = vadd.xlane.f32.xlu1 %v24577_v32 }
0x1fb9   :  { %18907 = vpow2.f32 %v11843_v52  ;;  %11861 = vadd.xlane.f32.xlu0 %v24579_v15 }
0x1fba   :  { %18909 = vpow2.f32 %v11841_v29 }
0x1fbb   :  { %v24583_v22 = vpop.eup %18899 }
0x1fbc   :  { %v24585_v54 = vpop.eup %18901  ;;  %11867 = vadd.xlane.f32.xlu1 %v24583_v22 }
0x1fbd   :  { %11865 = vadd.xlane.f32.xlu0 %v24585_v54 }
0x1fbf   :  { %v24589_v9 = vpop.eup %18903 }
0x1fc0   :  { %v24591_v36 = vpop.eup %18905  ;;  %11871 = vadd.xlane.f32.xlu1 %v24589_v9 }
0x1fc1   :  { %11869 = vadd.xlane.f32.xlu0 %v24591_v36 }
0x1fc3   :  { %v24595_v1 = vpop.eup %18907 }
0x1fc4   :  { %v24597_v26 = vpop.eup %18909  ;;  %11875 = vadd.xlane.f32.xlu1 %v24595_v1 }
0x1fc5   :  { %11873 = vadd.xlane.f32.xlu0 %v24597_v26 }
0x2035   :  { %v11848_v59 = vpop.xlane.xlu1 %11847 }
0x2036   :  { %18911 = vrcp.f32 %v11848_v59  ;;  %v11846_v4 = vpop.xlane.xlu0 %11845 }
0x2037   :  { %18913 = vrcp.f32 %v11846_v4 }
0x2039   :  { %v11852_v63 = vpop.xlane.xlu1 %11851 }
0x203a   :  { %18915 = vrcp.f32 %v11852_v63  ;;  %v11850_v28 = vpop.xlane.xlu0 %11849 }
0x203b   :  { %18917 = vrcp.f32 %v11850_v28 }
0x203d   :  { %v11856_v51 = vpop.xlane.xlu1 %11855 }
0x203e   :  { %18919 = vrcp.f32 %v11856_v51  ;;  %v11854_v53 = vpop.xlane.xlu0 %11853 }
0x203f   :  { %18921 = vrcp.f32 %v11854_v53 }
0x2040   :  { %v18912_v21 = vpop.eup %18911 }
0x2041   :  { %v18914_v3 = vpop.eup %18913  ;;  %v11860_v18 = vpop.xlane.xlu1 %11859  ;;  %v11894_v62 = vmul.f32 %v18912_v21, %v24547_v33 }
0x2042   :  { %18923 = vrcp.f32 %v11860_v18  ;;  %v11858_v8 = vpop.xlane.xlu0 %11857  ;;  %v11893_v61 = vmul.f32 %v18914_v3, %v24549_v11 }
0x2043   :  { %18925 = vrcp.f32 %v11858_v8 }
0x2044   :  { %v18916_v45 = vpop.eup %18915  ;;  %17047 = vmatprep.mubr.f32.mxu0 %v11893_v61 }
0x2045   :  { %v18918_v58 = vpop.eup %18917  ;;  %v11864_v55 = vpop.xlane.xlu1 %11863  ;;  %17048 = vmatmul.mubr.f32.vlgmr.msra.gmra.mrb[122].mxu0 %v11894_v62  ;;  %v11896_v0 = vmul.f32 %v18916_v45, %v24553_v60 }
0x2046   :  { %18927 = vrcp.f32 %v11864_v55  ;;  %v11862_v30 = vpop.xlane.xlu0 %11861  ;;  %v11895_v44 = vmul.f32 %v18918_v58, %v24555_v42 }
0x2047   :  { %18929 = vrcp.f32 %v11862_v30 }
0x2048   :  { %v18920_v19 = vpop.eup %18919  ;;  %17050 = vmatprep.mubr.f32.mxu0 %v11895_v44  ;;  %v24639_v44 = vld [vmem:[%s24928_s15] ss:$0 sm:$0xff] }
0x2049   :  { %v18922_v39 = vpop.eup %18921  ;;  %v11868_v38 = vpop.xlane.xlu1 %11867  ;;  %17051 = vmatmul.mubr.f32.gmra.mrb[124].mxu0 %v11896_v0  ;;  %v11898_v16 = vmul.f32 %v18920_v19, %v24561_v17 }
0x204a   :  { %18931 = vrcp.f32 %v11868_v38  ;;  %v11866_v33 = vpop.xlane.xlu0 %11865  ;;  %v11897_v11 = vmul.f32 %v18922_v39, %v24563_v41 }
0x204b   :  { %18933 = vrcp.f32 %v11866_v33 }
0x204c   :  { %v18924_v10 = vpop.eup %18923  ;;  %17053 = vmatprep.mubr.f32.mxu0 %v11897_v11 }
0x204d   :  { %v18926_v24 = vpop.eup %18925  ;;  %v11872_v43 = vpop.xlane.xlu1 %11871  ;;  %17054 = vmatmul.mubr.f32.gmra.mrb[126].mxu0 %v11898_v16  ;;  %v11900_v37 = vmul.f32 %v18924_v10, %v24569_v56 }
0x204e   :  { %18935 = vrcp.f32 %v11872_v43  ;;  %v11870_v60 = vpop.xlane.xlu0 %11869  ;;  %v11899_v42 = vmul.f32 %v18926_v24, %v24571_v12 }
0x204f   :  { %18937 = vrcp.f32 %v11870_v60 }
0x2050   :  { %v18928_v48 = vpop.eup %18927  ;;  %17056 = vmatprep.mubr.f32.mxu0 %v11899_v42 }
0x2051   :  { %v18930_v40 = vpop.eup %18929  ;;  %v11876_v50 = vpop.xlane.xlu1 %11875  ;;  %17057 = vmatmul.mubr.f32.gmra.mrb[128].mxu0 %v11900_v37  ;;  %v11902_v52 = vmul.f32 %v18928_v48, %v24577_v32 }
0x2052   :  { %18939 = vrcp.f32 %v11876_v50  ;;  %v11874_v17 = vpop.xlane.xlu0 %11873  ;;  %v11901_v41 = vmul.f32 %v18930_v40, %v24579_v15 }
0x2053   :  { %18941 = vrcp.f32 %v11874_v17 }
0x2054   :  { %v18932_v29 = vpop.eup %18931  ;;  %17059 = vmatprep.mubr.f32.mxu0 %v11901_v41 }
0x2055   :  { %v18934_v27 = vpop.eup %18933  ;;  %17060 = vmatmul.mubr.f32.gmra.mrb[130].mxu0 %v11902_v52  ;;  %v11904_v56 = vmul.f32 %v18932_v29, %v24583_v22 }
0x2056   :  { %v11903_v12 = vmul.f32 %v18934_v27, %v24585_v54 }
0x2058   :  { %v18936_v59 = vpop.eup %18935  ;;  %17062 = vmatprep.mubr.f32.mxu0 %v11903_v12 }
0x2059   :  { %v18938_v4 = vpop.eup %18937  ;;  %17063 = vmatmul.mubr.f32.gmra.mrb[132].mxu0 %v11904_v56  ;;  %v11906_v28 = vmul.f32 %v18936_v59, %v24589_v9 }
0x205a   :  { %v11905_v63 = vmul.f32 %v18938_v4, %v24591_v36 }
0x205c   :  { %v18940_v15 = vpop.eup %18939  ;;  %17065 = vmatprep.mubr.f32.mxu0 %v11905_v63 }
0x205d   :  { %v18942_v32 = vpop.eup %18941  ;;  %17066 = vmatmul.mubr.f32.gmra.mrb[134].mxu0 %v11906_v28  ;;  %v11908_v53 = vmul.f32 %v18940_v15, %v24595_v1 }
0x205e   :  { %v11907_v51 = vmul.f32 %v18942_v32, %v24597_v26 }
0x2060   :  { %17068 = vmatprep.mubr.f32.mxu0 %v11907_v51 }
0x2061   :  { %17069 = vmatmul.mubr.f32.gmra.mrb[136].mxu0 %v11908_v53 }
0x2118   :  { %v17049_v54 = vpop.f32.mrb[122].mxu0 }
0x2119   :  { %v11975_v22 = vpop.f32.mrb[123].mxu0 }
0x211a   :  { %17073 = vmatprep.mubr.msk.f32.mxu1 %vm2967_vm10, %v11975_v22 }
0x211b   :  { %17074 = vmatmul.mubr.msk.f32.vlgmr.msra.gmra.mrb[86].mxu1 %vm2967_vm10, %v17049_v54 }
0x211c   :  { %v17052_v21 = vpop.f32.mrb[124].mxu0 }
0x211d   :  { %v11985_v36 = vpop.f32.mrb[125].mxu0 }
0x211e   :  { %17076 = vmatprep.mubr.msk.f32.mxu1 %vm2967_vm10, %v11985_v36 }
0x211f   :  { %17077 = vmatmul.mubr.msk.f32.gmra.mrb[88].mxu1 %vm2967_vm10, %v17052_v21 }
0x2120   :  { %v17055_v9 = vpop.f32.mrb[126].mxu0 }
0x2121   :  { %v11995_v3 = vpop.f32.mrb[127].mxu0 }
0x2122   :  { %17079 = vmatprep.mubr.msk.f32.mxu1 %vm2967_vm10, %v11995_v3 }
0x2123   :  { %17080 = vmatmul.mubr.msk.f32.gmra.mrb[90].mxu1 %vm2967_vm10, %v17055_v9 }
0x2124   :  { %v17058_v1 = vpop.f32.mrb[128].mxu0 }
0x2125   :  { %v12005_v26 = vpop.f32.mrb[129].mxu0 }
0x2126   :  { %17082 = vmatprep.mubr.msk.f32.mxu1 %vm2967_vm10, %v12005_v26 }
0x2127   :  { %17083 = vmatmul.mubr.msk.f32.gmra.mrb[92].mxu1 %vm2967_vm10, %v17058_v1 }
0x2128   :  { %v17061_v18 = vpop.f32.mrb[130].mxu0 }
0x2129   :  { %v12015_v8 = vpop.f32.mrb[131].mxu0 }
0x212a   :  { %17085 = vmatprep.mubr.msk.f32.mxu1 %vm2967_vm10, %v12015_v8 }
0x212b   :  { %17086 = vmatmul.mubr.msk.f32.gmra.mrb[94].mxu1 %vm2967_vm10, %v17061_v18 }
0x212c   :  { %v17064_v61 = vpop.f32.mrb[132].mxu0 }
0x212d   :  { %v12025_v62 = vpop.f32.mrb[133].mxu0 }
0x212e   :  { %17088 = vmatprep.mubr.msk.f32.mxu1 %vm2967_vm10, %v12025_v62 }
0x212f   :  { %17089 = vmatmul.mubr.msk.f32.gmra.mrb[96].mxu1 %vm2967_vm10, %v17064_v61 }
0x2130   :  { %v17067_v45 = vpop.f32.mrb[134].mxu0 }
0x2131   :  { %v12035_v58 = vpop.f32.mrb[135].mxu0 }
0x2132   :  { %17091 = vmatprep.mubr.msk.f32.mxu1 %vm2967_vm10, %v12035_v58 }
0x2133   :  { %17092 = vmatmul.mubr.msk.f32.gmra.mrb[98].mxu1 %vm2967_vm10, %v17067_v45 }
0x2134   :  { %v17070_v55 = vpop.f32.mrb[136].mxu0 }
0x2135   :  { %v12045_v30 = vpop.f32.mrb[137].mxu0 }
0x2136   :  { %17094 = vmatprep.mubr.msk.f32.mxu1 %vm2967_vm10, %v12045_v30 }
0x2137   :  { %17095 = vmatmul.mubr.msk.f32.gmra.mrb[100].mxu1 %vm2967_vm10, %v17070_v55 }
0x21ee   :  { %v17075_v0 = vpop.f32.mrb[86].mxu1 }
0x21ef   :  { %v12273_v19 = vadd.f32 %v17075_v0, %v24639_v44  ;;  %v12170_v39 = vpop.f32.mrb[87].mxu1 }
0x21f0   :  { %v12272_v38 = vadd.f32 %v24639_v44, %v12170_v39 }
0x21f1   :  { %v24644_v33 = vadd.f32 %v12273_v19, %v21354_v34 }
0x21f2   :  { %v24647_v11 = vadd.f32 %v12272_v38, %v21351_v35  ;;  %v17078_v16 = vpop.f32.mrb[88].mxu1 }
0x21f3   :  { %v12275_v10 = vadd.f32 %v17078_v16, %v24639_v44  ;;  %v12180_v24 = vpop.f32.mrb[89].mxu1  ;;  %v12307_v43 = vsel %vm2029_vm5, %v24644_v33, 0.0 }
0x21f4   :  { %v12274_v60 = vadd.f32 %v24639_v44, %v12180_v24  ;;  %12308 = vadd.xlane.f32.xlu1 %v12307_v43  ;;  %v12304_v42 = vsel %vm2029_vm5, %v24647_v11, 0.0 }
0x21f5   :  { %v24656_v37 = vadd.f32 %v12275_v10, %v21374_v7  ;;  %12305 = vadd.xlane.f32.xlu0 %v12304_v42 }
0x21f6   :  { %v24659_v35 = vadd.f32 %v12274_v60, %v21371_v46  ;;  %v17081_v34 = vpop.f32.mrb[90].mxu1 }
0x21f7   :  { %v12277_v48 = vadd.f32 %v17081_v34, %v24639_v44  ;;  %v12190_v40 = vpop.f32.mrb[91].mxu1  ;;  %v12313_v50 = vsel %vm2029_vm5, %v24656_v37, 0.0 }
0x21f8   :  { %v12276_v17 = vadd.f32 %v24639_v44, %v12190_v40  ;;  %12314 = vadd.xlane.f32.xlu1 %v12313_v50  ;;  %v12310_v41 = vsel %vm2029_vm5, %v24659_v35, 0.0 }
0x21f9   :  { %v24668_v7 = vadd.f32 %v12277_v48, %v21394_v6  ;;  %12311 = vadd.xlane.f32.xlu0 %v12310_v41 }
0x21fa   :  { %v24671_v46 = vadd.f32 %v12276_v17, %v21391_v14  ;;  %v17084_v52 = vpop.f32.mrb[92].mxu1 }
0x21fb   :  { %v12279_v29 = vadd.f32 %v17084_v52, %v24639_v44  ;;  %v12200_v27 = vpop.f32.mrb[93].mxu1  ;;  %v12319_v12 = vsel %vm2029_vm5, %v24668_v7, 0.0 }
0x21fc   :  { %v12278_v56 = vadd.f32 %v24639_v44, %v12200_v27  ;;  %12320 = vadd.xlane.f32.xlu1 %v12319_v12  ;;  %v12316_v59 = vsel %vm2029_vm5, %v24671_v46, 0.0 }
0x21fd   :  { %v24680_v6 = vadd.f32 %v12279_v29, %v21408_v2  ;;  %12317 = vadd.xlane.f32.xlu0 %v12316_v59 }
0x21fe   :  { %v24683_v14 = vadd.f32 %v12278_v56, %v21405_v20  ;;  %v17087_v4 = vpop.f32.mrb[94].mxu1 }
0x21ff   :  { %v12281_v63 = vadd.f32 %v17087_v4, %v24639_v44  ;;  %v12210_v28 = vpop.f32.mrb[95].mxu1  ;;  %v12325_v15 = vsel %vm2029_vm5, %v24680_v6, 0.0 }
0x2200   :  { %v12280_v32 = vadd.f32 %v24639_v44, %v12210_v28  ;;  %12326 = vadd.xlane.f32.xlu1 %v12325_v15  ;;  %v12322_v51 = vsel %vm2029_vm5, %v24683_v14, 0.0 }
0x2201   :  { %v24692_v2 = vadd.f32 %v12281_v63, %v21422_v13  ;;  %12323 = vadd.xlane.f32.xlu0 %v12322_v51 }
0x2202   :  { %v24695_v20 = vadd.f32 %v12280_v32, %v21419_v23  ;;  %v17090_v53 = vpop.f32.mrb[96].mxu1 }
0x2203   :  { %v12283_v54 = vadd.f32 %v17090_v53, %v24639_v44  ;;  %v12220_v22 = vpop.f32.mrb[97].mxu1  ;;  %v12331_v21 = vsel %vm2029_vm5, %v24692_v2, 0.0 }
0x2204   :  { %v12282_v36 = vadd.f32 %v24639_v44, %v12220_v22  ;;  %12332 = vadd.xlane.f32.xlu1 %v12331_v21  ;;  %v12328_v9 = vsel %vm2029_vm5, %v24695_v20, 0.0 }
0x2205   :  { %v24704_v13 = vadd.f32 %v12283_v54, %v21436_v47  ;;  %12329 = vadd.xlane.f32.xlu0 %v12328_v9 }
0x2206   :  { %v24707_v23 = vadd.f32 %v12282_v36, %v21433_v57  ;;  %v17093_v3 = vpop.f32.mrb[98].mxu1 }
0x2207   :  { %v12285_v1 = vadd.f32 %v17093_v3, %v24639_v44  ;;  %v12230_v26 = vpop.f32.mrb[99].mxu1  ;;  %v12337_v18 = vsel %vm2029_vm5, %v24704_v13, 0.0 }
0x2208   :  { %v12284_v8 = vadd.f32 %v24639_v44, %v12230_v26  ;;  %12338 = vadd.xlane.f32.xlu1 %v12337_v18  ;;  %v12334_v61 = vsel %vm2029_vm5, %v24707_v23, 0.0 }
0x2209   :  { %v24716_v47 = vadd.f32 %v12285_v1, %v21450_v49  ;;  %12335 = vadd.xlane.f32.xlu0 %v12334_v61 }
0x220a   :  { %v24719_v57 = vadd.f32 %v12284_v8, %v21447_v31  ;;  %v17096_v62 = vpop.f32.mrb[100].mxu1 }
0x220b   :  { %v12287_v45 = vadd.f32 %v17096_v62, %v24639_v44  ;;  %v12240_v58 = vpop.f32.mrb[101].mxu1  ;;  %v12343_v55 = vsel %vm2029_vm5, %v24716_v47, 0.0 }
0x220c   :  { %v12286_v30 = vadd.f32 %v24639_v44, %v12240_v58  ;;  %12344 = vadd.xlane.f32.xlu1 %v12343_v55  ;;  %v12340_v0 = vsel %vm2029_vm5, %v24719_v57, 0.0 }
0x220d   :  { %v24728_v49 = vadd.f32 %v12287_v45, %v21464_v25  ;;  %12341 = vadd.xlane.f32.xlu0 %v12340_v0 }
0x220e   :  { %v24731_v31 = vadd.f32 %v12286_v30, %v21461_v5 }
0x220f   :  { %v12349_v19 = vsel %vm2029_vm5, %v24728_v49, 0.0 }
0x2210   :  { %12350 = vadd.xlane.f32.xlu1 %v12349_v19  ;;  %v12346_v39 = vsel %vm2029_vm5, %v24731_v31, 0.0 }
0x2211   :  { %12347 = vadd.xlane.f32.xlu0 %v12346_v39 }
0x2281   :  { %v12309_v44 = vpop.xlane.xlu1 %12308 }
0x2282   :  { %v12354_v38 = vmul.f32 0.015625, %v12309_v44  ;;  %v12306_v16 = vpop.xlane.xlu0 %12305 }
0x2283   :  { %v12353_v10 = vmul.f32 0.015625, %v12306_v16 }
0x2284   :  { %v24738_v24 = vsub.f32 %v24644_v33, %v12354_v38 }
0x2285   :  { %v24741_v25 = vsub.f32 %v24647_v11, %v12353_v10  ;;  %v12315_v5 = vpop.xlane.xlu1 %12314 }
0x2286   :  { %v12356_v43 = vmul.f32 0.015625, %v12315_v5  ;;  %v12312_v60 = vpop.xlane.xlu0 %12311  ;;  %v12386_v42 = vmul.f32 %v24738_v24, %v24738_v24 }
0x2287   :  { %v12355_v34 = vmul.f32 0.015625, %v12312_v60  ;;  %v12385_v48 = vmul.f32 %v24741_v25, %v24741_v25 }
0x2288   :  { %v24748_v40 = vsub.f32 %v24656_v37, %v12356_v43  ;;  %v12404_v50 = vsel %vm2029_vm5, %v12386_v42, 0.0 }
0x2289   :  { %v24752_v33 = vsub.f32 %v24659_v35, %v12355_v34  ;;  %v12321_v11 = vpop.xlane.xlu1 %12320  ;;  %12405 = vadd.xlane.f32.xlu1 %v12404_v50  ;;  %v12401_v17 = vsel %vm2029_vm5, %v12385_v48, 0.0 }
0x228a   :  { %v12358_v41 = vmul.f32 0.015625, %v12321_v11  ;;  %12402 = vadd.xlane.f32.xlu0 %v12401_v17  ;;  %v12318_v52 = vpop.xlane.xlu0 %12317  ;;  %v12388_v29 = vmul.f32 %v24748_v40, %v24748_v40 }
0x228b   :  { %v12357_v27 = vmul.f32 0.015625, %v12318_v52  ;;  %v12387_v37 = vmul.f32 %v24752_v33, %v24752_v33 }
0x228c   :  { %v24760_v12 = vsub.f32 %v24668_v7, %v12358_v41  ;;  %v12410_v35 = vsel %vm2029_vm5, %v12388_v29, 0.0 }
0x228d   :  { %v24764_v56 = vsub.f32 %v24671_v46, %v12357_v27  ;;  %v12327_v59 = vpop.xlane.xlu1 %12326  ;;  %12411 = vadd.xlane.f32.xlu1 %v12410_v35  ;;  %v12407_v4 = vsel %vm2029_vm5, %v12387_v37, 0.0 }
0x228e   :  { %v12360_v63 = vmul.f32 0.015625, %v12327_v59  ;;  %12408 = vadd.xlane.f32.xlu0 %v12407_v4  ;;  %v12324_v28 = vpop.xlane.xlu0 %12323  ;;  %v12390_v15 = vmul.f32 %v24760_v12, %v24760_v12 }
0x228f   :  { %v12359_v32 = vmul.f32 0.015625, %v12324_v28  ;;  %v12389_v7 = vmul.f32 %v24764_v56, %v24764_v56 }
0x2290   :  { %v24772_v51 = vsub.f32 %v24680_v6, %v12360_v63  ;;  %v12416_v46 = vsel %vm2029_vm5, %v12390_v15, 0.0 }
0x2291   :  { %v24776_v53 = vsub.f32 %v24683_v14, %v12359_v32  ;;  %v12333_v54 = vpop.xlane.xlu1 %12332  ;;  %12417 = vadd.xlane.f32.xlu1 %v12416_v46  ;;  %v12413_v22 = vsel %vm2029_vm5, %v12389_v7, 0.0 }
0x2292   :  { %v12362_v21 = vmul.f32 0.015625, %v12333_v54  ;;  %12414 = vadd.xlane.f32.xlu0 %v12413_v22  ;;  %v12330_v36 = vpop.xlane.xlu0 %12329  ;;  %v12392_v9 = vmul.f32 %v24772_v51, %v24772_v51 }
0x2293   :  { %v12361_v3 = vmul.f32 0.015625, %v12330_v36  ;;  %v12391_v6 = vmul.f32 %v24776_v53, %v24776_v53 }
0x2294   :  { %v24784_v1 = vsub.f32 %v24692_v2, %v12362_v21  ;;  %v12422_v14 = vsel %vm2029_vm5, %v12392_v9, 0.0 }
0x2295   :  { %v24788_v26 = vsub.f32 %v24695_v20, %v12361_v3  ;;  %v12339_v18 = vpop.xlane.xlu1 %12338  ;;  %12423 = vadd.xlane.f32.xlu1 %v12422_v14  ;;  %v12419_v8 = vsel %vm2029_vm5, %v12391_v6, 0.0 }
0x2296   :  { %v12364_v61 = vmul.f32 0.015625, %v12339_v18  ;;  %12420 = vadd.xlane.f32.xlu0 %v12419_v8  ;;  %v12336_v62 = vpop.xlane.xlu0 %12335  ;;  %v12394_v45 = vmul.f32 %v24784_v1, %v24784_v1 }
0x2297   :  { %v12363_v58 = vmul.f32 0.015625, %v12336_v62  ;;  %v12393_v2 = vmul.f32 %v24788_v26, %v24788_v26 }
0x2298   :  { %v24796_v55 = vsub.f32 %v24704_v13, %v12364_v61  ;;  %v12428_v20 = vsel %vm2029_vm5, %v12394_v45, 0.0 }
0x2299   :  { %v24800_v30 = vsub.f32 %v24707_v23, %v12363_v58  ;;  %v12345_v0 = vpop.xlane.xlu1 %12344  ;;  %12429 = vadd.xlane.f32.xlu1 %v12428_v20  ;;  %v12425_v19 = vsel %vm2029_vm5, %v12393_v2, 0.0 }
0x229a   :  { %v12366_v39 = vmul.f32 0.015625, %v12345_v0  ;;  %12426 = vadd.xlane.f32.xlu0 %v12425_v19  ;;  %v12342_v44 = vpop.xlane.xlu0 %12341  ;;  %v12396_v38 = vmul.f32 %v24796_v55, %v24796_v55 }
0x229b   :  { %v12365_v16 = vmul.f32 0.015625, %v12342_v44  ;;  %v12395_v13 = vmul.f32 %v24800_v30, %v24800_v30 }
0x229c   :  { %v24808_v10 = vsub.f32 %v24716_v47, %v12366_v39  ;;  %v12434_v23 = vsel %vm2029_vm5, %v12396_v38, 0.0 }
0x229d   :  { %v24812_v5 = vsub.f32 %v24719_v57, %v12365_v16  ;;  %12435 = vadd.xlane.f32.xlu1 %v12434_v23  ;;  %v12351_v43 = vpop.xlane.xlu1 %12350  ;;  %v12431_v60 = vsel %vm2029_vm5, %v12395_v13, 0.0 }
0x229e   :  { %v12368_v42 = vmul.f32 0.015625, %v12351_v43  ;;  %12432 = vadd.xlane.f32.xlu0 %v12431_v60  ;;  %v12348_v34 = vpop.xlane.xlu0 %12347  ;;  %v12398_v48 = vmul.f32 %v24808_v10, %v24808_v10 }
0x229f   :  { %v12367_v50 = vmul.f32 0.015625, %v12348_v34  ;;  %v12397_v47 = vmul.f32 %v24812_v5, %v24812_v5 }
0x22a0   :  { %v24820_v11 = vsub.f32 %v24728_v49, %v12368_v42  ;;  %v12440_v57 = vsel %vm2029_vm5, %v12398_v48, 0.0 }
0x22a1   :  { %v24824_v17 = vsub.f32 %v24731_v31, %v12367_v50  ;;  %12441 = vadd.xlane.f32.xlu1 %v12440_v57  ;;  %v12437_v41 = vsel %vm2029_vm5, %v12397_v47, 0.0 }
0x22a2   :  { %12438 = vadd.xlane.f32.xlu0 %v12437_v41  ;;  %v12400_v52 = vmul.f32 %v24820_v11, %v24820_v11 }
0x22a3   :  { %v12399_v29 = vmul.f32 %v24824_v17, %v24824_v17 }
0x22a4   :  { %v12446_v27 = vsel %vm2029_vm5, %v12400_v52, 0.0 }
0x22a5   :  { %12447 = vadd.xlane.f32.xlu1 %v12446_v27  ;;  %v12443_v49 = vsel %vm2029_vm5, %v12399_v29, 0.0 }
0x22a6   :  { %12444 = vadd.xlane.f32.xlu0 %v12443_v49 }
0x2316   :  { %v12406_v37 = vpop.xlane.xlu1 %12405 }
0x2317   :  { %v12450_v35 = vmul.f32 0.015625, %v12406_v37  ;;  %v12403_v31 = vpop.xlane.xlu0 %12402 }
0x2318   :  { %v12449_v59 = vmul.f32 0.015625, %v12403_v31 }
0x2319   :  { %v12466_v4 = vadd.f32 1e-05, %v12450_v35 }
0x231a   :  { %v12465_v63 = vadd.f32 1e-05, %v12449_v59  ;;  %v12412_v28 = vpop.xlane.xlu1 %12411 }
0x231b   :  { %18943 = vrsqrt.f32 %v12466_v4  ;;  %v12452_v15 = vmul.f32 0.015625, %v12412_v28  ;;  %v12409_v32 = vpop.xlane.xlu0 %12408 }
0x231c   :  { %18945 = vrsqrt.f32 %v12465_v63  ;;  %v12451_v7 = vmul.f32 0.015625, %v12409_v32 }
0x231d   :  { %v12468_v46 = vadd.f32 1e-05, %v12452_v15 }
0x231e   :  { %v12467_v54 = vadd.f32 1e-05, %v12451_v7  ;;  %v12418_v22 = vpop.xlane.xlu1 %12417 }
0x231f   :  { %18947 = vrsqrt.f32 %v12468_v46  ;;  %v12454_v21 = vmul.f32 0.015625, %v12418_v22  ;;  %v12415_v36 = vpop.xlane.xlu0 %12414 }
0x2320   :  { %18949 = vrsqrt.f32 %v12467_v54  ;;  %v12453_v9 = vmul.f32 0.015625, %v12415_v36 }
0x2321   :  { %v12470_v3 = vadd.f32 1e-05, %v12454_v21 }
0x2322   :  { %v12469_v6 = vadd.f32 1e-05, %v12453_v9  ;;  %v12424_v14 = vpop.xlane.xlu1 %12423 }
0x2323   :  { %18951 = vrsqrt.f32 %v12470_v3  ;;  %v12456_v18 = vmul.f32 0.015625, %v12424_v14  ;;  %v12421_v8 = vpop.xlane.xlu0 %12420 }
0x2324   :  { %18953 = vrsqrt.f32 %v12469_v6  ;;  %v12455_v61 = vmul.f32 0.015625, %v12421_v8 }
0x2325   :  { %v18944_v62 = vpop.eup %18943  ;;  %v12472_v45 = vadd.f32 1e-05, %v12456_v18 }
0x2326   :  { %v18946_v58 = vpop.eup %18945  ;;  %v12498_v2 = vmul.f32 %v18944_v62, %v24738_v24  ;;  %v12471_v20 = vadd.f32 1e-05, %v12455_v61  ;;  %v12430_v0 = vpop.xlane.xlu1 %12429 }
0x2327   :  { %v12497_v19 = vmul.f32 %v18946_v58, %v24741_v25  ;;  %18955 = vrsqrt.f32 %v12472_v45  ;;  %v12458_v39 = vmul.f32 0.015625, %v12430_v0  ;;  %v12427_v44 = vpop.xlane.xlu0 %12426 }
0x2328   :  { %12514 = vst.msk [vmem:[%s24929_s16 + $0x8] sm:$0xff] %vm2029_vm5, %v12498_v2  ;;  %18957 = vrsqrt.f32 %v12471_v20  ;;  %v12457_v38 = vmul.f32 0.015625, %v12427_v44 }
0x2329   :  { %v18948_v16 = vpop.eup %18947  ;;  %12513 = vst.msk [vmem:[%s24929_s16] sm:$0xff] %vm2029_vm5, %v12497_v19  ;;  %v12474_v24 = vadd.f32 1e-05, %v12458_v39 }
0x232a   :  { %v18950_v13 = vpop.eup %18949  ;;  %v12500_v25 = vmul.f32 %v18948_v16, %v24748_v40  ;;  %v12473_v23 = vadd.f32 1e-05, %v12457_v38  ;;  %v12436_v43 = vpop.xlane.xlu1 %12435 }
0x232b   :  { %v12499_v60 = vmul.f32 %v18950_v13, %v24752_v33  ;;  %18959 = vrsqrt.f32 %v12474_v24  ;;  %v12460_v42 = vmul.f32 0.015625, %v12436_v43  ;;  %v12433_v34 = vpop.xlane.xlu0 %12432 }
0x232c   :  { %12516 = vst.msk [vmem:[%s24929_s16 + $0x18] sm:$0xff] %vm2029_vm5, %v12500_v25  ;;  %18961 = vrsqrt.f32 %v12473_v23  ;;  %v12459_v48 = vmul.f32 0.015625, %v12433_v34 }
0x232d   :  { %v18952_v50 = vpop.eup %18951  ;;  %12515 = vst.msk [vmem:[%s24929_s16 + $0x10] sm:$0xff] %vm2029_vm5, %v12499_v60  ;;  %v12476_v40 = vadd.f32 1e-05, %v12460_v42 }
0x232e   :  { %v18954_v47 = vpop.eup %18953  ;;  %v12502_v33 = vmul.f32 %v18952_v50, %v24760_v12  ;;  %v12475_v57 = vadd.f32 1e-05, %v12459_v48  ;;  %v12442_v41 = vpop.xlane.xlu1 %12441 }
0x232f   :  { %v12501_v52 = vmul.f32 %v18954_v47, %v24764_v56  ;;  %18963 = vrsqrt.f32 %v12476_v40  ;;  %v12462_v29 = vmul.f32 0.015625, %v12442_v41  ;;  %v12439_v27 = vpop.xlane.xlu0 %12438 }
0x2330   :  { %12518 = vst.msk [vmem:[%s24929_s16 + $0x28] sm:$0xff] %vm2029_vm5, %v12502_v33  ;;  %18965 = vrsqrt.f32 %v12475_v57  ;;  %v12461_v49 = vmul.f32 0.015625, %v12439_v27 }
0x2331   :  { %v18956_v37 = vpop.eup %18955  ;;  %12517 = vst.msk [vmem:[%s24929_s16 + $0x20] sm:$0xff] %vm2029_vm5, %v12501_v52  ;;  %v12478_v12 = vadd.f32 1e-05, %v12462_v29 }
0x2332   :  { %v18958_v35 = vpop.eup %18957  ;;  %v12504_v56 = vmul.f32 %v18956_v37, %v24772_v51  ;;  %v12477_v31 = vadd.f32 1e-05, %v12461_v49  ;;  %v12448_v59 = vpop.xlane.xlu1 %12447 }
0x2333   :  { %v12503_v4 = vmul.f32 %v18958_v35, %v24776_v53  ;;  %18967 = vrsqrt.f32 %v12478_v12  ;;  %v12464_v63 = vmul.f32 0.015625, %v12448_v59  ;;  %v12445_v28 = vpop.xlane.xlu0 %12444 }
0x2334   :  { %12520 = vst.msk [vmem:[%s24929_s16 + $0x38] sm:$0xff] %vm2029_vm5, %v12504_v56  ;;  %18969 = vrsqrt.f32 %v12477_v31  ;;  %v12463_v15 = vmul.f32 0.015625, %v12445_v28 }
0x2335   :  { %v18960_v32 = vpop.eup %18959  ;;  %12519 = vst.msk [vmem:[%s24929_s16 + $0x30] sm:$0xff] %vm2029_vm5, %v12503_v4  ;;  %v12480_v51 = vadd.f32 1e-05, %v12464_v63 }
0x2336   :  { %v18962_v7 = vpop.eup %18961  ;;  %v12506_v53 = vmul.f32 %v18960_v32, %v24784_v1  ;;  %v12479_v46 = vadd.f32 1e-05, %v12463_v15 }
0x2337   :  { %v12505_v54 = vmul.f32 %v18962_v7, %v24788_v26  ;;  %18971 = vrsqrt.f32 %v12480_v51 }
0x2338   :  { %12522 = vst.msk [vmem:[%s24929_s16 + $0x48] sm:$0xff] %vm2029_vm5, %v12506_v53  ;;  %18973 = vrsqrt.f32 %v12479_v46 }
0x2339   :  { %v18964_v22 = vpop.eup %18963  ;;  %12521 = vst.msk [vmem:[%s24929_s16 + $0x40] sm:$0xff] %vm2029_vm5, %v12505_v54 }
0x233a   :  { %v18966_v21 = vpop.eup %18965  ;;  %v12508_v36 = vmul.f32 %v18964_v22, %v24796_v55 }
0x233b   :  { %v12507_v1 = vmul.f32 %v18966_v21, %v24800_v30 }
0x233c   :  { %12524 = vst.msk [vmem:[%s24929_s16 + $0x58] sm:$0xff] %vm2029_vm5, %v12508_v36 }
0x233d   :  { %v18968_v26 = vpop.eup %18967  ;;  %12523 = vst.msk [vmem:[%s24929_s16 + $0x50] sm:$0xff] %vm2029_vm5, %v12507_v1 }
0x233e   :  { %v18970_v9 = vpop.eup %18969  ;;  %v12510_v3 = vmul.f32 %v18968_v26, %v24808_v10 }
0x233f   :  { %v12509_v6 = vmul.f32 %v18970_v9, %v24812_v5 }
0x2340   :  { %12526 = vst.msk [vmem:[%s24929_s16 + $0x68] sm:$0xff] %vm2029_vm5, %v12510_v3 }
0x2341   :  { %v18972_v55 = vpop.eup %18971  ;;  %12525 = vst.msk [vmem:[%s24929_s16 + $0x60] sm:$0xff] %vm2029_vm5, %v12509_v6 }
0x2342   :  { %v18974_v30 = vpop.eup %18973  ;;  %v12512_v14 = vmul.f32 %v18972_v55, %v24820_v11 }
0x2343   :  { %v12511_v18 = vmul.f32 %v18974_v30, %v24824_v17 }
0x2344   :  { %12528 = vst.msk [vmem:[%s24929_s16 + $0x78] sm:$0xff] %vm2029_vm5, %v12512_v14 }
0x2345   :  { %12527 = vst.msk [vmem:[%s24929_s16 + $0x70] sm:$0xff] %vm2029_vm5, %v12511_v18 }

</bundles_post_ra>
